<compile_context>
chip_gen: v7x
topology: tpu7x:2x2x1
jax: 0.10.0
libtpu: 0.0.40
codegen_flags: <defaults>
</compile_context>

<pallas_src>
import functools

import jax
import jax.numpy as jnp
from jax.experimental import pallas as pl
from jax.experimental.pallas import tpu as pltpu


# ----------------------------- in-kernel helpers ---------------------------- #

def _conv5x5_relu(pad_ref, w_ref, b_ref, Bb, H, W, c_in, c_out):
    """5x5 'same' conv + bias + ReLU, reading a zero-padded VMEM ref.

    pad_ref: (Bb, H+4, W+4, c_in) zero-padded input (NHWC).
    w_ref:   (25*c_in, c_out), rows ordered (kh, kw, c_in)  [pre-packed in wrapper].
    b_ref:   (1, c_out).
    Returns (Bb*H*W, c_out) float32.
    """
    acc = jnp.zeros((Bb * H * W, c_out), jnp.float32)
    for i in range(5):
        for j in range(5):
            xs = pad_ref[:, i:i + H, j:j + W, :].reshape(Bb * H * W, c_in)
            k0 = (i * 5 + j) * c_in
            wt = w_ref[k0:k0 + c_in, :]
            if c_in == 1:
                # K=1 contraction: a broadcast multiply on the VPU beats an MXU pass.
                acc = acc + xs * wt.astype(jnp.float32)
            else:
                acc = acc + jnp.dot(xs.astype(jnp.bfloat16),
                                    wt.astype(jnp.bfloat16),
                                    preferred_element_type=jnp.float32)
    return jnp.maximum(acc + b_ref[...], 0.0)


def _convnet_kernel(x_ref, w1_ref, b1_ref, w2_ref, b2_ref, w3_ref, b3_ref,
                    w4_ref, b4_ref, out_ref,
                    pad1_ref, hp1_ref, pad2_ref, hp2_ref, flat_ref,
                    *, H, W, d0, d1):
    Bb = x_ref.shape[0]          # 1 image per grid step
    Ho, Wo = H // 2, W // 2
    Hq, Wq = Ho // 2, Wo // 2

    # ---- conv1 (5x5, pad=2, C_in=1) + bias + ReLU: patches built in VMEM ----
    pad1_ref[...] = jnp.zeros_like(pad1_ref)
    pad1_ref[:, 2:2 + H, 2:2 + W, :] = x_ref[...]
    y1 = _conv5x5_relu(pad1_ref, w1_ref, b1_ref, Bb, H, W, 1, d0)   # (Bb*H*W, d0)

    # ---- maxpool 2x2 #1, fused: result goes straight into conv2's padded input
    t1 = y1.reshape(Bb, Ho, 2, W, d0)
    hp1_ref[...] = jnp.maximum(t1[:, :, 0], t1[:, :, 1])            # (Bb, Ho, W, d0)
    pad2_ref[...] = jnp.zeros_like(pad2_ref)
    for wo in range(Wo):
        col = jnp.maximum(hp1_ref[:, :, 2 * wo:2 * wo + 1, :],
                          hp1_ref[:, :, 2 * wo + 1:2 * wo + 2, :])  # (Bb, Ho, 1, d0)
        pad2_ref[:, 2:2 + Ho, 2 + wo:3 + wo, :] = col

    # ---- conv2 (5x5, pad=2) + bias + ReLU ----
    y2 = _conv5x5_relu(pad2_ref, w2_ref, b2_ref, Bb, Ho, Wo, d0, d1)  # (Bb*Ho*Wo, d1)

    # ---- maxpool 2x2 #2 + flatten (torch NCHW order folded into fc1 row perm) ----
    t2 = y2.reshape(Bb, Hq, 2, Wo, d1)
    hp2_ref[...] = jnp.maximum(t2[:, :, 0], t2[:, :, 1])            # (Bb, Hq, Wo, d1)
    for hq_i in range(Hq):
        for wq_i in range(Wq):
            piece = jnp.maximum(hp2_ref[:, hq_i, 2 * wq_i, :],
                                hp2_ref[:, hq_i, 2 * wq_i + 1, :])  # (Bb, d1)
            g = (hq_i * Wq + wq_i) * d1
            flat_ref[:, g:g + d1] = piece

    # ---- fc1 + ReLU ----
    # TODO(synk): F.dropout is identity in eval mode; training-mode dropout not implemented.
    h1 = jnp.dot(flat_ref[...].astype(jnp.bfloat16), w3_ref[...],
                 preferred_element_type=jnp.float32)
    h1 = jnp.maximum(h1 + b3_ref[...], 0.0)                          # (Bb, 512)

    # ---- fc2 + log_softmax fused epilogue (f32) ----
    logits = jnp.dot(h1.astype(jnp.bfloat16), w4_ref[...],
                     preferred_element_type=jnp.float32) + b4_ref[...]   # (Bb, 10)
    m = jnp.max(logits, axis=-1, keepdims=True)
    z = logits - m
    lse = jnp.log(jnp.sum(jnp.exp(z), axis=-1, keepdims=True))
    out_ref[...] = (z - lse).reshape(Bb, 1, 10)


# ------------------------------- host wrappers ------------------------------ #

def convnet_forward(packed, x_nchw, *, depth, image_size):
    B = x_nchw.shape[0]
    d0, d1 = depth
    H = W = image_size
    F = (H // 4) * (W // 4) * d1
    # C_in == 1, so NCHW -> NHWC is a free reshape (no transpose / copy).
    x = x_nchw.astype(jnp.float32).reshape(B, H, W, 1)

    kernel = functools.partial(_convnet_kernel, H=H, W=W, d0=d0, d1=d1)
    full2d = lambda b: (0, 0)

    out = pl.pallas_call(
        kernel,
        out_shape=jax.ShapeDtypeStruct((B, 1, 10), jnp.float32),
        grid=(B,),
        in_specs=[
            pl.BlockSpec((1, H, W, 1), lambda b: (b, 0, 0, 0)),
            pl.BlockSpec((25, d0), full2d),
            pl.BlockSpec((1, d0), full2d),
            pl.BlockSpec((25 * d0, d1), full2d),
            pl.BlockSpec((1, d1), full2d),
            pl.BlockSpec((F, 512), full2d),
            pl.BlockSpec((1, 512), full2d),
            pl.BlockSpec((512, 10), full2d),
            pl.BlockSpec((1, 10), full2d),
        ],
        out_specs=pl.BlockSpec((1, 1, 10), lambda b: (b, 0, 0)),
        scratch_shapes=[
            pltpu.VMEM((1, H + 4, W + 4, 1), jnp.float32),            # padded conv1 input
            pltpu.VMEM((1, H // 2, W, d0), jnp.float32),              # H-pooled conv1 out
            pltpu.VMEM((1, H // 2 + 4, W // 2 + 4, d0), jnp.float32),  # padded conv2 input
            pltpu.VMEM((1, H // 4, W // 2, d1), jnp.float32),         # H-pooled conv2 out
            pltpu.VMEM((1, F), jnp.float32),                          # flattened features
        ],
        compiler_params=pltpu.CompilerParams(
            dimension_semantics=("parallel",),   # batch axis -> both TCs on v7x
        ),
    )(x, packed["w1"], packed["b1"], packed["w2"], packed["b2"],
      packed["w3"], packed["b3"], packed["w4"], packed["b4"])
    return out.reshape(B, 10)


def init_params(key, depth, image_size):
    """Deterministic torch-style uniform(-1/sqrt(fan_in), +1/sqrt(fan_in)) init."""
    d0, d1 = depth
    feat = (image_size // 4) * (image_size // 4) * d1
    keys = jax.random.split(key, 8)

    def u(k, shape, fan_in):
        bound = 1.0 / float(fan_in) ** 0.5
        return jax.random.uniform(k, shape, jnp.float32, -bound, bound)

    return {
        "conv1_w": u(keys[0], (d0, 1, 5, 5), 1 * 25),
        "conv1_b": u(keys[1], (d0,), 1 * 25),
        "conv2_w": u(keys[2], (d1, d0, 5, 5), d0 * 25),
        "conv2_b": u(keys[3], (d1,), d0 * 25),
        "fc1_w": u(keys[4], (512, feat), feat),   # torch Linear: (out, in)
        "fc1_b": u(keys[5], (512,), feat),
        "fc2_w": u(keys[6], (10, 512), 512),
        "fc2_b": u(keys[7], (10,), 512),
    }


def pack_params(params, depth, image_size):
    """One-time repack of torch-layout params into the kernel's layouts.

    * conv weights -> (kh*kw*c_in, c_out) rows in the kernel's tap order.
    * fc1 rows permuted so the kernel's NHWC flatten matches torch's NCHW view().
    * MXU operands (conv2/fc1/fc2 weights) stored as bf16; conv1 weights and all
      biases stay f32 (they are consumed by VPU/EUP epilogues).
    """
    d0, d1 = depth
    hq = wq = image_size // 4
    feat = hq * wq * d1
    bf16 = jnp.bfloat16
    w3 = (params["fc1_w"].reshape(512, d1, hq, wq)
          .transpose(2, 3, 1, 0).reshape(feat, 512).astype(bf16))
    return {
        "w1": jnp.transpose(params["conv1_w"], (2, 3, 1, 0))
                 .reshape(25, d0).astype(jnp.float32),
        "b1": params["conv1_b"].reshape(1, d0),
        "w2": jnp.transpose(params["conv2_w"], (2, 3, 1, 0))
                 .reshape(25 * d0, d1).astype(bf16),
        "b2": params["conv2_b"].reshape(1, d1),
        "w3": w3,
        "b3": params["fc1_b"].reshape(1, 512),
        "w4": jnp.transpose(params["fc2_w"], (1, 0)).astype(bf16),
        "b4": params["fc2_b"].reshape(1, 10),
    }


def reference_forward(params, x, depth, image_size):
    """Plain-JAX reference with torch semantics (eval mode)."""
    feat = (image_size // 4) * (image_size // 4) * depth[1]
    y = jax.lax.conv_general_dilated(
        x, params["conv1_w"], window_strides=(1, 1), padding=[(2, 2), (2, 2)],
        dimension_numbers=("NCHW", "OIHW", "NCHW"))
    y = jax.nn.relu(y + params["conv1_b"][None, :, None, None])
    y = jax.lax.reduce_window(y, -jnp.inf, jax.lax.max, (1, 1, 2, 2), (1, 1, 2, 2), "VALID")
    y = jax.lax.conv_general_dilated(
        y, params["conv2_w"], window_strides=(1, 1), padding=[(2, 2), (2, 2)],
        dimension_numbers=("NCHW", "OIHW", "NCHW"))
    y = jax.nn.relu(y + params["conv2_b"][None, :, None, None])
    y = jax.lax.reduce_window(y, -jnp.inf, jax.lax.max, (1, 1, 2, 2), (1, 1, 2, 2), "VALID")
    y = y.reshape(y.shape[0], feat)
    y = jax.nn.relu(y @ params["fc1_w"].T + params["fc1_b"])
    y = y @ params["fc2_w"].T + params["fc2_b"]
    return jax.nn.log_softmax(y, axis=-1)


# --------------------------------- main ------------------------------------ #

if __name__ == "__main__":
    depth = (4, 8)
    image_size = 16
    batch = 2

    key = jax.random.PRNGKey(0)
    k_params, k_x = jax.random.split(key)
    params = init_params(k_params, depth, image_size)
    packed = pack_params(params, depth, image_size)   # one-time layout prep, outside jit
    x = jax.random.normal(k_x, (batch, 1, image_size, image_size), jnp.float32)

    fwd = jax.jit(functools.partial(convnet_forward, depth=depth, image_size=image_size))
    out = jax.block_until_ready(fwd(packed, x))

    assert out.shape == (batch, 10), out.shape
    assert bool(jnp.all(jnp.isfinite(out)))
    # log-softmax rows should exponentiate-sum to 1.
    assert bool(jnp.allclose(jnp.sum(jnp.exp(out), axis=1), 1.0, atol=1e-4))
    # match the f32 reference (bf16 matmul operands -> loose tolerance).
    ref = reference_forward(params, x, depth, image_size)
    assert bool(jnp.allclose(out, ref, atol=5e-2, rtol=0.0)), \
        float(jnp.max(jnp.abs(out - ref)))
    print("KERNEL_OK")
</pallas_src>

<mosaic_0001>
module attributes {stable_mosaic.version = 11 : i64} {
  func.func @_convnet_kernel(%arg0: i32, %arg1: memref<1x16x16x1xf32, #tpu.memory_space<vmem>>, %arg2: memref<25x4xf32, #tpu.memory_space<vmem>>, %arg3: memref<1x4xf32, #tpu.memory_space<vmem>>, %arg4: memref<100x8xbf16, #tpu.memory_space<vmem>>, %arg5: memref<1x8xf32, #tpu.memory_space<vmem>>, %arg6: memref<128x512xbf16, #tpu.memory_space<vmem>>, %arg7: memref<1x512xf32, #tpu.memory_space<vmem>>, %arg8: memref<512x10xbf16, #tpu.memory_space<vmem>>, %arg9: memref<1x10xf32, #tpu.memory_space<vmem>>, %arg10: memref<1x1x10xf32, #tpu.memory_space<vmem>>, %arg11: memref<1x20x20x1xf32, #tpu.memory_space<vmem>>, %arg12: memref<1x8x16x4xf32, #tpu.memory_space<vmem>>, %arg13: memref<1x12x12x4xf32, #tpu.memory_space<vmem>>, %arg14: memref<1x4x8x8xf32, #tpu.memory_space<vmem>>, %arg15: memref<1x128xf32, #tpu.memory_space<vmem>>) attributes {dimension_semantics = [#tpu.dimension_semantics<parallel>], iteration_bounds = array<i64: 2>, scalar_prefetch = 0 : i64, scratch_operands = 5 : i64, tpu.core_type = #tpu.core_type<tc>, window_params = [{transform_indices = @transform_0, window_bounds = array<i64: 1, 16, 16, 1>}, {pipeline_mode = #tpu.pipeline_mode<synchronous>, transform_indices = @transform_1, window_bounds = array<i64: 25, 4>}, {pipeline_mode = #tpu.pipeline_mode<synchronous>, transform_indices = @transform_2, window_bounds = array<i64: 1, 4>}, {pipeline_mode = #tpu.pipeline_mode<synchronous>, transform_indices = @transform_3, window_bounds = array<i64: 100, 8>}, {pipeline_mode = #tpu.pipeline_mode<synchronous>, transform_indices = @transform_4, window_bounds = array<i64: 1, 8>}, {pipeline_mode = #tpu.pipeline_mode<synchronous>, transform_indices = @transform_5, window_bounds = array<i64: 128, 512>}, {pipeline_mode = #tpu.pipeline_mode<synchronous>, transform_indices = @transform_6, window_bounds = array<i64: 1, 512>}, {pipeline_mode = #tpu.pipeline_mode<synchronous>, transform_indices = @transform_7, window_bounds = array<i64: 512, 10>}, {pipeline_mode = #tpu.pipeline_mode<synchronous>, transform_indices = @transform_8, window_bounds = array<i64: 1, 10>}, {transform_indices = @transform_9, window_bounds = array<i64: 1, 1, 10>}]} {
    %cst = arith.constant 0.000000e+00 : f32
    %0 = vector.broadcast %cst : f32 to vector<1x20x20x1xf32>
    %c0 = arith.constant 0 : index
    %c0_0 = arith.constant 0 : index
    %c0_1 = arith.constant 0 : index
    %c0_2 = arith.constant 0 : index
    %1 = vector.load %arg11[%c0, %c0_0, %c0_1, %c0_2] : memref<1x20x20x1xf32, #tpu.memory_space<vmem>>, vector<1x20x20x1xf32>
    tpu.vector_store %arg11[%c0, %c0_0, %c0_1, %c0_2], %0 {strides = array<i32>} : memref<1x20x20x1xf32, #tpu.memory_space<vmem>>, vector<1x20x20x1xf32>,
    %c0_3 = arith.constant 0 : index
    %c0_4 = arith.constant 0 : index
    %c0_5 = arith.constant 0 : index
    %c0_6 = arith.constant 0 : index
    %2 = vector.load %arg1[%c0_3, %c0_4, %c0_5, %c0_6] : memref<1x16x16x1xf32, #tpu.memory_space<vmem>>, vector<1x16x16x1xf32>
    %c0_7 = arith.constant 0 : index
    %c2 = arith.constant 2 : index
    %c2_8 = arith.constant 2 : index
    %c0_9 = arith.constant 0 : index
    %3 = vector.load %arg11[%c0_7, %c2, %c2_8, %c0_9] : memref<1x20x20x1xf32, #tpu.memory_space<vmem>>, vector<1x16x16x1xf32>
    tpu.vector_store %arg11[%c0_7, %c2, %c2_8, %c0_9], %2 {strides = array<i32>} : memref<1x20x20x1xf32, #tpu.memory_space<vmem>>, vector<1x16x16x1xf32>,
    %cst_10 = arith.constant 0.000000e+00 : f32
    %4 = vector.broadcast %cst_10 : f32 to vector<256x4xf32>
    %c0_11 = arith.constant 0 : index
    %c0_12 = arith.constant 0 : index
    %c0_13 = arith.constant 0 : index
    %c0_14 = arith.constant 0 : index
    %5 = vector.load %arg11[%c0_11, %c0_12, %c0_13, %c0_14] : memref<1x20x20x1xf32, #tpu.memory_space<vmem>>, vector<1x16x16x1xf32>
    %6 = vector.shape_cast %5 : vector<1x16x16x1xf32> to vector<256x1xf32>
    %c0_15 = arith.constant 0 : index
    %c0_16 = arith.constant 0 : index
    %7 = vector.load %arg2[%c0_15, %c0_16] : memref<25x4xf32, #tpu.memory_space<vmem>>, vector<1x4xf32>
    %8 = vector.broadcast %6 : vector<256x1xf32> to vector<256x4xf32>
    %9 = vector.broadcast %7 : vector<1x4xf32> to vector<256x4xf32>
    %10 = arith.mulf %8, %9 : vector<256x4xf32>
    %11 = arith.addf %4, %10 : vector<256x4xf32>
    %c0_17 = arith.constant 0 : index
    %c0_18 = arith.constant 0 : index
    %c1 = arith.constant 1 : index
    %c0_19 = arith.constant 0 : index
    %12 = vector.load %arg11[%c0_17, %c0_18, %c1, %c0_19] : memref<1x20x20x1xf32, #tpu.memory_space<vmem>>, vector<1x16x16x1xf32>
    %13 = vector.shape_cast %12 : vector<1x16x16x1xf32> to vector<256x1xf32>
    %c1_20 = arith.constant 1 : index
    %c0_21 = arith.constant 0 : index
    %14 = vector.load %arg2[%c1_20, %c0_21] : memref<25x4xf32, #tpu.memory_space<vmem>>, vector<1x4xf32>
    %15 = vector.broadcast %13 : vector<256x1xf32> to vector<256x4xf32>
    %16 = vector.broadcast %14 : vector<1x4xf32> to vector<256x4xf32>
    %17 = arith.mulf %15, %16 : vector<256x4xf32>
    %18 = arith.addf %11, %17 : vector<256x4xf32>
    %c0_22 = arith.constant 0 : index
    %c0_23 = arith.constant 0 : index
    %c2_24 = arith.constant 2 : index
    %c0_25 = arith.constant 0 : index
    %19 = vector.load %arg11[%c0_22, %c0_23, %c2_24, %c0_25] : memref<1x20x20x1xf32, #tpu.memory_space<vmem>>, vector<1x16x16x1xf32>
    %20 = vector.shape_cast %19 : vector<1x16x16x1xf32> to vector<256x1xf32>
    %c2_26 = arith.constant 2 : index
    %c0_27 = arith.constant 0 : index
    %21 = vector.load %arg2[%c2_26, %c0_27] : memref<25x4xf32, #tpu.memory_space<vmem>>, vector<1x4xf32>
    %22 = vector.broadcast %20 : vector<256x1xf32> to vector<256x4xf32>
    %23 = vector.broadcast %21 : vector<1x4xf32> to vector<256x4xf32>
    %24 = arith.mulf %22, %23 : vector<256x4xf32>
    %25 = arith.addf %18, %24 : vector<256x4xf32>
    %c0_28 = arith.constant 0 : index
    %c0_29 = arith.constant 0 : index
    %c3 = arith.constant 3 : index
    %c0_30 = arith.constant 0 : index
    %26 = vector.load %arg11[%c0_28, %c0_29, %c3, %c0_30] : memref<1x20x20x1xf32, #tpu.memory_space<vmem>>, vector<1x16x16x1xf32>
    %27 = vector.shape_cast %26 : vector<1x16x16x1xf32> to vector<256x1xf32>
    %c3_31 = arith.constant 3 : index
    %c0_32 = arith.constant 0 : index
    %28 = vector.load %arg2[%c3_31, %c0_32] : memref<25x4xf32, #tpu.memory_space<vmem>>, vector<1x4xf32>
    %29 = vector.broadcast %27 : vector<256x1xf32> to vector<256x4xf32>
    %30 = vector.broadcast %28 : vector<1x4xf32> to vector<256x4xf32>
    %31 = arith.mulf %29, %30 : vector<256x4xf32>
    %32 = arith.addf %25, %31 : vector<256x4xf32>
    %c0_33 = arith.constant 0 : index
    %c0_34 = arith.constant 0 : index
    %c4 = arith.constant 4 : index
    %c0_35 = arith.constant 0 : index
    %33 = vector.load %arg11[%c0_33, %c0_34, %c4, %c0_35] : memref<1x20x20x1xf32, #tpu.memory_space<vmem>>, vector<1x16x16x1xf32>
    %34 = vector.shape_cast %33 : vector<1x16x16x1xf32> to vector<256x1xf32>
    %c4_36 = arith.constant 4 : index
    %c0_37 = arith.constant 0 : index
    %35 = vector.load %arg2[%c4_36, %c0_37] : memref<25x4xf32, #tpu.memory_space<vmem>>, vector<1x4xf32>
    %36 = vector.broadcast %34 : vector<256x1xf32> to vector<256x4xf32>
    %37 = vector.broadcast %35 : vector<1x4xf32> to vector<256x4xf32>
    %38 = arith.mulf %36, %37 : vector<256x4xf32>
    %39 = arith.addf %32, %38 : vector<256x4xf32>
    %c0_38 = arith.constant 0 : index
    %c1_39 = arith.constant 1 : index
    %c0_40 = arith.constant 0 : index
    %c0_41 = arith.constant 0 : index
    %40 = vector.load %arg11[%c0_38, %c1_39, %c0_40, %c0_41] : memref<1x20x20x1xf32, #tpu.memory_space<vmem>>, vector<1x16x16x1xf32>
    %41 = vector.shape_cast %40 : vector<1x16x16x1xf32> to vector<256x1xf32>
    %c5 = arith.constant 5 : index
    %c0_42 = arith.constant 0 : index
    %42 = vector.load %arg2[%c5, %c0_42] : memref<25x4xf32, #tpu.memory_space<vmem>>, vector<1x4xf32>
    %43 = vector.broadcast %41 : vector<256x1xf32> to vector<256x4xf32>
    %44 = vector.broadcast %42 : vector<1x4xf32> to vector<256x4xf32>
    %45 = arith.mulf %43, %44 : vector<256x4xf32>
    %46 = arith.addf %39, %45 : vector<256x4xf32>
    %c0_43 = arith.constant 0 : index
    %c1_44 = arith.constant 1 : index
    %c1_45 = arith.constant 1 : index
    %c0_46 = arith.constant 0 : index
    %47 = vector.load %arg11[%c0_43, %c1_44, %c1_45, %c0_46] : memref<1x20x20x1xf32, #tpu.memory_space<vmem>>, vector<1x16x16x1xf32>
    %48 = vector.shape_cast %47 : vector<1x16x16x1xf32> to vector<256x1xf32>
    %c6 = arith.constant 6 : index
    %c0_47 = arith.constant 0 : index
    %49 = vector.load %arg2[%c6, %c0_47] : memref<25x4xf32, #tpu.memory_space<vmem>>, vector<1x4xf32>
    %50 = vector.broadcast %48 : vector<256x1xf32> to vector<256x4xf32>
    %51 = vector.broadcast %49 : vector<1x4xf32> to vector<256x4xf32>
    %52 = arith.mulf %50, %51 : vector<256x4xf32>
    %53 = arith.addf %46, %52 : vector<256x4xf32>
    %c0_48 = arith.constant 0 : index
    %c1_49 = arith.constant 1 : index
    %c2_50 = arith.constant 2 : index
    %c0_51 = arith.constant 0 : index
    %54 = vector.load %arg11[%c0_48, %c1_49, %c2_50, %c0_51] : memref<1x20x20x1xf32, #tpu.memory_space<vmem>>, vector<1x16x16x1xf32>
    %55 = vector.shape_cast %54 : vector<1x16x16x1xf32> to vector<256x1xf32>
    %c7 = arith.constant 7 : index
    %c0_52 = arith.constant 0 : index
    %56 = vector.load %arg2[%c7, %c0_52] : memref<25x4xf32, #tpu.memory_space<vmem>>, vector<1x4xf32>
    %57 = vector.broadcast %55 : vector<256x1xf32> to vector<256x4xf32>
    %58 = vector.broadcast %56 : vector<1x4xf32> to vector<256x4xf32>
    %59 = arith.mulf %57, %58 : vector<256x4xf32>
    %60 = arith.addf %53, %59 : vector<256x4xf32>
    %c0_53 = arith.constant 0 : index
    %c1_54 = arith.constant 1 : index
    %c3_55 = arith.constant 3 : index
    %c0_56 = arith.constant 0 : index
    %61 = vector.load %arg11[%c0_53, %c1_54, %c3_55, %c0_56] : memref<1x20x20x1xf32, #tpu.memory_space<vmem>>, vector<1x16x16x1xf32>
    %62 = vector.shape_cast %61 : vector<1x16x16x1xf32> to vector<256x1xf32>
    %c8 = arith.constant 8 : index
    %c0_57 = arith.constant 0 : index
    %63 = vector.load %arg2[%c8, %c0_57] : memref<25x4xf32, #tpu.memory_space<vmem>>, vector<1x4xf32>
    %64 = vector.broadcast %62 : vector<256x1xf32> to vector<256x4xf32>
    %65 = vector.broadcast %63 : vector<1x4xf32> to vector<256x4xf32>
    %66 = arith.mulf %64, %65 : vector<256x4xf32>
    %67 = arith.addf %60, %66 : vector<256x4xf32>
    %c0_58 = arith.constant 0 : index
    %c1_59 = arith.constant 1 : index
    %c4_60 = arith.constant 4 : index
    %c0_61 = arith.constant 0 : index
    %68 = vector.load %arg11[%c0_58, %c1_59, %c4_60, %c0_61] : memref<1x20x20x1xf32, #tpu.memory_space<vmem>>, vector<1x16x16x1xf32>
    %69 = vector.shape_cast %68 : vector<1x16x16x1xf32> to vector<256x1xf32>
    %c9 = arith.constant 9 : index
    %c0_62 = arith.constant 0 : index
    %70 = vector.load %arg2[%c9, %c0_62] : memref<25x4xf32, #tpu.memory_space<vmem>>, vector<1x4xf32>
    %71 = vector.broadcast %69 : vector<256x1xf32> to vector<256x4xf32>
    %72 = vector.broadcast %70 : vector<1x4xf32> to vector<256x4xf32>
    %73 = arith.mulf %71, %72 : vector<256x4xf32>
    %74 = arith.addf %67, %73 : vector<256x4xf32>
    %c0_63 = arith.constant 0 : index
    %c2_64 = arith.constant 2 : index
    %c0_65 = arith.constant 0 : index
    %c0_66 = arith.constant 0 : index
    %75 = vector.load %arg11[%c0_63, %c2_64, %c0_65, %c0_66] : memref<1x20x20x1xf32, #tpu.memory_space<vmem>>, vector<1x16x16x1xf32>
    %76 = vector.shape_cast %75 : vector<1x16x16x1xf32> to vector<256x1xf32>
    %c10 = arith.constant 10 : index
    %c0_67 = arith.constant 0 : index
    %77 = vector.load %arg2[%c10, %c0_67] : memref<25x4xf32, #tpu.memory_space<vmem>>, vector<1x4xf32>
    %78 = vector.broadcast %76 : vector<256x1xf32> to vector<256x4xf32>
    %79 = vector.broadcast %77 : vector<1x4xf32> to vector<256x4xf32>
    %80 = arith.mulf %78, %79 : vector<256x4xf32>
    %81 = arith.addf %74, %80 : vector<256x4xf32>
    %c0_68 = arith.constant 0 : index
    %c2_69 = arith.constant 2 : index
    %c1_70 = arith.constant 1 : index
    %c0_71 = arith.constant 0 : index
    %82 = vector.load %arg11[%c0_68, %c2_69, %c1_70, %c0_71] : memref<1x20x20x1xf32, #tpu.memory_space<vmem>>, vector<1x16x16x1xf32>
    %83 = vector.shape_cast %82 : vector<1x16x16x1xf32> to vector<256x1xf32>
    %c11 = arith.constant 11 : index
    %c0_72 = arith.constant 0 : index
    %84 = vector.load %arg2[%c11, %c0_72] : memref<25x4xf32, #tpu.memory_space<vmem>>, vector<1x4xf32>
    %85 = vector.broadcast %83 : vector<256x1xf32> to vector<256x4xf32>
    %86 = vector.broadcast %84 : vector<1x4xf32> to vector<256x4xf32>
    %87 = arith.mulf %85, %86 : vector<256x4xf32>
    %88 = arith.addf %81, %87 : vector<256x4xf32>
    %c0_73 = arith.constant 0 : index
    %c2_74 = arith.constant 2 : index
    %c2_75 = arith.constant 2 : index
    %c0_76 = arith.constant 0 : index
    %89 = vector.load %arg11[%c0_73, %c2_74, %c2_75, %c0_76] : memref<1x20x20x1xf32, #tpu.memory_space<vmem>>, vector<1x16x16x1xf32>
    %90 = vector.shape_cast %89 : vector<1x16x16x1xf32> to vector<256x1xf32>
    %c12 = arith.constant 12 : index
    %c0_77 = arith.constant 0 : index
    %91 = vector.load %arg2[%c12, %c0_77] : memref<25x4xf32, #tpu.memory_space<vmem>>, vector<1x4xf32>
    %92 = vector.broadcast %90 : vector<256x1xf32> to vector<256x4xf32>
    %93 = vector.broadcast %91 : vector<1x4xf32> to vector<256x4xf32>
    %94 = arith.mulf %92, %93 : vector<256x4xf32>
    %95 = arith.addf %88, %94 : vector<256x4xf32>
    %c0_78 = arith.constant 0 : index
    %c2_79 = arith.constant 2 : index
    %c3_80 = arith.constant 3 : index
    %c0_81 = arith.constant 0 : index
    %96 = vector.load %arg11[%c0_78, %c2_79, %c3_80, %c0_81] : memref<1x20x20x1xf32, #tpu.memory_space<vmem>>, vector<1x16x16x1xf32>
    %97 = vector.shape_cast %96 : vector<1x16x16x1xf32> to vector<256x1xf32>
    %c13 = arith.constant 13 : index
    %c0_82 = arith.constant 0 : index
    %98 = vector.load %arg2[%c13, %c0_82] : memref<25x4xf32, #tpu.memory_space<vmem>>, vector<1x4xf32>
    %99 = vector.broadcast %97 : vector<256x1xf32> to vector<256x4xf32>
    %100 = vector.broadcast %98 : vector<1x4xf32> to vector<256x4xf32>
    %101 = arith.mulf %99, %100 : vector<256x4xf32>
    %102 = arith.addf %95, %101 : vector<256x4xf32>
    %c0_83 = arith.constant 0 : index
    %c2_84 = arith.constant 2 : index
    %c4_85 = arith.constant 4 : index
    %c0_86 = arith.constant 0 : index
    %103 = vector.load %arg11[%c0_83, %c2_84, %c4_85, %c0_86] : memref<1x20x20x1xf32, #tpu.memory_space<vmem>>, vector<1x16x16x1xf32>
    %104 = vector.shape_cast %103 : vector<1x16x16x1xf32> to vector<256x1xf32>
    %c14 = arith.constant 14 : index
    %c0_87 = arith.constant 0 : index
    %105 = vector.load %arg2[%c14, %c0_87] : memref<25x4xf32, #tpu.memory_space<vmem>>, vector<1x4xf32>
    %106 = vector.broadcast %104 : vector<256x1xf32> to vector<256x4xf32>
    %107 = vector.broadcast %105 : vector<1x4xf32> to vector<256x4xf32>
    %108 = arith.mulf %106, %107 : vector<256x4xf32>
    %109 = arith.addf %102, %108 : vector<256x4xf32>
    %c0_88 = arith.constant 0 : index
    %c3_89 = arith.constant 3 : index
    %c0_90 = arith.constant 0 : index
    %c0_91 = arith.constant 0 : index
    %110 = vector.load %arg11[%c0_88, %c3_89, %c0_90, %c0_91] : memref<1x20x20x1xf32, #tpu.memory_space<vmem>>, vector<1x16x16x1xf32>
    %111 = vector.shape_cast %110 : vector<1x16x16x1xf32> to vector<256x1xf32>
    %c15 = arith.constant 15 : index
    %c0_92 = arith.constant 0 : index
    %112 = vector.load %arg2[%c15, %c0_92] : memref<25x4xf32, #tpu.memory_space<vmem>>, vector<1x4xf32>
    %113 = vector.broadcast %111 : vector<256x1xf32> to vector<256x4xf32>
    %114 = vector.broadcast %112 : vector<1x4xf32> to vector<256x4xf32>
    %115 = arith.mulf %113, %114 : vector<256x4xf32>
    %116 = arith.addf %109, %115 : vector<256x4xf32>
    %c0_93 = arith.constant 0 : index
    %c3_94 = arith.constant 3 : index
    %c1_95 = arith.constant 1 : index
    %c0_96 = arith.constant 0 : index
    %117 = vector.load %arg11[%c0_93, %c3_94, %c1_95, %c0_96] : memref<1x20x20x1xf32, #tpu.memory_space<vmem>>, vector<1x16x16x1xf32>
    %118 = vector.shape_cast %117 : vector<1x16x16x1xf32> to vector<256x1xf32>
    %c16 = arith.constant 16 : index
    %c0_97 = arith.constant 0 : index
    %119 = vector.load %arg2[%c16, %c0_97] : memref<25x4xf32, #tpu.memory_space<vmem>>, vector<1x4xf32>
    %120 = vector.broadcast %118 : vector<256x1xf32> to vector<256x4xf32>
    %121 = vector.broadcast %119 : vector<1x4xf32> to vector<256x4xf32>
    %122 = arith.mulf %120, %121 : vector<256x4xf32>
    %123 = arith.addf %116, %122 : vector<256x4xf32>
    %c0_98 = arith.constant 0 : index
    %c3_99 = arith.constant 3 : index
    %c2_100 = arith.constant 2 : index
    %c0_101 = arith.constant 0 : index
    %124 = vector.load %arg11[%c0_98, %c3_99, %c2_100, %c0_101] : memref<1x20x20x1xf32, #tpu.memory_space<vmem>>, vector<1x16x16x1xf32>
    %125 = vector.shape_cast %124 : vector<1x16x16x1xf32> to vector<256x1xf32>
    %c17 = arith.constant 17 : index
    %c0_102 = arith.constant 0 : index
    %126 = vector.load %arg2[%c17, %c0_102] : memref<25x4xf32, #tpu.memory_space<vmem>>, vector<1x4xf32>
    %127 = vector.broadcast %125 : vector<256x1xf32> to vector<256x4xf32>
    %128 = vector.broadcast %126 : vector<1x4xf32> to vector<256x4xf32>
    %129 = arith.mulf %127, %128 : vector<256x4xf32>
    %130 = arith.addf %123, %129 : vector<256x4xf32>
    %c0_103 = arith.constant 0 : index
    %c3_104 = arith.constant 3 : index
    %c3_105 = arith.constant 3 : index
    %c0_106 = arith.constant 0 : index
    %131 = vector.load %arg11[%c0_103, %c3_104, %c3_105, %c0_106] : memref<1x20x20x1xf32, #tpu.memory_space<vmem>>, vector<1x16x16x1xf32>
    %132 = vector.shape_cast %131 : vector<1x16x16x1xf32> to vector<256x1xf32>
    %c18 = arith.constant 18 : index
    %c0_107 = arith.constant 0 : index
    %133 = vector.load %arg2[%c18, %c0_107] : memref<25x4xf32, #tpu.memory_space<vmem>>, vector<1x4xf32>
    %134 = vector.broadcast %132 : vector<256x1xf32> to vector<256x4xf32>
    %135 = vector.broadcast %133 : vector<1x4xf32> to vector<256x4xf32>
    %136 = arith.mulf %134, %135 : vector<256x4xf32>
    %137 = arith.addf %130, %136 : vector<256x4xf32>
    %c0_108 = arith.constant 0 : index
    %c3_109 = arith.constant 3 : index
    %c4_110 = arith.constant 4 : index
    %c0_111 = arith.constant 0 : index
    %138 = vector.load %arg11[%c0_108, %c3_109, %c4_110, %c0_111] : memref<1x20x20x1xf32, #tpu.memory_space<vmem>>, vector<1x16x16x1xf32>
    %139 = vector.shape_cast %138 : vector<1x16x16x1xf32> to vector<256x1xf32>
    %c19 = arith.constant 19 : index
    %c0_112 = arith.constant 0 : index
    %140 = vector.load %arg2[%c19, %c0_112] : memref<25x4xf32, #tpu.memory_space<vmem>>, vector<1x4xf32>
    %141 = vector.broadcast %139 : vector<256x1xf32> to vector<256x4xf32>
    %142 = vector.broadcast %140 : vector<1x4xf32> to vector<256x4xf32>
    %143 = arith.mulf %141, %142 : vector<256x4xf32>
    %144 = arith.addf %137, %143 : vector<256x4xf32>
    %c0_113 = arith.constant 0 : index
    %c4_114 = arith.constant 4 : index
    %c0_115 = arith.constant 0 : index
    %c0_116 = arith.constant 0 : index
    %145 = vector.load %arg11[%c0_113, %c4_114, %c0_115, %c0_116] : memref<1x20x20x1xf32, #tpu.memory_space<vmem>>, vector<1x16x16x1xf32>
    %146 = vector.shape_cast %145 : vector<1x16x16x1xf32> to vector<256x1xf32>
    %c20 = arith.constant 20 : index
    %c0_117 = arith.constant 0 : index
    %147 = vector.load %arg2[%c20, %c0_117] : memref<25x4xf32, #tpu.memory_space<vmem>>, vector<1x4xf32>
    %148 = vector.broadcast %146 : vector<256x1xf32> to vector<256x4xf32>
    %149 = vector.broadcast %147 : vector<1x4xf32> to vector<256x4xf32>
    %150 = arith.mulf %148, %149 : vector<256x4xf32>
    %151 = arith.addf %144, %150 : vector<256x4xf32>
    %c0_118 = arith.constant 0 : index
    %c4_119 = arith.constant 4 : index
    %c1_120 = arith.constant 1 : index
    %c0_121 = arith.constant 0 : index
    %152 = vector.load %arg11[%c0_118, %c4_119, %c1_120, %c0_121] : memref<1x20x20x1xf32, #tpu.memory_space<vmem>>, vector<1x16x16x1xf32>
    %153 = vector.shape_cast %152 : vector<1x16x16x1xf32> to vector<256x1xf32>
    %c21 = arith.constant 21 : index
    %c0_122 = arith.constant 0 : index
    %154 = vector.load %arg2[%c21, %c0_122] : memref<25x4xf32, #tpu.memory_space<vmem>>, vector<1x4xf32>
    %155 = vector.broadcast %153 : vector<256x1xf32> to vector<256x4xf32>
    %156 = vector.broadcast %154 : vector<1x4xf32> to vector<256x4xf32>
    %157 = arith.mulf %155, %156 : vector<256x4xf32>
    %158 = arith.addf %151, %157 : vector<256x4xf32>
    %c0_123 = arith.constant 0 : index
    %c4_124 = arith.constant 4 : index
    %c2_125 = arith.constant 2 : index
    %c0_126 = arith.constant 0 : index
    %159 = vector.load %arg11[%c0_123, %c4_124, %c2_125, %c0_126] : memref<1x20x20x1xf32, #tpu.memory_space<vmem>>, vector<1x16x16x1xf32>
    %160 = vector.shape_cast %159 : vector<1x16x16x1xf32> to vector<256x1xf32>
    %c22 = arith.constant 22 : index
    %c0_127 = arith.constant 0 : index
    %161 = vector.load %arg2[%c22, %c0_127] : memref<25x4xf32, #tpu.memory_space<vmem>>, vector<1x4xf32>
    %162 = vector.broadcast %160 : vector<256x1xf32> to vector<256x4xf32>
    %163 = vector.broadcast %161 : vector<1x4xf32> to vector<256x4xf32>
    %164 = arith.mulf %162, %163 : vector<256x4xf32>
    %165 = arith.addf %158, %164 : vector<256x4xf32>
    %c0_128 = arith.constant 0 : index
    %c4_129 = arith.constant 4 : index
    %c3_130 = arith.constant 3 : index
    %c0_131 = arith.constant 0 : index
    %166 = vector.load %arg11[%c0_128, %c4_129, %c3_130, %c0_131] : memref<1x20x20x1xf32, #tpu.memory_space<vmem>>, vector<1x16x16x1xf32>
    %167 = vector.shape_cast %166 : vector<1x16x16x1xf32> to vector<256x1xf32>
    %c23 = arith.constant 23 : index
    %c0_132 = arith.constant 0 : index
    %168 = vector.load %arg2[%c23, %c0_132] : memref<25x4xf32, #tpu.memory_space<vmem>>, vector<1x4xf32>
    %169 = vector.broadcast %167 : vector<256x1xf32> to vector<256x4xf32>
    %170 = vector.broadcast %168 : vector<1x4xf32> to vector<256x4xf32>
    %171 = arith.mulf %169, %170 : vector<256x4xf32>
    %172 = arith.addf %165, %171 : vector<256x4xf32>
    %c0_133 = arith.constant 0 : index
    %c4_134 = arith.constant 4 : index
    %c4_135 = arith.constant 4 : index
    %c0_136 = arith.constant 0 : index
    %173 = vector.load %arg11[%c0_133, %c4_134, %c4_135, %c0_136] : memref<1x20x20x1xf32, #tpu.memory_space<vmem>>, vector<1x16x16x1xf32>
    %174 = vector.shape_cast %173 : vector<1x16x16x1xf32> to vector<256x1xf32>
    %c24 = arith.constant 24 : index
    %c0_137 = arith.constant 0 : index
    %175 = vector.load %arg2[%c24, %c0_137] : memref<25x4xf32, #tpu.memory_space<vmem>>, vector<1x4xf32>
    %176 = vector.broadcast %174 : vector<256x1xf32> to vector<256x4xf32>
    %177 = vector.broadcast %175 : vector<1x4xf32> to vector<256x4xf32>
    %178 = arith.mulf %176, %177 : vector<256x4xf32>
    %179 = arith.addf %172, %178 : vector<256x4xf32>
    %c0_138 = arith.constant 0 : index
    %c0_139 = arith.constant 0 : index
    %180 = vector.load %arg3[%c0_138, %c0_139] : memref<1x4xf32, #tpu.memory_space<vmem>>, vector<1x4xf32>
    %181 = vector.broadcast %180 : vector<1x4xf32> to vector<256x4xf32>
    %182 = arith.addf %179, %181 : vector<256x4xf32>
    %cst_140 = arith.constant 0.000000e+00 : f32
    %183 = vector.broadcast %cst_140 : f32 to vector<256x4xf32>
    %184 = arith.maximumf %182, %183 : vector<256x4xf32>
    %185 = vector.shape_cast %184 : vector<256x4xf32> to vector<1x8x2x16x4xf32>
    %186 = vector.extract_strided_slice %185 {offsets = [0, 0, 0, 0, 0], sizes = [1, 8, 1, 16, 4], strides = [1, 1, 1, 1, 1]} : vector<1x8x2x16x4xf32> to vector<1x8x1x16x4xf32>
    %187 = vector.shape_cast %186 : vector<1x8x1x16x4xf32> to vector<1x8x16x4xf32>
    %188 = vector.extract_strided_slice %185 {offsets = [0, 0, 1, 0, 0], sizes = [1, 8, 1, 16, 4], strides = [1, 1, 1, 1, 1]} : vector<1x8x2x16x4xf32> to vector<1x8x1x16x4xf32>
    %189 = vector.shape_cast %188 : vector<1x8x1x16x4xf32> to vector<1x8x16x4xf32>
    %190 = arith.maximumf %187, %189 : vector<1x8x16x4xf32>
    %c0_141 = arith.constant 0 : index
    %c0_142 = arith.constant 0 : index
    %c0_143 = arith.constant 0 : index
    %c0_144 = arith.constant 0 : index
    %191 = vector.load %arg12[%c0_141, %c0_142, %c0_143, %c0_144] : memref<1x8x16x4xf32, #tpu.memory_space<vmem>>, vector<1x8x16x4xf32>
    tpu.vector_store %arg12[%c0_141, %c0_142, %c0_143, %c0_144], %190 {strides = array<i32>} : memref<1x8x16x4xf32, #tpu.memory_space<vmem>>, vector<1x8x16x4xf32>,
    %cst_145 = arith.constant 0.000000e+00 : f32
    %192 = vector.broadcast %cst_145 : f32 to vector<1x12x12x4xf32>
    %c0_146 = arith.constant 0 : index
    %c0_147 = arith.constant 0 : index
    %c0_148 = arith.constant 0 : index
    %c0_149 = arith.constant 0 : index
    %193 = vector.load %arg13[%c0_146, %c0_147, %c0_148, %c0_149] : memref<1x12x12x4xf32, #tpu.memory_space<vmem>>, vector<1x12x12x4xf32>
    tpu.vector_store %arg13[%c0_146, %c0_147, %c0_148, %c0_149], %192 {strides = array<i32>} : memref<1x12x12x4xf32, #tpu.memory_space<vmem>>, vector<1x12x12x4xf32>,
    %c0_150 = arith.constant 0 : index
    %c0_151 = arith.constant 0 : index
    %c0_152 = arith.constant 0 : index
    %c0_153 = arith.constant 0 : index
    %194 = vector.load %arg12[%c0_150, %c0_151, %c0_152, %c0_153] : memref<1x8x16x4xf32, #tpu.memory_space<vmem>>, vector<1x8x1x4xf32>
    %c0_154 = arith.constant 0 : index
    %c0_155 = arith.constant 0 : index
    %c1_156 = arith.constant 1 : index
    %c0_157 = arith.constant 0 : index
    %195 = vector.load %arg12[%c0_154, %c0_155, %c1_156, %c0_157] : memref<1x8x16x4xf32, #tpu.memory_space<vmem>>, vector<1x8x1x4xf32>
    %196 = arith.maximumf %194, %195 : vector<1x8x1x4xf32>
    %c0_158 = arith.constant 0 : index
    %c2_159 = arith.constant 2 : index
    %c2_160 = arith.constant 2 : index
    %c0_161 = arith.constant 0 : index
    %197 = vector.load %arg13[%c0_158, %c2_159, %c2_160, %c0_161] : memref<1x12x12x4xf32, #tpu.memory_space<vmem>>, vector<1x8x1x4xf32>
    tpu.vector_store %arg13[%c0_158, %c2_159, %c2_160, %c0_161], %196 {strides = array<i32>} : memref<1x12x12x4xf32, #tpu.memory_space<vmem>>, vector<1x8x1x4xf32>,
    %c0_162 = arith.constant 0 : index
    %c0_163 = arith.constant 0 : index
    %c2_164 = arith.constant 2 : index
    %c0_165 = arith.constant 0 : index
    %198 = vector.load %arg12[%c0_162, %c0_163, %c2_164, %c0_165] : memref<1x8x16x4xf32, #tpu.memory_space<vmem>>, vector<1x8x1x4xf32>
    %c0_166 = arith.constant 0 : index
    %c0_167 = arith.constant 0 : index
    %c3_168 = arith.constant 3 : index
    %c0_169 = arith.constant 0 : index
    %199 = vector.load %arg12[%c0_166, %c0_167, %c3_168, %c0_169] : memref<1x8x16x4xf32, #tpu.memory_space<vmem>>, vector<1x8x1x4xf32>
    %200 = arith.maximumf %198, %199 : vector<1x8x1x4xf32>
    %c0_170 = arith.constant 0 : index
    %c2_171 = arith.constant 2 : index
    %c3_172 = arith.constant 3 : index
    %c0_173 = arith.constant 0 : index
    %201 = vector.load %arg13[%c0_170, %c2_171, %c3_172, %c0_173] : memref<1x12x12x4xf32, #tpu.memory_space<vmem>>, vector<1x8x1x4xf32>
    tpu.vector_store %arg13[%c0_170, %c2_171, %c3_172, %c0_173], %200 {strides = array<i32>} : memref<1x12x12x4xf32, #tpu.memory_space<vmem>>, vector<1x8x1x4xf32>,
    %c0_174 = arith.constant 0 : index
    %c0_175 = arith.constant 0 : index
    %c4_176 = arith.constant 4 : index
    %c0_177 = arith.constant 0 : index
    %202 = vector.load %arg12[%c0_174, %c0_175, %c4_176, %c0_177] : memref<1x8x16x4xf32, #tpu.memory_space<vmem>>, vector<1x8x1x4xf32>
    %c0_178 = arith.constant 0 : index
    %c0_179 = arith.constant 0 : index
    %c5_180 = arith.constant 5 : index
    %c0_181 = arith.constant 0 : index
    %203 = vector.load %arg12[%c0_178, %c0_179, %c5_180, %c0_181] : memref<1x8x16x4xf32, #tpu.memory_space<vmem>>, vector<1x8x1x4xf32>
    %204 = arith.maximumf %202, %203 : vector<1x8x1x4xf32>
    %c0_182 = arith.constant 0 : index
    %c2_183 = arith.constant 2 : index
    %c4_184 = arith.constant 4 : index
    %c0_185 = arith.constant 0 : index
    %205 = vector.load %arg13[%c0_182, %c2_183, %c4_184, %c0_185] : memref<1x12x12x4xf32, #tpu.memory_space<vmem>>, vector<1x8x1x4xf32>
    tpu.vector_store %arg13[%c0_182, %c2_183, %c4_184, %c0_185], %204 {strides = array<i32>} : memref<1x12x12x4xf32, #tpu.memory_space<vmem>>, vector<1x8x1x4xf32>,
    %c0_186 = arith.constant 0 : index
    %c0_187 = arith.constant 0 : index
    %c6_188 = arith.constant 6 : index
    %c0_189 = arith.constant 0 : index
    %206 = vector.load %arg12[%c0_186, %c0_187, %c6_188, %c0_189] : memref<1x8x16x4xf32, #tpu.memory_space<vmem>>, vector<1x8x1x4xf32>
    %c0_190 = arith.constant 0 : index
    %c0_191 = arith.constant 0 : index
    %c7_192 = arith.constant 7 : index
    %c0_193 = arith.constant 0 : index
    %207 = vector.load %arg12[%c0_190, %c0_191, %c7_192, %c0_193] : memref<1x8x16x4xf32, #tpu.memory_space<vmem>>, vector<1x8x1x4xf32>
    %208 = arith.maximumf %206, %207 : vector<1x8x1x4xf32>
    %c0_194 = arith.constant 0 : index
    %c2_195 = arith.constant 2 : index
    %c5_196 = arith.constant 5 : index
    %c0_197 = arith.constant 0 : index
    %209 = vector.load %arg13[%c0_194, %c2_195, %c5_196, %c0_197] : memref<1x12x12x4xf32, #tpu.memory_space<vmem>>, vector<1x8x1x4xf32>
    tpu.vector_store %arg13[%c0_194, %c2_195, %c5_196, %c0_197], %208 {strides = array<i32>} : memref<1x12x12x4xf32, #tpu.memory_space<vmem>>, vector<1x8x1x4xf32>,
    %c0_198 = arith.constant 0 : index
    %c0_199 = arith.constant 0 : index
    %c8_200 = arith.constant 8 : index
    %c0_201 = arith.constant 0 : index
    %210 = vector.load %arg12[%c0_198, %c0_199, %c8_200, %c0_201] : memref<1x8x16x4xf32, #tpu.memory_space<vmem>>, vector<1x8x1x4xf32>
    %c0_202 = arith.constant 0 : index
    %c0_203 = arith.constant 0 : index
    %c9_204 = arith.constant 9 : index
    %c0_205 = arith.constant 0 : index
    %211 = vector.load %arg12[%c0_202, %c0_203, %c9_204, %c0_205] : memref<1x8x16x4xf32, #tpu.memory_space<vmem>>, vector<1x8x1x4xf32>
    %212 = arith.maximumf %210, %211 : vector<1x8x1x4xf32>
    %c0_206 = arith.constant 0 : index
    %c2_207 = arith.constant 2 : index
    %c6_208 = arith.constant 6 : index
    %c0_209 = arith.constant 0 : index
    %213 = vector.load %arg13[%c0_206, %c2_207, %c6_208, %c0_209] : memref<1x12x12x4xf32, #tpu.memory_space<vmem>>, vector<1x8x1x4xf32>
    tpu.vector_store %arg13[%c0_206, %c2_207, %c6_208, %c0_209], %212 {strides = array<i32>} : memref<1x12x12x4xf32, #tpu.memory_space<vmem>>, vector<1x8x1x4xf32>,
    %c0_210 = arith.constant 0 : index
    %c0_211 = arith.constant 0 : index
    %c10_212 = arith.constant 10 : index
    %c0_213 = arith.constant 0 : index
    %214 = vector.load %arg12[%c0_210, %c0_211, %c10_212, %c0_213] : memref<1x8x16x4xf32, #tpu.memory_space<vmem>>, vector<1x8x1x4xf32>
    %c0_214 = arith.constant 0 : index
    %c0_215 = arith.constant 0 : index
    %c11_216 = arith.constant 11 : index
    %c0_217 = arith.constant 0 : index
    %215 = vector.load %arg12[%c0_214, %c0_215, %c11_216, %c0_217] : memref<1x8x16x4xf32, #tpu.memory_space<vmem>>, vector<1x8x1x4xf32>
    %216 = arith.maximumf %214, %215 : vector<1x8x1x4xf32>
    %c0_218 = arith.constant 0 : index
    %c2_219 = arith.constant 2 : index
    %c7_220 = arith.constant 7 : index
    %c0_221 = arith.constant 0 : index
    %217 = vector.load %arg13[%c0_218, %c2_219, %c7_220, %c0_221] : memref<1x12x12x4xf32, #tpu.memory_space<vmem>>, vector<1x8x1x4xf32>
    tpu.vector_store %arg13[%c0_218, %c2_219, %c7_220, %c0_221], %216 {strides = array<i32>} : memref<1x12x12x4xf32, #tpu.memory_space<vmem>>, vector<1x8x1x4xf32>,
    %c0_222 = arith.constant 0 : index
    %c0_223 = arith.constant 0 : index
    %c12_224 = arith.constant 12 : index
    %c0_225 = arith.constant 0 : index
    %218 = vector.load %arg12[%c0_222, %c0_223, %c12_224, %c0_225] : memref<1x8x16x4xf32, #tpu.memory_space<vmem>>, vector<1x8x1x4xf32>
    %c0_226 = arith.constant 0 : index
    %c0_227 = arith.constant 0 : index
    %c13_228 = arith.constant 13 : index
    %c0_229 = arith.constant 0 : index
    %219 = vector.load %arg12[%c0_226, %c0_227, %c13_228, %c0_229] : memref<1x8x16x4xf32, #tpu.memory_space<vmem>>, vector<1x8x1x4xf32>
    %220 = arith.maximumf %218, %219 : vector<1x8x1x4xf32>
    %c0_230 = arith.constant 0 : index
    %c2_231 = arith.constant 2 : index
    %c8_232 = arith.constant 8 : index
    %c0_233 = arith.constant 0 : index
    %221 = vector.load %arg13[%c0_230, %c2_231, %c8_232, %c0_233] : memref<1x12x12x4xf32, #tpu.memory_space<vmem>>, vector<1x8x1x4xf32>
    tpu.vector_store %arg13[%c0_230, %c2_231, %c8_232, %c0_233], %220 {strides = array<i32>} : memref<1x12x12x4xf32, #tpu.memory_space<vmem>>, vector<1x8x1x4xf32>,
    %c0_234 = arith.constant 0 : index
    %c0_235 = arith.constant 0 : index
    %c14_236 = arith.constant 14 : index
    %c0_237 = arith.constant 0 : index
    %222 = vector.load %arg12[%c0_234, %c0_235, %c14_236, %c0_237] : memref<1x8x16x4xf32, #tpu.memory_space<vmem>>, vector<1x8x1x4xf32>
    %c0_238 = arith.constant 0 : index
    %c0_239 = arith.constant 0 : index
    %c15_240 = arith.constant 15 : index
    %c0_241 = arith.constant 0 : index
    %223 = vector.load %arg12[%c0_238, %c0_239, %c15_240, %c0_241] : memref<1x8x16x4xf32, #tpu.memory_space<vmem>>, vector<1x8x1x4xf32>
    %224 = arith.maximumf %222, %223 : vector<1x8x1x4xf32>
    %c0_242 = arith.constant 0 : index
    %c2_243 = arith.constant 2 : index
    %c9_244 = arith.constant 9 : index
    %c0_245 = arith.constant 0 : index
    %225 = vector.load %arg13[%c0_242, %c2_243, %c9_244, %c0_245] : memref<1x12x12x4xf32, #tpu.memory_space<vmem>>, vector<1x8x1x4xf32>
    tpu.vector_store %arg13[%c0_242, %c2_243, %c9_244, %c0_245], %224 {strides = array<i32>} : memref<1x12x12x4xf32, #tpu.memory_space<vmem>>, vector<1x8x1x4xf32>,
    %cst_246 = arith.constant 0.000000e+00 : f32
    %226 = vector.broadcast %cst_246 : f32 to vector<64x8xf32>
    %c0_247 = arith.constant 0 : index
    %c0_248 = arith.constant 0 : index
    %c0_249 = arith.constant 0 : index
    %c0_250 = arith.constant 0 : index
    %227 = vector.load %arg13[%c0_247, %c0_248, %c0_249, %c0_250] : memref<1x12x12x4xf32, #tpu.memory_space<vmem>>, vector<1x8x8x4xf32>
    %228 = vector.shape_cast %227 : vector<1x8x8x4xf32> to vector<64x4xf32>
    %c0_251 = arith.constant 0 : index
    %c0_252 = arith.constant 0 : index
    %229 = vector.load %arg4[%c0_251, %c0_252] : memref<100x8xbf16, #tpu.memory_space<vmem>>, vector<4x8xbf16>
    %230 = arith.truncf %228 : vector<64x4xf32> to vector<64x4xbf16>
    %cst_253 = arith.constant dense<0.000000e+00> : vector<64x8xf32>
    %231 = tpu.matmul %230, %229, %cst_253 {dimension_numbers = #tpu.dot_dimension_numbers<[1], [0], [0], [1], [0, 0, 1, 1], [], []>} : vector<64x4xbf16>, vector<4x8xbf16>, vector<64x8xf32> -> vector<64x8xf32>
    %232 = arith.addf %226, %231 : vector<64x8xf32>
    %c0_254 = arith.constant 0 : index
    %c0_255 = arith.constant 0 : index
    %c1_256 = arith.constant 1 : index
    %c0_257 = arith.constant 0 : index
    %233 = vector.load %arg13[%c0_254, %c0_255, %c1_256, %c0_257] : memref<1x12x12x4xf32, #tpu.memory_space<vmem>>, vector<1x8x8x4xf32>
    %234 = vector.shape_cast %233 : vector<1x8x8x4xf32> to vector<64x4xf32>
    %c4_258 = arith.constant 4 : index
    %c0_259 = arith.constant 0 : index
    %235 = vector.load %arg4[%c4_258, %c0_259] : memref<100x8xbf16, #tpu.memory_space<vmem>>, vector<4x8xbf16>
    %236 = arith.truncf %234 : vector<64x4xf32> to vector<64x4xbf16>
    %cst_260 = arith.constant dense<0.000000e+00> : vector<64x8xf32>
    %237 = tpu.matmul %236, %235, %cst_260 {dimension_numbers = #tpu.dot_dimension_numbers<[1], [0], [0], [1], [0, 0, 1, 1], [], []>} : vector<64x4xbf16>, vector<4x8xbf16>, vector<64x8xf32> -> vector<64x8xf32>
    %238 = arith.addf %232, %237 : vector<64x8xf32>
    %c0_261 = arith.constant 0 : index
    %c0_262 = arith.constant 0 : index
    %c2_263 = arith.constant 2 : index
    %c0_264 = arith.constant 0 : index
    %239 = vector.load %arg13[%c0_261, %c0_262, %c2_263, %c0_264] : memref<1x12x12x4xf32, #tpu.memory_space<vmem>>, vector<1x8x8x4xf32>
    %240 = vector.shape_cast %239 : vector<1x8x8x4xf32> to vector<64x4xf32>
    %c8_265 = arith.constant 8 : index
    %c0_266 = arith.constant 0 : index
    %241 = vector.load %arg4[%c8_265, %c0_266] : memref<100x8xbf16, #tpu.memory_space<vmem>>, vector<4x8xbf16>
    %242 = arith.truncf %240 : vector<64x4xf32> to vector<64x4xbf16>
    %cst_267 = arith.constant dense<0.000000e+00> : vector<64x8xf32>
    %243 = tpu.matmul %242, %241, %cst_267 {dimension_numbers = #tpu.dot_dimension_numbers<[1], [0], [0], [1], [0, 0, 1, 1], [], []>} : vector<64x4xbf16>, vector<4x8xbf16>, vector<64x8xf32> -> vector<64x8xf32>
    %244 = arith.addf %238, %243 : vector<64x8xf32>
    %c0_268 = arith.constant 0 : index
    %c0_269 = arith.constant 0 : index
    %c3_270 = arith.constant 3 : index
    %c0_271 = arith.constant 0 : index
    %245 = vector.load %arg13[%c0_268, %c0_269, %c3_270, %c0_271] : memref<1x12x12x4xf32, #tpu.memory_space<vmem>>, vector<1x8x8x4xf32>
    %246 = vector.shape_cast %245 : vector<1x8x8x4xf32> to vector<64x4xf32>
    %c12_272 = arith.constant 12 : index
    %c0_273 = arith.constant 0 : index
    %247 = vector.load %arg4[%c12_272, %c0_273] : memref<100x8xbf16, #tpu.memory_space<vmem>>, vector<4x8xbf16>
    %248 = arith.truncf %246 : vector<64x4xf32> to vector<64x4xbf16>
    %cst_274 = arith.constant dense<0.000000e+00> : vector<64x8xf32>
    %249 = tpu.matmul %248, %247, %cst_274 {dimension_numbers = #tpu.dot_dimension_numbers<[1], [0], [0], [1], [0, 0, 1, 1], [], []>} : vector<64x4xbf16>, vector<4x8xbf16>, vector<64x8xf32> -> vector<64x8xf32>
    %250 = arith.addf %244, %249 : vector<64x8xf32>
    %c0_275 = arith.constant 0 : index
    %c0_276 = arith.constant 0 : index
    %c4_277 = arith.constant 4 : index
    %c0_278 = arith.constant 0 : index
    %251 = vector.load %arg13[%c0_275, %c0_276, %c4_277, %c0_278] : memref<1x12x12x4xf32, #tpu.memory_space<vmem>>, vector<1x8x8x4xf32>
    %252 = vector.shape_cast %251 : vector<1x8x8x4xf32> to vector<64x4xf32>
    %c16_279 = arith.constant 16 : index
    %c0_280 = arith.constant 0 : index
    %253 = vector.load %arg4[%c16_279, %c0_280] : memref<100x8xbf16, #tpu.memory_space<vmem>>, vector<4x8xbf16>
    %254 = arith.truncf %252 : vector<64x4xf32> to vector<64x4xbf16>
    %cst_281 = arith.constant dense<0.000000e+00> : vector<64x8xf32>
    %255 = tpu.matmul %254, %253, %cst_281 {dimension_numbers = #tpu.dot_dimension_numbers<[1], [0], [0], [1], [0, 0, 1, 1], [], []>} : vector<64x4xbf16>, vector<4x8xbf16>, vector<64x8xf32> -> vector<64x8xf32>
    %256 = arith.addf %250, %255 : vector<64x8xf32>
    %c0_282 = arith.constant 0 : index
    %c1_283 = arith.constant 1 : index
    %c0_284 = arith.constant 0 : index
    %c0_285 = arith.constant 0 : index
    %257 = vector.load %arg13[%c0_282, %c1_283, %c0_284, %c0_285] : memref<1x12x12x4xf32, #tpu.memory_space<vmem>>, vector<1x8x8x4xf32>
    %258 = vector.shape_cast %257 : vector<1x8x8x4xf32> to vector<64x4xf32>
    %c20_286 = arith.constant 20 : index
    %c0_287 = arith.constant 0 : index
    %259 = vector.load %arg4[%c20_286, %c0_287] : memref<100x8xbf16, #tpu.memory_space<vmem>>, vector<4x8xbf16>
    %260 = arith.truncf %258 : vector<64x4xf32> to vector<64x4xbf16>
    %cst_288 = arith.constant dense<0.000000e+00> : vector<64x8xf32>
    %261 = tpu.matmul %260, %259, %cst_288 {dimension_numbers = #tpu.dot_dimension_numbers<[1], [0], [0], [1], [0, 0, 1, 1], [], []>} : vector<64x4xbf16>, vector<4x8xbf16>, vector<64x8xf32> -> vector<64x8xf32>
    %262 = arith.addf %256, %261 : vector<64x8xf32>
    %c0_289 = arith.constant 0 : index
    %c1_290 = arith.constant 1 : index
    %c1_291 = arith.constant 1 : index
    %c0_292 = arith.constant 0 : index
    %263 = vector.load %arg13[%c0_289, %c1_290, %c1_291, %c0_292] : memref<1x12x12x4xf32, #tpu.memory_space<vmem>>, vector<1x8x8x4xf32>
    %264 = vector.shape_cast %263 : vector<1x8x8x4xf32> to vector<64x4xf32>
    %c24_293 = arith.constant 24 : index
    %c0_294 = arith.constant 0 : index
    %265 = vector.load %arg4[%c24_293, %c0_294] : memref<100x8xbf16, #tpu.memory_space<vmem>>, vector<4x8xbf16>
    %266 = arith.truncf %264 : vector<64x4xf32> to vector<64x4xbf16>
    %cst_295 = arith.constant dense<0.000000e+00> : vector<64x8xf32>
    %267 = tpu.matmul %266, %265, %cst_295 {dimension_numbers = #tpu.dot_dimension_numbers<[1], [0], [0], [1], [0, 0, 1, 1], [], []>} : vector<64x4xbf16>, vector<4x8xbf16>, vector<64x8xf32> -> vector<64x8xf32>
    %268 = arith.addf %262, %267 : vector<64x8xf32>
    %c0_296 = arith.constant 0 : index
    %c1_297 = arith.constant 1 : index
    %c2_298 = arith.constant 2 : index
    %c0_299 = arith.constant 0 : index
    %269 = vector.load %arg13[%c0_296, %c1_297, %c2_298, %c0_299] : memref<1x12x12x4xf32, #tpu.memory_space<vmem>>, vector<1x8x8x4xf32>
    %270 = vector.shape_cast %269 : vector<1x8x8x4xf32> to vector<64x4xf32>
    %c28 = arith.constant 28 : index
    %c0_300 = arith.constant 0 : index
    %271 = vector.load %arg4[%c28, %c0_300] : memref<100x8xbf16, #tpu.memory_space<vmem>>, vector<4x8xbf16>
    %272 = arith.truncf %270 : vector<64x4xf32> to vector<64x4xbf16>
    %cst_301 = arith.constant dense<0.000000e+00> : vector<64x8xf32>
    %273 = tpu.matmul %272, %271, %cst_301 {dimension_numbers = #tpu.dot_dimension_numbers<[1], [0], [0], [1], [0, 0, 1, 1], [], []>} : vector<64x4xbf16>, vector<4x8xbf16>, vector<64x8xf32> -> vector<64x8xf32>
    %274 = arith.addf %268, %273 : vector<64x8xf32>
    %c0_302 = arith.constant 0 : index
    %c1_303 = arith.constant 1 : index
    %c3_304 = arith.constant 3 : index
    %c0_305 = arith.constant 0 : index
    %275 = vector.load %arg13[%c0_302, %c1_303, %c3_304, %c0_305] : memref<1x12x12x4xf32, #tpu.memory_space<vmem>>, vector<1x8x8x4xf32>
    %276 = vector.shape_cast %275 : vector<1x8x8x4xf32> to vector<64x4xf32>
    %c32 = arith.constant 32 : index
    %c0_306 = arith.constant 0 : index
    %277 = vector.load %arg4[%c32, %c0_306] : memref<100x8xbf16, #tpu.memory_space<vmem>>, vector<4x8xbf16>
    %278 = arith.truncf %276 : vector<64x4xf32> to vector<64x4xbf16>
    %cst_307 = arith.constant dense<0.000000e+00> : vector<64x8xf32>
    %279 = tpu.matmul %278, %277, %cst_307 {dimension_numbers = #tpu.dot_dimension_numbers<[1], [0], [0], [1], [0, 0, 1, 1], [], []>} : vector<64x4xbf16>, vector<4x8xbf16>, vector<64x8xf32> -> vector<64x8xf32>
    %280 = arith.addf %274, %279 : vector<64x8xf32>
    %c0_308 = arith.constant 0 : index
    %c1_309 = arith.constant 1 : index
    %c4_310 = arith.constant 4 : index
    %c0_311 = arith.constant 0 : index
    %281 = vector.load %arg13[%c0_308, %c1_309, %c4_310, %c0_311] : memref<1x12x12x4xf32, #tpu.memory_space<vmem>>, vector<1x8x8x4xf32>
    %282 = vector.shape_cast %281 : vector<1x8x8x4xf32> to vector<64x4xf32>
    %c36 = arith.constant 36 : index
    %c0_312 = arith.constant 0 : index
    %283 = vector.load %arg4[%c36, %c0_312] : memref<100x8xbf16, #tpu.memory_space<vmem>>, vector<4x8xbf16>
    %284 = arith.truncf %282 : vector<64x4xf32> to vector<64x4xbf16>
    %cst_313 = arith.constant dense<0.000000e+00> : vector<64x8xf32>
    %285 = tpu.matmul %284, %283, %cst_313 {dimension_numbers = #tpu.dot_dimension_numbers<[1], [0], [0], [1], [0, 0, 1, 1], [], []>} : vector<64x4xbf16>, vector<4x8xbf16>, vector<64x8xf32> -> vector<64x8xf32>
    %286 = arith.addf %280, %285 : vector<64x8xf32>
    %c0_314 = arith.constant 0 : index
    %c2_315 = arith.constant 2 : index
    %c0_316 = arith.constant 0 : index
    %c0_317 = arith.constant 0 : index
    %287 = vector.load %arg13[%c0_314, %c2_315, %c0_316, %c0_317] : memref<1x12x12x4xf32, #tpu.memory_space<vmem>>, vector<1x8x8x4xf32>
    %288 = vector.shape_cast %287 : vector<1x8x8x4xf32> to vector<64x4xf32>
    %c40 = arith.constant 40 : index
    %c0_318 = arith.constant 0 : index
    %289 = vector.load %arg4[%c40, %c0_318] : memref<100x8xbf16, #tpu.memory_space<vmem>>, vector<4x8xbf16>
    %290 = arith.truncf %288 : vector<64x4xf32> to vector<64x4xbf16>
    %cst_319 = arith.constant dense<0.000000e+00> : vector<64x8xf32>
    %291 = tpu.matmul %290, %289, %cst_319 {dimension_numbers = #tpu.dot_dimension_numbers<[1], [0], [0], [1], [0, 0, 1, 1], [], []>} : vector<64x4xbf16>, vector<4x8xbf16>, vector<64x8xf32> -> vector<64x8xf32>
    %292 = arith.addf %286, %291 : vector<64x8xf32>
    %c0_320 = arith.constant 0 : index
    %c2_321 = arith.constant 2 : index
    %c1_322 = arith.constant 1 : index
    %c0_323 = arith.constant 0 : index
    %293 = vector.load %arg13[%c0_320, %c2_321, %c1_322, %c0_323] : memref<1x12x12x4xf32, #tpu.memory_space<vmem>>, vector<1x8x8x4xf32>
    %294 = vector.shape_cast %293 : vector<1x8x8x4xf32> to vector<64x4xf32>
    %c44 = arith.constant 44 : index
    %c0_324 = arith.constant 0 : index
    %295 = vector.load %arg4[%c44, %c0_324] : memref<100x8xbf16, #tpu.memory_space<vmem>>, vector<4x8xbf16>
    %296 = arith.truncf %294 : vector<64x4xf32> to vector<64x4xbf16>
    %cst_325 = arith.constant dense<0.000000e+00> : vector<64x8xf32>
    %297 = tpu.matmul %296, %295, %cst_325 {dimension_numbers = #tpu.dot_dimension_numbers<[1], [0], [0], [1], [0, 0, 1, 1], [], []>} : vector<64x4xbf16>, vector<4x8xbf16>, vector<64x8xf32> -> vector<64x8xf32>
    %298 = arith.addf %292, %297 : vector<64x8xf32>
    %c0_326 = arith.constant 0 : index
    %c2_327 = arith.constant 2 : index
    %c2_328 = arith.constant 2 : index
    %c0_329 = arith.constant 0 : index
    %299 = vector.load %arg13[%c0_326, %c2_327, %c2_328, %c0_329] : memref<1x12x12x4xf32, #tpu.memory_space<vmem>>, vector<1x8x8x4xf32>
    %300 = vector.shape_cast %299 : vector<1x8x8x4xf32> to vector<64x4xf32>
    %c48 = arith.constant 48 : index
    %c0_330 = arith.constant 0 : index
    %301 = vector.load %arg4[%c48, %c0_330] : memref<100x8xbf16, #tpu.memory_space<vmem>>, vector<4x8xbf16>
    %302 = arith.truncf %300 : vector<64x4xf32> to vector<64x4xbf16>
    %cst_331 = arith.constant dense<0.000000e+00> : vector<64x8xf32>
    %303 = tpu.matmul %302, %301, %cst_331 {dimension_numbers = #tpu.dot_dimension_numbers<[1], [0], [0], [1], [0, 0, 1, 1], [], []>} : vector<64x4xbf16>, vector<4x8xbf16>, vector<64x8xf32> -> vector<64x8xf32>
    %304 = arith.addf %298, %303 : vector<64x8xf32>
    %c0_332 = arith.constant 0 : index
    %c2_333 = arith.constant 2 : index
    %c3_334 = arith.constant 3 : index
    %c0_335 = arith.constant 0 : index
    %305 = vector.load %arg13[%c0_332, %c2_333, %c3_334, %c0_335] : memref<1x12x12x4xf32, #tpu.memory_space<vmem>>, vector<1x8x8x4xf32>
    %306 = vector.shape_cast %305 : vector<1x8x8x4xf32> to vector<64x4xf32>
    %c52 = arith.constant 52 : index
    %c0_336 = arith.constant 0 : index
    %307 = vector.load %arg4[%c52, %c0_336] : memref<100x8xbf16, #tpu.memory_space<vmem>>, vector<4x8xbf16>
    %308 = arith.truncf %306 : vector<64x4xf32> to vector<64x4xbf16>
    %cst_337 = arith.constant dense<0.000000e+00> : vector<64x8xf32>
    %309 = tpu.matmul %308, %307, %cst_337 {dimension_numbers = #tpu.dot_dimension_numbers<[1], [0], [0], [1], [0, 0, 1, 1], [], []>} : vector<64x4xbf16>, vector<4x8xbf16>, vector<64x8xf32> -> vector<64x8xf32>
    %310 = arith.addf %304, %309 : vector<64x8xf32>
    %c0_338 = arith.constant 0 : index
    %c2_339 = arith.constant 2 : index
    %c4_340 = arith.constant 4 : index
    %c0_341 = arith.constant 0 : index
    %311 = vector.load %arg13[%c0_338, %c2_339, %c4_340, %c0_341] : memref<1x12x12x4xf32, #tpu.memory_space<vmem>>, vector<1x8x8x4xf32>
    %312 = vector.shape_cast %311 : vector<1x8x8x4xf32> to vector<64x4xf32>
    %c56 = arith.constant 56 : index
    %c0_342 = arith.constant 0 : index
    %313 = vector.load %arg4[%c56, %c0_342] : memref<100x8xbf16, #tpu.memory_space<vmem>>, vector<4x8xbf16>
    %314 = arith.truncf %312 : vector<64x4xf32> to vector<64x4xbf16>
    %cst_343 = arith.constant dense<0.000000e+00> : vector<64x8xf32>
    %315 = tpu.matmul %314, %313, %cst_343 {dimension_numbers = #tpu.dot_dimension_numbers<[1], [0], [0], [1], [0, 0, 1, 1], [], []>} : vector<64x4xbf16>, vector<4x8xbf16>, vector<64x8xf32> -> vector<64x8xf32>
    %316 = arith.addf %310, %315 : vector<64x8xf32>
    %c0_344 = arith.constant 0 : index
    %c3_345 = arith.constant 3 : index
    %c0_346 = arith.constant 0 : index
    %c0_347 = arith.constant 0 : index
    %317 = vector.load %arg13[%c0_344, %c3_345, %c0_346, %c0_347] : memref<1x12x12x4xf32, #tpu.memory_space<vmem>>, vector<1x8x8x4xf32>
    %318 = vector.shape_cast %317 : vector<1x8x8x4xf32> to vector<64x4xf32>
    %c60 = arith.constant 60 : index
    %c0_348 = arith.constant 0 : index
    %319 = vector.load %arg4[%c60, %c0_348] : memref<100x8xbf16, #tpu.memory_space<vmem>>, vector<4x8xbf16>
    %320 = arith.truncf %318 : vector<64x4xf32> to vector<64x4xbf16>
    %cst_349 = arith.constant dense<0.000000e+00> : vector<64x8xf32>
    %321 = tpu.matmul %320, %319, %cst_349 {dimension_numbers = #tpu.dot_dimension_numbers<[1], [0], [0], [1], [0, 0, 1, 1], [], []>} : vector<64x4xbf16>, vector<4x8xbf16>, vector<64x8xf32> -> vector<64x8xf32>
    %322 = arith.addf %316, %321 : vector<64x8xf32>
    %c0_350 = arith.constant 0 : index
    %c3_351 = arith.constant 3 : index
    %c1_352 = arith.constant 1 : index
    %c0_353 = arith.constant 0 : index
    %323 = vector.load %arg13[%c0_350, %c3_351, %c1_352, %c0_353] : memref<1x12x12x4xf32, #tpu.memory_space<vmem>>, vector<1x8x8x4xf32>
    %324 = vector.shape_cast %323 : vector<1x8x8x4xf32> to vector<64x4xf32>
    %c64 = arith.constant 64 : index
    %c0_354 = arith.constant 0 : index
    %325 = vector.load %arg4[%c64, %c0_354] : memref<100x8xbf16, #tpu.memory_space<vmem>>, vector<4x8xbf16>
    %326 = arith.truncf %324 : vector<64x4xf32> to vector<64x4xbf16>
    %cst_355 = arith.constant dense<0.000000e+00> : vector<64x8xf32>
    %327 = tpu.matmul %326, %325, %cst_355 {dimension_numbers = #tpu.dot_dimension_numbers<[1], [0], [0], [1], [0, 0, 1, 1], [], []>} : vector<64x4xbf16>, vector<4x8xbf16>, vector<64x8xf32> -> vector<64x8xf32>
    %328 = arith.addf %322, %327 : vector<64x8xf32>
    %c0_356 = arith.constant 0 : index
    %c3_357 = arith.constant 3 : index
    %c2_358 = arith.constant 2 : index
    %c0_359 = arith.constant 0 : index
    %329 = vector.load %arg13[%c0_356, %c3_357, %c2_358, %c0_359] : memref<1x12x12x4xf32, #tpu.memory_space<vmem>>, vector<1x8x8x4xf32>
    %330 = vector.shape_cast %329 : vector<1x8x8x4xf32> to vector<64x4xf32>
    %c68 = arith.constant 68 : index
    %c0_360 = arith.constant 0 : index
    %331 = vector.load %arg4[%c68, %c0_360] : memref<100x8xbf16, #tpu.memory_space<vmem>>, vector<4x8xbf16>
    %332 = arith.truncf %330 : vector<64x4xf32> to vector<64x4xbf16>
    %cst_361 = arith.constant dense<0.000000e+00> : vector<64x8xf32>
    %333 = tpu.matmul %332, %331, %cst_361 {dimension_numbers = #tpu.dot_dimension_numbers<[1], [0], [0], [1], [0, 0, 1, 1], [], []>} : vector<64x4xbf16>, vector<4x8xbf16>, vector<64x8xf32> -> vector<64x8xf32>
    %334 = arith.addf %328, %333 : vector<64x8xf32>
    %c0_362 = arith.constant 0 : index
    %c3_363 = arith.constant 3 : index
    %c3_364 = arith.constant 3 : index
    %c0_365 = arith.constant 0 : index
    %335 = vector.load %arg13[%c0_362, %c3_363, %c3_364, %c0_365] : memref<1x12x12x4xf32, #tpu.memory_space<vmem>>, vector<1x8x8x4xf32>
    %336 = vector.shape_cast %335 : vector<1x8x8x4xf32> to vector<64x4xf32>
    %c72 = arith.constant 72 : index
    %c0_366 = arith.constant 0 : index
    %337 = vector.load %arg4[%c72, %c0_366] : memref<100x8xbf16, #tpu.memory_space<vmem>>, vector<4x8xbf16>
    %338 = arith.truncf %336 : vector<64x4xf32> to vector<64x4xbf16>
    %cst_367 = arith.constant dense<0.000000e+00> : vector<64x8xf32>
    %339 = tpu.matmul %338, %337, %cst_367 {dimension_numbers = #tpu.dot_dimension_numbers<[1], [0], [0], [1], [0, 0, 1, 1], [], []>} : vector<64x4xbf16>, vector<4x8xbf16>, vector<64x8xf32> -> vector<64x8xf32>
    %340 = arith.addf %334, %339 : vector<64x8xf32>
    %c0_368 = arith.constant 0 : index
    %c3_369 = arith.constant 3 : index
    %c4_370 = arith.constant 4 : index
    %c0_371 = arith.constant 0 : index
    %341 = vector.load %arg13[%c0_368, %c3_369, %c4_370, %c0_371] : memref<1x12x12x4xf32, #tpu.memory_space<vmem>>, vector<1x8x8x4xf32>
    %342 = vector.shape_cast %341 : vector<1x8x8x4xf32> to vector<64x4xf32>
    %c76 = arith.constant 76 : index
    %c0_372 = arith.constant 0 : index
    %343 = vector.load %arg4[%c76, %c0_372] : memref<100x8xbf16, #tpu.memory_space<vmem>>, vector<4x8xbf16>
    %344 = arith.truncf %342 : vector<64x4xf32> to vector<64x4xbf16>
    %cst_373 = arith.constant dense<0.000000e+00> : vector<64x8xf32>
    %345 = tpu.matmul %344, %343, %cst_373 {dimension_numbers = #tpu.dot_dimension_numbers<[1], [0], [0], [1], [0, 0, 1, 1], [], []>} : vector<64x4xbf16>, vector<4x8xbf16>, vector<64x8xf32> -> vector<64x8xf32>
    %346 = arith.addf %340, %345 : vector<64x8xf32>
    %c0_374 = arith.constant 0 : index
    %c4_375 = arith.constant 4 : index
    %c0_376 = arith.constant 0 : index
    %c0_377 = arith.constant 0 : index
    %347 = vector.load %arg13[%c0_374, %c4_375, %c0_376, %c0_377] : memref<1x12x12x4xf32, #tpu.memory_space<vmem>>, vector<1x8x8x4xf32>
    %348 = vector.shape_cast %347 : vector<1x8x8x4xf32> to vector<64x4xf32>
    %c80 = arith.constant 80 : index
    %c0_378 = arith.constant 0 : index
    %349 = vector.load %arg4[%c80, %c0_378] : memref<100x8xbf16, #tpu.memory_space<vmem>>, vector<4x8xbf16>
    %350 = arith.truncf %348 : vector<64x4xf32> to vector<64x4xbf16>
    %cst_379 = arith.constant dense<0.000000e+00> : vector<64x8xf32>
    %351 = tpu.matmul %350, %349, %cst_379 {dimension_numbers = #tpu.dot_dimension_numbers<[1], [0], [0], [1], [0, 0, 1, 1], [], []>} : vector<64x4xbf16>, vector<4x8xbf16>, vector<64x8xf32> -> vector<64x8xf32>
    %352 = arith.addf %346, %351 : vector<64x8xf32>
    %c0_380 = arith.constant 0 : index
    %c4_381 = arith.constant 4 : index
    %c1_382 = arith.constant 1 : index
    %c0_383 = arith.constant 0 : index
    %353 = vector.load %arg13[%c0_380, %c4_381, %c1_382, %c0_383] : memref<1x12x12x4xf32, #tpu.memory_space<vmem>>, vector<1x8x8x4xf32>
    %354 = vector.shape_cast %353 : vector<1x8x8x4xf32> to vector<64x4xf32>
    %c84 = arith.constant 84 : index
    %c0_384 = arith.constant 0 : index
    %355 = vector.load %arg4[%c84, %c0_384] : memref<100x8xbf16, #tpu.memory_space<vmem>>, vector<4x8xbf16>
    %356 = arith.truncf %354 : vector<64x4xf32> to vector<64x4xbf16>
    %cst_385 = arith.constant dense<0.000000e+00> : vector<64x8xf32>
    %357 = tpu.matmul %356, %355, %cst_385 {dimension_numbers = #tpu.dot_dimension_numbers<[1], [0], [0], [1], [0, 0, 1, 1], [], []>} : vector<64x4xbf16>, vector<4x8xbf16>, vector<64x8xf32> -> vector<64x8xf32>
    %358 = arith.addf %352, %357 : vector<64x8xf32>
    %c0_386 = arith.constant 0 : index
    %c4_387 = arith.constant 4 : index
    %c2_388 = arith.constant 2 : index
    %c0_389 = arith.constant 0 : index
    %359 = vector.load %arg13[%c0_386, %c4_387, %c2_388, %c0_389] : memref<1x12x12x4xf32, #tpu.memory_space<vmem>>, vector<1x8x8x4xf32>
    %360 = vector.shape_cast %359 : vector<1x8x8x4xf32> to vector<64x4xf32>
    %c88 = arith.constant 88 : index
    %c0_390 = arith.constant 0 : index
    %361 = vector.load %arg4[%c88, %c0_390] : memref<100x8xbf16, #tpu.memory_space<vmem>>, vector<4x8xbf16>
    %362 = arith.truncf %360 : vector<64x4xf32> to vector<64x4xbf16>
    %cst_391 = arith.constant dense<0.000000e+00> : vector<64x8xf32>
    %363 = tpu.matmul %362, %361, %cst_391 {dimension_numbers = #tpu.dot_dimension_numbers<[1], [0], [0], [1], [0, 0, 1, 1], [], []>} : vector<64x4xbf16>, vector<4x8xbf16>, vector<64x8xf32> -> vector<64x8xf32>
    %364 = arith.addf %358, %363 : vector<64x8xf32>
    %c0_392 = arith.constant 0 : index
    %c4_393 = arith.constant 4 : index
    %c3_394 = arith.constant 3 : index
    %c0_395 = arith.constant 0 : index
    %365 = vector.load %arg13[%c0_392, %c4_393, %c3_394, %c0_395] : memref<1x12x12x4xf32, #tpu.memory_space<vmem>>, vector<1x8x8x4xf32>
    %366 = vector.shape_cast %365 : vector<1x8x8x4xf32> to vector<64x4xf32>
    %c92 = arith.constant 92 : index
    %c0_396 = arith.constant 0 : index
    %367 = vector.load %arg4[%c92, %c0_396] : memref<100x8xbf16, #tpu.memory_space<vmem>>, vector<4x8xbf16>
    %368 = arith.truncf %366 : vector<64x4xf32> to vector<64x4xbf16>
    %cst_397 = arith.constant dense<0.000000e+00> : vector<64x8xf32>
    %369 = tpu.matmul %368, %367, %cst_397 {dimension_numbers = #tpu.dot_dimension_numbers<[1], [0], [0], [1], [0, 0, 1, 1], [], []>} : vector<64x4xbf16>, vector<4x8xbf16>, vector<64x8xf32> -> vector<64x8xf32>
    %370 = arith.addf %364, %369 : vector<64x8xf32>
    %c0_398 = arith.constant 0 : index
    %c4_399 = arith.constant 4 : index
    %c4_400 = arith.constant 4 : index
    %c0_401 = arith.constant 0 : index
    %371 = vector.load %arg13[%c0_398, %c4_399, %c4_400, %c0_401] : memref<1x12x12x4xf32, #tpu.memory_space<vmem>>, vector<1x8x8x4xf32>
    %372 = vector.shape_cast %371 : vector<1x8x8x4xf32> to vector<64x4xf32>
    %c96 = arith.constant 96 : index
    %c0_402 = arith.constant 0 : index
    %373 = vector.load %arg4[%c96, %c0_402] : memref<100x8xbf16, #tpu.memory_space<vmem>>, vector<4x8xbf16>
    %374 = arith.truncf %372 : vector<64x4xf32> to vector<64x4xbf16>
    %cst_403 = arith.constant dense<0.000000e+00> : vector<64x8xf32>
    %375 = tpu.matmul %374, %373, %cst_403 {dimension_numbers = #tpu.dot_dimension_numbers<[1], [0], [0], [1], [0, 0, 1, 1], [], []>} : vector<64x4xbf16>, vector<4x8xbf16>, vector<64x8xf32> -> vector<64x8xf32>
    %376 = arith.addf %370, %375 : vector<64x8xf32>
    %c0_404 = arith.constant 0 : index
    %c0_405 = arith.constant 0 : index
    %377 = vector.load %arg5[%c0_404, %c0_405] : memref<1x8xf32, #tpu.memory_space<vmem>>, vector<1x8xf32>
    %378 = vector.broadcast %377 : vector<1x8xf32> to vector<64x8xf32>
    %379 = arith.addf %376, %378 : vector<64x8xf32>
    %cst_406 = arith.constant 0.000000e+00 : f32
    %380 = vector.broadcast %cst_406 : f32 to vector<64x8xf32>
    %381 = arith.maximumf %379, %380 : vector<64x8xf32>
    %382 = vector.shape_cast %381 : vector<64x8xf32> to vector<1x4x2x8x8xf32>
    %383 = vector.extract_strided_slice %382 {offsets = [0, 0, 0, 0, 0], sizes = [1, 4, 1, 8, 8], strides = [1, 1, 1, 1, 1]} : vector<1x4x2x8x8xf32> to vector<1x4x1x8x8xf32>
    %384 = vector.shape_cast %383 : vector<1x4x1x8x8xf32> to vector<1x4x8x8xf32>
    %385 = vector.extract_strided_slice %382 {offsets = [0, 0, 1, 0, 0], sizes = [1, 4, 1, 8, 8], strides = [1, 1, 1, 1, 1]} : vector<1x4x2x8x8xf32> to vector<1x4x1x8x8xf32>
    %386 = vector.shape_cast %385 : vector<1x4x1x8x8xf32> to vector<1x4x8x8xf32>
    %387 = arith.maximumf %384, %386 : vector<1x4x8x8xf32>
    %c0_407 = arith.constant 0 : index
    %c0_408 = arith.constant 0 : index
    %c0_409 = arith.constant 0 : index
    %c0_410 = arith.constant 0 : index
    %388 = vector.load %arg14[%c0_407, %c0_408, %c0_409, %c0_410] : memref<1x4x8x8xf32, #tpu.memory_space<vmem>>, vector<1x4x8x8xf32>
    tpu.vector_store %arg14[%c0_407, %c0_408, %c0_409, %c0_410], %387 {strides = array<i32>} : memref<1x4x8x8xf32, #tpu.memory_space<vmem>>, vector<1x4x8x8xf32>,
    %c0_411 = arith.constant 0 : index
    %c0_412 = arith.constant 0 : index
    %c0_413 = arith.constant 0 : index
    %c0_414 = arith.constant 0 : index
    %389 = vector.load %arg14[%c0_411, %c0_412, %c0_413, %c0_414] : memref<1x4x8x8xf32, #tpu.memory_space<vmem>>, vector<1x1x1x8xf32>
    %390 = vector.shape_cast %389 : vector<1x1x1x8xf32> to vector<1x8xf32>
    %c0_415 = arith.constant 0 : index
    %c0_416 = arith.constant 0 : index
    %c1_417 = arith.constant 1 : index
    %c0_418 = arith.constant 0 : index
    %391 = vector.load %arg14[%c0_415, %c0_416, %c1_417, %c0_418] : memref<1x4x8x8xf32, #tpu.memory_space<vmem>>, vector<1x1x1x8xf32>
    %392 = vector.shape_cast %391 : vector<1x1x1x8xf32> to vector<1x8xf32>
    %393 = arith.maximumf %390, %392 : vector<1x8xf32>
    %c0_419 = arith.constant 0 : index
    %c0_420 = arith.constant 0 : index
    %394 = vector.load %arg15[%c0_419, %c0_420] : memref<1x128xf32, #tpu.memory_space<vmem>>, vector<1x8xf32>
    tpu.vector_store %arg15[%c0_419, %c0_420], %393 {strides = array<i32>} : memref<1x128xf32, #tpu.memory_space<vmem>>, vector<1x8xf32>,
    %c0_421 = arith.constant 0 : index
    %c0_422 = arith.constant 0 : index
    %c2_423 = arith.constant 2 : index
    %c0_424 = arith.constant 0 : index
    %395 = vector.load %arg14[%c0_421, %c0_422, %c2_423, %c0_424] : memref<1x4x8x8xf32, #tpu.memory_space<vmem>>, vector<1x1x1x8xf32>
    %396 = vector.shape_cast %395 : vector<1x1x1x8xf32> to vector<1x8xf32>
    %c0_425 = arith.constant 0 : index
    %c0_426 = arith.constant 0 : index
    %c3_427 = arith.constant 3 : index
    %c0_428 = arith.constant 0 : index
    %397 = vector.load %arg14[%c0_425, %c0_426, %c3_427, %c0_428] : memref<1x4x8x8xf32, #tpu.memory_space<vmem>>, vector<1x1x1x8xf32>
    %398 = vector.shape_cast %397 : vector<1x1x1x8xf32> to vector<1x8xf32>
    %399 = arith.maximumf %396, %398 : vector<1x8xf32>
    %c0_429 = arith.constant 0 : index
    %c8_430 = arith.constant 8 : index
    %400 = vector.load %arg15[%c0_429, %c8_430] : memref<1x128xf32, #tpu.memory_space<vmem>>, vector<1x8xf32>
    tpu.vector_store %arg15[%c0_429, %c8_430], %399 {strides = array<i32>} : memref<1x128xf32, #tpu.memory_space<vmem>>, vector<1x8xf32>,
    %c0_431 = arith.constant 0 : index
    %c0_432 = arith.constant 0 : index
    %c4_433 = arith.constant 4 : index
    %c0_434 = arith.constant 0 : index
    %401 = vector.load %arg14[%c0_431, %c0_432, %c4_433, %c0_434] : memref<1x4x8x8xf32, #tpu.memory_space<vmem>>, vector<1x1x1x8xf32>
    %402 = vector.shape_cast %401 : vector<1x1x1x8xf32> to vector<1x8xf32>
    %c0_435 = arith.constant 0 : index
    %c0_436 = arith.constant 0 : index
    %c5_437 = arith.constant 5 : index
    %c0_438 = arith.constant 0 : index
    %403 = vector.load %arg14[%c0_435, %c0_436, %c5_437, %c0_438] : memref<1x4x8x8xf32, #tpu.memory_space<vmem>>, vector<1x1x1x8xf32>
    %404 = vector.shape_cast %403 : vector<1x1x1x8xf32> to vector<1x8xf32>
    %405 = arith.maximumf %402, %404 : vector<1x8xf32>
    %c0_439 = arith.constant 0 : index
    %c16_440 = arith.constant 16 : index
    %406 = vector.load %arg15[%c0_439, %c16_440] : memref<1x128xf32, #tpu.memory_space<vmem>>, vector<1x8xf32>
    tpu.vector_store %arg15[%c0_439, %c16_440], %405 {strides = array<i32>} : memref<1x128xf32, #tpu.memory_space<vmem>>, vector<1x8xf32>,
    %c0_441 = arith.constant 0 : index
    %c0_442 = arith.constant 0 : index
    %c6_443 = arith.constant 6 : index
    %c0_444 = arith.constant 0 : index
    %407 = vector.load %arg14[%c0_441, %c0_442, %c6_443, %c0_444] : memref<1x4x8x8xf32, #tpu.memory_space<vmem>>, vector<1x1x1x8xf32>
    %408 = vector.shape_cast %407 : vector<1x1x1x8xf32> to vector<1x8xf32>
    %c0_445 = arith.constant 0 : index
    %c0_446 = arith.constant 0 : index
    %c7_447 = arith.constant 7 : index
    %c0_448 = arith.constant 0 : index
    %409 = vector.load %arg14[%c0_445, %c0_446, %c7_447, %c0_448] : memref<1x4x8x8xf32, #tpu.memory_space<vmem>>, vector<1x1x1x8xf32>
    %410 = vector.shape_cast %409 : vector<1x1x1x8xf32> to vector<1x8xf32>
    %411 = arith.maximumf %408, %410 : vector<1x8xf32>
    %c0_449 = arith.constant 0 : index
    %c24_450 = arith.constant 24 : index
    %412 = vector.load %arg15[%c0_449, %c24_450] : memref<1x128xf32, #tpu.memory_space<vmem>>, vector<1x8xf32>
    tpu.vector_store %arg15[%c0_449, %c24_450], %411 {strides = array<i32>} : memref<1x128xf32, #tpu.memory_space<vmem>>, vector<1x8xf32>,
    %c0_451 = arith.constant 0 : index
    %c1_452 = arith.constant 1 : index
    %c0_453 = arith.constant 0 : index
    %c0_454 = arith.constant 0 : index
    %413 = vector.load %arg14[%c0_451, %c1_452, %c0_453, %c0_454] : memref<1x4x8x8xf32, #tpu.memory_space<vmem>>, vector<1x1x1x8xf32>
    %414 = vector.shape_cast %413 : vector<1x1x1x8xf32> to vector<1x8xf32>
    %c0_455 = arith.constant 0 : index
    %c1_456 = arith.constant 1 : index
    %c1_457 = arith.constant 1 : index
    %c0_458 = arith.constant 0 : index
    %415 = vector.load %arg14[%c0_455, %c1_456, %c1_457, %c0_458] : memref<1x4x8x8xf32, #tpu.memory_space<vmem>>, vector<1x1x1x8xf32>
    %416 = vector.shape_cast %415 : vector<1x1x1x8xf32> to vector<1x8xf32>
    %417 = arith.maximumf %414, %416 : vector<1x8xf32>
    %c0_459 = arith.constant 0 : index
    %c32_460 = arith.constant 32 : index
    %418 = vector.load %arg15[%c0_459, %c32_460] : memref<1x128xf32, #tpu.memory_space<vmem>>, vector<1x8xf32>
    tpu.vector_store %arg15[%c0_459, %c32_460], %417 {strides = array<i32>} : memref<1x128xf32, #tpu.memory_space<vmem>>, vector<1x8xf32>,
    %c0_461 = arith.constant 0 : index
    %c1_462 = arith.constant 1 : index
    %c2_463 = arith.constant 2 : index
    %c0_464 = arith.constant 0 : index
    %419 = vector.load %arg14[%c0_461, %c1_462, %c2_463, %c0_464] : memref<1x4x8x8xf32, #tpu.memory_space<vmem>>, vector<1x1x1x8xf32>
    %420 = vector.shape_cast %419 : vector<1x1x1x8xf32> to vector<1x8xf32>
    %c0_465 = arith.constant 0 : index
    %c1_466 = arith.constant 1 : index
    %c3_467 = arith.constant 3 : index
    %c0_468 = arith.constant 0 : index
    %421 = vector.load %arg14[%c0_465, %c1_466, %c3_467, %c0_468] : memref<1x4x8x8xf32, #tpu.memory_space<vmem>>, vector<1x1x1x8xf32>
    %422 = vector.shape_cast %421 : vector<1x1x1x8xf32> to vector<1x8xf32>
    %423 = arith.maximumf %420, %422 : vector<1x8xf32>
    %c0_469 = arith.constant 0 : index
    %c40_470 = arith.constant 40 : index
    %424 = vector.load %arg15[%c0_469, %c40_470] : memref<1x128xf32, #tpu.memory_space<vmem>>, vector<1x8xf32>
    tpu.vector_store %arg15[%c0_469, %c40_470], %423 {strides = array<i32>} : memref<1x128xf32, #tpu.memory_space<vmem>>, vector<1x8xf32>,
    %c0_471 = arith.constant 0 : index
    %c1_472 = arith.constant 1 : index
    %c4_473 = arith.constant 4 : index
    %c0_474 = arith.constant 0 : index
    %425 = vector.load %arg14[%c0_471, %c1_472, %c4_473, %c0_474] : memref<1x4x8x8xf32, #tpu.memory_space<vmem>>, vector<1x1x1x8xf32>
    %426 = vector.shape_cast %425 : vector<1x1x1x8xf32> to vector<1x8xf32>
    %c0_475 = arith.constant 0 : index
    %c1_476 = arith.constant 1 : index
    %c5_477 = arith.constant 5 : index
    %c0_478 = arith.constant 0 : index
    %427 = vector.load %arg14[%c0_475, %c1_476, %c5_477, %c0_478] : memref<1x4x8x8xf32, #tpu.memory_space<vmem>>, vector<1x1x1x8xf32>
    %428 = vector.shape_cast %427 : vector<1x1x1x8xf32> to vector<1x8xf32>
    %429 = arith.maximumf %426, %428 : vector<1x8xf32>
    %c0_479 = arith.constant 0 : index
    %c48_480 = arith.constant 48 : index
    %430 = vector.load %arg15[%c0_479, %c48_480] : memref<1x128xf32, #tpu.memory_space<vmem>>, vector<1x8xf32>
    tpu.vector_store %arg15[%c0_479, %c48_480], %429 {strides = array<i32>} : memref<1x128xf32, #tpu.memory_space<vmem>>, vector<1x8xf32>,
    %c0_481 = arith.constant 0 : index
    %c1_482 = arith.constant 1 : index
    %c6_483 = arith.constant 6 : index
    %c0_484 = arith.constant 0 : index
    %431 = vector.load %arg14[%c0_481, %c1_482, %c6_483, %c0_484] : memref<1x4x8x8xf32, #tpu.memory_space<vmem>>, vector<1x1x1x8xf32>
    %432 = vector.shape_cast %431 : vector<1x1x1x8xf32> to vector<1x8xf32>
    %c0_485 = arith.constant 0 : index
    %c1_486 = arith.constant 1 : index
    %c7_487 = arith.constant 7 : index
    %c0_488 = arith.constant 0 : index
    %433 = vector.load %arg14[%c0_485, %c1_486, %c7_487, %c0_488] : memref<1x4x8x8xf32, #tpu.memory_space<vmem>>, vector<1x1x1x8xf32>
    %434 = vector.shape_cast %433 : vector<1x1x1x8xf32> to vector<1x8xf32>
    %435 = arith.maximumf %432, %434 : vector<1x8xf32>
    %c0_489 = arith.constant 0 : index
    %c56_490 = arith.constant 56 : index
    %436 = vector.load %arg15[%c0_489, %c56_490] : memref<1x128xf32, #tpu.memory_space<vmem>>, vector<1x8xf32>
    tpu.vector_store %arg15[%c0_489, %c56_490], %435 {strides = array<i32>} : memref<1x128xf32, #tpu.memory_space<vmem>>, vector<1x8xf32>,
    %c0_491 = arith.constant 0 : index
    %c2_492 = arith.constant 2 : index
    %c0_493 = arith.constant 0 : index
    %c0_494 = arith.constant 0 : index
    %437 = vector.load %arg14[%c0_491, %c2_492, %c0_493, %c0_494] : memref<1x4x8x8xf32, #tpu.memory_space<vmem>>, vector<1x1x1x8xf32>
    %438 = vector.shape_cast %437 : vector<1x1x1x8xf32> to vector<1x8xf32>
    %c0_495 = arith.constant 0 : index
    %c2_496 = arith.constant 2 : index
    %c1_497 = arith.constant 1 : index
    %c0_498 = arith.constant 0 : index
    %439 = vector.load %arg14[%c0_495, %c2_496, %c1_497, %c0_498] : memref<1x4x8x8xf32, #tpu.memory_space<vmem>>, vector<1x1x1x8xf32>
    %440 = vector.shape_cast %439 : vector<1x1x1x8xf32> to vector<1x8xf32>
    %441 = arith.maximumf %438, %440 : vector<1x8xf32>
    %c0_499 = arith.constant 0 : index
    %c64_500 = arith.constant 64 : index
    %442 = vector.load %arg15[%c0_499, %c64_500] : memref<1x128xf32, #tpu.memory_space<vmem>>, vector<1x8xf32>
    tpu.vector_store %arg15[%c0_499, %c64_500], %441 {strides = array<i32>} : memref<1x128xf32, #tpu.memory_space<vmem>>, vector<1x8xf32>,
    %c0_501 = arith.constant 0 : index
    %c2_502 = arith.constant 2 : index
    %c2_503 = arith.constant 2 : index
    %c0_504 = arith.constant 0 : index
    %443 = vector.load %arg14[%c0_501, %c2_502, %c2_503, %c0_504] : memref<1x4x8x8xf32, #tpu.memory_space<vmem>>, vector<1x1x1x8xf32>
    %444 = vector.shape_cast %443 : vector<1x1x1x8xf32> to vector<1x8xf32>
    %c0_505 = arith.constant 0 : index
    %c2_506 = arith.constant 2 : index
    %c3_507 = arith.constant 3 : index
    %c0_508 = arith.constant 0 : index
    %445 = vector.load %arg14[%c0_505, %c2_506, %c3_507, %c0_508] : memref<1x4x8x8xf32, #tpu.memory_space<vmem>>, vector<1x1x1x8xf32>
    %446 = vector.shape_cast %445 : vector<1x1x1x8xf32> to vector<1x8xf32>
    %447 = arith.maximumf %444, %446 : vector<1x8xf32>
    %c0_509 = arith.constant 0 : index
    %c72_510 = arith.constant 72 : index
    %448 = vector.load %arg15[%c0_509, %c72_510] : memref<1x128xf32, #tpu.memory_space<vmem>>, vector<1x8xf32>
    tpu.vector_store %arg15[%c0_509, %c72_510], %447 {strides = array<i32>} : memref<1x128xf32, #tpu.memory_space<vmem>>, vector<1x8xf32>,
    %c0_511 = arith.constant 0 : index
    %c2_512 = arith.constant 2 : index
    %c4_513 = arith.constant 4 : index
    %c0_514 = arith.constant 0 : index
    %449 = vector.load %arg14[%c0_511, %c2_512, %c4_513, %c0_514] : memref<1x4x8x8xf32, #tpu.memory_space<vmem>>, vector<1x1x1x8xf32>
    %450 = vector.shape_cast %449 : vector<1x1x1x8xf32> to vector<1x8xf32>
    %c0_515 = arith.constant 0 : index
    %c2_516 = arith.constant 2 : index
    %c5_517 = arith.constant 5 : index
    %c0_518 = arith.constant 0 : index
    %451 = vector.load %arg14[%c0_515, %c2_516, %c5_517, %c0_518] : memref<1x4x8x8xf32, #tpu.memory_space<vmem>>, vector<1x1x1x8xf32>
    %452 = vector.shape_cast %451 : vector<1x1x1x8xf32> to vector<1x8xf32>
    %453 = arith.maximumf %450, %452 : vector<1x8xf32>
    %c0_519 = arith.constant 0 : index
    %c80_520 = arith.constant 80 : index
    %454 = vector.load %arg15[%c0_519, %c80_520] : memref<1x128xf32, #tpu.memory_space<vmem>>, vector<1x8xf32>
    tpu.vector_store %arg15[%c0_519, %c80_520], %453 {strides = array<i32>} : memref<1x128xf32, #tpu.memory_space<vmem>>, vector<1x8xf32>,
    %c0_521 = arith.constant 0 : index
    %c2_522 = arith.constant 2 : index
    %c6_523 = arith.constant 6 : index
    %c0_524 = arith.constant 0 : index
    %455 = vector.load %arg14[%c0_521, %c2_522, %c6_523, %c0_524] : memref<1x4x8x8xf32, #tpu.memory_space<vmem>>, vector<1x1x1x8xf32>
    %456 = vector.shape_cast %455 : vector<1x1x1x8xf32> to vector<1x8xf32>
    %c0_525 = arith.constant 0 : index
    %c2_526 = arith.constant 2 : index
    %c7_527 = arith.constant 7 : index
    %c0_528 = arith.constant 0 : index
    %457 = vector.load %arg14[%c0_525, %c2_526, %c7_527, %c0_528] : memref<1x4x8x8xf32, #tpu.memory_space<vmem>>, vector<1x1x1x8xf32>
    %458 = vector.shape_cast %457 : vector<1x1x1x8xf32> to vector<1x8xf32>
    %459 = arith.maximumf %456, %458 : vector<1x8xf32>
    %c0_529 = arith.constant 0 : index
    %c88_530 = arith.constant 88 : index
    %460 = vector.load %arg15[%c0_529, %c88_530] : memref<1x128xf32, #tpu.memory_space<vmem>>, vector<1x8xf32>
    tpu.vector_store %arg15[%c0_529, %c88_530], %459 {strides = array<i32>} : memref<1x128xf32, #tpu.memory_space<vmem>>, vector<1x8xf32>,
    %c0_531 = arith.constant 0 : index
    %c3_532 = arith.constant 3 : index
    %c0_533 = arith.constant 0 : index
    %c0_534 = arith.constant 0 : index
    %461 = vector.load %arg14[%c0_531, %c3_532, %c0_533, %c0_534] : memref<1x4x8x8xf32, #tpu.memory_space<vmem>>, vector<1x1x1x8xf32>
    %462 = vector.shape_cast %461 : vector<1x1x1x8xf32> to vector<1x8xf32>
    %c0_535 = arith.constant 0 : index
    %c3_536 = arith.constant 3 : index
    %c1_537 = arith.constant 1 : index
    %c0_538 = arith.constant 0 : index
    %463 = vector.load %arg14[%c0_535, %c3_536, %c1_537, %c0_538] : memref<1x4x8x8xf32, #tpu.memory_space<vmem>>, vector<1x1x1x8xf32>
    %464 = vector.shape_cast %463 : vector<1x1x1x8xf32> to vector<1x8xf32>
    %465 = arith.maximumf %462, %464 : vector<1x8xf32>
    %c0_539 = arith.constant 0 : index
    %c96_540 = arith.constant 96 : index
    %466 = vector.load %arg15[%c0_539, %c96_540] : memref<1x128xf32, #tpu.memory_space<vmem>>, vector<1x8xf32>
    tpu.vector_store %arg15[%c0_539, %c96_540], %465 {strides = array<i32>} : memref<1x128xf32, #tpu.memory_space<vmem>>, vector<1x8xf32>,
    %c0_541 = arith.constant 0 : index
    %c3_542 = arith.constant 3 : index
    %c2_543 = arith.constant 2 : index
    %c0_544 = arith.constant 0 : index
    %467 = vector.load %arg14[%c0_541, %c3_542, %c2_543, %c0_544] : memref<1x4x8x8xf32, #tpu.memory_space<vmem>>, vector<1x1x1x8xf32>
    %468 = vector.shape_cast %467 : vector<1x1x1x8xf32> to vector<1x8xf32>
    %c0_545 = arith.constant 0 : index
    %c3_546 = arith.constant 3 : index
    %c3_547 = arith.constant 3 : index
    %c0_548 = arith.constant 0 : index
    %469 = vector.load %arg14[%c0_545, %c3_546, %c3_547, %c0_548] : memref<1x4x8x8xf32, #tpu.memory_space<vmem>>, vector<1x1x1x8xf32>
    %470 = vector.shape_cast %469 : vector<1x1x1x8xf32> to vector<1x8xf32>
    %471 = arith.maximumf %468, %470 : vector<1x8xf32>
    %c0_549 = arith.constant 0 : index
    %c104 = arith.constant 104 : index
    %472 = vector.load %arg15[%c0_549, %c104] : memref<1x128xf32, #tpu.memory_space<vmem>>, vector<1x8xf32>
    tpu.vector_store %arg15[%c0_549, %c104], %471 {strides = array<i32>} : memref<1x128xf32, #tpu.memory_space<vmem>>, vector<1x8xf32>,
    %c0_550 = arith.constant 0 : index
    %c3_551 = arith.constant 3 : index
    %c4_552 = arith.constant 4 : index
    %c0_553 = arith.constant 0 : index
    %473 = vector.load %arg14[%c0_550, %c3_551, %c4_552, %c0_553] : memref<1x4x8x8xf32, #tpu.memory_space<vmem>>, vector<1x1x1x8xf32>
    %474 = vector.shape_cast %473 : vector<1x1x1x8xf32> to vector<1x8xf32>
    %c0_554 = arith.constant 0 : index
    %c3_555 = arith.constant 3 : index
    %c5_556 = arith.constant 5 : index
    %c0_557 = arith.constant 0 : index
    %475 = vector.load %arg14[%c0_554, %c3_555, %c5_556, %c0_557] : memref<1x4x8x8xf32, #tpu.memory_space<vmem>>, vector<1x1x1x8xf32>
    %476 = vector.shape_cast %475 : vector<1x1x1x8xf32> to vector<1x8xf32>
    %477 = arith.maximumf %474, %476 : vector<1x8xf32>
    %c0_558 = arith.constant 0 : index
    %c112 = arith.constant 112 : index
    %478 = vector.load %arg15[%c0_558, %c112] : memref<1x128xf32, #tpu.memory_space<vmem>>, vector<1x8xf32>
    tpu.vector_store %arg15[%c0_558, %c112], %477 {strides = array<i32>} : memref<1x128xf32, #tpu.memory_space<vmem>>, vector<1x8xf32>,
    %c0_559 = arith.constant 0 : index
    %c3_560 = arith.constant 3 : index
    %c6_561 = arith.constant 6 : index
    %c0_562 = arith.constant 0 : index
    %479 = vector.load %arg14[%c0_559, %c3_560, %c6_561, %c0_562] : memref<1x4x8x8xf32, #tpu.memory_space<vmem>>, vector<1x1x1x8xf32>
    %480 = vector.shape_cast %479 : vector<1x1x1x8xf32> to vector<1x8xf32>
    %c0_563 = arith.constant 0 : index
    %c3_564 = arith.constant 3 : index
    %c7_565 = arith.constant 7 : index
    %c0_566 = arith.constant 0 : index
    %481 = vector.load %arg14[%c0_563, %c3_564, %c7_565, %c0_566] : memref<1x4x8x8xf32, #tpu.memory_space<vmem>>, vector<1x1x1x8xf32>
    %482 = vector.shape_cast %481 : vector<1x1x1x8xf32> to vector<1x8xf32>
    %483 = arith.maximumf %480, %482 : vector<1x8xf32>
    %c0_567 = arith.constant 0 : index
    %c120 = arith.constant 120 : index
    %484 = vector.load %arg15[%c0_567, %c120] : memref<1x128xf32, #tpu.memory_space<vmem>>, vector<1x8xf32>
    tpu.vector_store %arg15[%c0_567, %c120], %483 {strides = array<i32>} : memref<1x128xf32, #tpu.memory_space<vmem>>, vector<1x8xf32>,
    %c0_568 = arith.constant 0 : index
    %c0_569 = arith.constant 0 : index
    %485 = vector.load %arg15[%c0_568, %c0_569] : memref<1x128xf32, #tpu.memory_space<vmem>>, vector<1x128xf32>
    %486 = arith.truncf %485 : vector<1x128xf32> to vector<1x128xbf16>
    %c0_570 = arith.constant 0 : index
    %c0_571 = arith.constant 0 : index
    %487 = vector.load %arg6[%c0_570, %c0_571] : memref<128x512xbf16, #tpu.memory_space<vmem>>, vector<128x512xbf16>
    %cst_572 = arith.constant dense<0.000000e+00> : vector<1x512xf32>
    %488 = tpu.matmul %486, %487, %cst_572 {dimension_numbers = #tpu.dot_dimension_numbers<[1], [0], [0], [1], [0, 0, 1, 1], [], []>} : vector<1x128xbf16>, vector<128x512xbf16>, vector<1x512xf32> -> vector<1x512xf32>
    %c0_573 = arith.constant 0 : index
    %c0_574 = arith.constant 0 : index
    %489 = vector.load %arg7[%c0_573, %c0_574] : memref<1x512xf32, #tpu.memory_space<vmem>>, vector<1x512xf32>
    %490 = arith.addf %488, %489 : vector<1x512xf32>
    %cst_575 = arith.constant 0.000000e+00 : f32
    %491 = vector.broadcast %cst_575 : f32 to vector<1x512xf32>
    %492 = arith.maximumf %490, %491 : vector<1x512xf32>
    %493 = arith.truncf %492 : vector<1x512xf32> to vector<1x512xbf16>
    %c0_576 = arith.constant 0 : index
    %c0_577 = arith.constant 0 : index
    %494 = vector.load %arg8[%c0_576, %c0_577] : memref<512x10xbf16, #tpu.memory_space<vmem>>, vector<512x10xbf16>
    %cst_578 = arith.constant dense<0.000000e+00> : vector<1x10xf32>
    %495 = tpu.matmul %493, %494, %cst_578 {dimension_numbers = #tpu.dot_dimension_numbers<[1], [0], [0], [1], [0, 0, 1, 1], [], []>} : vector<1x512xbf16>, vector<512x10xbf16>, vector<1x10xf32> -> vector<1x10xf32>
    %c0_579 = arith.constant 0 : index
    %c0_580 = arith.constant 0 : index
    %496 = vector.load %arg9[%c0_579, %c0_580] : memref<1x10xf32, #tpu.memory_space<vmem>>, vector<1x10xf32>
    %497 = arith.addf %495, %496 : vector<1x10xf32>
    %cst_581 = arith.constant dense<0xFF800000> : vector<1xf32>
    %498 = vector.multi_reduction <maximumf>, %497, %cst_581 [1] : vector<1x10xf32> to vector<1xf32>
    %499 = vector.shape_cast %498 : vector<1xf32> to vector<1x1xf32>
    %500 = vector.broadcast %499 : vector<1x1xf32> to vector<1x10xf32>
    %501 = arith.subf %497, %500 : vector<1x10xf32>
    %502 = math.exp %501 : vector<1x10xf32>
    %cst_582 = arith.constant dense<0.000000e+00> : vector<1xf32>
    %503 = vector.multi_reduction <add>, %502, %cst_582 [1] : vector<1x10xf32> to vector<1xf32>
    %504 = vector.shape_cast %503 : vector<1xf32> to vector<1x1xf32>
    %505 = math.log %504 : vector<1x1xf32>
    %506 = vector.broadcast %505 : vector<1x1xf32> to vector<1x10xf32>
    %507 = arith.subf %501, %506 : vector<1x10xf32>
    %508 = vector.shape_cast %507 : vector<1x10xf32> to vector<1x1x10xf32>
    %c0_583 = arith.constant 0 : index
    %c0_584 = arith.constant 0 : index
    %c0_585 = arith.constant 0 : index
    %509 = vector.load %arg10[%c0_583, %c0_584, %c0_585] : memref<1x1x10xf32, #tpu.memory_space<vmem>>, vector<1x1x10xf32>
    tpu.vector_store %arg10[%c0_583, %c0_584, %c0_585], %508 {strides = array<i32>} : memref<1x1x10xf32, #tpu.memory_space<vmem>>, vector<1x1x10xf32>,
    return
  }
  func.func @transform_0(%arg0: i32) -> (i32, i32, i32, i32) {
    %c0_i32 = arith.constant 0 : i32
    %c0_i32_0 = arith.constant 0 : i32
    %c0_i32_1 = arith.constant 0 : i32
    %c0_i32_2 = arith.constant 0 : i32
    return %arg0, %c0_i32, %c0_i32_0, %c0_i32_1 : i32, i32, i32, i32
  }
  func.func @transform_1(%arg0: i32) -> (i32, i32) {
    %c0_i32 = arith.constant 0 : i32
    %c0_i32_0 = arith.constant 0 : i32
    %c0_i32_1 = arith.constant 0 : i32
    return %c0_i32, %c0_i32_0 : i32, i32
  }
  func.func @transform_2(%arg0: i32) -> (i32, i32) {
    %c0_i32 = arith.constant 0 : i32
    %c0_i32_0 = arith.constant 0 : i32
    %c0_i32_1 = arith.constant 0 : i32
    return %c0_i32, %c0_i32_0 : i32, i32
  }
  func.func @transform_3(%arg0: i32) -> (i32, i32) {
    %c0_i32 = arith.constant 0 : i32
    %c0_i32_0 = arith.constant 0 : i32
    %c0_i32_1 = arith.constant 0 : i32
    return %c0_i32, %c0_i32_0 : i32, i32
  }
  func.func @transform_4(%arg0: i32) -> (i32, i32) {
    %c0_i32 = arith.constant 0 : i32
    %c0_i32_0 = arith.constant 0 : i32
    %c0_i32_1 = arith.constant 0 : i32
    return %c0_i32, %c0_i32_0 : i32, i32
  }
  func.func @transform_5(%arg0: i32) -> (i32, i32) {
    %c0_i32 = arith.constant 0 : i32
    %c0_i32_0 = arith.constant 0 : i32
    %c0_i32_1 = arith.constant 0 : i32
    return %c0_i32, %c0_i32_0 : i32, i32
  }
  func.func @transform_6(%arg0: i32) -> (i32, i32) {
    %c0_i32 = arith.constant 0 : i32
    %c0_i32_0 = arith.constant 0 : i32
    %c0_i32_1 = arith.constant 0 : i32
    return %c0_i32, %c0_i32_0 : i32, i32
  }
  func.func @transform_7(%arg0: i32) -> (i32, i32) {
    %c0_i32 = arith.constant 0 : i32
    %c0_i32_0 = arith.constant 0 : i32
    %c0_i32_1 = arith.constant 0 : i32
    return %c0_i32, %c0_i32_0 : i32, i32
  }
  func.func @transform_8(%arg0: i32) -> (i32, i32) {
    %c0_i32 = arith.constant 0 : i32
    %c0_i32_0 = arith.constant 0 : i32
    %c0_i32_1 = arith.constant 0 : i32
    return %c0_i32, %c0_i32_0 : i32, i32
  }
  func.func @transform_9(%arg0: i32) -> (i32, i32, i32) {
    %c0_i32 = arith.constant 0 : i32
    %c0_i32_0 = arith.constant 0 : i32
    %c0_i32_1 = arith.constant 0 : i32
    return %arg0, %c0_i32, %c0_i32_0 : i32, i32, i32
  }
}

</mosaic_0001>

<bundles_post_ra>
// kernel: convnet_forward.1
= control target key start
LH: loop header
LB: loop body
LE: loop exit
PB: predicated region body
PF: predicated region fallthrough
CT: control target
= control target key end

     0   :  { %14 = vsyncpa [#allocation8], 0  ;;  %s16570_s0 = inlined_call_operand.vmem [shape: f32[2,16,16,1], index: 0, kind: input, shape index: {}]   ;;  %s16571_s1 = inlined_call_operand.vmem [shape: f32[25,4], index: 1, kind: input, shape index: {}]   ;;  %s16572_s2 = inlined_call_operand.vmem [shape: f32[1,4], index: 2, kind: input, shape index: {}]   ;;  %s16573_s3 = inlined_call_operand.vmem [shape: bf16[100,8], index: 3, kind: input, shape index: {}]   ;;  %s16574_s4 = inlined_call_operand.vmem [shape: f32[1,8], index: 4, kind: input, shape index: {}]   ;;  %s16575_s5 = inlined_call_operand.vmem [shape: bf16[128,512], index: 5, kind: input, shape index: {}]   ;;  %s16576_s6 = inlined_call_operand.vmem [shape: f32[1,512], index: 6, kind: input, shape index: {}]   ;;  %s16577_s7 = inlined_call_operand.vmem [shape: bf16[512,10], index: 7, kind: input, shape index: {}]   ;;  %s16578_s8 = inlined_call_operand.vmem [shape: f32[1,10], index: 8, kind: input, shape index: {}]   ;;  %s16579_s9 = inlined_call_operand.hbm [shape: f32[2,1,10], index: 9, kind: output, shape index: {}]  }
   0x1   :  { %16 = vsyncpa [#allocation8 + $0x1], 0  ;;  %s12007_s30 = smov 0   ;;  %s12009_s10 = smov 0  }
   0x2   :  { %s12011_s11 = smov 0   ;;  %s12013_s12 = smov 0  }
   0x3 LB: > { %s12028_s13 = sadd.s32 4294967295, %s11937_s12   ;;  %s10834_s14 = sadd.s32 4294967294, %s11937_s12   ;;  %s11937_s12 = sphi %s12013_s12, %s17414_s12   ;;  %s11933_s11 = sphi %s12011_s11, %s17413_s11   ;;  %s11929_s10 = sphi %s12009_s10, %s17412_s10   ;;  %s11925_s30 = sphi %s12007_s30, %s17411_s30  }
   0x4   : > { %s12032_s15 = sadd.s32 1, %s11937_s12   ;;  %s223_s16 = sadd.s32 1, %s11933_s11 }
   0x5   : > { %s220_s17 = ssub.s32 %s11937_s12, %s12032_s15  ;;  %p233_p0 = scmp.ne.s32.totalorder %s11933_s11, %s11929_s10 }
   0x6   : > { %p221_p1 = scmp.eq.s32.totalorder %s220_s17, 0  ;;  %p234_p2 = scmp.eq.s32.totalorder %s12028_s13, 1 }
   0x7   : > { %p239_p3 = scmp.ne.s32.totalorder %s11929_s10, %s11925_s30  ;;  %p240_p4 = scmp.eq.s32.totalorder %s10834_s14, 1 }
   0x8   : > { %s12043_s18 = scalar_select %p221_p1, %s11933_s11, %s223_s16  }
   0x9   : > { %p12045_p5 = por %p234_p2, %p233_p0  ;;  %p12049_p6 = por %p240_p4, %p239_p3 }
   0xa   : > { %p10837_p7 = scmp.ge.s32.totalorder %s11937_s12, 1  ;;  %p290_p8 = scmp.lt.s32.totalorder %s11937_s12, 3 }
   0xc   : > { %p291_p9 = pnand %p10837_p7, %p290_p8 }
   0xe   : > { %294 = sbr.rel (%p291_p9) target bundleno = 3218 (0xc92), region = 56 }
  0x15   : > { %vm331_vm0 = vcmask 7168   ;;  %p325_p10 = scmp.lt.s32.totalorder %s12028_s13, 1  ;;  %vm334_vm1 = vcmask 3072   ;;  %v16580_v0 = vmov 0   ;;  %v16582_v1 = vmov 0.0   ;;  %s11941_s14 = smov 16  }
  0x16   : > { %11740 = vset.pattern.permute.xlu1 %v16580_v0  ;;  %11739 = vset.pattern.permute.xlu0 %v16580_v0  ;;  %336 = vst.msk [vmem:[#allocation2 + $0x18] sm:$0xff] %vm331_vm0, %v16582_v1  ;;  %332 = vst.msk [vmem:[#allocation2] sm:$0xff] %vm331_vm0, %v16582_v1  ;;  %vm7073_vm2 = vcmask 31744   ;;  %vm7091_vm3 = vcmask 27648   ;;  %vm7415_vm4 = vcmask 1041408   ;;  %vm7140_vm5 = vcmask 24576  }
  0x17   : > { %333 = vst.msk [vmem:[#allocation2 + $0x8] sm:$0xff] %vm331_vm0, %v16582_v1  ;;  %337 = vst.msk [vmem:[#allocation2 + $0x20] sm:$0xff] %vm331_vm0, %v16582_v1  ;;  %s326_s21 = scalar_select %p325_p10, %s12028_s13, 1  ;;  %vm9961_vm6 = vcmask 64512   ;;  %vm9969_vm7 = vcmask 57344   ;;  %vm9978_vm8 = vcmask 122944  }
  0x18   : > { %339 = vst.msk [vmem:[#allocation2 + $0x30] sm:$0xff] %vm331_vm0, %v16582_v1  ;;  %340 = vst.msk [vmem:[#allocation2 + $0x38] sm:$0xff] %vm331_vm0, %v16582_v1  ;;  %s11942_s16 = smov 8   ;;  %s11943_s27 = smov 32   ;;  %vm9987_vm9 = vcmask 188544   ;;  %vm9996_vm10 = vcmask 254144  }
  0x19   : > { %342 = vst.msk [vmem:[#allocation2 + $0x48] sm:$0xff] %vm331_vm0, %v16582_v1  ;;  %343 = vst.msk [vmem:[#allocation2 + $0x50] sm:$0xff] %vm331_vm0, %v16582_v1  ;;  %s11046_s22 = sshll.u32 %s326_s21, 8  ;;  %s11944_s29 = smov 24   ;;  %vm10006_vm11 = vcmask 319744   ;;  %vm10015_vm12 = vcmask 385344  }
  0x1a   : > { %345 = vst.msk [vmem:[#allocation2 + $0x60] sm:$0xff] %vm331_vm0, %v16582_v1  ;;  %346 = vst.msk [vmem:[#allocation2 + $0x68] sm:$0xff] %vm331_vm0, %v16582_v1  ;;  %s12184_s25 = scalar_lea.vmem %s16570_s0, %s11046_s22  ;;  %s11948_s28 = smov 56   ;;  %vm10024_vm13 = vcmask 450944   ;;  %vm10033_vm14 = vcmask 516544   ;;  %vm10043_vm15 = vcmask 582144  }
  0x1b   : > { %348 = vst.msk [vmem:[#allocation2 + $0x78] sm:$0xff] %vm331_vm0, %v16582_v1  ;;  %349 = vst.msk [vmem:[#allocation2 + $0x80] sm:$0xff] %vm331_vm0, %v16582_v1  ;;  %v393_v2 = vld [vmem:[%s12184_s25] sm:$0xff]  ;;  %v394_v3 = vld [vmem:[%s12184_s25 + $0x8] sm:$0xff]  ;;  %s11949_s17 = smov 80   ;;  %s11950_s21 = smov 72  }
  0x1c   : > { %351 = vst.msk [vmem:[#allocation2 + $0x90] sm:$0xff] %vm331_vm0, %v16582_v1  ;;  %352 = vst.msk [vmem:[#allocation2 + $0x98] sm:$0xff] %vm331_vm0, %v16582_v1  ;;  %v395_v4 = vld [vmem:[%s12184_s25 + $0x10] sm:$0xff]  ;;  %v396_v5 = vld [vmem:[%s12184_s25 + $0x18] sm:$0xff] }
  0x1d   : > { %354 = vst.msk [vmem:[#allocation2 + $0xa8] sm:$0xff] %vm331_vm0, %v16582_v1  ;;  %355 = vst.msk [vmem:[#allocation2 + $0xb0] sm:$0xff] %vm331_vm0, %v16582_v1  ;;  %v397_v6 = vld [vmem:[%s12184_s25 + $0x20] sm:$0xff]  ;;  %v398_v7 = vld [vmem:[%s12184_s25 + $0x28] sm:$0xff] }
  0x1e   : > { %357 = vst.msk [vmem:[#allocation2 + $0xc0] sm:$0xff] %vm331_vm0, %v16582_v1  ;;  %358 = vst.msk [vmem:[#allocation2 + $0xc8] sm:$0xff] %vm331_vm0, %v16582_v1  ;;  %v460_v8 = vld [vmem:[#allocation2 + $0x18] sm:$0xff]  ;;  %v458_v9 = vld [vmem:[#allocation2] sm:$0xff] }
  0x1f   : > { %360 = vst.msk [vmem:[#allocation2 + $0xd8] sm:$0xff] %vm331_vm0, %v16582_v1  ;;  %361 = vst.msk [vmem:[#allocation2 + $0xe0] sm:$0xff] %vm331_vm0, %v16582_v1  ;;  %v461_v10 = vld [vmem:[#allocation2 + $0x20] sm:$0xff]  ;;  %503 = vperm.xlu1 %11740, %v460_v8   ;;  %493 = vperm.xlu0 %11739, %v458_v9   ;;  %v459_v11 = vld [vmem:[#allocation2 + $0x8] sm:$0xff] }
  0x20   : > { %363 = vst.msk [vmem:[#allocation2 + $0xf0] sm:$0xff] %vm331_vm0, %v16582_v1  ;;  %364 = vst.msk [vmem:[#allocation2 + $0xf8] sm:$0xff] %vm331_vm0, %v16582_v1  ;;  %v399_v12 = vld [vmem:[%s12184_s25 + $0x30] sm:$0xff]  ;;  %v400_v13 = vld [vmem:[%s12184_s25 + $0x38] sm:$0xff] }
  0x21   : > { %366 = vst.msk [vmem:[#allocation2 + $0x108] sm:$0xff] %vm331_vm0, %v16582_v1  ;;  %367 = vst.msk [vmem:[#allocation2 + $0x110] sm:$0xff] %vm331_vm0, %v16582_v1  ;;  %v401_v14 = vld [vmem:[%s12184_s25 + $0x40] sm:$0xff]  ;;  %v402_v15 = vld [vmem:[%s12184_s25 + $0x48] sm:$0xff] }
  0x22   : > { %369 = vst.msk [vmem:[#allocation2 + $0x120] sm:$0xff] %vm331_vm0, %v16582_v1  ;;  %370 = vst.msk [vmem:[#allocation2 + $0x128] sm:$0xff] %vm331_vm0, %v16582_v1  ;;  %v403_v16 = vld [vmem:[%s12184_s25 + $0x50] sm:$0xff]  ;;  %v404_v17 = vld [vmem:[%s12184_s25 + $0x58] sm:$0xff] }
  0x23   : > { %372 = vst.msk [vmem:[#allocation2 + $0x138] sm:$0xff] %vm331_vm0, %v16582_v1  ;;  %373 = vst.msk [vmem:[#allocation2 + $0x140] sm:$0xff] %vm331_vm0, %v16582_v1  ;;  %v405_v18 = vld [vmem:[%s12184_s25 + $0x60] sm:$0xff]  ;;  %v406_v19 = vld [vmem:[%s12184_s25 + $0x68] sm:$0xff]  ;;  %508 = vperm.xlu1 %11740, %v461_v10   ;;  %498 = vperm.xlu0 %11739, %v459_v11  }
  0x24   : > { %375 = vst.msk [vmem:[#allocation2 + $0x150] sm:$0xff] %vm331_vm0, %v16582_v1  ;;  %376 = vst.msk [vmem:[#allocation2 + $0x158] sm:$0xff] %vm331_vm0, %v16582_v1  ;;  %v407_v20 = vld [vmem:[%s12184_s25 + $0x70] sm:$0xff]  ;;  %v408_v21 = vld [vmem:[%s12184_s25 + $0x78] sm:$0xff] }
  0x25   : > { %378 = vst.msk [vmem:[#allocation2 + $0x168] sm:$0xff] %vm331_vm0, %v16582_v1  ;;  %379 = vst.msk [vmem:[#allocation2 + $0x170] sm:$0xff] %vm331_vm0, %v16582_v1  ;;  %v409_v22 = vld [vmem:[%s12184_s25 + $0x80] sm:$0xff]  ;;  %v410_v23 = vld [vmem:[%s12184_s25 + $0x88] sm:$0xff] }
  0x26   : > { %381 = vst.msk [vmem:[#allocation2 + $0x180] sm:$0xff] %vm331_vm0, %v16582_v1  ;;  %382 = vst.msk [vmem:[#allocation2 + $0x188] sm:$0xff] %vm331_vm0, %v16582_v1  ;;  %v411_v24 = vld [vmem:[%s12184_s25 + $0x90] sm:$0xff]  ;;  %v412_v25 = vld [vmem:[%s12184_s25 + $0x98] sm:$0xff] }
  0x27   : > { %384 = vst.msk [vmem:[#allocation2 + $0x198] sm:$0xff] %vm331_vm0, %v16582_v1  ;;  %385 = vst.msk [vmem:[#allocation2 + $0x1a0] sm:$0xff] %vm331_vm0, %v16582_v1  ;;  %v413_v28 = vld [vmem:[%s12184_s25 + $0xa0] sm:$0xff]  ;;  %v414_v29 = vld [vmem:[%s12184_s25 + $0xa8] sm:$0xff] }
  0x28   : > { %387 = vst.msk [vmem:[#allocation2 + $0x1b0] sm:$0xff] %vm331_vm0, %v16582_v1  ;;  %388 = vst.msk [vmem:[#allocation2 + $0x1b8] sm:$0xff] %vm331_vm0, %v16582_v1  ;;  %v415_v30 = vld [vmem:[%s12184_s25 + $0xb0] sm:$0xff]  ;;  %v416_v31 = vld [vmem:[%s12184_s25 + $0xb8] sm:$0xff] }
  0x29   : > { %390 = vst.msk [vmem:[#allocation2 + $0x1c8] sm:$0xff] %vm331_vm0, %v16582_v1  ;;  %391 = vst.msk [vmem:[#allocation2 + $0x1d0] sm:$0xff] %vm331_vm0, %v16582_v1  ;;  %v417_v36 = vld [vmem:[%s12184_s25 + $0xc0] sm:$0xff]  ;;  %v418_v37 = vld [vmem:[%s12184_s25 + $0xc8] sm:$0xff] }
  0x2a   : > { %341 = vst.msk [vmem:[#allocation2 + $0x40] sm:$0xf] %vm334_vm1, %v16582_v1  ;;  %335 = vst.msk [vmem:[#allocation2 + $0x10] sm:$0xf] %vm334_vm1, %v16582_v1  ;;  %v419_v38 = vld [vmem:[%s12184_s25 + $0xd0] sm:$0xff]  ;;  %v420_v39 = vld [vmem:[%s12184_s25 + $0xd8] sm:$0xff] }
  0x2b   : > { %338 = vst.msk [vmem:[#allocation2 + $0x28] sm:$0xf] %vm334_vm1, %v16582_v1  ;;  %344 = vst.msk [vmem:[#allocation2 + $0x58] sm:$0xf] %vm334_vm1, %v16582_v1  ;;  %v719_v63 = vld [vmem:[#allocation2 + $0x1] sm:$0xff] }
  0x2c   : > { %347 = vst.msk [vmem:[#allocation2 + $0x70] sm:$0xf] %vm334_vm1, %v16582_v1  ;;  %350 = vst.msk [vmem:[#allocation2 + $0x88] sm:$0xf] %vm334_vm1, %v16582_v1 }
  0x2d   : > { %353 = vst.msk [vmem:[#allocation2 + $0xa0] sm:$0xf] %vm334_vm1, %v16582_v1  ;;  %356 = vst.msk [vmem:[#allocation2 + $0xb8] sm:$0xf] %vm334_vm1, %v16582_v1 }
  0x2e   : > { %359 = vst.msk [vmem:[#allocation2 + $0xd0] sm:$0xf] %vm334_vm1, %v16582_v1  ;;  %362 = vst.msk [vmem:[#allocation2 + $0xe8] sm:$0xf] %vm334_vm1, %v16582_v1 }
  0x2f   : > { %365 = vst.msk [vmem:[#allocation2 + $0x100] sm:$0xf] %vm334_vm1, %v16582_v1  ;;  %368 = vst.msk [vmem:[#allocation2 + $0x118] sm:$0xf] %vm334_vm1, %v16582_v1 }
  0x30   : > { %371 = vst.msk [vmem:[#allocation2 + $0x130] sm:$0xf] %vm334_vm1, %v16582_v1  ;;  %374 = vst.msk [vmem:[#allocation2 + $0x148] sm:$0xf] %vm334_vm1, %v16582_v1 }
  0x31   : > { %377 = vst.msk [vmem:[#allocation2 + $0x160] sm:$0xf] %vm334_vm1, %v16582_v1  ;;  %380 = vst.msk [vmem:[#allocation2 + $0x178] sm:$0xf] %vm334_vm1, %v16582_v1  ;;  %v720_v62 = vld [vmem:[#allocation2 + $0x9] sm:$0xff] }
  0x32   : > { %383 = vst.msk [vmem:[#allocation2 + $0x190] sm:$0xf] %vm334_vm1, %v16582_v1  ;;  %386 = vst.msk [vmem:[#allocation2 + $0x1a8] sm:$0xf] %vm334_vm1, %v16582_v1 }
  0x33   : > { %389 = vst.msk [vmem:[#allocation2 + $0x1c0] sm:$0xf] %vm334_vm1, %v16582_v1  ;;  %392 = vst.msk [vmem:[#allocation2 + $0x1d8] sm:$0xf] %vm334_vm1, %v16582_v1  ;;  %vm10061_vm1 = vcmask 713344  }
  0x34   : > { %426 = vst.msk [vmem:[#allocation2 + $0x32] sm:$0xff] %vm331_vm0, %v393_v2  ;;  %427 = vst.msk [vmem:[#allocation2 + $0x3a] sm:$0xff] %vm331_vm0, %v394_v3  ;;  %v722_v2 = vld [vmem:[#allocation2 + $0x21] sm:$0xff]  ;;  %v721_v3 = vld [vmem:[#allocation2 + $0x19] sm:$0xff] }
  0x35   : > { %428 = vst.msk [vmem:[#allocation2 + $0x4a] sm:$0xff] %vm331_vm0, %v395_v4  ;;  %429 = vst.msk [vmem:[#allocation2 + $0x52] sm:$0xff] %vm331_vm0, %v396_v5 }
  0x36   : > { %430 = vst.msk [vmem:[#allocation2 + $0x62] sm:$0xff] %vm331_vm0, %v397_v6  ;;  %431 = vst.msk [vmem:[#allocation2 + $0x6a] sm:$0xff] %vm331_vm0, %v398_v7 }
  0x37   : > { %432 = vst.msk [vmem:[#allocation2 + $0x7a] sm:$0xff] %vm331_vm0, %v399_v12  ;;  %433 = vst.msk [vmem:[#allocation2 + $0x82] sm:$0xff] %vm331_vm0, %v400_v13 }
  0x38   : > { %434 = vst.msk [vmem:[#allocation2 + $0x92] sm:$0xff] %vm331_vm0, %v401_v14  ;;  %435 = vst.msk [vmem:[#allocation2 + $0x9a] sm:$0xff] %vm331_vm0, %v402_v15 }
  0x39   : > { %436 = vst.msk [vmem:[#allocation2 + $0xaa] sm:$0xff] %vm331_vm0, %v403_v16  ;;  %437 = vst.msk [vmem:[#allocation2 + $0xb2] sm:$0xff] %vm331_vm0, %v404_v17 }
  0x3a   : > { %438 = vst.msk [vmem:[#allocation2 + $0xc2] sm:$0xff] %vm331_vm0, %v405_v18  ;;  %439 = vst.msk [vmem:[#allocation2 + $0xca] sm:$0xff] %vm331_vm0, %v406_v19 }
  0x3b   : > { %440 = vst.msk [vmem:[#allocation2 + $0xda] sm:$0xff] %vm331_vm0, %v407_v20  ;;  %441 = vst.msk [vmem:[#allocation2 + $0xe2] sm:$0xff] %vm331_vm0, %v408_v21  ;;  %v463_v26 = vld [vmem:[#allocation2 + $0x38] sm:$0xff]  ;;  %v462_v27 = vld [vmem:[#allocation2 + $0x30] sm:$0xff] }
  0x3c   : > { %442 = vst.msk [vmem:[#allocation2 + $0xf2] sm:$0xff] %vm331_vm0, %v409_v22  ;;  %443 = vst.msk [vmem:[#allocation2 + $0xfa] sm:$0xff] %vm331_vm0, %v410_v23  ;;  %518 = vperm.xlu1 %11740, %v463_v26   ;;  %513 = vperm.xlu0 %11739, %v462_v27   ;;  %v465_v32 = vld [vmem:[#allocation2 + $0x50] sm:$0xff]  ;;  %v464_v33 = vld [vmem:[#allocation2 + $0x48] sm:$0xff] }
  0x3d   : > { %444 = vst.msk [vmem:[#allocation2 + $0x10a] sm:$0xff] %vm331_vm0, %v411_v24  ;;  %445 = vst.msk [vmem:[#allocation2 + $0x112] sm:$0xff] %vm331_vm0, %v412_v25  ;;  %v467_v34 = vld [vmem:[#allocation2 + $0x68] sm:$0xff]  ;;  %v466_v35 = vld [vmem:[#allocation2 + $0x60] sm:$0xff] }
  0x3e   : > { %446 = vst.msk [vmem:[#allocation2 + $0x122] sm:$0xff] %vm331_vm0, %v413_v28  ;;  %447 = vst.msk [vmem:[#allocation2 + $0x12a] sm:$0xff] %vm331_vm0, %v414_v29  ;;  %v469_v40 = vld [vmem:[#allocation2 + $0x80] sm:$0xff]  ;;  %v468_v41 = vld [vmem:[#allocation2 + $0x78] sm:$0xff] }
  0x3f   : > { %448 = vst.msk [vmem:[#allocation2 + $0x13a] sm:$0xff] %vm331_vm0, %v415_v30  ;;  %449 = vst.msk [vmem:[#allocation2 + $0x142] sm:$0xff] %vm331_vm0, %v416_v31  ;;  %v471_v42 = vld [vmem:[#allocation2 + $0x98] sm:$0xff]  ;;  %v470_v43 = vld [vmem:[#allocation2 + $0x90] sm:$0xff] }
  0x40   : > { %528 = vperm.xlu1 %11740, %v465_v32   ;;  %523 = vperm.xlu0 %11739, %v464_v33   ;;  %450 = vst.msk [vmem:[#allocation2 + $0x152] sm:$0xff] %vm331_vm0, %v417_v36  ;;  %451 = vst.msk [vmem:[#allocation2 + $0x15a] sm:$0xff] %vm331_vm0, %v418_v37  ;;  %v473_v44 = vld [vmem:[#allocation2 + $0xb0] sm:$0xff]  ;;  %v472_v45 = vld [vmem:[#allocation2 + $0xa8] sm:$0xff] }
  0x41   : > { %452 = vst.msk [vmem:[#allocation2 + $0x16a] sm:$0xff] %vm331_vm0, %v419_v38  ;;  %453 = vst.msk [vmem:[#allocation2 + $0x172] sm:$0xff] %vm331_vm0, %v420_v39  ;;  %v475_v46 = vld [vmem:[#allocation2 + $0xc8] sm:$0xff]  ;;  %v474_v47 = vld [vmem:[#allocation2 + $0xc0] sm:$0xff] }
  0x42   : > { %v477_v48 = vld [vmem:[#allocation2 + $0xe0] sm:$0xff]  ;;  %v476_v49 = vld [vmem:[#allocation2 + $0xd8] sm:$0xff]  ;;  %v725_v7 = vld [vmem:[#allocation2 + $0x49] sm:$0xff] }
  0x43   : > { %v479_v50 = vld [vmem:[#allocation2 + $0xf8] sm:$0xff]  ;;  %v478_v51 = vld [vmem:[#allocation2 + $0xf0] sm:$0xff]  ;;  %v727_v9 = vld [vmem:[#allocation2 + $0x61] sm:$0xff] }
  0x44   : > { %538 = vperm.xlu1 %11740, %v467_v34   ;;  %533 = vperm.xlu0 %11739, %v466_v35   ;;  %v481_v52 = vld [vmem:[#allocation2 + $0x110] sm:$0xff]  ;;  %v480_v53 = vld [vmem:[#allocation2 + $0x108] sm:$0xff]  ;;  %v724_v4 = vld [vmem:[#allocation2 + $0x39] sm:$0xff] }
  0x45   : > { %v483_v54 = vld [vmem:[#allocation2 + $0x128] sm:$0xff]  ;;  %v482_v55 = vld [vmem:[#allocation2 + $0x120] sm:$0xff]  ;;  %v723_v5 = vld [vmem:[#allocation2 + $0x31] sm:$0xff] }
  0x46   : > { %v485_v56 = vld [vmem:[#allocation2 + $0x140] sm:$0xff]  ;;  %v484_v57 = vld [vmem:[#allocation2 + $0x138] sm:$0xff]  ;;  %v728_v8 = vld [vmem:[#allocation2 + $0x69] sm:$0xff] }
  0x47   : > { %v487_v58 = vld [vmem:[#allocation2 + $0x158] sm:$0xff]  ;;  %v486_v59 = vld [vmem:[#allocation2 + $0x150] sm:$0xff]  ;;  %v730_v10 = vld [vmem:[#allocation2 + $0x81] sm:$0xff] }
  0x48   : > { %548 = vperm.xlu1 %11740, %v469_v40   ;;  %543 = vperm.xlu0 %11739, %v468_v41   ;;  %v489_v60 = vld [vmem:[#allocation2 + $0x170] sm:$0xff]  ;;  %v488_v61 = vld [vmem:[#allocation2 + $0x168] sm:$0xff]  ;;  %v729_v11 = vld [vmem:[#allocation2 + $0x79] sm:$0xff] }
  0x49   : > { %v726_v6 = vld [vmem:[#allocation2 + $0x51] sm:$0xff]  ;;  %v732_v12 = vld [vmem:[#allocation2 + $0x99] sm:$0xff]  ;;  %v733_v15 = vld [vmem:[#allocation2 + $0xa9] sm:$0xff] }
  0x4a   : > { %v731_v13 = vld [vmem:[#allocation2 + $0x91] sm:$0xff]  ;;  %v736_v16 = vld [vmem:[#allocation2 + $0xc9] sm:$0xff]  ;;  %v735_v17 = vld [vmem:[#allocation2 + $0xc1] sm:$0xff] }
  0x4b   : > { %v734_v14 = vld [vmem:[#allocation2 + $0xb1] sm:$0xff]  ;;  %v738_v18 = vld [vmem:[#allocation2 + $0xe1] sm:$0xff]  ;;  %v737_v19 = vld [vmem:[#allocation2 + $0xd9] sm:$0xff] }
  0x4c   : > { %558 = vperm.xlu1 %11740, %v471_v42   ;;  %553 = vperm.xlu0 %11739, %v470_v43   ;;  %v740_v20 = vld [vmem:[#allocation2 + $0xf9] sm:$0xff]  ;;  %v739_v21 = vld [vmem:[#allocation2 + $0xf1] sm:$0xff]  ;;  %v741_v23 = vld [vmem:[#allocation2 + $0x109] sm:$0xff] }
  0x4d   : > { %v742_v22 = vld [vmem:[#allocation2 + $0x111] sm:$0xff]  ;;  %v744_v24 = vld [vmem:[#allocation2 + $0x129] sm:$0xff]  ;;  %v743_v25 = vld [vmem:[#allocation2 + $0x121] sm:$0xff] }
  0x4e   : > { %v746_v26 = vld [vmem:[#allocation2 + $0x141] sm:$0xff]  ;;  %v745_v27 = vld [vmem:[#allocation2 + $0x139] sm:$0xff]  ;;  %v747_v29 = vld [vmem:[#allocation2 + $0x151] sm:$0xff] }
  0x4f   : > { %v748_v28 = vld [vmem:[#allocation2 + $0x159] sm:$0xff]  ;;  %v750_v30 = vld [vmem:[#allocation2 + $0x171] sm:$0xff]  ;;  %v749_v31 = vld [vmem:[#allocation2 + $0x169] sm:$0xff] }
  0x50   : > { %568 = vperm.xlu1 %11740, %v473_v44   ;;  %563 = vperm.xlu0 %11739, %v472_v45   ;;  %v981_v32 = vld [vmem:[#allocation2 + $0xa] sm:$0xff]  ;;  %v980_v33 = vld [vmem:[#allocation2 + $0x2] sm:$0xff]  ;;  %v982_v37 = vld [vmem:[#allocation2 + $0x1a] sm:$0xff] }
  0x51   : > { %v983_v36 = vld [vmem:[#allocation2 + $0x22] sm:$0xff]  ;;  %v985_v40 = vld [vmem:[#allocation2 + $0x3a] sm:$0xff]  ;;  %v984_v41 = vld [vmem:[#allocation2 + $0x32] sm:$0xff] }
  0x52   : > { %v987_v44 = vld [vmem:[#allocation2 + $0x52] sm:$0xff]  ;;  %v986_v45 = vld [vmem:[#allocation2 + $0x4a] sm:$0xff]  ;;  %v1515_v0 = vld [vmem:[#allocation2 + $0x9c] sm:$0xff] }
  0x53   : > { %v1514_v1 = vld [vmem:[#allocation2 + $0x94] sm:$0xff] }
  0x54   : > { %578 = vperm.xlu1 %11740, %v475_v46   ;;  %573 = vperm.xlu0 %11739, %v474_v47  }
  0x58   : > { %588 = vperm.xlu1 %11740, %v477_v48   ;;  %583 = vperm.xlu0 %11739, %v476_v49   ;;  %v989_v48 = vld [vmem:[#allocation2 + $0x6a] sm:$0xff]  ;;  %v988_v49 = vld [vmem:[#allocation2 + $0x62] sm:$0xff] }
  0x5c   : > { %598 = vperm.xlu1 %11740, %v479_v50   ;;  %593 = vperm.xlu0 %11739, %v478_v51  }
  0x60   : > { %608 = vperm.xlu1 %11740, %v481_v52   ;;  %603 = vperm.xlu0 %11739, %v480_v53   ;;  %v991_v52 = vld [vmem:[#allocation2 + $0x82] sm:$0xff]  ;;  %v990_v53 = vld [vmem:[#allocation2 + $0x7a] sm:$0xff] }
  0x64   : > { %618 = vperm.xlu1 %11740, %v483_v54   ;;  %613 = vperm.xlu0 %11739, %v482_v55  }
  0x68   : > { %628 = vperm.xlu1 %11740, %v485_v56   ;;  %623 = vperm.xlu0 %11739, %v484_v57   ;;  %v993_v56 = vld [vmem:[#allocation2 + $0x9a] sm:$0xff]  ;;  %v992_v57 = vld [vmem:[#allocation2 + $0x92] sm:$0xff] }
  0x6c   : > { %638 = vperm.xlu1 %11740, %v487_v58   ;;  %633 = vperm.xlu0 %11739, %v486_v59  }
  0x70   : > { %648 = vperm.xlu1 %11740, %v489_v60   ;;  %643 = vperm.xlu0 %11739, %v488_v61   ;;  %v995_v60 = vld [vmem:[#allocation2 + $0xb2] sm:$0xff]  ;;  %v994_v61 = vld [vmem:[#allocation2 + $0xaa] sm:$0xff] }
  0x74   : > { %759 = vperm.xlu1 %11740, %v720_v62   ;;  %754 = vperm.xlu0 %11739, %v719_v63  }
  0x78   : > { %769 = vperm.xlu1 %11740, %v722_v2   ;;  %764 = vperm.xlu0 %11739, %v721_v3   ;;  %v997_v2 = vld [vmem:[#allocation2 + $0xca] sm:$0xff]  ;;  %v996_v3 = vld [vmem:[#allocation2 + $0xc2] sm:$0xff] }
  0x7c   : > { %779 = vperm.xlu1 %11740, %v724_v4   ;;  %774 = vperm.xlu0 %11739, %v723_v5  }
  0x80   : > { %789 = vperm.xlu1 %11740, %v726_v6   ;;  %784 = vperm.xlu0 %11739, %v725_v7   ;;  %v999_v6 = vld [vmem:[#allocation2 + $0xe2] sm:$0xff]  ;;  %v998_v7 = vld [vmem:[#allocation2 + $0xda] sm:$0xff] }
  0x84   : > { %799 = vperm.xlu1 %11740, %v728_v8   ;;  %794 = vperm.xlu0 %11739, %v727_v9  }
  0x88   : > { %809 = vperm.xlu1 %11740, %v730_v10   ;;  %804 = vperm.xlu0 %11739, %v729_v11   ;;  %v1001_v10 = vld [vmem:[#allocation2 + $0xfa] sm:$0xff]  ;;  %v1000_v11 = vld [vmem:[#allocation2 + $0xf2] sm:$0xff] }
  0x8c   : > { %819 = vperm.xlu1 %11740, %v732_v12   ;;  %814 = vperm.xlu0 %11739, %v731_v13  }
  0x90   : > { %829 = vperm.xlu1 %11740, %v734_v14   ;;  %824 = vperm.xlu0 %11739, %v733_v15   ;;  %v1003_v14 = vld [vmem:[#allocation2 + $0x112] sm:$0xff]  ;;  %v1002_v15 = vld [vmem:[#allocation2 + $0x10a] sm:$0xff] }
  0x94   : > { %839 = vperm.xlu1 %11740, %v736_v16   ;;  %834 = vperm.xlu0 %11739, %v735_v17  }
  0x98   : > { %849 = vperm.xlu1 %11740, %v738_v18   ;;  %844 = vperm.xlu0 %11739, %v737_v19   ;;  %v1005_v18 = vld [vmem:[#allocation2 + $0x12a] sm:$0xff]  ;;  %v1004_v19 = vld [vmem:[#allocation2 + $0x122] sm:$0xff] }
  0x9c   : > { %859 = vperm.xlu1 %11740, %v740_v20   ;;  %854 = vperm.xlu0 %11739, %v739_v21  }
  0x9e   : > { %v12242_v34 = vpop.permute.xlu1 %503  ;;  %v12244_v35 = vpop.permute.xlu0 %493 }
  0x9f   : > { %16612 = vst [vmem:[#allocation10_spill] sm:$0xff] %v12242_v34  ;;  %16613 = vst [vmem:[#allocation11_spill] sm:$0xff] %v12244_v35 }
  0xa0   : > { %869 = vperm.xlu1 %11740, %v742_v22   ;;  %864 = vperm.xlu0 %11739, %v741_v23   ;;  %v1007_v22 = vld [vmem:[#allocation2 + $0x142] sm:$0xff]  ;;  %v1006_v23 = vld [vmem:[#allocation2 + $0x13a] sm:$0xff] }
  0xa2   : > { %v12246_v38 = vpop.permute.xlu1 %508  ;;  %v12248_v39 = vpop.permute.xlu0 %498 }
  0xa3   : > { %16614 = vst [vmem:[#allocation12_spill] sm:$0xff] %v12246_v38  ;;  %16615 = vst [vmem:[#allocation13_spill] sm:$0xff] %v12248_v39 }
  0xa4   : > { %879 = vperm.xlu1 %11740, %v744_v24   ;;  %874 = vperm.xlu0 %11739, %v743_v25  }
  0xa8   : > { %889 = vperm.xlu1 %11740, %v746_v26   ;;  %884 = vperm.xlu0 %11739, %v745_v27   ;;  %v1009_v26 = vld [vmem:[#allocation2 + $0x15a] sm:$0xff]  ;;  %v1008_v27 = vld [vmem:[#allocation2 + $0x152] sm:$0xff] }
  0xac   : > { %899 = vperm.xlu1 %11740, %v748_v28   ;;  %894 = vperm.xlu0 %11739, %v747_v29  }
  0xb0   : > { %909 = vperm.xlu1 %11740, %v750_v30   ;;  %904 = vperm.xlu0 %11739, %v749_v31   ;;  %v1011_v30 = vld [vmem:[#allocation2 + $0x172] sm:$0xff]  ;;  %v1010_v31 = vld [vmem:[#allocation2 + $0x16a] sm:$0xff] }
  0xb4   : > { %1020 = vperm.xlu1 %11740, %v981_v32   ;;  %1015 = vperm.xlu0 %11739, %v980_v33  }
  0xb8   : > { %1030 = vperm.xlu1 %11740, %v983_v36   ;;  %1025 = vperm.xlu0 %11739, %v982_v37   ;;  %v1242_v36 = vld [vmem:[#allocation2 + $0xb] sm:$0xff]  ;;  %v1241_v37 = vld [vmem:[#allocation2 + $0x3] sm:$0xff] }
  0xbb   : > { %v12250_v42 = vpop.permute.xlu1 %518  ;;  %v12252_v43 = vpop.permute.xlu0 %513 }
  0xbc   : > { %16616 = vst [vmem:[#allocation14_spill] sm:$0xff] %v12250_v42  ;;  %16617 = vst [vmem:[#allocation15_spill] sm:$0xff] %v12252_v43  ;;  %1040 = vperm.xlu1 %11740, %v985_v40   ;;  %1035 = vperm.xlu0 %11739, %v984_v41  }
  0xbf   : > { %v12254_v46 = vpop.permute.xlu1 %528  ;;  %v12256_v47 = vpop.permute.xlu0 %523 }
  0xc0   : > { %16618 = vst [vmem:[#allocation16_spill] sm:$0xff] %v12254_v46  ;;  %16619 = vst [vmem:[#allocation17_spill] sm:$0xff] %v12256_v47  ;;  %1050 = vperm.xlu1 %11740, %v987_v44   ;;  %1045 = vperm.xlu0 %11739, %v986_v45   ;;  %v1244_v44 = vld [vmem:[#allocation2 + $0x23] sm:$0xff]  ;;  %v1243_v45 = vld [vmem:[#allocation2 + $0x1b] sm:$0xff] }
  0xc3   : > { %v12258_v50 = vpop.permute.xlu1 %538  ;;  %v12260_v51 = vpop.permute.xlu0 %533 }
  0xc4   : > { %16620 = vst [vmem:[#allocation18_spill] sm:$0xff] %v12258_v50  ;;  %16621 = vst [vmem:[#allocation19_spill] sm:$0xff] %v12260_v51  ;;  %1060 = vperm.xlu1 %11740, %v989_v48   ;;  %1055 = vperm.xlu0 %11739, %v988_v49   ;;  %v4127_v50 = vld [vmem:[#allocation2 + $0xdc] sm:$0xff] }
  0xc7   : > { %v12262_v54 = vpop.permute.xlu1 %548  ;;  %v12264_v55 = vpop.permute.xlu0 %543 }
  0xc8   : > { %16622 = vst [vmem:[#allocation20_spill] sm:$0xff] %v12262_v54  ;;  %16623 = vst [vmem:[#allocation21_spill] sm:$0xff] %v12264_v55  ;;  %1070 = vperm.xlu1 %11740, %v991_v52   ;;  %1065 = vperm.xlu0 %11739, %v990_v53   ;;  %v1246_v52 = vld [vmem:[#allocation2 + $0x3b] sm:$0xff]  ;;  %v1245_v53 = vld [vmem:[#allocation2 + $0x33] sm:$0xff] }
  0xcb   : > { %v12266_v58 = vpop.permute.xlu1 %558  ;;  %v12268_v59 = vpop.permute.xlu0 %553 }
  0xcc   : > { %1080 = vperm.xlu1 %11740, %v993_v56   ;;  %1075 = vperm.xlu0 %11739, %v992_v57  }
  0xcf   : > { %v12270_v62 = vpop.permute.xlu1 %568  ;;  %v12272_v63 = vpop.permute.xlu0 %563 }
  0xd0   : > { %1090 = vperm.xlu1 %11740, %v995_v60   ;;  %1085 = vperm.xlu0 %11739, %v994_v61   ;;  %v1248_v60 = vld [vmem:[#allocation2 + $0x53] sm:$0xff]  ;;  %v1247_v61 = vld [vmem:[#allocation2 + $0x4b] sm:$0xff] }
  0xd3   : > { %v12274_v4 = vpop.permute.xlu1 %578  ;;  %v12276_v5 = vpop.permute.xlu0 %573 }
  0xd4   : > { %1100 = vperm.xlu1 %11740, %v997_v2   ;;  %1095 = vperm.xlu0 %11739, %v996_v3  }
  0xd7   : > { %v12278_v8 = vpop.permute.xlu1 %588  ;;  %v12280_v9 = vpop.permute.xlu0 %583 }
  0xd8   : > { %1110 = vperm.xlu1 %11740, %v999_v6   ;;  %1105 = vperm.xlu0 %11739, %v998_v7   ;;  %v1250_v6 = vld [vmem:[#allocation2 + $0x6b] sm:$0xff]  ;;  %v1249_v7 = vld [vmem:[#allocation2 + $0x63] sm:$0xff] }
  0xdb   : > { %v12282_v12 = vpop.permute.xlu1 %598  ;;  %v12284_v13 = vpop.permute.xlu0 %593 }
  0xdc   : > { %1120 = vperm.xlu1 %11740, %v1001_v10   ;;  %1115 = vperm.xlu0 %11739, %v1000_v11  }
  0xdf   : > { %v12286_v16 = vpop.permute.xlu1 %608  ;;  %v12288_v17 = vpop.permute.xlu0 %603 }
  0xe0   : > { %1130 = vperm.xlu1 %11740, %v1003_v14   ;;  %1125 = vperm.xlu0 %11739, %v1002_v15   ;;  %v1252_v14 = vld [vmem:[#allocation2 + $0x83] sm:$0xff]  ;;  %v1251_v15 = vld [vmem:[#allocation2 + $0x7b] sm:$0xff] }
  0xe3   : > { %v12290_v20 = vpop.permute.xlu1 %618  ;;  %v12292_v21 = vpop.permute.xlu0 %613 }
  0xe4   : > { %1140 = vperm.xlu1 %11740, %v1005_v18   ;;  %1135 = vperm.xlu0 %11739, %v1004_v19  }
  0xe7   : > { %v12294_v24 = vpop.permute.xlu1 %628  ;;  %v12296_v25 = vpop.permute.xlu0 %623 }
  0xe8   : > { %1150 = vperm.xlu1 %11740, %v1007_v22   ;;  %1145 = vperm.xlu0 %11739, %v1006_v23   ;;  %v1254_v22 = vld [vmem:[#allocation2 + $0x9b] sm:$0xff]  ;;  %v1253_v23 = vld [vmem:[#allocation2 + $0x93] sm:$0xff] }
  0xeb   : > { %v12298_v28 = vpop.permute.xlu1 %638  ;;  %v12300_v29 = vpop.permute.xlu0 %633 }
  0xec   : > { %1160 = vperm.xlu1 %11740, %v1009_v26   ;;  %1155 = vperm.xlu0 %11739, %v1008_v27   ;;  %v12333_v26 = vld [vmem:[%s16571_s1] ss:$0 sm:$0xff] }
  0xed   : > { %v668_v27 = vmul.f32 %v12333_v26, %v12266_v58 }
  0xef   : > { %v12302_v32 = vpop.permute.xlu1 %648  ;;  %v12304_v33 = vpop.permute.xlu0 %643 }
  0xf0   : > { %1170 = vperm.xlu1 %11740, %v1011_v30   ;;  %1165 = vperm.xlu0 %11739, %v1010_v31   ;;  %v12340_v30 = vld [vmem:[%s16571_s1 + $0x1] ss:$0 sm:$0xff] }
  0xf3   : > { %v12306_v40 = vpop.permute.xlu1 %759  ;;  %v12308_v41 = vpop.permute.xlu0 %754 }
  0xf4   : > { %16624 = vst [vmem:[#allocation22_spill] sm:$0xff] %v12306_v40  ;;  %16625 = vst [vmem:[#allocation23_spill] sm:$0xff] %v12308_v41  ;;  %1281 = vperm.xlu1 %11740, %v1242_v36   ;;  %1276 = vperm.xlu0 %11739, %v1241_v37   ;;  %v667_v37 = vmul.f32 %v12333_v26, %v12268_v59  ;;  %v669_v59 = vmul.f32 %v12333_v26, %v12272_v63 }
  0xf5   : > { %v671_v63 = vmul.f32 %v12333_v26, %v12276_v5  ;;  %v673_v5 = vmul.f32 %v12333_v26, %v12280_v9  ;;  %v675_v9 = vmul.f32 %v12333_v26, %v12284_v13  ;;  %v677_v13 = vmul.f32 %v12333_v26, %v12288_v17 }
  0xf6   : > { %v679_v17 = vmul.f32 %v12333_v26, %v12292_v21  ;;  %v681_v21 = vmul.f32 %v12333_v26, %v12296_v25  ;;  %v684_v25 = vmul.f32 %v12333_v26, %v12298_v28  ;;  %v686_v28 = vmul.f32 %v12333_v26, %v12302_v32 }
  0xf7   : > { %v12310_v48 = vpop.permute.xlu1 %769  ;;  %v12312_v49 = vpop.permute.xlu0 %764 }
  0xf8   : > { %16626 = vst [vmem:[#allocation24_spill] sm:$0xff] %v12310_v48  ;;  %16627 = vst [vmem:[#allocation25_spill] sm:$0xff] %v12312_v49  ;;  %1291 = vperm.xlu1 %11740, %v1244_v44   ;;  %1286 = vperm.xlu0 %11739, %v1243_v45   ;;  %v4129_v48 = vld [vmem:[#allocation2 + $0xf4] sm:$0xff] }
  0xfb   : > { %v12314_v56 = vpop.permute.xlu1 %779  ;;  %v12316_v57 = vpop.permute.xlu0 %774 }
  0xfc   : > { %16628 = vst [vmem:[#allocation26_spill] sm:$0xff] %v12314_v56  ;;  %16629 = vst [vmem:[#allocation27_spill] sm:$0xff] %v12316_v57  ;;  %1301 = vperm.xlu1 %11740, %v1246_v52   ;;  %1296 = vperm.xlu0 %11739, %v1245_v53   ;;  %v1256_v52 = vld [vmem:[#allocation2 + $0xb3] sm:$0xff]  ;;  %v1255_v53 = vld [vmem:[#allocation2 + $0xab] sm:$0xff] }
  0xff   : > { %v12318_v2 = vpop.permute.xlu1 %789  ;;  %v12320_v3 = vpop.permute.xlu0 %784 }
 0x100   : > { %16630 = vst [vmem:[#allocation28_spill] sm:$0xff] %v12318_v2  ;;  %16631 = vst [vmem:[#allocation29_spill] sm:$0xff] %v12320_v3  ;;  %1311 = vperm.xlu1 %11740, %v1248_v60   ;;  %1306 = vperm.xlu0 %11739, %v1247_v61   ;;  %v670_v61 = vmul.f32 %v12333_v26, %v12270_v62  ;;  %v672_v62 = vmul.f32 %v12333_v26, %v12274_v4  ;;  %v3868_v3 = vld [vmem:[#allocation2 + $0xf3] sm:$0xff] }
 0x101   : > { %v674_v4 = vmul.f32 %v12333_v26, %v12278_v8  ;;  %v676_v8 = vmul.f32 %v12333_v26, %v12282_v12  ;;  %v678_v12 = vmul.f32 %v12333_v26, %v12286_v16  ;;  %v680_v16 = vmul.f32 %v12333_v26, %v12290_v20 }
 0x102   : > { %v682_v20 = vmul.f32 %v12333_v26, %v12294_v24 }
 0x103   : > { %v12322_v10 = vpop.permute.xlu1 %799  ;;  %v12324_v11 = vpop.permute.xlu0 %794 }
 0x104   : > { %16632 = vst [vmem:[#allocation30_spill] sm:$0xff] %v12322_v10  ;;  %16633 = vst [vmem:[#allocation31_spill] sm:$0xff] %v12324_v11  ;;  %1321 = vperm.xlu1 %11740, %v1250_v6   ;;  %1316 = vperm.xlu0 %11739, %v1249_v7  }
 0x107   : > { %v12326_v18 = vpop.permute.xlu1 %809  ;;  %v12328_v19 = vpop.permute.xlu0 %804 }
 0x108   : > { %16634 = vst [vmem:[#allocation32_spill] sm:$0xff] %v12326_v18  ;;  %16635 = vst [vmem:[#allocation33_spill] sm:$0xff] %v12328_v19  ;;  %1331 = vperm.xlu1 %11740, %v1252_v14   ;;  %1326 = vperm.xlu0 %11739, %v1251_v15  }
 0x10b   : > { %v820_v31 = vpop.permute.xlu1 %819  ;;  %v815_v36 = vpop.permute.xlu0 %814 }
 0x10c   : > { %v929_v44 = vmul.f32 %v12340_v30, %v820_v31  ;;  %v928_v45 = vmul.f32 %v12340_v30, %v815_v36  ;;  %1341 = vperm.xlu1 %11740, %v1254_v22   ;;  %1336 = vperm.xlu0 %11739, %v1253_v23   ;;  %v1258_v22 = vld [vmem:[#allocation2 + $0xcb] sm:$0xff]  ;;  %v1257_v23 = vld [vmem:[#allocation2 + $0xc3] sm:$0xff] }
 0x10e   : > { %v12346_v60 = vadd.f32 %v929_v44, %v668_v27  ;;  %v12348_v58 = vadd.f32 %v928_v45, %v667_v37 }
 0x10f   : > { %v830_v6 = vpop.permute.xlu1 %829  ;;  %v825_v7 = vpop.permute.xlu0 %824 }
 0x110   : > { %v931_v14 = vmul.f32 %v12340_v30, %v830_v6  ;;  %v930_v15 = vmul.f32 %v12340_v30, %v825_v7  ;;  %1351 = vperm.xlu1 %11740, %v1256_v52   ;;  %1346 = vperm.xlu0 %11739, %v1255_v53   ;;  %v1260_v52 = vld [vmem:[#allocation2 + $0xe3] sm:$0xff]  ;;  %v1259_v53 = vld [vmem:[#allocation2 + $0xdb] sm:$0xff] }
 0x112   : > { %v12356_v27 = vadd.f32 %v931_v14, %v670_v61  ;;  %v12358_v31 = vadd.f32 %v930_v15, %v669_v59 }
 0x113   : > { %v840_v36 = vpop.permute.xlu1 %839  ;;  %v835_v37 = vpop.permute.xlu0 %834 }
 0x114   : > { %v933_v44 = vmul.f32 %v12340_v30, %v840_v36  ;;  %v932_v45 = vmul.f32 %v12340_v30, %v835_v37  ;;  %1361 = vperm.xlu1 %11740, %v1258_v22   ;;  %1356 = vperm.xlu0 %11739, %v1257_v23   ;;  %v1262_v22 = vld [vmem:[#allocation2 + $0xfb] sm:$0xff]  ;;  %v1261_v23 = vld [vmem:[#allocation2 + $0xf3] sm:$0xff] }
 0x116   : > { %v12366_v61 = vadd.f32 %v933_v44, %v672_v62  ;;  %v12368_v6 = vadd.f32 %v932_v45, %v671_v63 }
 0x117   : > { %v850_v7 = vpop.permute.xlu1 %849  ;;  %v845_v59 = vpop.permute.xlu0 %844 }
 0x118   : > { %v935_v14 = vmul.f32 %v12340_v30, %v850_v7  ;;  %v934_v15 = vmul.f32 %v12340_v30, %v845_v59  ;;  %1371 = vperm.xlu1 %11740, %v1260_v52   ;;  %1366 = vperm.xlu0 %11739, %v1259_v53   ;;  %v1264_v52 = vld [vmem:[#allocation2 + $0x113] sm:$0xff]  ;;  %v1263_v53 = vld [vmem:[#allocation2 + $0x10b] sm:$0xff] }
 0x11a   : > { %v12376_v62 = vadd.f32 %v935_v14, %v674_v4  ;;  %v12378_v36 = vadd.f32 %v934_v15, %v673_v5 }
 0x11b   : > { %v860_v37 = vpop.permute.xlu1 %859  ;;  %v855_v63 = vpop.permute.xlu0 %854 }
 0x11c   : > { %v937_v44 = vmul.f32 %v12340_v30, %v860_v37  ;;  %v936_v45 = vmul.f32 %v12340_v30, %v855_v63  ;;  %1381 = vperm.xlu1 %11740, %v1262_v22   ;;  %1376 = vperm.xlu0 %11739, %v1261_v23   ;;  %v1266_v22 = vld [vmem:[#allocation2 + $0x12b] sm:$0xff]  ;;  %v1265_v23 = vld [vmem:[#allocation2 + $0x123] sm:$0xff] }
 0x11e   : > { %v12386_v4 = vadd.f32 %v937_v44, %v676_v8  ;;  %v12388_v7 = vadd.f32 %v936_v45, %v675_v9 }
 0x11f   : > { %v870_v59 = vpop.permute.xlu1 %869  ;;  %v865_v5 = vpop.permute.xlu0 %864 }
 0x120   : > { %v939_v14 = vmul.f32 %v12340_v30, %v870_v59  ;;  %v938_v15 = vmul.f32 %v12340_v30, %v865_v5  ;;  %1391 = vperm.xlu1 %11740, %v1264_v52   ;;  %1386 = vperm.xlu0 %11739, %v1263_v53   ;;  %v1268_v52 = vld [vmem:[#allocation2 + $0x143] sm:$0xff]  ;;  %v1267_v53 = vld [vmem:[#allocation2 + $0x13b] sm:$0xff] }
 0x122   : > { %v12396_v8 = vadd.f32 %v939_v14, %v678_v12  ;;  %v12398_v37 = vadd.f32 %v938_v15, %v677_v13  ;;  %v421_v14 = vld [vmem:[%s12184_s25 + $0xe0] sm:$0xff] }
 0x123   : > { %v880_v63 = vpop.permute.xlu1 %879  ;;  %v875_v9 = vpop.permute.xlu0 %874  ;;  %454 = vst.msk [vmem:[#allocation2 + $0x182] sm:$0xff] %vm331_vm0, %v421_v14 }
 0x124   : > { %v941_v44 = vmul.f32 %v12340_v30, %v880_v63  ;;  %v940_v45 = vmul.f32 %v12340_v30, %v875_v9  ;;  %1401 = vperm.xlu1 %11740, %v1266_v22   ;;  %1396 = vperm.xlu0 %11739, %v1265_v23   ;;  %v422_v23 = vld [vmem:[%s12184_s25 + $0xe8] sm:$0xff]  ;;  %v1269_v63 = vld [vmem:[#allocation2 + $0x153] sm:$0xff] }
 0x125   : > { %455 = vst.msk [vmem:[#allocation2 + $0x18a] sm:$0xff] %vm331_vm0, %v422_v23 }
 0x126   : > { %v12406_v12 = vadd.f32 %v941_v44, %v680_v16  ;;  %v12408_v59 = vadd.f32 %v940_v45, %v679_v17  ;;  %v1270_v16 = vld [vmem:[#allocation2 + $0x15b] sm:$0xff]  ;;  %v683_v45 = vmul.f32 %v12333_v26, %v12300_v29  ;;  %v685_v29 = vmul.f32 %v12333_v26, %v12304_v33 }
 0x127   : > { %v890_v5 = vpop.permute.xlu1 %889  ;;  %v885_v13 = vpop.permute.xlu0 %884  ;;  %v1504_v33 = vld [vmem:[#allocation2 + $0x1c] sm:$0xff] }
 0x128   : > { %v943_v15 = vmul.f32 %v12340_v30, %v890_v5  ;;  %v942_v22 = vmul.f32 %v12340_v30, %v885_v13  ;;  %1411 = vperm.xlu1 %11740, %v1268_v52   ;;  %1406 = vperm.xlu0 %11739, %v1267_v53   ;;  %v1272_v5 = vld [vmem:[#allocation2 + $0x173] sm:$0xff]  ;;  %v1271_v13 = vld [vmem:[#allocation2 + $0x16b] sm:$0xff] }
 0x12a   : > { %v12420_v24 = vadd.f32 %v943_v15, %v682_v20  ;;  %v12422_v9 = vadd.f32 %v942_v22, %v681_v21 }
 0x12b   : > { %v900_v17 = vpop.permute.xlu1 %899  ;;  %v895_v44 = vpop.permute.xlu0 %894 }
 0x12c   : > { %v945_v52 = vmul.f32 %v12340_v30, %v900_v17  ;;  %v944_v53 = vmul.f32 %v12340_v30, %v895_v44  ;;  %1421 = vperm.xlu1 %11740, %v1270_v16   ;;  %1416 = vperm.xlu0 %11739, %v1269_v63   ;;  %v1503_v16 = vld [vmem:[#allocation2 + $0xc] sm:$0xff]  ;;  %v1502_v63 = vld [vmem:[#allocation2 + $0x4] sm:$0xff] }
 0x12e   : > { %v12430_v20 = vadd.f32 %v945_v52, %v684_v25  ;;  %v12432_v14 = vadd.f32 %v944_v53, %v683_v45  ;;  %v1505_v45 = vld [vmem:[#allocation2 + $0x24] sm:$0xff]  ;;  %v1506_v53 = vld [vmem:[#allocation2 + $0x34] sm:$0xff] }
 0x12f   : > { %v910_v21 = vpop.permute.xlu1 %909  ;;  %v905_v15 = vpop.permute.xlu0 %904 }
 0x130   : > { %v947_v22 = vmul.f32 %v12340_v30, %v910_v21  ;;  %v946_v23 = vmul.f32 %v12340_v30, %v905_v15  ;;  %1431 = vperm.xlu1 %11740, %v1272_v5   ;;  %1426 = vperm.xlu0 %11739, %v1271_v13   ;;  %v1507_v30 = vld [vmem:[#allocation2 + $0x3c] sm:$0xff]  ;;  %v1508_v21 = vld [vmem:[#allocation2 + $0x4c] sm:$0xff] }
 0x132   : > { %v12440_v25 = vadd.f32 %v947_v22, %v686_v28  ;;  %v12442_v17 = vadd.f32 %v946_v23, %v685_v29  ;;  %v1509_v28 = vld [vmem:[#allocation2 + $0x54] sm:$0xff]  ;;  %v1511_v22 = vld [vmem:[#allocation2 + $0x6c] sm:$0xff]  ;;  %v1510_v23 = vld [vmem:[#allocation2 + $0x64] sm:$0xff] }
 0x133   : > { %v12444_v44 = vpop.permute.xlu1 %1020  ;;  %v12446_v32 = vpop.permute.xlu0 %1015 }
 0x134   : > { %16636 = vst [vmem:[#allocation34_spill] sm:$0xff] %v12444_v44  ;;  %16637 = vst [vmem:[#allocation35_spill] sm:$0xff] %v12446_v32  ;;  %1542 = vperm.xlu1 %11740, %v1503_v16   ;;  %1537 = vperm.xlu0 %11739, %v1502_v63   ;;  %v3866_v32 = vld [vmem:[#allocation2 + $0xdb] sm:$0xff] }
 0x137   : > { %v12448_v26 = vpop.permute.xlu1 %1030  ;;  %v12450_v52 = vpop.permute.xlu0 %1025 }
 0x138   : > { %16638 = vst [vmem:[#allocation36_spill] sm:$0xff] %v12448_v26  ;;  %16639 = vst [vmem:[#allocation37_spill] sm:$0xff] %v12450_v52  ;;  %1552 = vperm.xlu1 %11740, %v1505_v45   ;;  %1547 = vperm.xlu0 %11739, %v1504_v33   ;;  %v1513_v45 = vld [vmem:[#allocation2 + $0x84] sm:$0xff]  ;;  %v1512_v33 = vld [vmem:[#allocation2 + $0x7c] sm:$0xff] }
 0x13b   : > { %v12452_v5 = vpop.permute.xlu1 %1040  ;;  %v12454_v13 = vpop.permute.xlu0 %1035 }
 0x13c   : > { %16640 = vst [vmem:[#allocation38_spill] sm:$0xff] %v12452_v5  ;;  %16641 = vst [vmem:[#allocation39_spill] sm:$0xff] %v12454_v13  ;;  %1562 = vperm.xlu1 %11740, %v1507_v30   ;;  %1557 = vperm.xlu0 %11739, %v1506_v53  }
 0x13f   : > { %v12456_v15 = vpop.permute.xlu1 %1050  ;;  %v12458_v29 = vpop.permute.xlu0 %1045 }
 0x140   : > { %16642 = vst [vmem:[#allocation40_spill] sm:$0xff] %v12456_v15  ;;  %16643 = vst [vmem:[#allocation41_spill] sm:$0xff] %v12458_v29  ;;  %1572 = vperm.xlu1 %11740, %v1509_v28   ;;  %1567 = vperm.xlu0 %11739, %v1508_v21   ;;  %v12471_v28 = vld [vmem:[%s16571_s1 + $0x2] ss:$0 sm:$0xff] }
 0x143   : > { %v12460_v16 = vpop.permute.xlu1 %1060  ;;  %v12462_v63 = vpop.permute.xlu0 %1055 }
 0x144   : > { %16644 = vst [vmem:[#allocation42_spill] sm:$0xff] %v12460_v16  ;;  %16645 = vst [vmem:[#allocation43_spill] sm:$0xff] %v12462_v63  ;;  %1582 = vperm.xlu1 %11740, %v1511_v22   ;;  %1577 = vperm.xlu0 %11739, %v1510_v23   ;;  %v1516_v63 = vld [vmem:[#allocation2 + $0xac] sm:$0xff] }
 0x147   : > { %v12464_v30 = vpop.permute.xlu1 %1070  ;;  %v12466_v53 = vpop.permute.xlu0 %1065 }
 0x148   : > { %16646 = vst [vmem:[#allocation44_spill] sm:$0xff] %v12464_v30  ;;  %16647 = vst [vmem:[#allocation45_spill] sm:$0xff] %v12466_v53  ;;  %1592 = vperm.xlu1 %11740, %v1513_v45   ;;  %1587 = vperm.xlu0 %11739, %v1512_v33   ;;  %v1517_v30 = vld [vmem:[#allocation2 + $0xb4] sm:$0xff] }
 0x14b   : > { %v1081_v21 = vpop.permute.xlu1 %1080  ;;  %v1076_v16 = vpop.permute.xlu0 %1075 }
 0x14c   : > { %v1190_v22 = vmul.f32 %v12471_v28, %v1081_v21  ;;  %v1189_v23 = vmul.f32 %v12471_v28, %v1076_v16  ;;  %1602 = vperm.xlu1 %11740, %v1515_v0   ;;  %1597 = vperm.xlu0 %11739, %v1514_v1   ;;  %v1519_v21 = vld [vmem:[#allocation2 + $0xcc] sm:$0xff]  ;;  %v1518_v16 = vld [vmem:[#allocation2 + $0xc4] sm:$0xff] }
 0x14e   : > { %v12476_v45 = vadd.f32 %v1190_v22, %v12346_v60  ;;  %v12479_v33 = vadd.f32 %v1189_v23, %v12348_v58 }
 0x14f   : > { %v1091_v53 = vpop.permute.xlu1 %1090  ;;  %v1086_v29 = vpop.permute.xlu0 %1085 }
 0x150   : > { %v1192_v15 = vmul.f32 %v12471_v28, %v1091_v53  ;;  %v1191_v13 = vmul.f32 %v12471_v28, %v1086_v29  ;;  %1612 = vperm.xlu1 %11740, %v1517_v30   ;;  %1607 = vperm.xlu0 %11739, %v1516_v63   ;;  %v1521_v53 = vld [vmem:[#allocation2 + $0xe4] sm:$0xff]  ;;  %v1520_v29 = vld [vmem:[#allocation2 + $0xdc] sm:$0xff] }
 0x152   : > { %v12484_v0 = vadd.f32 %v1192_v15, %v12356_v27  ;;  %v12487_v1 = vadd.f32 %v1191_v13, %v12358_v31 }
 0x153   : > { %v1101_v60 = vpop.permute.xlu1 %1100  ;;  %v1096_v22 = vpop.permute.xlu0 %1095 }
 0x154   : > { %v1194_v58 = vmul.f32 %v12471_v28, %v1101_v60  ;;  %v1193_v23 = vmul.f32 %v12471_v28, %v1096_v22  ;;  %1622 = vperm.xlu1 %11740, %v1519_v21   ;;  %1617 = vperm.xlu0 %11739, %v1518_v16   ;;  %v1523_v60 = vld [vmem:[#allocation2 + $0xfc] sm:$0xff]  ;;  %v1522_v22 = vld [vmem:[#allocation2 + $0xf4] sm:$0xff] }
 0x156   : > { %v12492_v63 = vadd.f32 %v1194_v58, %v12366_v61  ;;  %v12495_v30 = vadd.f32 %v1193_v23, %v12368_v6 }
 0x157   : > { %v1111_v27 = vpop.permute.xlu1 %1110  ;;  %v1106_v15 = vpop.permute.xlu0 %1105 }
 0x158   : > { %v1196_v31 = vmul.f32 %v12471_v28, %v1111_v27  ;;  %v1195_v13 = vmul.f32 %v12471_v28, %v1106_v15  ;;  %1632 = vperm.xlu1 %11740, %v1521_v53   ;;  %1627 = vperm.xlu0 %11739, %v1520_v29   ;;  %v1525_v27 = vld [vmem:[#allocation2 + $0x114] sm:$0xff]  ;;  %v1524_v15 = vld [vmem:[#allocation2 + $0x10c] sm:$0xff] }
 0x15a   : > { %v12500_v21 = vadd.f32 %v1196_v31, %v12376_v62  ;;  %v12503_v16 = vadd.f32 %v1195_v13, %v12378_v36 }
 0x15b   : > { %v1121_v61 = vpop.permute.xlu1 %1120  ;;  %v1116_v58 = vpop.permute.xlu0 %1115 }
 0x15c   : > { %v1198_v6 = vmul.f32 %v12471_v28, %v1121_v61  ;;  %v1197_v23 = vmul.f32 %v12471_v28, %v1116_v58  ;;  %1642 = vperm.xlu1 %11740, %v1523_v60   ;;  %1637 = vperm.xlu0 %11739, %v1522_v22   ;;  %v1527_v61 = vld [vmem:[#allocation2 + $0x12c] sm:$0xff]  ;;  %v1526_v58 = vld [vmem:[#allocation2 + $0x124] sm:$0xff] }
 0x15e   : > { %v12508_v53 = vadd.f32 %v1198_v6, %v12386_v4  ;;  %v12511_v29 = vadd.f32 %v1197_v23, %v12388_v7 }
 0x15f   : > { %v1131_v62 = vpop.permute.xlu1 %1130  ;;  %v1126_v31 = vpop.permute.xlu0 %1125 }
 0x160   : > { %v1200_v36 = vmul.f32 %v12471_v28, %v1131_v62  ;;  %v1199_v13 = vmul.f32 %v12471_v28, %v1126_v31  ;;  %1652 = vperm.xlu1 %11740, %v1525_v27   ;;  %1647 = vperm.xlu0 %11739, %v1524_v15   ;;  %v1529_v62 = vld [vmem:[#allocation2 + $0x144] sm:$0xff]  ;;  %v1528_v31 = vld [vmem:[#allocation2 + $0x13c] sm:$0xff] }
 0x162   : > { %v12516_v60 = vadd.f32 %v1200_v36, %v12396_v8  ;;  %v12519_v22 = vadd.f32 %v1199_v13, %v12398_v37 }
 0x163   : > { %v1141_v4 = vpop.permute.xlu1 %1140  ;;  %v1136_v6 = vpop.permute.xlu0 %1135 }
 0x164   : > { %v1202_v7 = vmul.f32 %v12471_v28, %v1141_v4  ;;  %v1201_v23 = vmul.f32 %v12471_v28, %v1136_v6  ;;  %1662 = vperm.xlu1 %11740, %v1527_v61   ;;  %1657 = vperm.xlu0 %11739, %v1526_v58   ;;  %v1531_v4 = vld [vmem:[#allocation2 + $0x15c] sm:$0xff]  ;;  %v1530_v6 = vld [vmem:[#allocation2 + $0x154] sm:$0xff] }
 0x166   : > { %v12524_v27 = vadd.f32 %v1202_v7, %v12406_v12  ;;  %v12527_v15 = vadd.f32 %v1201_v23, %v12408_v59 }
 0x167   : > { %v1151_v8 = vpop.permute.xlu1 %1150  ;;  %v1146_v36 = vpop.permute.xlu0 %1145 }
 0x168   : > { %v1204_v37 = vmul.f32 %v12471_v28, %v1151_v8  ;;  %v1203_v13 = vmul.f32 %v12471_v28, %v1146_v36  ;;  %1672 = vperm.xlu1 %11740, %v1529_v62   ;;  %1667 = vperm.xlu0 %11739, %v1528_v31   ;;  %v1533_v8 = vld [vmem:[#allocation2 + $0x174] sm:$0xff]  ;;  %v1532_v36 = vld [vmem:[#allocation2 + $0x16c] sm:$0xff] }
 0x16a   : > { %v12532_v61 = vadd.f32 %v1204_v37, %v12420_v24  ;;  %v12535_v58 = vadd.f32 %v1203_v13, %v12422_v9 }
 0x16b   : > { %v1161_v12 = vpop.permute.xlu1 %1160  ;;  %v1156_v7 = vpop.permute.xlu0 %1155 }
 0x16c   : > { %v1206_v59 = vmul.f32 %v12471_v28, %v1161_v12  ;;  %v1205_v23 = vmul.f32 %v12471_v28, %v1156_v7  ;;  %1682 = vperm.xlu1 %11740, %v1531_v4   ;;  %1677 = vperm.xlu0 %11739, %v1530_v6   ;;  %v1765_v12 = vld [vmem:[#allocation2 + $0x20] sm:$0xff]  ;;  %v1764_v7 = vld [vmem:[#allocation2 + $0x18] sm:$0xff] }
 0x16e   : > { %v12540_v62 = vadd.f32 %v1206_v59, %v12430_v20  ;;  %v12543_v31 = vadd.f32 %v1205_v23, %v12432_v14  ;;  %v1767_v59 = vld [vmem:[#allocation2 + $0x38] sm:$0xff]  ;;  %v1766_v23 = vld [vmem:[#allocation2 + $0x30] sm:$0xff] }
 0x16f   : > { %v1171_v24 = vpop.permute.xlu1 %1170  ;;  %v1166_v37 = vpop.permute.xlu0 %1165 }
 0x170   : > { %v1208_v9 = vmul.f32 %v12471_v28, %v1171_v24  ;;  %v1207_v13 = vmul.f32 %v12471_v28, %v1166_v37  ;;  %1692 = vperm.xlu1 %11740, %v1533_v8   ;;  %1687 = vperm.xlu0 %11739, %v1532_v36   ;;  %v1769_v8 = vld [vmem:[#allocation2 + $0x50] sm:$0xff]  ;;  %v1771_v37 = vld [vmem:[#allocation2 + $0x68] sm:$0xff] }
 0x172   : > { %v12548_v4 = vadd.f32 %v1208_v9, %v12440_v25  ;;  %v12551_v6 = vadd.f32 %v1207_v13, %v12442_v17  ;;  %v1768_v25 = vld [vmem:[#allocation2 + $0x48] sm:$0xff]  ;;  %v1770_v9 = vld [vmem:[#allocation2 + $0x60] sm:$0xff] }
 0x173   : > { %v12553_v20 = vpop.permute.xlu1 %1281  ;;  %v12555_v14 = vpop.permute.xlu0 %1276 }
 0x174   : > { %16648 = vst [vmem:[#allocation46_spill] sm:$0xff] %v12553_v20  ;;  %16649 = vst [vmem:[#allocation47_spill] sm:$0xff] %v12555_v14  ;;  %1804 = vperm.xlu1 %11740, %v1765_v12   ;;  %1799 = vperm.xlu0 %11739, %v1764_v7   ;;  %v1773_v7 = vld [vmem:[#allocation2 + $0x80] sm:$0xff] }
 0x177   : > { %v12557_v24 = vpop.permute.xlu1 %1291  ;;  %v12559_v28 = vpop.permute.xlu0 %1286 }
 0x178   : > { %16650 = vst [vmem:[#allocation48_spill] sm:$0xff] %v12557_v24  ;;  %16651 = vst [vmem:[#allocation49_spill] sm:$0xff] %v12559_v28  ;;  %1814 = vperm.xlu1 %11740, %v1767_v59   ;;  %1809 = vperm.xlu0 %11739, %v1766_v23   ;;  %v1772_v28 = vld [vmem:[#allocation2 + $0x78] sm:$0xff] }
 0x17b   : > { %v12561_v36 = vpop.permute.xlu1 %1301  ;;  %v12563_v17 = vpop.permute.xlu0 %1296 }
 0x17c   : > { %16652 = vst [vmem:[#allocation50_spill] sm:$0xff] %v12561_v36  ;;  %16653 = vst [vmem:[#allocation51_spill] sm:$0xff] %v12563_v17  ;;  %1824 = vperm.xlu1 %11740, %v1769_v8   ;;  %1819 = vperm.xlu0 %11739, %v1768_v25   ;;  %v1775_v36 = vld [vmem:[#allocation2 + $0x98] sm:$0xff]  ;;  %v1774_v17 = vld [vmem:[#allocation2 + $0x90] sm:$0xff] }
 0x17f   : > { %v12565_v13 = vpop.permute.xlu1 %1311  ;;  %v12567_v12 = vpop.permute.xlu0 %1306 }
 0x180   : > { %16654 = vst [vmem:[#allocation52_spill] sm:$0xff] %v12565_v13  ;;  %16655 = vst [vmem:[#allocation53_spill] sm:$0xff] %v12567_v12  ;;  %1834 = vperm.xlu1 %11740, %v1771_v37   ;;  %1829 = vperm.xlu0 %11739, %v1770_v9   ;;  %v1777_v13 = vld [vmem:[#allocation2 + $0xb0] sm:$0xff]  ;;  %v1776_v12 = vld [vmem:[#allocation2 + $0xa8] sm:$0xff] }
 0x181   : > { %v12580_v37 = vld [vmem:[%s16571_s1 + $0x3] ss:$0 sm:$0xff] }
 0x183   : > { %v12569_v59 = vpop.permute.xlu1 %1321  ;;  %v12571_v23 = vpop.permute.xlu0 %1316 }
 0x184   : > { %16656 = vst [vmem:[#allocation54_spill] sm:$0xff] %v12569_v59  ;;  %16657 = vst [vmem:[#allocation55_spill] sm:$0xff] %v12571_v23  ;;  %1844 = vperm.xlu1 %11740, %v1773_v7   ;;  %1839 = vperm.xlu0 %11739, %v1772_v28   ;;  %v1778_v23 = vld [vmem:[#allocation2 + $0xc0] sm:$0xff] }
 0x187   : > { %v12573_v8 = vpop.permute.xlu1 %1331  ;;  %v12575_v25 = vpop.permute.xlu0 %1326 }
 0x188   : > { %16658 = vst [vmem:[#allocation56_spill] sm:$0xff] %v12573_v8  ;;  %16659 = vst [vmem:[#allocation57_spill] sm:$0xff] %v12575_v25  ;;  %1854 = vperm.xlu1 %11740, %v1775_v36   ;;  %1849 = vperm.xlu0 %11739, %v1774_v17   ;;  %v1779_v8 = vld [vmem:[#allocation2 + $0xc8] sm:$0xff] }
 0x18b   : > { %v1342_v9 = vpop.permute.xlu1 %1341  ;;  %v1337_v59 = vpop.permute.xlu0 %1336 }
 0x18c   : > { %v1451_v7 = vmul.f32 %v12580_v37, %v1342_v9  ;;  %v1450_v28 = vmul.f32 %v12580_v37, %v1337_v59  ;;  %1864 = vperm.xlu1 %11740, %v1777_v13   ;;  %1859 = vperm.xlu0 %11739, %v1776_v12   ;;  %v1781_v9 = vld [vmem:[#allocation2 + $0xe0] sm:$0xff]  ;;  %v1780_v59 = vld [vmem:[#allocation2 + $0xd8] sm:$0xff] }
 0x18e   : > { %v12585_v36 = vadd.f32 %v1451_v7, %v12476_v45  ;;  %v12588_v17 = vadd.f32 %v1450_v28, %v12479_v33 }
 0x18f   : > { %v1352_v25 = vpop.permute.xlu1 %1351  ;;  %v1347_v24 = vpop.permute.xlu0 %1346 }
 0x190   : > { %v1453_v14 = vmul.f32 %v12580_v37, %v1352_v25  ;;  %v1452_v20 = vmul.f32 %v12580_v37, %v1347_v24  ;;  %1874 = vperm.xlu1 %11740, %v1779_v8   ;;  %1869 = vperm.xlu0 %11739, %v1778_v23   ;;  %v1783_v25 = vld [vmem:[#allocation2 + $0xf8] sm:$0xff]  ;;  %v1782_v24 = vld [vmem:[#allocation2 + $0xf0] sm:$0xff] }
 0x192   : > { %v12593_v13 = vadd.f32 %v1453_v14, %v12484_v0  ;;  %v12596_v12 = vadd.f32 %v1452_v20, %v12487_v1 }
 0x193   : > { %v1362_v45 = vpop.permute.xlu1 %1361  ;;  %v1357_v7 = vpop.permute.xlu0 %1356 }
 0x194   : > { %v1455_v33 = vmul.f32 %v12580_v37, %v1362_v45  ;;  %v1454_v28 = vmul.f32 %v12580_v37, %v1357_v7  ;;  %1884 = vperm.xlu1 %11740, %v1781_v9   ;;  %1879 = vperm.xlu0 %11739, %v1780_v59   ;;  %v1785_v45 = vld [vmem:[#allocation2 + $0x110] sm:$0xff]  ;;  %v1784_v7 = vld [vmem:[#allocation2 + $0x108] sm:$0xff] }
 0x196   : > { %v12601_v23 = vadd.f32 %v1455_v33, %v12492_v63  ;;  %v12604_v8 = vadd.f32 %v1454_v28, %v12495_v30 }
 0x197   : > { %v1372_v0 = vpop.permute.xlu1 %1371  ;;  %v1367_v14 = vpop.permute.xlu0 %1366 }
 0x198   : > { %v1457_v1 = vmul.f32 %v12580_v37, %v1372_v0  ;;  %v1456_v20 = vmul.f32 %v12580_v37, %v1367_v14  ;;  %1894 = vperm.xlu1 %11740, %v1783_v25   ;;  %1889 = vperm.xlu0 %11739, %v1782_v24   ;;  %v1787_v0 = vld [vmem:[#allocation2 + $0x128] sm:$0xff]  ;;  %v1786_v14 = vld [vmem:[#allocation2 + $0x120] sm:$0xff] }
 0x19a   : > { %v12609_v9 = vadd.f32 %v1457_v1, %v12500_v21  ;;  %v12612_v59 = vadd.f32 %v1456_v20, %v12503_v16 }
 0x19b   : > { %v1382_v63 = vpop.permute.xlu1 %1381  ;;  %v1377_v33 = vpop.permute.xlu0 %1376 }
 0x19c   : > { %v1459_v30 = vmul.f32 %v12580_v37, %v1382_v63  ;;  %v1458_v28 = vmul.f32 %v12580_v37, %v1377_v33  ;;  %1904 = vperm.xlu1 %11740, %v1785_v45   ;;  %1899 = vperm.xlu0 %11739, %v1784_v7   ;;  %v1789_v63 = vld [vmem:[#allocation2 + $0x140] sm:$0xff]  ;;  %v1788_v33 = vld [vmem:[#allocation2 + $0x138] sm:$0xff] }
 0x19e   : > { %v12617_v25 = vadd.f32 %v1459_v30, %v12508_v53  ;;  %v12620_v24 = vadd.f32 %v1458_v28, %v12511_v29 }
 0x19f   : > { %v1392_v21 = vpop.permute.xlu1 %1391  ;;  %v1387_v1 = vpop.permute.xlu0 %1386 }
 0x1a0   : > { %v1461_v16 = vmul.f32 %v12580_v37, %v1392_v21  ;;  %v1460_v20 = vmul.f32 %v12580_v37, %v1387_v1  ;;  %1914 = vperm.xlu1 %11740, %v1787_v0   ;;  %1909 = vperm.xlu0 %11739, %v1786_v14   ;;  %v1791_v21 = vld [vmem:[#allocation2 + $0x158] sm:$0xff]  ;;  %v1790_v1 = vld [vmem:[#allocation2 + $0x150] sm:$0xff] }
 0x1a2   : > { %v12625_v45 = vadd.f32 %v1461_v16, %v12516_v60  ;;  %v12628_v7 = vadd.f32 %v1460_v20, %v12519_v22 }
 0x1a3   : > { %v1402_v53 = vpop.permute.xlu1 %1401  ;;  %v1397_v30 = vpop.permute.xlu0 %1396 }
 0x1a4   : > { %v1463_v29 = vmul.f32 %v12580_v37, %v1402_v53  ;;  %v1462_v28 = vmul.f32 %v12580_v37, %v1397_v30  ;;  %1924 = vperm.xlu1 %11740, %v1789_v63   ;;  %1919 = vperm.xlu0 %11739, %v1788_v33   ;;  %v1793_v53 = vld [vmem:[#allocation2 + $0x170] sm:$0xff]  ;;  %v1792_v30 = vld [vmem:[#allocation2 + $0x168] sm:$0xff] }
 0x1a6   : > { %v12633_v0 = vadd.f32 %v1463_v29, %v12524_v27  ;;  %v12636_v14 = vadd.f32 %v1462_v28, %v12527_v15 }
 0x1a7   : > { %v1412_v60 = vpop.permute.xlu1 %1411  ;;  %v1407_v16 = vpop.permute.xlu0 %1406 }
 0x1a8   : > { %v1465_v22 = vmul.f32 %v12580_v37, %v1412_v60  ;;  %v1464_v20 = vmul.f32 %v12580_v37, %v1407_v16  ;;  %1934 = vperm.xlu1 %11740, %v1791_v21   ;;  %1929 = vperm.xlu0 %11739, %v1790_v1   ;;  %v1795_v60 = vld [vmem:[#allocation2 + $0x188] sm:$0xff]  ;;  %v1794_v16 = vld [vmem:[#allocation2 + $0x180] sm:$0xff] }
 0x1aa   : > { %v12641_v63 = vadd.f32 %v1465_v22, %v12532_v61  ;;  %v12644_v33 = vadd.f32 %v1464_v20, %v12535_v58 }
 0x1ab   : > { %v1422_v27 = vpop.permute.xlu1 %1421  ;;  %v1417_v29 = vpop.permute.xlu0 %1416 }
 0x1ac   : > { %v1467_v15 = vmul.f32 %v12580_v37, %v1422_v27  ;;  %v1466_v28 = vmul.f32 %v12580_v37, %v1417_v29  ;;  %1944 = vperm.xlu1 %11740, %v1793_v53   ;;  %1939 = vperm.xlu0 %11739, %v1792_v30   ;;  %v2026_v27 = vld [vmem:[#allocation2 + $0x21] sm:$0xff]  ;;  %v2025_v29 = vld [vmem:[#allocation2 + $0x19] sm:$0xff] }
 0x1ae   : > { %v12649_v21 = vadd.f32 %v1467_v15, %v12540_v62  ;;  %v12652_v1 = vadd.f32 %v1466_v28, %v12543_v31  ;;  %v2028_v15 = vld [vmem:[#allocation2 + $0x39] sm:$0xff]  ;;  %v2027_v28 = vld [vmem:[#allocation2 + $0x31] sm:$0xff] }
 0x1af   : > { %v1432_v61 = vpop.permute.xlu1 %1431  ;;  %v1427_v22 = vpop.permute.xlu0 %1426 }
 0x1b0   : > { %v1469_v58 = vmul.f32 %v12580_v37, %v1432_v61  ;;  %v1468_v20 = vmul.f32 %v12580_v37, %v1427_v22  ;;  %1954 = vperm.xlu1 %11740, %v1795_v60   ;;  %1949 = vperm.xlu0 %11739, %v1794_v16   ;;  %v2030_v60 = vld [vmem:[#allocation2 + $0x51] sm:$0xff]  ;;  %v2032_v22 = vld [vmem:[#allocation2 + $0x69] sm:$0xff] }
 0x1b2   : > { %v12657_v53 = vadd.f32 %v1469_v58, %v12548_v4  ;;  %v12660_v30 = vadd.f32 %v1468_v20, %v12551_v6  ;;  %v2029_v4 = vld [vmem:[#allocation2 + $0x49] sm:$0xff]  ;;  %v2031_v58 = vld [vmem:[#allocation2 + $0x61] sm:$0xff] }
 0x1b3   : > { %v12662_v62 = vpop.permute.xlu1 %1542  ;;  %v12664_v31 = vpop.permute.xlu0 %1537 }
 0x1b4   : > { %16660 = vst [vmem:[#allocation58_spill] sm:$0xff] %v12662_v62  ;;  %16661 = vst [vmem:[#allocation59_spill] sm:$0xff] %v12664_v31  ;;  %2065 = vperm.xlu1 %11740, %v2026_v27   ;;  %2060 = vperm.xlu0 %11739, %v2025_v29   ;;  %v2034_v29 = vld [vmem:[#allocation2 + $0x81] sm:$0xff] }
 0x1b7   : > { %v12666_v61 = vpop.permute.xlu1 %1552  ;;  %v12668_v37 = vpop.permute.xlu0 %1547 }
 0x1b8   : > { %16662 = vst [vmem:[#allocation60_spill] sm:$0xff] %v12666_v61  ;;  %16663 = vst [vmem:[#allocation61_spill] sm:$0xff] %v12668_v37  ;;  %2075 = vperm.xlu1 %11740, %v2028_v15   ;;  %2070 = vperm.xlu0 %11739, %v2027_v28   ;;  %v2033_v37 = vld [vmem:[#allocation2 + $0x79] sm:$0xff] }
 0x1bb   : > { %v12670_v16 = vpop.permute.xlu1 %1562  ;;  %v12672_v6 = vpop.permute.xlu0 %1557 }
 0x1bc   : > { %16664 = vst [vmem:[#allocation62_spill] sm:$0xff] %v12670_v16  ;;  %16665 = vst [vmem:[#allocation63_spill] sm:$0xff] %v12672_v6  ;;  %2085 = vperm.xlu1 %11740, %v2030_v60   ;;  %2080 = vperm.xlu0 %11739, %v2029_v4   ;;  %v2036_v16 = vld [vmem:[#allocation2 + $0x99] sm:$0xff]  ;;  %v2035_v6 = vld [vmem:[#allocation2 + $0x91] sm:$0xff] }
 0x1bf   : > { %v12674_v20 = vpop.permute.xlu1 %1572  ;;  %v12676_v27 = vpop.permute.xlu0 %1567 }
 0x1c0   : > { %16666 = vst [vmem:[#allocation64_spill] sm:$0xff] %v12674_v20  ;;  %16667 = vst [vmem:[#allocation65_spill] sm:$0xff] %v12676_v27  ;;  %2095 = vperm.xlu1 %11740, %v2032_v22   ;;  %2090 = vperm.xlu0 %11739, %v2031_v58   ;;  %v2038_v20 = vld [vmem:[#allocation2 + $0xb1] sm:$0xff]  ;;  %v2037_v27 = vld [vmem:[#allocation2 + $0xa9] sm:$0xff] }
 0x1c1   : > { %v12689_v22 = vld [vmem:[%s16571_s1 + $0x4] ss:$0 sm:$0xff] }
 0x1c3   : > { %v12678_v15 = vpop.permute.xlu1 %1582  ;;  %v12680_v28 = vpop.permute.xlu0 %1577 }
 0x1c4   : > { %16668 = vst [vmem:[#allocation66_spill] sm:$0xff] %v12678_v15  ;;  %16669 = vst [vmem:[#allocation67_spill] sm:$0xff] %v12680_v28  ;;  %2105 = vperm.xlu1 %11740, %v2034_v29   ;;  %2100 = vperm.xlu0 %11739, %v2033_v37   ;;  %v2039_v28 = vld [vmem:[#allocation2 + $0xc1] sm:$0xff] }
 0x1c7   : > { %v12682_v60 = vpop.permute.xlu1 %1592  ;;  %v12684_v4 = vpop.permute.xlu0 %1587 }
 0x1c8   : > { %16670 = vst [vmem:[#allocation68_spill] sm:$0xff] %v12682_v60  ;;  %16671 = vst [vmem:[#allocation69_spill] sm:$0xff] %v12684_v4  ;;  %2115 = vperm.xlu1 %11740, %v2036_v16   ;;  %2110 = vperm.xlu0 %11739, %v2035_v6   ;;  %v2040_v60 = vld [vmem:[#allocation2 + $0xc9] sm:$0xff] }
 0x1cb   : > { %v1603_v58 = vpop.permute.xlu1 %1602  ;;  %v1598_v15 = vpop.permute.xlu0 %1597 }
 0x1cc   : > { %v1712_v29 = vmul.f32 %v12689_v22, %v1603_v58  ;;  %v1711_v37 = vmul.f32 %v12689_v22, %v1598_v15  ;;  %2125 = vperm.xlu1 %11740, %v2038_v20   ;;  %2120 = vperm.xlu0 %11739, %v2037_v27   ;;  %v2042_v58 = vld [vmem:[#allocation2 + $0xe1] sm:$0xff]  ;;  %v2041_v15 = vld [vmem:[#allocation2 + $0xd9] sm:$0xff] }
 0x1ce   : > { %v12694_v16 = vadd.f32 %v1712_v29, %v12585_v36  ;;  %v12697_v6 = vadd.f32 %v1711_v37, %v12588_v17 }
 0x1cf   : > { %v1613_v4 = vpop.permute.xlu1 %1612  ;;  %v1608_v61 = vpop.permute.xlu0 %1607 }
 0x1d0   : > { %v1714_v31 = vmul.f32 %v12689_v22, %v1613_v4  ;;  %v1713_v62 = vmul.f32 %v12689_v22, %v1608_v61  ;;  %2135 = vperm.xlu1 %11740, %v2040_v60   ;;  %2130 = vperm.xlu0 %11739, %v2039_v28   ;;  %v2044_v4 = vld [vmem:[#allocation2 + $0xf9] sm:$0xff]  ;;  %v2043_v61 = vld [vmem:[#allocation2 + $0xf1] sm:$0xff] }
 0x1d2   : > { %v12702_v20 = vadd.f32 %v1714_v31, %v12593_v13  ;;  %v12705_v27 = vadd.f32 %v1713_v62, %v12596_v12 }
 0x1d3   : > { %v1623_v36 = vpop.permute.xlu1 %1622  ;;  %v1618_v29 = vpop.permute.xlu0 %1617 }
 0x1d4   : > { %v1716_v17 = vmul.f32 %v12689_v22, %v1623_v36  ;;  %v1715_v37 = vmul.f32 %v12689_v22, %v1618_v29  ;;  %2145 = vperm.xlu1 %11740, %v2042_v58   ;;  %2140 = vperm.xlu0 %11739, %v2041_v15   ;;  %v2046_v36 = vld [vmem:[#allocation2 + $0x111] sm:$0xff]  ;;  %v2045_v29 = vld [vmem:[#allocation2 + $0x109] sm:$0xff] }
 0x1d6   : > { %v12710_v28 = vadd.f32 %v1716_v17, %v12601_v23  ;;  %v12713_v60 = vadd.f32 %v1715_v37, %v12604_v8 }
 0x1d7   : > { %v1633_v13 = vpop.permute.xlu1 %1632  ;;  %v1628_v31 = vpop.permute.xlu0 %1627 }
 0x1d8   : > { %v1718_v12 = vmul.f32 %v12689_v22, %v1633_v13  ;;  %v1717_v62 = vmul.f32 %v12689_v22, %v1628_v31  ;;  %2155 = vperm.xlu1 %11740, %v2044_v4   ;;  %2150 = vperm.xlu0 %11739, %v2043_v61   ;;  %v2048_v13 = vld [vmem:[#allocation2 + $0x129] sm:$0xff]  ;;  %v2047_v31 = vld [vmem:[#allocation2 + $0x121] sm:$0xff] }
 0x1da   : > { %v12718_v58 = vadd.f32 %v1718_v12, %v12609_v9  ;;  %v12721_v15 = vadd.f32 %v1717_v62, %v12612_v59 }
 0x1db   : > { %v1643_v23 = vpop.permute.xlu1 %1642  ;;  %v1638_v17 = vpop.permute.xlu0 %1637 }
 0x1dc   : > { %v1720_v8 = vmul.f32 %v12689_v22, %v1643_v23  ;;  %v1719_v37 = vmul.f32 %v12689_v22, %v1638_v17  ;;  %2165 = vperm.xlu1 %11740, %v2046_v36   ;;  %2160 = vperm.xlu0 %11739, %v2045_v29   ;;  %v2050_v23 = vld [vmem:[#allocation2 + $0x141] sm:$0xff]  ;;  %v2049_v17 = vld [vmem:[#allocation2 + $0x139] sm:$0xff] }
 0x1de   : > { %v12726_v4 = vadd.f32 %v1720_v8, %v12617_v25  ;;  %v12729_v61 = vadd.f32 %v1719_v37, %v12620_v24 }
 0x1df   : > { %v1653_v9 = vpop.permute.xlu1 %1652  ;;  %v1648_v12 = vpop.permute.xlu0 %1647 }
 0x1e0   : > { %v1722_v59 = vmul.f32 %v12689_v22, %v1653_v9  ;;  %v1721_v62 = vmul.f32 %v12689_v22, %v1648_v12  ;;  %2175 = vperm.xlu1 %11740, %v2048_v13   ;;  %2170 = vperm.xlu0 %11739, %v2047_v31   ;;  %v2052_v9 = vld [vmem:[#allocation2 + $0x159] sm:$0xff]  ;;  %v2051_v12 = vld [vmem:[#allocation2 + $0x151] sm:$0xff] }
 0x1e2   : > { %v12734_v36 = vadd.f32 %v1722_v59, %v12625_v45  ;;  %v12737_v29 = vadd.f32 %v1721_v62, %v12628_v7 }
 0x1e3   : > { %v1663_v25 = vpop.permute.xlu1 %1662  ;;  %v1658_v8 = vpop.permute.xlu0 %1657 }
 0x1e4   : > { %v1724_v24 = vmul.f32 %v12689_v22, %v1663_v25  ;;  %v1723_v37 = vmul.f32 %v12689_v22, %v1658_v8  ;;  %2185 = vperm.xlu1 %11740, %v2050_v23   ;;  %2180 = vperm.xlu0 %11739, %v2049_v17   ;;  %v2054_v25 = vld [vmem:[#allocation2 + $0x171] sm:$0xff]  ;;  %v2053_v8 = vld [vmem:[#allocation2 + $0x169] sm:$0xff] }
 0x1e6   : > { %v12742_v13 = vadd.f32 %v1724_v24, %v12633_v0  ;;  %v12745_v31 = vadd.f32 %v1723_v37, %v12636_v14 }
 0x1e7   : > { %v1673_v45 = vpop.permute.xlu1 %1672  ;;  %v1668_v59 = vpop.permute.xlu0 %1667 }
 0x1e8   : > { %v1726_v7 = vmul.f32 %v12689_v22, %v1673_v45  ;;  %v1725_v62 = vmul.f32 %v12689_v22, %v1668_v59  ;;  %2195 = vperm.xlu1 %11740, %v2052_v9   ;;  %2190 = vperm.xlu0 %11739, %v2051_v12   ;;  %v2056_v45 = vld [vmem:[#allocation2 + $0x189] sm:$0xff]  ;;  %v2055_v59 = vld [vmem:[#allocation2 + $0x181] sm:$0xff] }
 0x1ea   : > { %v12750_v23 = vadd.f32 %v1726_v7, %v12641_v63  ;;  %v12753_v17 = vadd.f32 %v1725_v62, %v12644_v33 }
 0x1eb   : > { %v1683_v0 = vpop.permute.xlu1 %1682  ;;  %v1678_v24 = vpop.permute.xlu0 %1677 }
 0x1ec   : > { %v1728_v14 = vmul.f32 %v12689_v22, %v1683_v0  ;;  %v1727_v37 = vmul.f32 %v12689_v22, %v1678_v24  ;;  %2205 = vperm.xlu1 %11740, %v2054_v25   ;;  %2200 = vperm.xlu0 %11739, %v2053_v8   ;;  %v2287_v0 = vld [vmem:[#allocation2 + $0x22] sm:$0xff]  ;;  %v2286_v24 = vld [vmem:[#allocation2 + $0x1a] sm:$0xff] }
 0x1ee   : > { %v12758_v9 = vadd.f32 %v1728_v14, %v12649_v21  ;;  %v12761_v12 = vadd.f32 %v1727_v37, %v12652_v1  ;;  %v2289_v14 = vld [vmem:[#allocation2 + $0x3a] sm:$0xff]  ;;  %v2288_v37 = vld [vmem:[#allocation2 + $0x32] sm:$0xff] }
 0x1ef   : > { %v1693_v63 = vpop.permute.xlu1 %1692  ;;  %v1688_v7 = vpop.permute.xlu0 %1687 }
 0x1f0   : > { %v1730_v33 = vmul.f32 %v12689_v22, %v1693_v63  ;;  %v1729_v62 = vmul.f32 %v12689_v22, %v1688_v7  ;;  %2215 = vperm.xlu1 %11740, %v2056_v45   ;;  %2210 = vperm.xlu0 %11739, %v2055_v59   ;;  %v2291_v45 = vld [vmem:[#allocation2 + $0x52] sm:$0xff]  ;;  %v2293_v7 = vld [vmem:[#allocation2 + $0x6a] sm:$0xff] }
 0x1f2   : > { %v12766_v25 = vadd.f32 %v1730_v33, %v12657_v53  ;;  %v12769_v8 = vadd.f32 %v1729_v62, %v12660_v30  ;;  %v2290_v53 = vld [vmem:[#allocation2 + $0x4a] sm:$0xff]  ;;  %v2292_v33 = vld [vmem:[#allocation2 + $0x62] sm:$0xff] }
 0x1f3   : > { %v12771_v21 = vpop.permute.xlu1 %1804  ;;  %v12773_v1 = vpop.permute.xlu0 %1799 }
 0x1f4   : > { %16672 = vst [vmem:[#allocation70_spill] sm:$0xff] %v12771_v21  ;;  %16673 = vst [vmem:[#allocation71_spill] sm:$0xff] %v12773_v1  ;;  %2326 = vperm.xlu1 %11740, %v2287_v0   ;;  %2321 = vperm.xlu0 %11739, %v2286_v24   ;;  %v2295_v24 = vld [vmem:[#allocation2 + $0x82] sm:$0xff] }
 0x1f7   : > { %v12775_v63 = vpop.permute.xlu1 %1814  ;;  %v12777_v22 = vpop.permute.xlu0 %1809 }
 0x1f8   : > { %16674 = vst [vmem:[#allocation72_spill] sm:$0xff] %v12775_v63  ;;  %16675 = vst [vmem:[#allocation73_spill] sm:$0xff] %v12777_v22  ;;  %2336 = vperm.xlu1 %11740, %v2289_v14   ;;  %2331 = vperm.xlu0 %11739, %v2288_v37   ;;  %v2294_v22 = vld [vmem:[#allocation2 + $0x7a] sm:$0xff] }
 0x1fb   : > { %v12779_v59 = vpop.permute.xlu1 %1824  ;;  %v12781_v30 = vpop.permute.xlu0 %1819 }
 0x1fc   : > { %16676 = vst [vmem:[#allocation74_spill] sm:$0xff] %v12779_v59  ;;  %16677 = vst [vmem:[#allocation75_spill] sm:$0xff] %v12781_v30  ;;  %2346 = vperm.xlu1 %11740, %v2291_v45   ;;  %2341 = vperm.xlu0 %11739, %v2290_v53   ;;  %v2297_v59 = vld [vmem:[#allocation2 + $0x9a] sm:$0xff]  ;;  %v2296_v30 = vld [vmem:[#allocation2 + $0x92] sm:$0xff] }
 0x1ff   : > { %v12783_v62 = vpop.permute.xlu1 %1834  ;;  %v12785_v0 = vpop.permute.xlu0 %1829 }
 0x200   : > { %16678 = vst [vmem:[#allocation76_spill] sm:$0xff] %v12783_v62  ;;  %16679 = vst [vmem:[#allocation77_spill] sm:$0xff] %v12785_v0  ;;  %2356 = vperm.xlu1 %11740, %v2293_v7   ;;  %2351 = vperm.xlu0 %11739, %v2292_v33   ;;  %v2299_v62 = vld [vmem:[#allocation2 + $0xb2] sm:$0xff]  ;;  %v2298_v0 = vld [vmem:[#allocation2 + $0xaa] sm:$0xff] }
 0x201   : > { %v12798_v7 = vld [vmem:[%s16571_s1 + $0x5] ss:$0 sm:$0xff] }
 0x203   : > { %v12787_v14 = vpop.permute.xlu1 %1844  ;;  %v12789_v37 = vpop.permute.xlu0 %1839 }
 0x204   : > { %16680 = vst [vmem:[#allocation78_spill] sm:$0xff] %v12787_v14  ;;  %16681 = vst [vmem:[#allocation79_spill] sm:$0xff] %v12789_v37  ;;  %2366 = vperm.xlu1 %11740, %v2295_v24   ;;  %2361 = vperm.xlu0 %11739, %v2294_v22   ;;  %v2300_v37 = vld [vmem:[#allocation2 + $0xc2] sm:$0xff] }
 0x207   : > { %v12791_v45 = vpop.permute.xlu1 %1854  ;;  %v12793_v53 = vpop.permute.xlu0 %1849 }
 0x208   : > { %16682 = vst [vmem:[#allocation80_spill] sm:$0xff] %v12791_v45  ;;  %16683 = vst [vmem:[#allocation81_spill] sm:$0xff] %v12793_v53  ;;  %2376 = vperm.xlu1 %11740, %v2297_v59   ;;  %2371 = vperm.xlu0 %11739, %v2296_v30   ;;  %v2301_v45 = vld [vmem:[#allocation2 + $0xca] sm:$0xff] }
 0x20b   : > { %v1865_v33 = vpop.permute.xlu1 %1864  ;;  %v1860_v14 = vpop.permute.xlu0 %1859 }
 0x20c   : > { %v1974_v24 = vmul.f32 %v12798_v7, %v1865_v33  ;;  %v1973_v22 = vmul.f32 %v12798_v7, %v1860_v14  ;;  %2386 = vperm.xlu1 %11740, %v2299_v62   ;;  %2381 = vperm.xlu0 %11739, %v2298_v0   ;;  %v2303_v33 = vld [vmem:[#allocation2 + $0xe2] sm:$0xff]  ;;  %v2302_v14 = vld [vmem:[#allocation2 + $0xda] sm:$0xff] }
 0x20e   : > { %v12803_v59 = vadd.f32 %v1974_v24, %v12694_v16  ;;  %v12806_v30 = vadd.f32 %v1973_v22, %v12697_v6 }
 0x20f   : > { %v1875_v53 = vpop.permute.xlu1 %1874  ;;  %v1870_v63 = vpop.permute.xlu0 %1869 }
 0x210   : > { %v1976_v1 = vmul.f32 %v12798_v7, %v1875_v53  ;;  %v1975_v21 = vmul.f32 %v12798_v7, %v1870_v63  ;;  %2396 = vperm.xlu1 %11740, %v2301_v45   ;;  %2391 = vperm.xlu0 %11739, %v2300_v37   ;;  %v2305_v53 = vld [vmem:[#allocation2 + $0xfa] sm:$0xff]  ;;  %v2304_v63 = vld [vmem:[#allocation2 + $0xf2] sm:$0xff] }
 0x212   : > { %v12811_v62 = vadd.f32 %v1976_v1, %v12702_v20  ;;  %v12814_v0 = vadd.f32 %v1975_v21, %v12705_v27 }
 0x213   : > { %v1885_v16 = vpop.permute.xlu1 %1884  ;;  %v1880_v24 = vpop.permute.xlu0 %1879 }
 0x214   : > { %v1978_v6 = vmul.f32 %v12798_v7, %v1885_v16  ;;  %v1977_v22 = vmul.f32 %v12798_v7, %v1880_v24  ;;  %2406 = vperm.xlu1 %11740, %v2303_v33   ;;  %2401 = vperm.xlu0 %11739, %v2302_v14   ;;  %v2307_v16 = vld [vmem:[#allocation2 + $0x112] sm:$0xff]  ;;  %v2306_v24 = vld [vmem:[#allocation2 + $0x10a] sm:$0xff] }
 0x216   : > { %v12819_v37 = vadd.f32 %v1978_v6, %v12710_v28  ;;  %v12822_v45 = vadd.f32 %v1977_v22, %v12713_v60 }
 0x217   : > { %v1895_v20 = vpop.permute.xlu1 %1894  ;;  %v1890_v1 = vpop.permute.xlu0 %1889 }
 0x218   : > { %v1980_v27 = vmul.f32 %v12798_v7, %v1895_v20  ;;  %v1979_v21 = vmul.f32 %v12798_v7, %v1890_v1  ;;  %2416 = vperm.xlu1 %11740, %v2305_v53   ;;  %2411 = vperm.xlu0 %11739, %v2304_v63   ;;  %v2309_v20 = vld [vmem:[#allocation2 + $0x12a] sm:$0xff]  ;;  %v2308_v1 = vld [vmem:[#allocation2 + $0x122] sm:$0xff] }
 0x21a   : > { %v12827_v33 = vadd.f32 %v1980_v27, %v12718_v58  ;;  %v12830_v14 = vadd.f32 %v1979_v21, %v12721_v15 }
 0x21b   : > { %v1905_v28 = vpop.permute.xlu1 %1904  ;;  %v1900_v6 = vpop.permute.xlu0 %1899 }
 0x21c   : > { %v1982_v60 = vmul.f32 %v12798_v7, %v1905_v28  ;;  %v1981_v22 = vmul.f32 %v12798_v7, %v1900_v6  ;;  %2426 = vperm.xlu1 %11740, %v2307_v16   ;;  %2421 = vperm.xlu0 %11739, %v2306_v24   ;;  %v2311_v28 = vld [vmem:[#allocation2 + $0x142] sm:$0xff]  ;;  %v2310_v6 = vld [vmem:[#allocation2 + $0x13a] sm:$0xff] }
 0x21e   : > { %v12835_v53 = vadd.f32 %v1982_v60, %v12726_v4  ;;  %v12838_v63 = vadd.f32 %v1981_v22, %v12729_v61 }
 0x21f   : > { %v1915_v58 = vpop.permute.xlu1 %1914  ;;  %v1910_v27 = vpop.permute.xlu0 %1909 }
 0x220   : > { %v1984_v15 = vmul.f32 %v12798_v7, %v1915_v58  ;;  %v1983_v21 = vmul.f32 %v12798_v7, %v1910_v27  ;;  %2436 = vperm.xlu1 %11740, %v2309_v20   ;;  %2431 = vperm.xlu0 %11739, %v2308_v1   ;;  %v2313_v58 = vld [vmem:[#allocation2 + $0x15a] sm:$0xff]  ;;  %v2312_v27 = vld [vmem:[#allocation2 + $0x152] sm:$0xff] }
 0x222   : > { %v12843_v16 = vadd.f32 %v1984_v15, %v12734_v36  ;;  %v12846_v24 = vadd.f32 %v1983_v21, %v12737_v29 }
 0x223   : > { %v1925_v4 = vpop.permute.xlu1 %1924  ;;  %v1920_v60 = vpop.permute.xlu0 %1919 }
 0x224   : > { %v1986_v61 = vmul.f32 %v12798_v7, %v1925_v4  ;;  %v1985_v22 = vmul.f32 %v12798_v7, %v1920_v60  ;;  %2446 = vperm.xlu1 %11740, %v2311_v28   ;;  %2441 = vperm.xlu0 %11739, %v2310_v6   ;;  %v2315_v4 = vld [vmem:[#allocation2 + $0x172] sm:$0xff]  ;;  %v2314_v60 = vld [vmem:[#allocation2 + $0x16a] sm:$0xff] }
 0x226   : > { %v12851_v20 = vadd.f32 %v1986_v61, %v12742_v13  ;;  %v12854_v1 = vadd.f32 %v1985_v22, %v12745_v31 }
 0x227   : > { %v1935_v36 = vpop.permute.xlu1 %1934  ;;  %v1930_v15 = vpop.permute.xlu0 %1929 }
 0x228   : > { %v1988_v29 = vmul.f32 %v12798_v7, %v1935_v36  ;;  %v1987_v21 = vmul.f32 %v12798_v7, %v1930_v15  ;;  %2456 = vperm.xlu1 %11740, %v2313_v58   ;;  %2451 = vperm.xlu0 %11739, %v2312_v27   ;;  %v2317_v36 = vld [vmem:[#allocation2 + $0x18a] sm:$0xff]  ;;  %v2316_v15 = vld [vmem:[#allocation2 + $0x182] sm:$0xff] }
 0x22a   : > { %v12859_v28 = vadd.f32 %v1988_v29, %v12750_v23  ;;  %v12862_v6 = vadd.f32 %v1987_v21, %v12753_v17 }
 0x22b   : > { %v1945_v13 = vpop.permute.xlu1 %1944  ;;  %v1940_v61 = vpop.permute.xlu0 %1939 }
 0x22c   : > { %v1990_v31 = vmul.f32 %v12798_v7, %v1945_v13  ;;  %v1989_v22 = vmul.f32 %v12798_v7, %v1940_v61  ;;  %2466 = vperm.xlu1 %11740, %v2315_v4   ;;  %2461 = vperm.xlu0 %11739, %v2314_v60   ;;  %v2548_v13 = vld [vmem:[#allocation2 + $0x23] sm:$0xff]  ;;  %v2547_v61 = vld [vmem:[#allocation2 + $0x1b] sm:$0xff] }
 0x22e   : > { %v12867_v58 = vadd.f32 %v1990_v31, %v12758_v9  ;;  %v12870_v27 = vadd.f32 %v1989_v22, %v12761_v12  ;;  %v2550_v31 = vld [vmem:[#allocation2 + $0x3b] sm:$0xff]  ;;  %v2549_v22 = vld [vmem:[#allocation2 + $0x33] sm:$0xff] }
 0x22f   : > { %v1955_v23 = vpop.permute.xlu1 %1954  ;;  %v1950_v29 = vpop.permute.xlu0 %1949 }
 0x230   : > { %v1992_v17 = vmul.f32 %v12798_v7, %v1955_v23  ;;  %v1991_v21 = vmul.f32 %v12798_v7, %v1950_v29  ;;  %2476 = vperm.xlu1 %11740, %v2317_v36   ;;  %2471 = vperm.xlu0 %11739, %v2316_v15   ;;  %v2552_v36 = vld [vmem:[#allocation2 + $0x53] sm:$0xff]  ;;  %v2554_v29 = vld [vmem:[#allocation2 + $0x6b] sm:$0xff] }
 0x232   : > { %v12875_v4 = vadd.f32 %v1992_v17, %v12766_v25  ;;  %v12878_v60 = vadd.f32 %v1991_v21, %v12769_v8  ;;  %v2551_v25 = vld [vmem:[#allocation2 + $0x4b] sm:$0xff]  ;;  %v2553_v17 = vld [vmem:[#allocation2 + $0x63] sm:$0xff] }
 0x233   : > { %v12880_v9 = vpop.permute.xlu1 %2065  ;;  %v12882_v12 = vpop.permute.xlu0 %2060 }
 0x234   : > { %16684 = vst [vmem:[#allocation82_spill] sm:$0xff] %v12880_v9  ;;  %16685 = vst [vmem:[#allocation83_spill] sm:$0xff] %v12882_v12  ;;  %2587 = vperm.xlu1 %11740, %v2548_v13   ;;  %2582 = vperm.xlu0 %11739, %v2547_v61   ;;  %v2556_v61 = vld [vmem:[#allocation2 + $0x83] sm:$0xff] }
 0x237   : > { %v12884_v23 = vpop.permute.xlu1 %2075  ;;  %v12886_v7 = vpop.permute.xlu0 %2070 }
 0x238   : > { %16686 = vst [vmem:[#allocation84_spill] sm:$0xff] %v12884_v23  ;;  %16687 = vst [vmem:[#allocation85_spill] sm:$0xff] %v12886_v7  ;;  %2597 = vperm.xlu1 %11740, %v2550_v31   ;;  %2592 = vperm.xlu0 %11739, %v2549_v22   ;;  %v2555_v7 = vld [vmem:[#allocation2 + $0x7b] sm:$0xff] }
 0x23b   : > { %v12888_v15 = vpop.permute.xlu1 %2085  ;;  %v12890_v8 = vpop.permute.xlu0 %2080 }
 0x23c   : > { %16688 = vst [vmem:[#allocation86_spill] sm:$0xff] %v12888_v15  ;;  %16689 = vst [vmem:[#allocation87_spill] sm:$0xff] %v12890_v8  ;;  %2607 = vperm.xlu1 %11740, %v2552_v36   ;;  %2602 = vperm.xlu0 %11739, %v2551_v25   ;;  %v2558_v15 = vld [vmem:[#allocation2 + $0x9b] sm:$0xff]  ;;  %v2557_v8 = vld [vmem:[#allocation2 + $0x93] sm:$0xff] }
 0x23f   : > { %v12892_v21 = vpop.permute.xlu1 %2095  ;;  %v12894_v13 = vpop.permute.xlu0 %2090 }
 0x240   : > { %16690 = vst [vmem:[#allocation88_spill] sm:$0xff] %v12892_v21  ;;  %16691 = vst [vmem:[#allocation89_spill] sm:$0xff] %v12894_v13  ;;  %2617 = vperm.xlu1 %11740, %v2554_v29   ;;  %2612 = vperm.xlu0 %11739, %v2553_v17   ;;  %v2560_v21 = vld [vmem:[#allocation2 + $0xb3] sm:$0xff]  ;;  %v2559_v13 = vld [vmem:[#allocation2 + $0xab] sm:$0xff] }
 0x241   : > { %v12907_v29 = vld [vmem:[%s16571_s1 + $0x6] ss:$0 sm:$0xff] }
 0x243   : > { %v12896_v31 = vpop.permute.xlu1 %2105  ;;  %v12898_v22 = vpop.permute.xlu0 %2100 }
 0x244   : > { %16692 = vst [vmem:[#allocation90_spill] sm:$0xff] %v12896_v31  ;;  %16693 = vst [vmem:[#allocation91_spill] sm:$0xff] %v12898_v22  ;;  %2627 = vperm.xlu1 %11740, %v2556_v61   ;;  %2622 = vperm.xlu0 %11739, %v2555_v7   ;;  %v2561_v22 = vld [vmem:[#allocation2 + $0xc3] sm:$0xff] }
 0x247   : > { %v12900_v36 = vpop.permute.xlu1 %2115  ;;  %v12902_v25 = vpop.permute.xlu0 %2110 }
 0x248   : > { %16694 = vst [vmem:[#allocation92_spill] sm:$0xff] %v12900_v36  ;;  %16695 = vst [vmem:[#allocation93_spill] sm:$0xff] %v12902_v25  ;;  %2637 = vperm.xlu1 %11740, %v2558_v15   ;;  %2632 = vperm.xlu0 %11739, %v2557_v8   ;;  %v2562_v36 = vld [vmem:[#allocation2 + $0xcb] sm:$0xff] }
 0x24b   : > { %v2126_v17 = vpop.permute.xlu1 %2125  ;;  %v2121_v31 = vpop.permute.xlu0 %2120 }
 0x24c   : > { %v2235_v61 = vmul.f32 %v12907_v29, %v2126_v17  ;;  %v2234_v7 = vmul.f32 %v12907_v29, %v2121_v31  ;;  %2647 = vperm.xlu1 %11740, %v2560_v21   ;;  %2642 = vperm.xlu0 %11739, %v2559_v13   ;;  %v2564_v17 = vld [vmem:[#allocation2 + $0xe3] sm:$0xff]  ;;  %v2563_v31 = vld [vmem:[#allocation2 + $0xdb] sm:$0xff] }
 0x24e   : > { %v12912_v15 = vadd.f32 %v2235_v61, %v12803_v59  ;;  %v12915_v8 = vadd.f32 %v2234_v7, %v12806_v30 }
 0x24f   : > { %v2136_v25 = vpop.permute.xlu1 %2135  ;;  %v2131_v23 = vpop.permute.xlu0 %2130 }
 0x250   : > { %v2237_v12 = vmul.f32 %v12907_v29, %v2136_v25  ;;  %v2236_v9 = vmul.f32 %v12907_v29, %v2131_v23  ;;  %2657 = vperm.xlu1 %11740, %v2562_v36   ;;  %2652 = vperm.xlu0 %11739, %v2561_v22   ;;  %v2566_v25 = vld [vmem:[#allocation2 + $0xfb] sm:$0xff]  ;;  %v2565_v23 = vld [vmem:[#allocation2 + $0xf3] sm:$0xff] }
 0x252   : > { %v12920_v21 = vadd.f32 %v2237_v12, %v12811_v62  ;;  %v12923_v13 = vadd.f32 %v2236_v9, %v12814_v0 }
 0x253   : > { %v2146_v59 = vpop.permute.xlu1 %2145  ;;  %v2141_v61 = vpop.permute.xlu0 %2140 }
 0x254   : > { %v2239_v30 = vmul.f32 %v12907_v29, %v2146_v59  ;;  %v2238_v7 = vmul.f32 %v12907_v29, %v2141_v61  ;;  %2667 = vperm.xlu1 %11740, %v2564_v17   ;;  %2662 = vperm.xlu0 %11739, %v2563_v31   ;;  %v2568_v59 = vld [vmem:[#allocation2 + $0x113] sm:$0xff]  ;;  %v2567_v61 = vld [vmem:[#allocation2 + $0x10b] sm:$0xff] }
 0x256   : > { %v12928_v22 = vadd.f32 %v2239_v30, %v12819_v37  ;;  %v12931_v36 = vadd.f32 %v2238_v7, %v12822_v45 }
 0x257   : > { %v2156_v62 = vpop.permute.xlu1 %2155  ;;  %v2151_v12 = vpop.permute.xlu0 %2150 }
 0x258   : > { %v2241_v0 = vmul.f32 %v12907_v29, %v2156_v62  ;;  %v2240_v9 = vmul.f32 %v12907_v29, %v2151_v12  ;;  %2677 = vperm.xlu1 %11740, %v2566_v25   ;;  %2672 = vperm.xlu0 %11739, %v2565_v23   ;;  %v2570_v62 = vld [vmem:[#allocation2 + $0x12b] sm:$0xff]  ;;  %v2569_v12 = vld [vmem:[#allocation2 + $0x123] sm:$0xff] }
 0x25a   : > { %v12936_v17 = vadd.f32 %v2241_v0, %v12827_v33  ;;  %v12939_v31 = vadd.f32 %v2240_v9, %v12830_v14 }
 0x25b   : > { %v2166_v37 = vpop.permute.xlu1 %2165  ;;  %v2161_v30 = vpop.permute.xlu0 %2160 }
 0x25c   : > { %v2243_v45 = vmul.f32 %v12907_v29, %v2166_v37  ;;  %v2242_v7 = vmul.f32 %v12907_v29, %v2161_v30  ;;  %2687 = vperm.xlu1 %11740, %v2568_v59   ;;  %2682 = vperm.xlu0 %11739, %v2567_v61   ;;  %v2572_v37 = vld [vmem:[#allocation2 + $0x143] sm:$0xff]  ;;  %v2571_v59 = vld [vmem:[#allocation2 + $0x13b] sm:$0xff] }
 0x25e   : > { %v12944_v25 = vadd.f32 %v2243_v45, %v12835_v53  ;;  %v12947_v23 = vadd.f32 %v2242_v7, %v12838_v63 }
 0x25f   : > { %v2176_v33 = vpop.permute.xlu1 %2175  ;;  %v2171_v0 = vpop.permute.xlu0 %2170 }
 0x260   : > { %v2245_v14 = vmul.f32 %v12907_v29, %v2176_v33  ;;  %v2244_v9 = vmul.f32 %v12907_v29, %v2171_v0  ;;  %2697 = vperm.xlu1 %11740, %v2570_v62   ;;  %2692 = vperm.xlu0 %11739, %v2569_v12   ;;  %v2574_v62 = vld [vmem:[#allocation2 + $0x15b] sm:$0xff]  ;;  %v2573_v12 = vld [vmem:[#allocation2 + $0x153] sm:$0xff] }
 0x262   : > { %v12952_v61 = vadd.f32 %v2245_v14, %v12843_v16  ;;  %v12955_v53 = vadd.f32 %v2244_v9, %v12846_v24  ;;  %v423_v14 = vld [vmem:[%s12184_s25 + $0xf0] sm:$0xff] }
 0x263   : > { %v2186_v30 = vpop.permute.xlu1 %2185  ;;  %v2181_v63 = vpop.permute.xlu0 %2180  ;;  %456 = vst.msk [vmem:[#allocation2 + $0x19a] sm:$0xff] %vm331_vm0, %v423_v14 }
 0x264   : > { %v2247_v45 = vmul.f32 %v12907_v29, %v2186_v30  ;;  %v2246_v7 = vmul.f32 %v12907_v29, %v2181_v63  ;;  %2707 = vperm.xlu1 %11740, %v2572_v37   ;;  %2702 = vperm.xlu0 %11739, %v2571_v59   ;;  %v424_v30 = vld [vmem:[%s12184_s25 + $0xf8] sm:$0xff]  ;;  %v2575_v59 = vld [vmem:[#allocation2 + $0x16b] sm:$0xff] }
 0x265   : > { %v2576_v37 = vld [vmem:[#allocation2 + $0x173] sm:$0xff]  ;;  %457 = vst.msk [vmem:[#allocation2 + $0x1a2] sm:$0xff] %vm331_vm0, %v424_v30  ;;  %v2809_v30 = vld [vmem:[#allocation2 + $0x24] sm:$0xff]  ;;  %vm10052_vm0 = vcmask 647744  }
 0x266   : > { %v12960_v33 = vadd.f32 %v2247_v45, %v12851_v20  ;;  %v12963_v16 = vadd.f32 %v2246_v7, %v12854_v1 }
 0x267   : > { %v2196_v0 = vpop.permute.xlu1 %2195  ;;  %v2191_v24 = vpop.permute.xlu0 %2190 }
 0x268   : > { %v2249_v9 = vmul.f32 %v12907_v29, %v2196_v0  ;;  %v2248_v5 = vmul.f32 %v12907_v29, %v2191_v24  ;;  %2717 = vperm.xlu1 %11740, %v2574_v62   ;;  %2712 = vperm.xlu0 %11739, %v2573_v12   ;;  %v2578_v12 = vld [vmem:[#allocation2 + $0x18b] sm:$0xff]  ;;  %v2577_v0 = vld [vmem:[#allocation2 + $0x183] sm:$0xff] }
 0x26a   : > { %v12972_v20 = vadd.f32 %v2249_v9, %v12859_v28  ;;  %v12975_v1 = vadd.f32 %v2248_v5, %v12862_v6 }
 0x26b   : > { %v2206_v63 = vpop.permute.xlu1 %2205  ;;  %v2201_v45 = vpop.permute.xlu0 %2200 }
 0x26c   : > { %v2251_v7 = vmul.f32 %v12907_v29, %v2206_v63  ;;  %v2250_v62 = vmul.f32 %v12907_v29, %v2201_v45  ;;  %2727 = vperm.xlu1 %11740, %v2576_v37   ;;  %2722 = vperm.xlu0 %11739, %v2575_v59   ;;  %v2808_v63 = vld [vmem:[#allocation2 + $0x1c] sm:$0xff] }
 0x26d   : > { %v2811_v45 = vld [vmem:[#allocation2 + $0x3c] sm:$0xff] }
 0x26e   : > { %v12980_v24 = vadd.f32 %v2251_v7, %v12867_v58  ;;  %v12983_v14 = vadd.f32 %v2250_v62, %v12870_v27  ;;  %v2810_v7 = vld [vmem:[#allocation2 + $0x34] sm:$0xff] }
 0x26f   : > { %v2216_v28 = vpop.permute.xlu1 %2215  ;;  %v2211_v9 = vpop.permute.xlu0 %2210 }
 0x270   : > { %v2253_v5 = vmul.f32 %v12907_v29, %v2216_v28  ;;  %v2252_v6 = vmul.f32 %v12907_v29, %v2211_v9  ;;  %2737 = vperm.xlu1 %11740, %v2578_v12   ;;  %2732 = vperm.xlu0 %11739, %v2577_v0   ;;  %v2813_v12 = vld [vmem:[#allocation2 + $0x54] sm:$0xff]  ;;  %v2815_v28 = vld [vmem:[#allocation2 + $0x6c] sm:$0xff]  ;;  %v2814_v9 = vld [vmem:[#allocation2 + $0x64] sm:$0xff] }
 0x272   : > { %v12988_v37 = vadd.f32 %v2253_v5, %v12875_v4  ;;  %v12991_v59 = vadd.f32 %v2252_v6, %v12878_v60  ;;  %v2812_v4 = vld [vmem:[#allocation2 + $0x4c] sm:$0xff] }
 0x273   : > { %v12993_v58 = vpop.permute.xlu1 %2326  ;;  %v12995_v27 = vpop.permute.xlu0 %2321 }
 0x274   : > { %16696 = vst [vmem:[#allocation94_spill] sm:$0xff] %v12993_v58  ;;  %16697 = vst [vmem:[#allocation95_spill] sm:$0xff] %v12995_v27  ;;  %2848 = vperm.xlu1 %11740, %v2809_v30   ;;  %2843 = vperm.xlu0 %11739, %v2808_v63   ;;  %v2817_v30 = vld [vmem:[#allocation2 + $0x84] sm:$0xff]  ;;  %v2816_v63 = vld [vmem:[#allocation2 + $0x7c] sm:$0xff] }
 0x277   : > { %v12997_v62 = vpop.permute.xlu1 %2336  ;;  %v12999_v29 = vpop.permute.xlu0 %2331 }
 0x278   : > { %16698 = vst [vmem:[#allocation96_spill] sm:$0xff] %v12997_v62  ;;  %16699 = vst [vmem:[#allocation97_spill] sm:$0xff] %v12999_v29  ;;  %2858 = vperm.xlu1 %11740, %v2811_v45   ;;  %2853 = vperm.xlu0 %11739, %v2810_v7  }
 0x27b   : > { %v13001_v0 = vpop.permute.xlu1 %2346  ;;  %v13003_v60 = vpop.permute.xlu0 %2341 }
 0x27c   : > { %16700 = vst [vmem:[#allocation98_spill] sm:$0xff] %v13001_v0  ;;  %16701 = vst [vmem:[#allocation99_spill] sm:$0xff] %v13003_v60  ;;  %2868 = vperm.xlu1 %11740, %v2813_v12   ;;  %2863 = vperm.xlu0 %11739, %v2812_v4   ;;  %v2819_v0 = vld [vmem:[#allocation2 + $0x9c] sm:$0xff]  ;;  %v2818_v60 = vld [vmem:[#allocation2 + $0x94] sm:$0xff] }
 0x27f   : > { %v13005_v5 = vpop.permute.xlu1 %2356  ;;  %v13007_v6 = vpop.permute.xlu0 %2351 }
 0x280   : > { %16702 = vst [vmem:[#allocation100_spill] sm:$0xff] %v13005_v5  ;;  %16703 = vst [vmem:[#allocation101_spill] sm:$0xff] %v13007_v6  ;;  %2878 = vperm.xlu1 %11740, %v2815_v28   ;;  %2873 = vperm.xlu0 %11739, %v2814_v9   ;;  %v2821_v5 = vld [vmem:[#allocation2 + $0xb4] sm:$0xff]  ;;  %v2820_v6 = vld [vmem:[#allocation2 + $0xac] sm:$0xff] }
 0x281   : > { %v13020_v28 = vld [vmem:[%s16571_s1 + $0x7] ss:$0 sm:$0xff] }
 0x283   : > { %v13009_v45 = vpop.permute.xlu1 %2366  ;;  %v13011_v7 = vpop.permute.xlu0 %2361 }
 0x284   : > { %16704 = vst [vmem:[#allocation102_spill] sm:$0xff] %v13009_v45  ;;  %16705 = vst [vmem:[#allocation103_spill] sm:$0xff] %v13011_v7  ;;  %2888 = vperm.xlu1 %11740, %v2817_v30   ;;  %2883 = vperm.xlu0 %11739, %v2816_v63   ;;  %v2822_v7 = vld [vmem:[#allocation2 + $0xc4] sm:$0xff] }
 0x287   : > { %v13013_v12 = vpop.permute.xlu1 %2376  ;;  %v13015_v4 = vpop.permute.xlu0 %2371 }
 0x288   : > { %16706 = vst [vmem:[#allocation104_spill] sm:$0xff] %v13013_v12  ;;  %16707 = vst [vmem:[#allocation105_spill] sm:$0xff] %v13015_v4  ;;  %2898 = vperm.xlu1 %11740, %v2819_v0   ;;  %2893 = vperm.xlu0 %11739, %v2818_v60   ;;  %v2823_v12 = vld [vmem:[#allocation2 + $0xcc] sm:$0xff] }
 0x28b   : > { %v2387_v9 = vpop.permute.xlu1 %2386  ;;  %v2382_v45 = vpop.permute.xlu0 %2381 }
 0x28c   : > { %v2496_v30 = vmul.f32 %v13020_v28, %v2387_v9  ;;  %v2495_v63 = vmul.f32 %v13020_v28, %v2382_v45  ;;  %2908 = vperm.xlu1 %11740, %v2821_v5   ;;  %2903 = vperm.xlu0 %11739, %v2820_v6   ;;  %v2825_v9 = vld [vmem:[#allocation2 + $0xe4] sm:$0xff]  ;;  %v2824_v45 = vld [vmem:[#allocation2 + $0xdc] sm:$0xff] }
 0x28e   : > { %v13025_v0 = vadd.f32 %v2496_v30, %v12912_v15  ;;  %v13028_v60 = vadd.f32 %v2495_v63, %v12915_v8 }
 0x28f   : > { %v2397_v4 = vpop.permute.xlu1 %2396  ;;  %v2392_v29 = vpop.permute.xlu0 %2391 }
 0x290   : > { %v2498_v62 = vmul.f32 %v13020_v28, %v2397_v4  ;;  %v2497_v27 = vmul.f32 %v13020_v28, %v2392_v29  ;;  %2918 = vperm.xlu1 %11740, %v2823_v12   ;;  %2913 = vperm.xlu0 %11739, %v2822_v7   ;;  %v2827_v4 = vld [vmem:[#allocation2 + $0xfc] sm:$0xff]  ;;  %v2826_v29 = vld [vmem:[#allocation2 + $0xf4] sm:$0xff] }
 0x292   : > { %v13033_v5 = vadd.f32 %v2498_v62, %v12920_v21  ;;  %v13036_v6 = vadd.f32 %v2497_v27, %v12923_v13 }
 0x293   : > { %v2407_v15 = vpop.permute.xlu1 %2406  ;;  %v2402_v30 = vpop.permute.xlu0 %2401 }
 0x294   : > { %v2500_v8 = vmul.f32 %v13020_v28, %v2407_v15  ;;  %v2499_v63 = vmul.f32 %v13020_v28, %v2402_v30  ;;  %2928 = vperm.xlu1 %11740, %v2825_v9   ;;  %2923 = vperm.xlu0 %11739, %v2824_v45   ;;  %v2829_v15 = vld [vmem:[#allocation2 + $0x114] sm:$0xff]  ;;  %v2828_v30 = vld [vmem:[#allocation2 + $0x10c] sm:$0xff] }
 0x296   : > { %v13041_v7 = vadd.f32 %v2500_v8, %v12928_v22  ;;  %v13044_v12 = vadd.f32 %v2499_v63, %v12931_v36 }
 0x297   : > { %v2417_v21 = vpop.permute.xlu1 %2416  ;;  %v2412_v62 = vpop.permute.xlu0 %2411 }
 0x298   : > { %v2502_v13 = vmul.f32 %v13020_v28, %v2417_v21  ;;  %v2501_v27 = vmul.f32 %v13020_v28, %v2412_v62  ;;  %2938 = vperm.xlu1 %11740, %v2827_v4   ;;  %2933 = vperm.xlu0 %11739, %v2826_v29   ;;  %v2831_v21 = vld [vmem:[#allocation2 + $0x12c] sm:$0xff]  ;;  %v2830_v62 = vld [vmem:[#allocation2 + $0x124] sm:$0xff] }
 0x29a   : > { %v13049_v9 = vadd.f32 %v2502_v13, %v12936_v17  ;;  %v13052_v45 = vadd.f32 %v2501_v27, %v12939_v31 }
 0x29b   : > { %v2427_v22 = vpop.permute.xlu1 %2426  ;;  %v2422_v8 = vpop.permute.xlu0 %2421 }
 0x29c   : > { %v2504_v36 = vmul.f32 %v13020_v28, %v2427_v22  ;;  %v2503_v63 = vmul.f32 %v13020_v28, %v2422_v8  ;;  %2948 = vperm.xlu1 %11740, %v2829_v15   ;;  %2943 = vperm.xlu0 %11739, %v2828_v30   ;;  %v2833_v22 = vld [vmem:[#allocation2 + $0x144] sm:$0xff]  ;;  %v2832_v8 = vld [vmem:[#allocation2 + $0x13c] sm:$0xff] }
 0x29e   : > { %v13057_v4 = vadd.f32 %v2504_v36, %v12944_v25  ;;  %v13060_v29 = vadd.f32 %v2503_v63, %v12947_v23 }
 0x29f   : > { %v2437_v17 = vpop.permute.xlu1 %2436  ;;  %v2432_v13 = vpop.permute.xlu0 %2431 }
 0x2a0   : > { %v2506_v31 = vmul.f32 %v13020_v28, %v2437_v17  ;;  %v2505_v27 = vmul.f32 %v13020_v28, %v2432_v13  ;;  %2958 = vperm.xlu1 %11740, %v2831_v21   ;;  %2953 = vperm.xlu0 %11739, %v2830_v62   ;;  %v2835_v17 = vld [vmem:[#allocation2 + $0x15c] sm:$0xff]  ;;  %v2834_v13 = vld [vmem:[#allocation2 + $0x154] sm:$0xff] }
 0x2a2   : > { %v13065_v15 = vadd.f32 %v2506_v31, %v12952_v61  ;;  %v13068_v30 = vadd.f32 %v2505_v27, %v12955_v53 }
 0x2a3   : > { %v2447_v25 = vpop.permute.xlu1 %2446  ;;  %v2442_v36 = vpop.permute.xlu0 %2441 }
 0x2a4   : > { %v2508_v23 = vmul.f32 %v13020_v28, %v2447_v25  ;;  %v2507_v63 = vmul.f32 %v13020_v28, %v2442_v36  ;;  %2968 = vperm.xlu1 %11740, %v2833_v22   ;;  %2963 = vperm.xlu0 %11739, %v2832_v8   ;;  %v2837_v25 = vld [vmem:[#allocation2 + $0x174] sm:$0xff]  ;;  %v2836_v36 = vld [vmem:[#allocation2 + $0x16c] sm:$0xff] }
 0x2a6   : > { %v13073_v21 = vadd.f32 %v2508_v23, %v12960_v33  ;;  %v13076_v62 = vadd.f32 %v2507_v63, %v12963_v16 }
 0x2a7   : > { %v2457_v61 = vpop.permute.xlu1 %2456  ;;  %v2452_v31 = vpop.permute.xlu0 %2451 }
 0x2a8   : > { %v2510_v53 = vmul.f32 %v13020_v28, %v2457_v61  ;;  %v2509_v27 = vmul.f32 %v13020_v28, %v2452_v31  ;;  %2978 = vperm.xlu1 %11740, %v2835_v17   ;;  %2973 = vperm.xlu0 %11739, %v2834_v13   ;;  %v2839_v61 = vld [vmem:[#allocation2 + $0x18c] sm:$0xff]  ;;  %v2838_v31 = vld [vmem:[#allocation2 + $0x184] sm:$0xff] }
 0x2aa   : > { %v13081_v22 = vadd.f32 %v2510_v53, %v12972_v20  ;;  %v13084_v8 = vadd.f32 %v2509_v27, %v12975_v1 }
 0x2ab   : > { %v2467_v33 = vpop.permute.xlu1 %2466  ;;  %v2462_v23 = vpop.permute.xlu0 %2461 }
 0x2ac   : > { %v2512_v16 = vmul.f32 %v13020_v28, %v2467_v33  ;;  %v2511_v63 = vmul.f32 %v13020_v28, %v2462_v23  ;;  %2988 = vperm.xlu1 %11740, %v2837_v25   ;;  %2983 = vperm.xlu0 %11739, %v2836_v36   ;;  %v3070_v33 = vld [vmem:[#allocation2 + $0x38] sm:$0xff]  ;;  %v3069_v23 = vld [vmem:[#allocation2 + $0x30] sm:$0xff] }
 0x2ae   : > { %v13089_v17 = vadd.f32 %v2512_v16, %v12980_v24  ;;  %v13092_v13 = vadd.f32 %v2511_v63, %v12983_v14  ;;  %v3072_v16 = vld [vmem:[#allocation2 + $0x50] sm:$0xff]  ;;  %v3071_v63 = vld [vmem:[#allocation2 + $0x48] sm:$0xff] }
 0x2af   : > { %v2477_v20 = vpop.permute.xlu1 %2476  ;;  %v2472_v53 = vpop.permute.xlu0 %2471 }
 0x2b0   : > { %v2514_v1 = vmul.f32 %v13020_v28, %v2477_v20  ;;  %v2513_v27 = vmul.f32 %v13020_v28, %v2472_v53  ;;  %2998 = vperm.xlu1 %11740, %v2839_v61   ;;  %2993 = vperm.xlu0 %11739, %v2838_v31   ;;  %v3074_v61 = vld [vmem:[#allocation2 + $0x68] sm:$0xff]  ;;  %v3076_v53 = vld [vmem:[#allocation2 + $0x80] sm:$0xff] }
 0x2b2   : > { %v13097_v25 = vadd.f32 %v2514_v1, %v12988_v37  ;;  %v13100_v36 = vadd.f32 %v2513_v27, %v12991_v59  ;;  %v3073_v37 = vld [vmem:[#allocation2 + $0x60] sm:$0xff]  ;;  %v3075_v1 = vld [vmem:[#allocation2 + $0x78] sm:$0xff] }
 0x2b3   : > { %v13102_v24 = vpop.permute.xlu1 %2587  ;;  %v13104_v14 = vpop.permute.xlu0 %2582 }
 0x2b4   : > { %16708 = vst [vmem:[#allocation106_spill] sm:$0xff] %v13102_v24  ;;  %16709 = vst [vmem:[#allocation107_spill] sm:$0xff] %v13104_v14  ;;  %3109 = vperm.xlu1 %11740, %v3070_v33   ;;  %3104 = vperm.xlu0 %11739, %v3069_v23   ;;  %v3078_v23 = vld [vmem:[#allocation2 + $0x98] sm:$0xff] }
 0x2b7   : > { %v13106_v20 = vpop.permute.xlu1 %2597  ;;  %v13108_v28 = vpop.permute.xlu0 %2592 }
 0x2b8   : > { %16710 = vst [vmem:[#allocation108_spill] sm:$0xff] %v13106_v20  ;;  %16711 = vst [vmem:[#allocation109_spill] sm:$0xff] %v13108_v28  ;;  %3119 = vperm.xlu1 %11740, %v3072_v16   ;;  %3114 = vperm.xlu0 %11739, %v3071_v63   ;;  %v3077_v28 = vld [vmem:[#allocation2 + $0x90] sm:$0xff] }
 0x2bb   : > { %v13110_v31 = vpop.permute.xlu1 %2607  ;;  %v13112_v59 = vpop.permute.xlu0 %2602 }
 0x2bc   : > { %16712 = vst [vmem:[#allocation110_spill] sm:$0xff] %v13110_v31  ;;  %16713 = vst [vmem:[#allocation111_spill] sm:$0xff] %v13112_v59  ;;  %3129 = vperm.xlu1 %11740, %v3074_v61   ;;  %3124 = vperm.xlu0 %11739, %v3073_v37   ;;  %v3080_v31 = vld [vmem:[#allocation2 + $0xb0] sm:$0xff]  ;;  %v3079_v59 = vld [vmem:[#allocation2 + $0xa8] sm:$0xff] }
 0x2bf   : > { %v13114_v27 = vpop.permute.xlu1 %2617  ;;  %v13116_v33 = vpop.permute.xlu0 %2612 }
 0x2c0   : > { %16714 = vst [vmem:[#allocation112_spill] sm:$0xff] %v13114_v27  ;;  %16715 = vst [vmem:[#allocation113_spill] sm:$0xff] %v13116_v33  ;;  %3139 = vperm.xlu1 %11740, %v3076_v53   ;;  %3134 = vperm.xlu0 %11739, %v3075_v1   ;;  %v3082_v27 = vld [vmem:[#allocation2 + $0xc8] sm:$0xff]  ;;  %v3081_v33 = vld [vmem:[#allocation2 + $0xc0] sm:$0xff] }
 0x2c1   : > { %v13129_v53 = vld [vmem:[%s16571_s1 + $0x8] ss:$0 sm:$0xff] }
 0x2c3   : > { %v13118_v16 = vpop.permute.xlu1 %2627  ;;  %v13120_v63 = vpop.permute.xlu0 %2622 }
 0x2c4   : > { %16716 = vst [vmem:[#allocation114_spill] sm:$0xff] %v13118_v16  ;;  %16717 = vst [vmem:[#allocation115_spill] sm:$0xff] %v13120_v63  ;;  %3149 = vperm.xlu1 %11740, %v3078_v23   ;;  %3144 = vperm.xlu0 %11739, %v3077_v28   ;;  %v3083_v63 = vld [vmem:[#allocation2 + $0xd8] sm:$0xff] }
 0x2c7   : > { %v13122_v61 = vpop.permute.xlu1 %2637  ;;  %v13124_v37 = vpop.permute.xlu0 %2632 }
 0x2c8   : > { %16718 = vst [vmem:[#allocation116_spill] sm:$0xff] %v13122_v61  ;;  %16719 = vst [vmem:[#allocation117_spill] sm:$0xff] %v13124_v37  ;;  %3159 = vperm.xlu1 %11740, %v3080_v31   ;;  %3154 = vperm.xlu0 %11739, %v3079_v59   ;;  %v3084_v61 = vld [vmem:[#allocation2 + $0xe0] sm:$0xff] }
 0x2cb   : > { %v2648_v1 = vpop.permute.xlu1 %2647  ;;  %v2643_v16 = vpop.permute.xlu0 %2642 }
 0x2cc   : > { %v2757_v23 = vmul.f32 %v13129_v53, %v2648_v1  ;;  %v2756_v28 = vmul.f32 %v13129_v53, %v2643_v16  ;;  %3169 = vperm.xlu1 %11740, %v3082_v27   ;;  %3164 = vperm.xlu0 %11739, %v3081_v33   ;;  %v3086_v1 = vld [vmem:[#allocation2 + $0xf8] sm:$0xff]  ;;  %v3085_v16 = vld [vmem:[#allocation2 + $0xf0] sm:$0xff] }
 0x2ce   : > { %v13134_v31 = vadd.f32 %v2757_v23, %v13025_v0  ;;  %v13137_v59 = vadd.f32 %v2756_v28, %v13028_v60 }
 0x2cf   : > { %v2658_v37 = vpop.permute.xlu1 %2657  ;;  %v2653_v20 = vpop.permute.xlu0 %2652 }
 0x2d0   : > { %v2759_v14 = vmul.f32 %v13129_v53, %v2658_v37  ;;  %v2758_v24 = vmul.f32 %v13129_v53, %v2653_v20  ;;  %3179 = vperm.xlu1 %11740, %v3084_v61   ;;  %3174 = vperm.xlu0 %11739, %v3083_v63   ;;  %v3088_v37 = vld [vmem:[#allocation2 + $0x110] sm:$0xff]  ;;  %v3087_v20 = vld [vmem:[#allocation2 + $0x108] sm:$0xff] }
 0x2d2   : > { %v13142_v27 = vadd.f32 %v2759_v14, %v13033_v5  ;;  %v13145_v33 = vadd.f32 %v2758_v24, %v13036_v6 }
 0x2d3   : > { %v2668_v0 = vpop.permute.xlu1 %2667  ;;  %v2663_v23 = vpop.permute.xlu0 %2662 }
 0x2d4   : > { %v2761_v60 = vmul.f32 %v13129_v53, %v2668_v0  ;;  %v2760_v28 = vmul.f32 %v13129_v53, %v2663_v23  ;;  %3189 = vperm.xlu1 %11740, %v3086_v1   ;;  %3184 = vperm.xlu0 %11739, %v3085_v16   ;;  %v3090_v0 = vld [vmem:[#allocation2 + $0x128] sm:$0xff]  ;;  %v3089_v23 = vld [vmem:[#allocation2 + $0x120] sm:$0xff] }
 0x2d6   : > { %v13150_v63 = vadd.f32 %v2761_v60, %v13041_v7  ;;  %v13153_v61 = vadd.f32 %v2760_v28, %v13044_v12 }
 0x2d7   : > { %v2678_v5 = vpop.permute.xlu1 %2677  ;;  %v2673_v14 = vpop.permute.xlu0 %2672 }
 0x2d8   : > { %v2763_v6 = vmul.f32 %v13129_v53, %v2678_v5  ;;  %v2762_v24 = vmul.f32 %v13129_v53, %v2673_v14  ;;  %3199 = vperm.xlu1 %11740, %v3088_v37   ;;  %3194 = vperm.xlu0 %11739, %v3087_v20   ;;  %v3092_v5 = vld [vmem:[#allocation2 + $0x140] sm:$0xff]  ;;  %v3091_v14 = vld [vmem:[#allocation2 + $0x138] sm:$0xff] }
 0x2da   : > { %v13158_v1 = vadd.f32 %v2763_v6, %v13049_v9  ;;  %v13161_v16 = vadd.f32 %v2762_v24, %v13052_v45 }
 0x2db   : > { %v2688_v7 = vpop.permute.xlu1 %2687  ;;  %v2683_v60 = vpop.permute.xlu0 %2682 }
 0x2dc   : > { %v2765_v12 = vmul.f32 %v13129_v53, %v2688_v7  ;;  %v2764_v28 = vmul.f32 %v13129_v53, %v2683_v60  ;;  %3209 = vperm.xlu1 %11740, %v3090_v0   ;;  %3204 = vperm.xlu0 %11739, %v3089_v23   ;;  %v3094_v7 = vld [vmem:[#allocation2 + $0x158] sm:$0xff]  ;;  %v3093_v60 = vld [vmem:[#allocation2 + $0x150] sm:$0xff] }
 0x2de   : > { %v13166_v37 = vadd.f32 %v2765_v12, %v13057_v4  ;;  %v13169_v20 = vadd.f32 %v2764_v28, %v13060_v29 }
 0x2df   : > { %v2698_v9 = vpop.permute.xlu1 %2697  ;;  %v2693_v6 = vpop.permute.xlu0 %2692 }
 0x2e0   : > { %v2767_v45 = vmul.f32 %v13129_v53, %v2698_v9  ;;  %v2766_v24 = vmul.f32 %v13129_v53, %v2693_v6  ;;  %3219 = vperm.xlu1 %11740, %v3092_v5   ;;  %3214 = vperm.xlu0 %11739, %v3091_v14   ;;  %v3096_v9 = vld [vmem:[#allocation2 + $0x170] sm:$0xff]  ;;  %v3095_v6 = vld [vmem:[#allocation2 + $0x168] sm:$0xff] }
 0x2e2   : > { %v13174_v0 = vadd.f32 %v2767_v45, %v13065_v15  ;;  %v13177_v23 = vadd.f32 %v2766_v24, %v13068_v30 }
 0x2e3   : > { %v2708_v4 = vpop.permute.xlu1 %2707  ;;  %v2703_v12 = vpop.permute.xlu0 %2702 }
 0x2e4   : > { %v2769_v29 = vmul.f32 %v13129_v53, %v2708_v4  ;;  %v2768_v28 = vmul.f32 %v13129_v53, %v2703_v12  ;;  %3229 = vperm.xlu1 %11740, %v3094_v7   ;;  %3224 = vperm.xlu0 %11739, %v3093_v60   ;;  %v3098_v4 = vld [vmem:[#allocation2 + $0x188] sm:$0xff]  ;;  %v3097_v12 = vld [vmem:[#allocation2 + $0x180] sm:$0xff] }
 0x2e6   : > { %v13182_v5 = vadd.f32 %v2769_v29, %v13073_v21  ;;  %v13185_v14 = vadd.f32 %v2768_v28, %v13076_v62 }
 0x2e7   : > { %v2718_v15 = vpop.permute.xlu1 %2717  ;;  %v2713_v45 = vpop.permute.xlu0 %2712 }
 0x2e8   : > { %v2771_v30 = vmul.f32 %v13129_v53, %v2718_v15  ;;  %v2770_v24 = vmul.f32 %v13129_v53, %v2713_v45  ;;  %3239 = vperm.xlu1 %11740, %v3096_v9   ;;  %3234 = vperm.xlu0 %11739, %v3095_v6   ;;  %v3100_v15 = vld [vmem:[#allocation2 + $0x1a0] sm:$0xff]  ;;  %v3099_v45 = vld [vmem:[#allocation2 + $0x198] sm:$0xff] }
 0x2ea   : > { %v13190_v7 = vadd.f32 %v2771_v30, %v13081_v22  ;;  %v13193_v60 = vadd.f32 %v2770_v24, %v13084_v8 }
 0x2eb   : > { %v2728_v21 = vpop.permute.xlu1 %2727  ;;  %v2723_v29 = vpop.permute.xlu0 %2722 }
 0x2ec   : > { %v2773_v62 = vmul.f32 %v13129_v53, %v2728_v21  ;;  %v2772_v28 = vmul.f32 %v13129_v53, %v2723_v29  ;;  %3249 = vperm.xlu1 %11740, %v3098_v4   ;;  %3244 = vperm.xlu0 %11739, %v3097_v12   ;;  %v3331_v21 = vld [vmem:[#allocation2 + $0x39] sm:$0xff]  ;;  %v3330_v29 = vld [vmem:[#allocation2 + $0x31] sm:$0xff] }
 0x2ee   : > { %v13198_v9 = vadd.f32 %v2773_v62, %v13089_v17  ;;  %v13201_v6 = vadd.f32 %v2772_v28, %v13092_v13  ;;  %v3333_v62 = vld [vmem:[#allocation2 + $0x51] sm:$0xff]  ;;  %v3332_v28 = vld [vmem:[#allocation2 + $0x49] sm:$0xff] }
 0x2ef   : > { %v2738_v22 = vpop.permute.xlu1 %2737  ;;  %v2733_v30 = vpop.permute.xlu0 %2732 }
 0x2f0   : > { %v2775_v8 = vmul.f32 %v13129_v53, %v2738_v22  ;;  %v2774_v24 = vmul.f32 %v13129_v53, %v2733_v30  ;;  %3259 = vperm.xlu1 %11740, %v3100_v15   ;;  %3254 = vperm.xlu0 %11739, %v3099_v45   ;;  %v3335_v15 = vld [vmem:[#allocation2 + $0x69] sm:$0xff]  ;;  %v3337_v30 = vld [vmem:[#allocation2 + $0x81] sm:$0xff] }
 0x2f2   : > { %v13206_v4 = vadd.f32 %v2775_v8, %v13097_v25  ;;  %v13209_v12 = vadd.f32 %v2774_v24, %v13100_v36  ;;  %v3334_v25 = vld [vmem:[#allocation2 + $0x61] sm:$0xff]  ;;  %v3336_v8 = vld [vmem:[#allocation2 + $0x79] sm:$0xff] }
 0x2f3   : > { %v13211_v17 = vpop.permute.xlu1 %2848  ;;  %v13213_v13 = vpop.permute.xlu0 %2843 }
 0x2f4   : > { %16720 = vst [vmem:[#allocation118_spill] sm:$0xff] %v13211_v17  ;;  %16721 = vst [vmem:[#allocation119_spill] sm:$0xff] %v13213_v13  ;;  %3370 = vperm.xlu1 %11740, %v3331_v21   ;;  %3365 = vperm.xlu0 %11739, %v3330_v29   ;;  %v3339_v29 = vld [vmem:[#allocation2 + $0x99] sm:$0xff] }
 0x2f7   : > { %v13215_v22 = vpop.permute.xlu1 %2858  ;;  %v13217_v53 = vpop.permute.xlu0 %2853 }
 0x2f8   : > { %16722 = vst [vmem:[#allocation120_spill] sm:$0xff] %v13215_v22  ;;  %16723 = vst [vmem:[#allocation121_spill] sm:$0xff] %v13217_v53  ;;  %3380 = vperm.xlu1 %11740, %v3333_v62   ;;  %3375 = vperm.xlu0 %11739, %v3332_v28   ;;  %v3338_v53 = vld [vmem:[#allocation2 + $0x91] sm:$0xff] }
 0x2fb   : > { %v13219_v45 = vpop.permute.xlu1 %2868  ;;  %v13221_v36 = vpop.permute.xlu0 %2863 }
 0x2fc   : > { %16724 = vst [vmem:[#allocation122_spill] sm:$0xff] %v13219_v45  ;;  %16725 = vst [vmem:[#allocation123_spill] sm:$0xff] %v13221_v36  ;;  %3390 = vperm.xlu1 %11740, %v3335_v15   ;;  %3385 = vperm.xlu0 %11739, %v3334_v25   ;;  %v3341_v45 = vld [vmem:[#allocation2 + $0xb1] sm:$0xff]  ;;  %v3340_v36 = vld [vmem:[#allocation2 + $0xa9] sm:$0xff] }
 0x2ff   : > { %v13223_v24 = vpop.permute.xlu1 %2878  ;;  %v13225_v21 = vpop.permute.xlu0 %2873 }
 0x300   : > { %16726 = vst [vmem:[#allocation124_spill] sm:$0xff] %v13223_v24  ;;  %16727 = vst [vmem:[#allocation125_spill] sm:$0xff] %v13225_v21  ;;  %3400 = vperm.xlu1 %11740, %v3337_v30   ;;  %3395 = vperm.xlu0 %11739, %v3336_v8   ;;  %v3343_v24 = vld [vmem:[#allocation2 + $0xc9] sm:$0xff]  ;;  %v3342_v21 = vld [vmem:[#allocation2 + $0xc1] sm:$0xff] }
 0x301   : > { %v13238_v30 = vld [vmem:[%s16571_s1 + $0x9] ss:$0 sm:$0xff] }
 0x303   : > { %v13227_v62 = vpop.permute.xlu1 %2888  ;;  %v13229_v28 = vpop.permute.xlu0 %2883 }
 0x304   : > { %16728 = vst [vmem:[#allocation126_spill] sm:$0xff] %v13227_v62  ;;  %16729 = vst [vmem:[#allocation127_spill] sm:$0xff] %v13229_v28  ;;  %3410 = vperm.xlu1 %11740, %v3339_v29   ;;  %3405 = vperm.xlu0 %11739, %v3338_v53   ;;  %v3344_v28 = vld [vmem:[#allocation2 + $0xd9] sm:$0xff] }
 0x307   : > { %v13231_v15 = vpop.permute.xlu1 %2898  ;;  %v13233_v25 = vpop.permute.xlu0 %2893 }
 0x308   : > { %16730 = vst [vmem:[#allocation128_spill] sm:$0xff] %v13231_v15  ;;  %16731 = vst [vmem:[#allocation129_spill] sm:$0xff] %v13233_v25  ;;  %3420 = vperm.xlu1 %11740, %v3341_v45   ;;  %3415 = vperm.xlu0 %11739, %v3340_v36   ;;  %v3345_v15 = vld [vmem:[#allocation2 + $0xe1] sm:$0xff] }
 0x30b   : > { %v2909_v8 = vpop.permute.xlu1 %2908  ;;  %v2904_v62 = vpop.permute.xlu0 %2903 }
 0x30c   : > { %v3018_v29 = vmul.f32 %v13238_v30, %v2909_v8  ;;  %v3017_v53 = vmul.f32 %v13238_v30, %v2904_v62  ;;  %3430 = vperm.xlu1 %11740, %v3343_v24   ;;  %3425 = vperm.xlu0 %11739, %v3342_v21   ;;  %v3347_v8 = vld [vmem:[#allocation2 + $0xf9] sm:$0xff]  ;;  %v3346_v62 = vld [vmem:[#allocation2 + $0xf1] sm:$0xff] }
 0x30e   : > { %v13243_v45 = vadd.f32 %v3018_v29, %v13134_v31  ;;  %v13246_v36 = vadd.f32 %v3017_v53, %v13137_v59 }
 0x30f   : > { %v2919_v25 = vpop.permute.xlu1 %2918  ;;  %v2914_v22 = vpop.permute.xlu0 %2913 }
 0x310   : > { %v3020_v13 = vmul.f32 %v13238_v30, %v2919_v25  ;;  %v3019_v17 = vmul.f32 %v13238_v30, %v2914_v22  ;;  %3440 = vperm.xlu1 %11740, %v3345_v15   ;;  %3435 = vperm.xlu0 %11739, %v3344_v28   ;;  %v3349_v25 = vld [vmem:[#allocation2 + $0x111] sm:$0xff]  ;;  %v3348_v22 = vld [vmem:[#allocation2 + $0x109] sm:$0xff] }
 0x312   : > { %v13251_v24 = vadd.f32 %v3020_v13, %v13142_v27  ;;  %v13254_v21 = vadd.f32 %v3019_v17, %v13145_v33 }
 0x313   : > { %v2929_v31 = vpop.permute.xlu1 %2928  ;;  %v2924_v29 = vpop.permute.xlu0 %2923 }
 0x314   : > { %v3022_v59 = vmul.f32 %v13238_v30, %v2929_v31  ;;  %v3021_v53 = vmul.f32 %v13238_v30, %v2924_v29  ;;  %3450 = vperm.xlu1 %11740, %v3347_v8   ;;  %3445 = vperm.xlu0 %11739, %v3346_v62   ;;  %v3351_v31 = vld [vmem:[#allocation2 + $0x129] sm:$0xff]  ;;  %v3350_v29 = vld [vmem:[#allocation2 + $0x121] sm:$0xff] }
 0x316   : > { %v13259_v28 = vadd.f32 %v3022_v59, %v13150_v63  ;;  %v13262_v15 = vadd.f32 %v3021_v53, %v13153_v61 }
 0x317   : > { %v2939_v27 = vpop.permute.xlu1 %2938  ;;  %v2934_v13 = vpop.permute.xlu0 %2933 }
 0x318   : > { %v3024_v33 = vmul.f32 %v13238_v30, %v2939_v27  ;;  %v3023_v17 = vmul.f32 %v13238_v30, %v2934_v13  ;;  %3460 = vperm.xlu1 %11740, %v3349_v25   ;;  %3455 = vperm.xlu0 %11739, %v3348_v22   ;;  %v3353_v27 = vld [vmem:[#allocation2 + $0x141] sm:$0xff]  ;;  %v3352_v13 = vld [vmem:[#allocation2 + $0x139] sm:$0xff] }
 0x31a   : > { %v13267_v8 = vadd.f32 %v3024_v33, %v13158_v1  ;;  %v13270_v62 = vadd.f32 %v3023_v17, %v13161_v16 }
 0x31b   : > { %v2949_v63 = vpop.permute.xlu1 %2948  ;;  %v2944_v59 = vpop.permute.xlu0 %2943 }
 0x31c   : > { %v3026_v61 = vmul.f32 %v13238_v30, %v2949_v63  ;;  %v3025_v53 = vmul.f32 %v13238_v30, %v2944_v59  ;;  %3470 = vperm.xlu1 %11740, %v3351_v31   ;;  %3465 = vperm.xlu0 %11739, %v3350_v29   ;;  %v3355_v63 = vld [vmem:[#allocation2 + $0x159] sm:$0xff]  ;;  %v3354_v59 = vld [vmem:[#allocation2 + $0x151] sm:$0xff] }
 0x31e   : > { %v13275_v25 = vadd.f32 %v3026_v61, %v13166_v37  ;;  %v13278_v22 = vadd.f32 %v3025_v53, %v13169_v20 }
 0x31f   : > { %v2959_v1 = vpop.permute.xlu1 %2958  ;;  %v2954_v33 = vpop.permute.xlu0 %2953 }
 0x320   : > { %v3028_v16 = vmul.f32 %v13238_v30, %v2959_v1  ;;  %v3027_v17 = vmul.f32 %v13238_v30, %v2954_v33  ;;  %3480 = vperm.xlu1 %11740, %v3353_v27   ;;  %3475 = vperm.xlu0 %11739, %v3352_v13   ;;  %v3357_v1 = vld [vmem:[#allocation2 + $0x171] sm:$0xff]  ;;  %v3356_v33 = vld [vmem:[#allocation2 + $0x169] sm:$0xff] }
 0x322   : > { %v13283_v31 = vadd.f32 %v3028_v16, %v13174_v0  ;;  %v13286_v29 = vadd.f32 %v3027_v17, %v13177_v23 }
 0x323   : > { %v2969_v37 = vpop.permute.xlu1 %2968  ;;  %v2964_v61 = vpop.permute.xlu0 %2963 }
 0x324   : > { %v3030_v20 = vmul.f32 %v13238_v30, %v2969_v37  ;;  %v3029_v53 = vmul.f32 %v13238_v30, %v2964_v61  ;;  %3490 = vperm.xlu1 %11740, %v3355_v63   ;;  %3485 = vperm.xlu0 %11739, %v3354_v59   ;;  %v3359_v37 = vld [vmem:[#allocation2 + $0x189] sm:$0xff]  ;;  %v3358_v61 = vld [vmem:[#allocation2 + $0x181] sm:$0xff] }
 0x326   : > { %v13291_v27 = vadd.f32 %v3030_v20, %v13182_v5  ;;  %v13294_v13 = vadd.f32 %v3029_v53, %v13185_v14 }
 0x327   : > { %v2979_v0 = vpop.permute.xlu1 %2978  ;;  %v2974_v16 = vpop.permute.xlu0 %2973 }
 0x328   : > { %v3032_v23 = vmul.f32 %v13238_v30, %v2979_v0  ;;  %v3031_v17 = vmul.f32 %v13238_v30, %v2974_v16  ;;  %3500 = vperm.xlu1 %11740, %v3357_v1   ;;  %3495 = vperm.xlu0 %11739, %v3356_v33   ;;  %v3361_v0 = vld [vmem:[#allocation2 + $0x1a1] sm:$0xff]  ;;  %v3360_v16 = vld [vmem:[#allocation2 + $0x199] sm:$0xff] }
 0x32a   : > { %v13299_v63 = vadd.f32 %v3032_v23, %v13190_v7  ;;  %v13302_v59 = vadd.f32 %v3031_v17, %v13193_v60 }
 0x32b   : > { %v2989_v5 = vpop.permute.xlu1 %2988  ;;  %v2984_v20 = vpop.permute.xlu0 %2983 }
 0x32c   : > { %v3034_v14 = vmul.f32 %v13238_v30, %v2989_v5  ;;  %v3033_v53 = vmul.f32 %v13238_v30, %v2984_v20  ;;  %3510 = vperm.xlu1 %11740, %v3359_v37   ;;  %3505 = vperm.xlu0 %11739, %v3358_v61   ;;  %v3592_v5 = vld [vmem:[#allocation2 + $0x3a] sm:$0xff]  ;;  %v3591_v20 = vld [vmem:[#allocation2 + $0x32] sm:$0xff] }
 0x32e   : > { %v13307_v1 = vadd.f32 %v3034_v14, %v13198_v9  ;;  %v13310_v33 = vadd.f32 %v3033_v53, %v13201_v6  ;;  %v3594_v14 = vld [vmem:[#allocation2 + $0x52] sm:$0xff]  ;;  %v3593_v53 = vld [vmem:[#allocation2 + $0x4a] sm:$0xff] }
 0x32f   : > { %v2999_v7 = vpop.permute.xlu1 %2998  ;;  %v2994_v23 = vpop.permute.xlu0 %2993 }
 0x330   : > { %v3036_v60 = vmul.f32 %v13238_v30, %v2999_v7  ;;  %v3035_v17 = vmul.f32 %v13238_v30, %v2994_v23  ;;  %3520 = vperm.xlu1 %11740, %v3361_v0   ;;  %3515 = vperm.xlu0 %11739, %v3360_v16   ;;  %v3596_v0 = vld [vmem:[#allocation2 + $0x6a] sm:$0xff]  ;;  %v3598_v23 = vld [vmem:[#allocation2 + $0x82] sm:$0xff] }
 0x332   : > { %v13315_v37 = vadd.f32 %v3036_v60, %v13206_v4  ;;  %v13318_v61 = vadd.f32 %v3035_v17, %v13209_v12  ;;  %v3595_v4 = vld [vmem:[#allocation2 + $0x62] sm:$0xff]  ;;  %v3597_v60 = vld [vmem:[#allocation2 + $0x7a] sm:$0xff] }
 0x333   : > { %v13320_v9 = vpop.permute.xlu1 %3109  ;;  %v13322_v6 = vpop.permute.xlu0 %3104 }
 0x334   : > { %16732 = vst [vmem:[#allocation130_spill] sm:$0xff] %v13320_v9  ;;  %16733 = vst [vmem:[#allocation131_spill] sm:$0xff] %v13322_v6  ;;  %3631 = vperm.xlu1 %11740, %v3592_v5   ;;  %3626 = vperm.xlu0 %11739, %v3591_v20   ;;  %v3600_v20 = vld [vmem:[#allocation2 + $0x9a] sm:$0xff] }
 0x337   : > { %v13324_v7 = vpop.permute.xlu1 %3119  ;;  %v13326_v30 = vpop.permute.xlu0 %3114 }
 0x338   : > { %16734 = vst [vmem:[#allocation132_spill] sm:$0xff] %v13324_v7  ;;  %16735 = vst [vmem:[#allocation133_spill] sm:$0xff] %v13326_v30  ;;  %3641 = vperm.xlu1 %11740, %v3594_v14   ;;  %3636 = vperm.xlu0 %11739, %v3593_v53   ;;  %v3599_v30 = vld [vmem:[#allocation2 + $0x92] sm:$0xff] }
 0x33b   : > { %v13328_v16 = vpop.permute.xlu1 %3129  ;;  %v13330_v12 = vpop.permute.xlu0 %3124 }
 0x33c   : > { %16736 = vst [vmem:[#allocation134_spill] sm:$0xff] %v13328_v16  ;;  %16737 = vst [vmem:[#allocation135_spill] sm:$0xff] %v13330_v12  ;;  %3651 = vperm.xlu1 %11740, %v3596_v0   ;;  %3646 = vperm.xlu0 %11739, %v3595_v4   ;;  %v3602_v16 = vld [vmem:[#allocation2 + $0xb2] sm:$0xff]  ;;  %v3601_v12 = vld [vmem:[#allocation2 + $0xaa] sm:$0xff] }
 0x33f   : > { %v13332_v17 = vpop.permute.xlu1 %3139  ;;  %v13334_v5 = vpop.permute.xlu0 %3134 }
 0x340   : > { %16738 = vst [vmem:[#allocation136_spill] sm:$0xff] %v13332_v17  ;;  %16739 = vst [vmem:[#allocation137_spill] sm:$0xff] %v13334_v5  ;;  %3661 = vperm.xlu1 %11740, %v3598_v23   ;;  %3656 = vperm.xlu0 %11739, %v3597_v60   ;;  %v3604_v17 = vld [vmem:[#allocation2 + $0xca] sm:$0xff]  ;;  %v3603_v5 = vld [vmem:[#allocation2 + $0xc2] sm:$0xff] }
 0x341   : > { %v13347_v23 = vld [vmem:[%s16571_s1 + $0xa] ss:$0 sm:$0xff] }
 0x343   : > { %v13336_v14 = vpop.permute.xlu1 %3149  ;;  %v13338_v53 = vpop.permute.xlu0 %3144 }
 0x344   : > { %16740 = vst [vmem:[#allocation138_spill] sm:$0xff] %v13336_v14  ;;  %16741 = vst [vmem:[#allocation139_spill] sm:$0xff] %v13338_v53  ;;  %3671 = vperm.xlu1 %11740, %v3600_v20   ;;  %3666 = vperm.xlu0 %11739, %v3599_v30   ;;  %v3605_v53 = vld [vmem:[#allocation2 + $0xda] sm:$0xff] }
 0x347   : > { %v13340_v0 = vpop.permute.xlu1 %3159  ;;  %v13342_v4 = vpop.permute.xlu0 %3154 }
 0x348   : > { %16742 = vst [vmem:[#allocation140_spill] sm:$0xff] %v13340_v0  ;;  %16743 = vst [vmem:[#allocation141_spill] sm:$0xff] %v13342_v4  ;;  %3681 = vperm.xlu1 %11740, %v3602_v16   ;;  %3676 = vperm.xlu0 %11739, %v3601_v12   ;;  %v3606_v0 = vld [vmem:[#allocation2 + $0xe2] sm:$0xff] }
 0x34b   : > { %v3170_v60 = vpop.permute.xlu1 %3169  ;;  %v3165_v14 = vpop.permute.xlu0 %3164 }
 0x34c   : > { %v3279_v20 = vmul.f32 %v13347_v23, %v3170_v60  ;;  %v3278_v30 = vmul.f32 %v13347_v23, %v3165_v14  ;;  %3691 = vperm.xlu1 %11740, %v3604_v17   ;;  %3686 = vperm.xlu0 %11739, %v3603_v5   ;;  %v3608_v60 = vld [vmem:[#allocation2 + $0xfa] sm:$0xff]  ;;  %v3607_v14 = vld [vmem:[#allocation2 + $0xf2] sm:$0xff] }
 0x34e   : > { %v13352_v16 = vadd.f32 %v3279_v20, %v13243_v45  ;;  %v13355_v12 = vadd.f32 %v3278_v30, %v13246_v36 }
 0x34f   : > { %v3180_v4 = vpop.permute.xlu1 %3179  ;;  %v3175_v7 = vpop.permute.xlu0 %3174 }
 0x350   : > { %v3281_v6 = vmul.f32 %v13347_v23, %v3180_v4  ;;  %v3280_v9 = vmul.f32 %v13347_v23, %v3175_v7  ;;  %3701 = vperm.xlu1 %11740, %v3606_v0   ;;  %3696 = vperm.xlu0 %11739, %v3605_v53   ;;  %v3610_v4 = vld [vmem:[#allocation2 + $0x112] sm:$0xff]  ;;  %v3609_v7 = vld [vmem:[#allocation2 + $0x10a] sm:$0xff] }
 0x352   : > { %v13360_v17 = vadd.f32 %v3281_v6, %v13251_v24  ;;  %v13363_v5 = vadd.f32 %v3280_v9, %v13254_v21 }
 0x353   : > { %v3190_v45 = vpop.permute.xlu1 %3189  ;;  %v3185_v20 = vpop.permute.xlu0 %3184 }
 0x354   : > { %v3283_v36 = vmul.f32 %v13347_v23, %v3190_v45  ;;  %v3282_v30 = vmul.f32 %v13347_v23, %v3185_v20  ;;  %3711 = vperm.xlu1 %11740, %v3608_v60   ;;  %3706 = vperm.xlu0 %11739, %v3607_v14   ;;  %v3612_v45 = vld [vmem:[#allocation2 + $0x12a] sm:$0xff]  ;;  %v3611_v20 = vld [vmem:[#allocation2 + $0x122] sm:$0xff] }
 0x356   : > { %v13368_v53 = vadd.f32 %v3283_v36, %v13259_v28  ;;  %v13371_v0 = vadd.f32 %v3282_v30, %v13262_v15 }
 0x357   : > { %v3200_v24 = vpop.permute.xlu1 %3199  ;;  %v3195_v6 = vpop.permute.xlu0 %3194 }
 0x358   : > { %v3285_v21 = vmul.f32 %v13347_v23, %v3200_v24  ;;  %v3284_v9 = vmul.f32 %v13347_v23, %v3195_v6  ;;  %3721 = vperm.xlu1 %11740, %v3610_v4   ;;  %3716 = vperm.xlu0 %11739, %v3609_v7   ;;  %v3614_v24 = vld [vmem:[#allocation2 + $0x142] sm:$0xff]  ;;  %v3613_v6 = vld [vmem:[#allocation2 + $0x13a] sm:$0xff] }
 0x35a   : > { %v13376_v60 = vadd.f32 %v3285_v21, %v13267_v8  ;;  %v13379_v14 = vadd.f32 %v3284_v9, %v13270_v62 }
 0x35b   : > { %v3210_v28 = vpop.permute.xlu1 %3209  ;;  %v3205_v36 = vpop.permute.xlu0 %3204 }
 0x35c   : > { %v3287_v15 = vmul.f32 %v13347_v23, %v3210_v28  ;;  %v3286_v30 = vmul.f32 %v13347_v23, %v3205_v36  ;;  %3731 = vperm.xlu1 %11740, %v3612_v45   ;;  %3726 = vperm.xlu0 %11739, %v3611_v20   ;;  %v3616_v28 = vld [vmem:[#allocation2 + $0x15a] sm:$0xff]  ;;  %v3615_v36 = vld [vmem:[#allocation2 + $0x152] sm:$0xff] }
 0x35e   : > { %v13384_v4 = vadd.f32 %v3287_v15, %v13275_v25  ;;  %v13387_v7 = vadd.f32 %v3286_v30, %v13278_v22 }
 0x35f   : > { %v3220_v8 = vpop.permute.xlu1 %3219  ;;  %v3215_v21 = vpop.permute.xlu0 %3214 }
 0x360   : > { %v3289_v62 = vmul.f32 %v13347_v23, %v3220_v8  ;;  %v3288_v9 = vmul.f32 %v13347_v23, %v3215_v21  ;;  %3741 = vperm.xlu1 %11740, %v3614_v24   ;;  %3736 = vperm.xlu0 %11739, %v3613_v6   ;;  %v3618_v8 = vld [vmem:[#allocation2 + $0x172] sm:$0xff]  ;;  %v3617_v21 = vld [vmem:[#allocation2 + $0x16a] sm:$0xff] }
 0x362   : > { %v13392_v45 = vadd.f32 %v3289_v62, %v13283_v31  ;;  %v13395_v20 = vadd.f32 %v3288_v9, %v13286_v29 }
 0x363   : > { %v3230_v25 = vpop.permute.xlu1 %3229  ;;  %v3225_v15 = vpop.permute.xlu0 %3224 }
 0x364   : > { %v3291_v22 = vmul.f32 %v13347_v23, %v3230_v25  ;;  %v3290_v30 = vmul.f32 %v13347_v23, %v3225_v15  ;;  %3751 = vperm.xlu1 %11740, %v3616_v28   ;;  %3746 = vperm.xlu0 %11739, %v3615_v36   ;;  %v3620_v25 = vld [vmem:[#allocation2 + $0x18a] sm:$0xff]  ;;  %v3619_v15 = vld [vmem:[#allocation2 + $0x182] sm:$0xff] }
 0x366   : > { %v13400_v24 = vadd.f32 %v3291_v22, %v13291_v27  ;;  %v13403_v6 = vadd.f32 %v3290_v30, %v13294_v13 }
 0x367   : > { %v3240_v31 = vpop.permute.xlu1 %3239  ;;  %v3235_v62 = vpop.permute.xlu0 %3234 }
 0x368   : > { %v3293_v29 = vmul.f32 %v13347_v23, %v3240_v31  ;;  %v3292_v9 = vmul.f32 %v13347_v23, %v3235_v62  ;;  %3761 = vperm.xlu1 %11740, %v3618_v8   ;;  %3756 = vperm.xlu0 %11739, %v3617_v21   ;;  %v3622_v31 = vld [vmem:[#allocation2 + $0x1a2] sm:$0xff]  ;;  %v3621_v62 = vld [vmem:[#allocation2 + $0x19a] sm:$0xff] }
 0x36a   : > { %v13408_v28 = vadd.f32 %v3293_v29, %v13299_v63  ;;  %v13411_v36 = vadd.f32 %v3292_v9, %v13302_v59 }
 0x36b   : > { %v3250_v27 = vpop.permute.xlu1 %3249  ;;  %v3245_v22 = vpop.permute.xlu0 %3244 }
 0x36c   : > { %v3295_v13 = vmul.f32 %v13347_v23, %v3250_v27  ;;  %v3294_v30 = vmul.f32 %v13347_v23, %v3245_v22  ;;  %3771 = vperm.xlu1 %11740, %v3620_v25   ;;  %3766 = vperm.xlu0 %11739, %v3619_v15   ;;  %v3853_v27 = vld [vmem:[#allocation2 + $0x3b] sm:$0xff]  ;;  %v3852_v22 = vld [vmem:[#allocation2 + $0x33] sm:$0xff] }
 0x36e   : > { %v13416_v8 = vadd.f32 %v3295_v13, %v13307_v1  ;;  %v13419_v21 = vadd.f32 %v3294_v30, %v13310_v33  ;;  %v13433_v13 = vld [vmem:[#allocation2 + $0x53] sm:$0xff]  ;;  %v13435_v30 = vld [vmem:[#allocation2 + $0x4b] sm:$0xff] }
 0x36f   : > { %v3260_v63 = vpop.permute.xlu1 %3259  ;;  %v3255_v29 = vpop.permute.xlu0 %3254 }
 0x370   : > { %v3297_v59 = vmul.f32 %v13347_v23, %v3260_v63  ;;  %v3296_v9 = vmul.f32 %v13347_v23, %v3255_v29  ;;  %3781 = vperm.xlu1 %11740, %v3622_v31   ;;  %3776 = vperm.xlu0 %11739, %v3621_v62   ;;  %v13453_v29 = vld [vmem:[#allocation2 + $0x83] sm:$0xff] }
 0x372   : > { %v13424_v25 = vadd.f32 %v3297_v59, %v13315_v37  ;;  %v13427_v15 = vadd.f32 %v3296_v9, %v13318_v61  ;;  %v13443_v37 = vld [vmem:[#allocation2 + $0x6b] sm:$0xff]  ;;  %v13445_v61 = vld [vmem:[#allocation2 + $0x63] sm:$0xff]  ;;  %v13455_v59 = vld [vmem:[#allocation2 + $0x7b] sm:$0xff] }
 0x373   : > { %v13429_v1 = vpop.permute.xlu1 %3370  ;;  %v13431_v33 = vpop.permute.xlu0 %3365 }
 0x374   : > { %16744 = vst [vmem:[#allocation142_spill] sm:$0xff] %v13429_v1  ;;  %16745 = vst [vmem:[#allocation143_spill] sm:$0xff] %v13431_v33  ;;  %3892 = vperm.xlu1 %11740, %v3853_v27   ;;  %3887 = vperm.xlu0 %11739, %v3852_v22   ;;  %v13463_v22 = vld [vmem:[#allocation2 + $0x9b] sm:$0xff]  ;;  %v13483_v1 = vld [vmem:[#allocation2 + $0xcb] sm:$0xff] }
 0x377   : > { %v13437_v23 = vpop.permute.xlu1 %3380  ;;  %v13439_v31 = vpop.permute.xlu0 %3375 }
 0x378   : > { %16746 = vst [vmem:[#allocation144_spill] sm:$0xff] %v13437_v23  ;;  %16747 = vst [vmem:[#allocation145_spill] sm:$0xff] %v13439_v31  ;;  %3902 = vperm.xlu1 %11740, %v13433_v13   ;;  %3897 = vperm.xlu0 %11739, %v13435_v30   ;;  %v13473_v23 = vld [vmem:[#allocation2 + $0xb3] sm:$0xff] }
 0x37b   : > { %v13447_v62 = vpop.permute.xlu1 %3390  ;;  %v13449_v63 = vpop.permute.xlu0 %3385 }
 0x37c   : > { %16748 = vst [vmem:[#allocation146_spill] sm:$0xff] %v13447_v62  ;;  %16749 = vst [vmem:[#allocation147_spill] sm:$0xff] %v13449_v63  ;;  %3912 = vperm.xlu1 %11740, %v13443_v37   ;;  %3907 = vperm.xlu0 %11739, %v13445_v61   ;;  %v13465_v62 = vld [vmem:[#allocation2 + $0x93] sm:$0xff] }
 0x37f   : > { %v13457_v9 = vpop.permute.xlu1 %3400  ;;  %v13459_v27 = vpop.permute.xlu0 %3395 }
 0x380   : > { %16750 = vst [vmem:[#allocation148_spill] sm:$0xff] %v13457_v9  ;;  %16751 = vst [vmem:[#allocation149_spill] sm:$0xff] %v13459_v27  ;;  %3922 = vperm.xlu1 %11740, %v13453_v29   ;;  %3917 = vperm.xlu0 %11739, %v13455_v59   ;;  %v13475_v9 = vld [vmem:[#allocation2 + $0xab] sm:$0xff] }
 0x383   : > { %v13467_v63 = vpop.permute.xlu1 %3410  ;;  %v13469_v31 = vpop.permute.xlu0 %3405 }
 0x384   : > { %16752 = vst [vmem:[#allocation150_spill] sm:$0xff] %v13467_v63  ;;  %16753 = vst [vmem:[#allocation151_spill] sm:$0xff] %v13469_v31  ;;  %3932 = vperm.xlu1 %11740, %v13463_v22   ;;  %3927 = vperm.xlu0 %11739, %v13465_v62   ;;  %v13485_v63 = vld [vmem:[#allocation2 + $0xc3] sm:$0xff]  ;;  %v13490_v31 = vld [vmem:[%s16571_s1 + $0xb] ss:$0 sm:$0xff] }
 0x387   : > { %v13477_v27 = vpop.permute.xlu1 %3420  ;;  %v13479_v33 = vpop.permute.xlu0 %3415 }
 0x388   : > { %16754 = vst [vmem:[#allocation152_spill] sm:$0xff] %v13477_v27  ;;  %16755 = vst [vmem:[#allocation153_spill] sm:$0xff] %v13479_v33  ;;  %3942 = vperm.xlu1 %11740, %v13473_v23   ;;  %3937 = vperm.xlu0 %11739, %v13475_v9   ;;  %v3867_v33 = vld [vmem:[#allocation2 + $0xe3] sm:$0xff] }
 0x38b   : > { %v3431_v58 = vpop.permute.xlu1 %3430  ;;  %v3426_v52 = vpop.permute.xlu0 %3425 }
 0x38c   : > { %v3540_v26 = vmul.f32 %v13490_v31, %v3431_v58  ;;  %v3539_v27 = vmul.f32 %v13490_v31, %v3426_v52  ;;  %3952 = vperm.xlu1 %11740, %v13483_v1   ;;  %3947 = vperm.xlu0 %11739, %v13485_v63   ;;  %v3869_v52 = vld [vmem:[#allocation2 + $0xfb] sm:$0xff] }
 0x38e   : > { %v13497_v44 = vadd.f32 %v3540_v26, %v13352_v16  ;;  %v13500_v19 = vadd.f32 %v3539_v27, %v13355_v12 }
 0x38f   : > { %v3441_v18 = vpop.permute.xlu1 %3440  ;;  %v3436_v11 = vpop.permute.xlu0 %3435 }
 0x390   : > { %v3542_v10 = vmul.f32 %v13490_v31, %v3441_v18  ;;  %v3541_v58 = vmul.f32 %v13490_v31, %v3436_v11  ;;  %3962 = vperm.xlu1 %11740, %v3867_v33   ;;  %3957 = vperm.xlu0 %11739, %v3866_v32   ;;  %v3871_v18 = vld [vmem:[#allocation2 + $0x113] sm:$0xff]  ;;  %v3870_v11 = vld [vmem:[#allocation2 + $0x10b] sm:$0xff] }
 0x392   : > { %v13505_v55 = vadd.f32 %v3542_v10, %v13360_v17  ;;  %v13508_v54 = vadd.f32 %v3541_v58, %v13363_v5 }
 0x393   : > { %v3451_v26 = vpop.permute.xlu1 %3450  ;;  %v3446_v16 = vpop.permute.xlu0 %3445 }
 0x394   : > { %v3544_v12 = vmul.f32 %v13490_v31, %v3451_v26  ;;  %v3543_v27 = vmul.f32 %v13490_v31, %v3446_v16  ;;  %3972 = vperm.xlu1 %11740, %v3869_v52   ;;  %3967 = vperm.xlu0 %11739, %v3868_v3   ;;  %v3873_v26 = vld [vmem:[#allocation2 + $0x12b] sm:$0xff]  ;;  %v3872_v16 = vld [vmem:[#allocation2 + $0x123] sm:$0xff] }
 0x396   : > { %v13513_v32 = vadd.f32 %v3544_v12, %v13368_v53  ;;  %v13516_v33 = vadd.f32 %v3543_v27, %v13371_v0 }
 0x397   : > { %v3461_v10 = vpop.permute.xlu1 %3460  ;;  %v3456_v17 = vpop.permute.xlu0 %3455 }
 0x398   : > { %v3546_v5 = vmul.f32 %v13490_v31, %v3461_v10  ;;  %v3545_v58 = vmul.f32 %v13490_v31, %v3456_v17  ;;  %3982 = vperm.xlu1 %11740, %v3871_v18   ;;  %3977 = vperm.xlu0 %11739, %v3870_v11   ;;  %v3875_v10 = vld [vmem:[#allocation2 + $0x143] sm:$0xff]  ;;  %v3874_v17 = vld [vmem:[#allocation2 + $0x13b] sm:$0xff] }
 0x39a   : > { %v13521_v3 = vadd.f32 %v3546_v5, %v13376_v60  ;;  %v13524_v52 = vadd.f32 %v3545_v58, %v13379_v14 }
 0x39b   : > { %v3471_v53 = vpop.permute.xlu1 %3470  ;;  %v3466_v12 = vpop.permute.xlu0 %3465 }
 0x39c   : > { %v3548_v0 = vmul.f32 %v13490_v31, %v3471_v53  ;;  %v3547_v27 = vmul.f32 %v13490_v31, %v3466_v12  ;;  %3992 = vperm.xlu1 %11740, %v3873_v26   ;;  %3987 = vperm.xlu0 %11739, %v3872_v16   ;;  %v3877_v53 = vld [vmem:[#allocation2 + $0x15b] sm:$0xff]  ;;  %v3876_v12 = vld [vmem:[#allocation2 + $0x153] sm:$0xff] }
 0x39e   : > { %v13529_v18 = vadd.f32 %v3548_v0, %v13384_v4  ;;  %v13532_v11 = vadd.f32 %v3547_v27, %v13387_v7 }
 0x39f   : > { %v3481_v60 = vpop.permute.xlu1 %3480  ;;  %v3476_v5 = vpop.permute.xlu0 %3475 }
 0x3a0   : > { %v3550_v14 = vmul.f32 %v13490_v31, %v3481_v60  ;;  %v3549_v58 = vmul.f32 %v13490_v31, %v3476_v5  ;;  %4002 = vperm.xlu1 %11740, %v3875_v10   ;;  %3997 = vperm.xlu0 %11739, %v3874_v17   ;;  %v3879_v60 = vld [vmem:[#allocation2 + $0x173] sm:$0xff]  ;;  %v3878_v5 = vld [vmem:[#allocation2 + $0x16b] sm:$0xff] }
 0x3a2   : > { %v13537_v26 = vadd.f32 %v3550_v14, %v13392_v45  ;;  %v13540_v16 = vadd.f32 %v3549_v58, %v13395_v20 }
 0x3a3   : > { %v3491_v4 = vpop.permute.xlu1 %3490  ;;  %v3486_v0 = vpop.permute.xlu0 %3485 }
 0x3a4   : > { %v3552_v7 = vmul.f32 %v13490_v31, %v3491_v4  ;;  %v3551_v27 = vmul.f32 %v13490_v31, %v3486_v0  ;;  %4012 = vperm.xlu1 %11740, %v3877_v53   ;;  %4007 = vperm.xlu0 %11739, %v3876_v12   ;;  %v3881_v4 = vld [vmem:[#allocation2 + $0x18b] sm:$0xff]  ;;  %v3880_v0 = vld [vmem:[#allocation2 + $0x183] sm:$0xff] }
 0x3a6   : > { %v13545_v10 = vadd.f32 %v3552_v7, %v13400_v24  ;;  %v13548_v17 = vadd.f32 %v3551_v27, %v13403_v6 }
 0x3a7   : > { %v3501_v45 = vpop.permute.xlu1 %3500  ;;  %v3496_v14 = vpop.permute.xlu0 %3495 }
 0x3a8   : > { %v3554_v20 = vmul.f32 %v13490_v31, %v3501_v45  ;;  %v3553_v58 = vmul.f32 %v13490_v31, %v3496_v14  ;;  %4022 = vperm.xlu1 %11740, %v3879_v60   ;;  %4017 = vperm.xlu0 %11739, %v3878_v5   ;;  %v3883_v45 = vld [vmem:[#allocation2 + $0x1a3] sm:$0xff]  ;;  %v3882_v14 = vld [vmem:[#allocation2 + $0x19b] sm:$0xff] }
 0x3aa   : > { %v13553_v53 = vadd.f32 %v3554_v20, %v13408_v28  ;;  %v13556_v12 = vadd.f32 %v3553_v58, %v13411_v36 }
 0x3ab   : > { %v3511_v24 = vpop.permute.xlu1 %3510  ;;  %v3506_v7 = vpop.permute.xlu0 %3505 }
 0x3ac   : > { %v3556_v6 = vmul.f32 %v13490_v31, %v3511_v24  ;;  %v3555_v27 = vmul.f32 %v13490_v31, %v3506_v7  ;;  %4032 = vperm.xlu1 %11740, %v3881_v4   ;;  %4027 = vperm.xlu0 %11739, %v3880_v0   ;;  %v4114_v24 = vld [vmem:[#allocation2 + $0x3c] sm:$0xff]  ;;  %v4113_v7 = vld [vmem:[#allocation2 + $0x34] sm:$0xff] }
 0x3ae   : > { %v13561_v60 = vadd.f32 %v3556_v6, %v13416_v8  ;;  %v13564_v5 = vadd.f32 %v3555_v27, %v13419_v21  ;;  %v13578_v6 = vld [vmem:[#allocation2 + $0x54] sm:$0xff]  ;;  %v13580_v27 = vld [vmem:[#allocation2 + $0x4c] sm:$0xff] }
 0x3af   : > { %v3521_v28 = vpop.permute.xlu1 %3520  ;;  %v3516_v20 = vpop.permute.xlu0 %3515 }
 0x3b0   : > { %v3558_v36 = vmul.f32 %v13490_v31, %v3521_v28  ;;  %v3557_v58 = vmul.f32 %v13490_v31, %v3516_v20  ;;  %4042 = vperm.xlu1 %11740, %v3883_v45   ;;  %4037 = vperm.xlu0 %11739, %v3882_v14   ;;  %v13598_v20 = vld [vmem:[#allocation2 + $0x84] sm:$0xff] }
 0x3b2   : > { %v13569_v4 = vadd.f32 %v3558_v36, %v13424_v25  ;;  %v13572_v0 = vadd.f32 %v3557_v58, %v13427_v15  ;;  %v13588_v25 = vld [vmem:[#allocation2 + $0x6c] sm:$0xff]  ;;  %v13590_v15 = vld [vmem:[#allocation2 + $0x64] sm:$0xff]  ;;  %v13600_v36 = vld [vmem:[#allocation2 + $0x7c] sm:$0xff] }
 0x3b3   : > { %v13574_v8 = vpop.permute.xlu1 %3631  ;;  %v13576_v21 = vpop.permute.xlu0 %3626 }
 0x3b4   : > { %16756 = vst [vmem:[#allocation154_spill] sm:$0xff] %v13574_v8  ;;  %16757 = vst [vmem:[#allocation155_spill] sm:$0xff] %v13576_v21  ;;  %4153 = vperm.xlu1 %11740, %v4114_v24   ;;  %4148 = vperm.xlu0 %11739, %v4113_v7   ;;  %v13608_v7 = vld [vmem:[#allocation2 + $0x9c] sm:$0xff]  ;;  %v13628_v8 = vld [vmem:[#allocation2 + $0xcc] sm:$0xff] }
 0x3b7   : > { %v13582_v31 = vpop.permute.xlu1 %3641  ;;  %v13584_v45 = vpop.permute.xlu0 %3636 }
 0x3b8   : > { %16758 = vst [vmem:[#allocation156_spill] sm:$0xff] %v13582_v31  ;;  %16759 = vst [vmem:[#allocation157_spill] sm:$0xff] %v13584_v45  ;;  %4163 = vperm.xlu1 %11740, %v13578_v6   ;;  %4158 = vperm.xlu0 %11739, %v13580_v27   ;;  %v13618_v31 = vld [vmem:[#allocation2 + $0xb4] sm:$0xff] }
 0x3bb   : > { %v13592_v14 = vpop.permute.xlu1 %3651  ;;  %v13594_v28 = vpop.permute.xlu0 %3646 }
 0x3bc   : > { %16760 = vst [vmem:[#allocation158_spill] sm:$0xff] %v13592_v14  ;;  %16761 = vst [vmem:[#allocation159_spill] sm:$0xff] %v13594_v28  ;;  %4173 = vperm.xlu1 %11740, %v13588_v25   ;;  %4168 = vperm.xlu0 %11739, %v13590_v15   ;;  %v13610_v14 = vld [vmem:[#allocation2 + $0x94] sm:$0xff] }
 0x3bf   : > { %v13602_v58 = vpop.permute.xlu1 %3661  ;;  %v13604_v24 = vpop.permute.xlu0 %3656 }
 0x3c0   : > { %16762 = vst [vmem:[#allocation160_spill] sm:$0xff] %v13602_v58  ;;  %16763 = vst [vmem:[#allocation161_spill] sm:$0xff] %v13604_v24  ;;  %4183 = vperm.xlu1 %11740, %v13598_v20   ;;  %4178 = vperm.xlu0 %11739, %v13600_v36   ;;  %v13620_v58 = vld [vmem:[#allocation2 + $0xac] sm:$0xff] }
 0x3c3   : > { %v13612_v28 = vpop.permute.xlu1 %3671  ;;  %v13614_v45 = vpop.permute.xlu0 %3666 }
 0x3c4   : > { %16764 = vst [vmem:[#allocation162_spill] sm:$0xff] %v13612_v28  ;;  %16765 = vst [vmem:[#allocation163_spill] sm:$0xff] %v13614_v45  ;;  %4193 = vperm.xlu1 %11740, %v13608_v7   ;;  %4188 = vperm.xlu0 %11739, %v13610_v14   ;;  %v13630_v28 = vld [vmem:[#allocation2 + $0xc4] sm:$0xff]  ;;  %v13635_v45 = vld [vmem:[%s16571_s1 + $0xc] ss:$0 sm:$0xff] }
 0x3c7   : > { %v13622_v24 = vpop.permute.xlu1 %3681  ;;  %v13624_v21 = vpop.permute.xlu0 %3676 }
 0x3c8   : > { %16766 = vst [vmem:[#allocation164_spill] sm:$0xff] %v13622_v24  ;;  %16767 = vst [vmem:[#allocation165_spill] sm:$0xff] %v13624_v21  ;;  %4203 = vperm.xlu1 %11740, %v13618_v31   ;;  %4198 = vperm.xlu0 %11739, %v13620_v58   ;;  %v4128_v21 = vld [vmem:[#allocation2 + $0xe4] sm:$0xff] }
 0x3cb   : > { %v3692_v51 = vpop.permute.xlu1 %3691  ;;  %v3687_v2 = vpop.permute.xlu0 %3686 }
 0x3cc   : > { %v3801_v57 = vmul.f32 %v13635_v45, %v3692_v51  ;;  %v3800_v24 = vmul.f32 %v13635_v45, %v3687_v2  ;;  %4213 = vperm.xlu1 %11740, %v13628_v8   ;;  %4208 = vperm.xlu0 %11739, %v13630_v28   ;;  %v4130_v2 = vld [vmem:[#allocation2 + $0xfc] sm:$0xff] }
 0x3ce   : > { %v13642_v47 = vadd.f32 %v3801_v57, %v13497_v44  ;;  %v13645_v56 = vadd.f32 %v3800_v24, %v13500_v19 }
 0x3cf   : > { %v3702_v46 = vpop.permute.xlu1 %3701  ;;  %v3697_v43 = vpop.permute.xlu0 %3696 }
 0x3d0   : > { %v3803_v49 = vmul.f32 %v13635_v45, %v3702_v46  ;;  %v3802_v51 = vmul.f32 %v13635_v45, %v3697_v43  ;;  %4223 = vperm.xlu1 %11740, %v4128_v21   ;;  %4218 = vperm.xlu0 %11739, %v4127_v50   ;;  %v4132_v46 = vld [vmem:[#allocation2 + $0x114] sm:$0xff]  ;;  %v4131_v43 = vld [vmem:[#allocation2 + $0x10c] sm:$0xff] }
 0x3d2   : > { %v13650_v41 = vadd.f32 %v3803_v49, %v13505_v55  ;;  %v13653_v40 = vadd.f32 %v3802_v51, %v13508_v54 }
 0x3d3   : > { %v3712_v57 = vpop.permute.xlu1 %3711  ;;  %v3707_v44 = vpop.permute.xlu0 %3706 }
 0x3d4   : > { %v3805_v19 = vmul.f32 %v13635_v45, %v3712_v57  ;;  %v3804_v24 = vmul.f32 %v13635_v45, %v3707_v44  ;;  %4233 = vperm.xlu1 %11740, %v4130_v2   ;;  %4228 = vperm.xlu0 %11739, %v4129_v48   ;;  %v4134_v57 = vld [vmem:[#allocation2 + $0x12c] sm:$0xff]  ;;  %v4133_v44 = vld [vmem:[#allocation2 + $0x124] sm:$0xff] }
 0x3d6   : > { %v13658_v50 = vadd.f32 %v3805_v19, %v13513_v32  ;;  %v13661_v21 = vadd.f32 %v3804_v24, %v13516_v33 }
 0x3d7   : > { %v3722_v55 = vpop.permute.xlu1 %3721  ;;  %v3717_v49 = vpop.permute.xlu0 %3716 }
 0x3d8   : > { %v3807_v54 = vmul.f32 %v13635_v45, %v3722_v55  ;;  %v3806_v51 = vmul.f32 %v13635_v45, %v3717_v49  ;;  %4243 = vperm.xlu1 %11740, %v4132_v46   ;;  %4238 = vperm.xlu0 %11739, %v4131_v43   ;;  %v4136_v55 = vld [vmem:[#allocation2 + $0x144] sm:$0xff]  ;;  %v4135_v49 = vld [vmem:[#allocation2 + $0x13c] sm:$0xff] }
 0x3da   : > { %v13666_v48 = vadd.f32 %v3807_v54, %v13521_v3  ;;  %v13669_v2 = vadd.f32 %v3806_v51, %v13524_v52 }
 0x3db   : > { %v3732_v32 = vpop.permute.xlu1 %3731  ;;  %v3727_v19 = vpop.permute.xlu0 %3726 }
 0x3dc   : > { %v3809_v33 = vmul.f32 %v13635_v45, %v3732_v32  ;;  %v3808_v24 = vmul.f32 %v13635_v45, %v3727_v19  ;;  %4253 = vperm.xlu1 %11740, %v4134_v57   ;;  %4248 = vperm.xlu0 %11739, %v4133_v44   ;;  %v4138_v32 = vld [vmem:[#allocation2 + $0x15c] sm:$0xff]  ;;  %v4137_v19 = vld [vmem:[#allocation2 + $0x154] sm:$0xff] }
 0x3de   : > { %v13674_v46 = vadd.f32 %v3809_v33, %v13529_v18  ;;  %v13677_v43 = vadd.f32 %v3808_v24, %v13532_v11 }
 0x3df   : > { %v3742_v3 = vpop.permute.xlu1 %3741  ;;  %v3737_v54 = vpop.permute.xlu0 %3736 }
 0x3e0   : > { %v3811_v52 = vmul.f32 %v13635_v45, %v3742_v3  ;;  %v3810_v51 = vmul.f32 %v13635_v45, %v3737_v54  ;;  %4263 = vperm.xlu1 %11740, %v4136_v55   ;;  %4258 = vperm.xlu0 %11739, %v4135_v49   ;;  %v4140_v3 = vld [vmem:[#allocation2 + $0x174] sm:$0xff]  ;;  %v4139_v54 = vld [vmem:[#allocation2 + $0x16c] sm:$0xff] }
 0x3e2   : > { %v13682_v57 = vadd.f32 %v3811_v52, %v13537_v26  ;;  %v13685_v44 = vadd.f32 %v3810_v51, %v13540_v16 }
 0x3e3   : > { %v3752_v18 = vpop.permute.xlu1 %3751  ;;  %v3747_v33 = vpop.permute.xlu0 %3746 }
 0x3e4   : > { %v3813_v11 = vmul.f32 %v13635_v45, %v3752_v18  ;;  %v3812_v24 = vmul.f32 %v13635_v45, %v3747_v33  ;;  %4273 = vperm.xlu1 %11740, %v4138_v32   ;;  %4268 = vperm.xlu0 %11739, %v4137_v19   ;;  %v4142_v18 = vld [vmem:[#allocation2 + $0x18c] sm:$0xff]  ;;  %v4141_v33 = vld [vmem:[#allocation2 + $0x184] sm:$0xff] }
 0x3e6   : > { %v13690_v55 = vadd.f32 %v3813_v11, %v13545_v10  ;;  %v13693_v49 = vadd.f32 %v3812_v24, %v13548_v17 }
 0x3e7   : > { %v3762_v26 = vpop.permute.xlu1 %3761  ;;  %v3757_v52 = vpop.permute.xlu0 %3756 }
 0x3e8   : > { %v3815_v16 = vmul.f32 %v13635_v45, %v3762_v26  ;;  %v3814_v51 = vmul.f32 %v13635_v45, %v3757_v52  ;;  %4283 = vperm.xlu1 %11740, %v4140_v3   ;;  %4278 = vperm.xlu0 %11739, %v4139_v54   ;;  %v4144_v26 = vld [vmem:[#allocation2 + $0x1a4] sm:$0xff]  ;;  %v4143_v52 = vld [vmem:[#allocation2 + $0x19c] sm:$0xff] }
 0x3ea   : > { %v13698_v32 = vadd.f32 %v3815_v16, %v13553_v53  ;;  %v13701_v19 = vadd.f32 %v3814_v51, %v13556_v12 }
 0x3eb   : > { %v3772_v10 = vpop.permute.xlu1 %3771  ;;  %v3767_v11 = vpop.permute.xlu0 %3766 }
 0x3ec   : > { %v3817_v17 = vmul.f32 %v13635_v45, %v3772_v10  ;;  %v3816_v24 = vmul.f32 %v13635_v45, %v3767_v11  ;;  %4293 = vperm.xlu1 %11740, %v4142_v18   ;;  %4288 = vperm.xlu0 %11739, %v4141_v33   ;;  %v4376_v10 = vld [vmem:[#allocation2 + $0x50] sm:$0xff]  ;;  %v4375_v11 = vld [vmem:[#allocation2 + $0x48] sm:$0xff] }
 0x3ee   : > { %v13706_v3 = vadd.f32 %v3817_v17, %v13561_v60  ;;  %v13709_v54 = vadd.f32 %v3816_v24, %v13564_v5  ;;  %v13723_v17 = vld [vmem:[#allocation2 + $0x68] sm:$0xff]  ;;  %v13725_v24 = vld [vmem:[#allocation2 + $0x60] sm:$0xff] }
 0x3ef   : > { %v3782_v53 = vpop.permute.xlu1 %3781  ;;  %v3777_v16 = vpop.permute.xlu0 %3776 }
 0x3f0   : > { %v3819_v12 = vmul.f32 %v13635_v45, %v3782_v53  ;;  %v3818_v51 = vmul.f32 %v13635_v45, %v3777_v16  ;;  %4303 = vperm.xlu1 %11740, %v4144_v26   ;;  %4298 = vperm.xlu0 %11739, %v4143_v52   ;;  %v13743_v16 = vld [vmem:[#allocation2 + $0x98] sm:$0xff] }
 0x3f2   : > { %v13714_v18 = vadd.f32 %v3819_v12, %v13569_v4  ;;  %v13717_v33 = vadd.f32 %v3818_v51, %v13572_v0  ;;  %v13733_v4 = vld [vmem:[#allocation2 + $0x80] sm:$0xff]  ;;  %v13735_v0 = vld [vmem:[#allocation2 + $0x78] sm:$0xff]  ;;  %v13745_v12 = vld [vmem:[#allocation2 + $0x90] sm:$0xff] }
 0x3f3   : > { %v13719_v60 = vpop.permute.xlu1 %3892  ;;  %v13721_v5 = vpop.permute.xlu0 %3887  ;;  %16774 = vst [vmem:[#allocation172_spill] sm:$0xff] %v13745_v12 }
 0x3f4   : > { %16768 = vst [vmem:[#allocation166_spill] sm:$0xff] %v13719_v60  ;;  %16769 = vst [vmem:[#allocation167_spill] sm:$0xff] %v13721_v5  ;;  %4415 = vperm.xlu1 %11740, %v4376_v10   ;;  %4410 = vperm.xlu0 %11739, %v4375_v11   ;;  %v13753_v11 = vld [vmem:[#allocation2 + $0xb0] sm:$0xff] }
 0x3f5   : > { %16777 = vst [vmem:[#allocation175_spill] sm:$0xff] %v13753_v11  ;;  %v4637_v60 = vld [vmem:[#allocation2 + $0x51] sm:$0xff] }
 0x3f7   : > { %v13727_v45 = vpop.permute.xlu1 %3902  ;;  %v13729_v26 = vpop.permute.xlu0 %3897 }
 0x3f8   : > { %16770 = vst [vmem:[#allocation168_spill] sm:$0xff] %v13727_v45  ;;  %16771 = vst [vmem:[#allocation169_spill] sm:$0xff] %v13729_v26  ;;  %4425 = vperm.xlu1 %11740, %v13723_v17   ;;  %4420 = vperm.xlu0 %11739, %v13725_v24   ;;  %v13763_v45 = vld [vmem:[#allocation2 + $0xc8] sm:$0xff] }
 0x3f9   : > { %16781 = vst [vmem:[#allocation179_spill] sm:$0xff] %v13763_v45 }
 0x3fb   : > { %v13737_v52 = vpop.permute.xlu1 %3912  ;;  %v13739_v53 = vpop.permute.xlu0 %3907 }
 0x3fc   : > { %16772 = vst [vmem:[#allocation170_spill] sm:$0xff] %v13737_v52  ;;  %16773 = vst [vmem:[#allocation171_spill] sm:$0xff] %v13739_v53  ;;  %4435 = vperm.xlu1 %11740, %v13733_v4   ;;  %4430 = vperm.xlu0 %11739, %v13735_v0   ;;  %v13755_v52 = vld [vmem:[#allocation2 + $0xa8] sm:$0xff] }
 0x3fd   : > { %16778 = vst [vmem:[#allocation176_spill] sm:$0xff] %v13755_v52 }
 0x3ff   : > { %v13747_v51 = vpop.permute.xlu1 %3922  ;;  %v13749_v10 = vpop.permute.xlu0 %3917 }
 0x400   : > { %16775 = vst [vmem:[#allocation173_spill] sm:$0xff] %v13747_v51  ;;  %16776 = vst [vmem:[#allocation174_spill] sm:$0xff] %v13749_v10  ;;  %4445 = vperm.xlu1 %11740, %v13743_v16   ;;  %4440 = vperm.xlu0 %11739, %v13745_v12   ;;  %v13765_v51 = vld [vmem:[#allocation2 + $0xc0] sm:$0xff] }
 0x401   : > { %16782 = vst [vmem:[#allocation180_spill] sm:$0xff] %v13765_v51 }
 0x403   : > { %v13757_v53 = vpop.permute.xlu1 %3932  ;;  %v13759_v26 = vpop.permute.xlu0 %3927 }
 0x404   : > { %16779 = vst [vmem:[#allocation177_spill] sm:$0xff] %v13757_v53  ;;  %16780 = vst [vmem:[#allocation178_spill] sm:$0xff] %v13759_v26  ;;  %4455 = vperm.xlu1 %11740, %v13753_v11   ;;  %4450 = vperm.xlu0 %11739, %v13755_v52   ;;  %v4636_v53 = vld [vmem:[#allocation2 + $0x49] sm:$0xff] }
 0x405   : > { %v13776_v26 = vld [vmem:[%s16571_s1 + $0xd] ss:$0 sm:$0xff] }
 0x407   : > { %v13767_v10 = vpop.permute.xlu1 %3942  ;;  %v13769_v5 = vpop.permute.xlu0 %3937 }
 0x408   : > { %16783 = vst [vmem:[#allocation181_spill] sm:$0xff] %v13767_v10  ;;  %16784 = vst [vmem:[#allocation182_spill] sm:$0xff] %v13769_v5  ;;  %4465 = vperm.xlu1 %11740, %v13763_v45   ;;  %4460 = vperm.xlu0 %11739, %v13765_v51   ;;  %v13780_v5 = vld [vmem:[#allocation2 + $0x69] sm:$0xff]  ;;  %v13782_v10 = vld [vmem:[#allocation2 + $0x61] sm:$0xff] }
 0x409   : > { %16785 = vst [vmem:[#allocation183_spill] sm:$0xff] %v13780_v5  ;;  %16786 = vst [vmem:[#allocation184_spill] sm:$0xff] %v13782_v10 }
 0x40b   : > { %v3953_v42 = vpop.permute.xlu1 %3952  ;;  %v3948_v39 = vpop.permute.xlu0 %3947 }
 0x40c   : > { %v4062_v38 = vmul.f32 %v13776_v26, %v3953_v42  ;;  %v4061_v35 = vmul.f32 %v13776_v26, %v3948_v39  ;;  %4676 = vperm.xlu1 %11740, %v4637_v60   ;;  %4671 = vperm.xlu0 %11739, %v4636_v53   ;;  %v13794_v39 = vld [vmem:[#allocation2 + $0x81] sm:$0xff]  ;;  %v13796_v60 = vld [vmem:[#allocation2 + $0x79] sm:$0xff] }
 0x40d   : > { %16787 = vst [vmem:[#allocation185_spill] sm:$0xff] %v13794_v39  ;;  %16788 = vst [vmem:[#allocation186_spill] sm:$0xff] %v13796_v60  ;;  %v4643_v53 = vld [vmem:[#allocation2 + $0x99] sm:$0xff] }
 0x40e   : > { %v13785_v34 = vadd.f32 %v4062_v38, %v13642_v47  ;;  %v13788_v51 = vadd.f32 %v4061_v35, %v13645_v56 }
 0x40f   : > { %v3963_v45 = vpop.permute.xlu1 %3962  ;;  %v3958_v52 = vpop.permute.xlu0 %3957 }
 0x410   : > { %v4064_v11 = vmul.f32 %v13776_v26, %v3963_v45  ;;  %v4063_v42 = vmul.f32 %v13776_v26, %v3958_v52  ;;  %4686 = vperm.xlu1 %11740, %v13780_v5   ;;  %4681 = vperm.xlu0 %11739, %v13782_v10   ;;  %v4642_v10 = vld [vmem:[#allocation2 + $0x91] sm:$0xff] }
 0x412   : > { %v13799_v38 = vadd.f32 %v4064_v11, %v13650_v41  ;;  %v13802_v35 = vadd.f32 %v4063_v42, %v13653_v40 }
 0x413   : > { %v3973_v47 = vpop.permute.xlu1 %3972  ;;  %v3968_v56 = vpop.permute.xlu0 %3967 }
 0x414   : > { %v4066_v45 = vmul.f32 %v13776_v26, %v3973_v47  ;;  %v4065_v52 = vmul.f32 %v13776_v26, %v3968_v56  ;;  %4696 = vperm.xlu1 %11740, %v13794_v39   ;;  %4691 = vperm.xlu0 %11739, %v13796_v60   ;;  %v4645_v56 = vld [vmem:[#allocation2 + $0xb1] sm:$0xff]  ;;  %v4644_v39 = vld [vmem:[#allocation2 + $0xa9] sm:$0xff] }
 0x416   : > { %v13809_v5 = vadd.f32 %v4066_v45, %v13658_v50  ;;  %v13812_v41 = vadd.f32 %v4065_v52, %v13661_v21 }
 0x417   : > { %v3983_v40 = vpop.permute.xlu1 %3982  ;;  %v3978_v11 = vpop.permute.xlu0 %3977 }
 0x418   : > { %v4068_v42 = vmul.f32 %v13776_v26, %v3983_v40  ;;  %v4067_v47 = vmul.f32 %v13776_v26, %v3978_v11  ;;  %4706 = vperm.xlu1 %11740, %v4643_v53   ;;  %4701 = vperm.xlu0 %11739, %v4642_v10   ;;  %v4647_v40 = vld [vmem:[#allocation2 + $0xc9] sm:$0xff]  ;;  %v4646_v11 = vld [vmem:[#allocation2 + $0xc1] sm:$0xff] }
 0x41a   : > { %v13817_v60 = vadd.f32 %v4068_v42, %v13666_v48  ;;  %v13820_v12 = vadd.f32 %v4067_v47, %v13669_v2 }
 0x41b   : > { %v3993_v50 = vpop.permute.xlu1 %3992  ;;  %v3988_v45 = vpop.permute.xlu0 %3987 }
 0x41c   : > { %v4070_v21 = vmul.f32 %v13776_v26, %v3993_v50  ;;  %v4069_v52 = vmul.f32 %v13776_v26, %v3988_v45  ;;  %4716 = vperm.xlu1 %11740, %v4645_v56   ;;  %4711 = vperm.xlu0 %11739, %v4644_v39   ;;  %v4898_v50 = vld [vmem:[#allocation2 + $0x52] sm:$0xff]  ;;  %v4897_v45 = vld [vmem:[#allocation2 + $0x4a] sm:$0xff] }
 0x41e   : > { %v13825_v10 = vadd.f32 %v4070_v21, %v13674_v46  ;;  %v13828_v53 = vadd.f32 %v4069_v52, %v13677_v43 }
 0x41f   : > { %v4003_v48 = vpop.permute.xlu1 %4002  ;;  %v3998_v42 = vpop.permute.xlu0 %3997 }
 0x420   : > { %v4072_v2 = vmul.f32 %v13776_v26, %v4003_v48  ;;  %v4071_v47 = vmul.f32 %v13776_v26, %v3998_v42  ;;  %4726 = vperm.xlu1 %11740, %v4647_v40   ;;  %4721 = vperm.xlu0 %11739, %v4646_v11   ;;  %v4900_v48 = vld [vmem:[#allocation2 + $0x6a] sm:$0xff]  ;;  %v4899_v42 = vld [vmem:[#allocation2 + $0x62] sm:$0xff] }
 0x422   : > { %v13833_v39 = vadd.f32 %v4072_v2, %v13682_v57  ;;  %v13836_v56 = vadd.f32 %v4071_v47, %v13685_v44 }
 0x423   : > { %v4013_v46 = vpop.permute.xlu1 %4012  ;;  %v4008_v21 = vpop.permute.xlu0 %4007 }
 0x424   : > { %v4074_v43 = vmul.f32 %v13776_v26, %v4013_v46  ;;  %v4073_v52 = vmul.f32 %v13776_v26, %v4008_v21  ;;  %4937 = vperm.xlu1 %11740, %v4898_v50   ;;  %4932 = vperm.xlu0 %11739, %v4897_v45   ;;  %v4902_v46 = vld [vmem:[#allocation2 + $0x82] sm:$0xff]  ;;  %v4901_v21 = vld [vmem:[#allocation2 + $0x7a] sm:$0xff] }
 0x426   : > { %v13841_v40 = vadd.f32 %v4074_v43, %v13690_v55  ;;  %v13844_v11 = vadd.f32 %v4073_v52, %v13693_v49 }
 0x427   : > { %v4023_v57 = vpop.permute.xlu1 %4022  ;;  %v4018_v2 = vpop.permute.xlu0 %4017 }
 0x428   : > { %v4076_v44 = vmul.f32 %v13776_v26, %v4023_v57  ;;  %v4075_v47 = vmul.f32 %v13776_v26, %v4018_v2  ;;  %4947 = vperm.xlu1 %11740, %v4900_v48   ;;  %4942 = vperm.xlu0 %11739, %v4899_v42   ;;  %v4904_v57 = vld [vmem:[#allocation2 + $0x9a] sm:$0xff]  ;;  %v4903_v2 = vld [vmem:[#allocation2 + $0x92] sm:$0xff] }
 0x42a   : > { %v13849_v50 = vadd.f32 %v4076_v44, %v13698_v32  ;;  %v13852_v45 = vadd.f32 %v4075_v47, %v13701_v19 }
 0x42b   : > { %v4033_v55 = vpop.permute.xlu1 %4032  ;;  %v4028_v43 = vpop.permute.xlu0 %4027 }
 0x42c   : > { %v4078_v49 = vmul.f32 %v13776_v26, %v4033_v55  ;;  %v4077_v52 = vmul.f32 %v13776_v26, %v4028_v43  ;;  %4957 = vperm.xlu1 %11740, %v4902_v46   ;;  %4952 = vperm.xlu0 %11739, %v4901_v21   ;;  %v4906_v55 = vld [vmem:[#allocation2 + $0xb2] sm:$0xff]  ;;  %v4905_v43 = vld [vmem:[#allocation2 + $0xaa] sm:$0xff] }
 0x42e   : > { %v13857_v48 = vadd.f32 %v4078_v49, %v13706_v3  ;;  %v13860_v42 = vadd.f32 %v4077_v52, %v13709_v54  ;;  %v4908_v49 = vld [vmem:[#allocation2 + $0xca] sm:$0xff]  ;;  %v4907_v52 = vld [vmem:[#allocation2 + $0xc2] sm:$0xff] }
 0x42f   : > { %v4043_v32 = vpop.permute.xlu1 %4042  ;;  %v4038_v44 = vpop.permute.xlu0 %4037 }
 0x430   : > { %v4080_v19 = vmul.f32 %v13776_v26, %v4043_v32  ;;  %v4079_v47 = vmul.f32 %v13776_v26, %v4038_v44  ;;  %4967 = vperm.xlu1 %11740, %v4904_v57   ;;  %4962 = vperm.xlu0 %11739, %v4903_v2  }
 0x432   : > { %v13865_v46 = vadd.f32 %v4080_v19, %v13714_v18  ;;  %v13868_v21 = vadd.f32 %v4079_v47, %v13717_v33 }
 0x433   : > { %v13870_v3 = vpop.permute.xlu1 %4153  ;;  %v13872_v54 = vpop.permute.xlu0 %4148 }
 0x434   : > { %4977 = vperm.xlu1 %11740, %v4906_v55   ;;  %4972 = vperm.xlu0 %11739, %v4905_v43  }
 0x437   : > { %v13874_v32 = vpop.permute.xlu1 %4163  ;;  %v13876_v26 = vpop.permute.xlu0 %4158 }
 0x438   : > { %4987 = vperm.xlu1 %11740, %v4908_v49   ;;  %4982 = vperm.xlu0 %11739, %v4907_v52  }
 0x43b   : > { %v13878_v57 = vpop.permute.xlu1 %4173  ;;  %v13880_v18 = vpop.permute.xlu0 %4168 }
 0x43c   : > { %5198 = vperm.xlu1 %11740, %v13433_v13   ;;  %5193 = vperm.xlu0 %11739, %v13435_v30   ;;  %v13905_v30 = vld [vmem:[%s16571_s1 + $0xe] ss:$0 sm:$0xff] }
 0x43f   : > { %v13884_v33 = vpop.permute.xlu1 %4183  ;;  %v13886_v2 = vpop.permute.xlu0 %4178 }
 0x440   : > { %5208 = vperm.xlu1 %11740, %v13443_v37   ;;  %5203 = vperm.xlu0 %11739, %v13445_v61  }
 0x443   : > { %v13890_v44 = vpop.permute.xlu1 %4193  ;;  %v13892_v19 = vpop.permute.xlu0 %4188 }
 0x444   : > { %5218 = vperm.xlu1 %11740, %v13453_v29   ;;  %5213 = vperm.xlu0 %11739, %v13455_v59  }
 0x447   : > { %v13896_v47 = vpop.permute.xlu1 %4203  ;;  %v13898_v13 = vpop.permute.xlu0 %4198 }
 0x448   : > { %5228 = vperm.xlu1 %11740, %v13463_v22   ;;  %5223 = vperm.xlu0 %11739, %v13465_v62  }
 0x44b   : > { %v4214_v37 = vpop.permute.xlu1 %4213  ;;  %v4209_v61 = vpop.permute.xlu0 %4208 }
 0x44c   : > { %v4323_v55 = vmul.f32 %v13905_v30, %v4214_v37  ;;  %v4322_v29 = vmul.f32 %v13905_v30, %v4209_v61  ;;  %5238 = vperm.xlu1 %11740, %v13473_v23   ;;  %5233 = vperm.xlu0 %11739, %v13475_v9   ;;  %v13921_v37 = vld [vmem:[#allocation2 + $0xe0] sm:$0xff]  ;;  %v13923_v23 = vld [vmem:[#allocation2 + $0xd8] sm:$0xff] }
 0x44e   : > { %v13912_v59 = vadd.f32 %v4323_v55, %v13785_v34  ;;  %v13915_v62 = vadd.f32 %v4322_v29, %v13788_v51 }
 0x44f   : > { %v4224_v22 = vpop.permute.xlu1 %4223  ;;  %v4219_v43 = vpop.permute.xlu0 %4218 }
 0x450   : > { %16789 = vst [vmem:[#allocation187_spill] sm:$0xff] %v13912_v59  ;;  %16790 = vst [vmem:[#allocation188_spill] sm:$0xff] %v13915_v62  ;;  %v4325_v49 = vmul.f32 %v13905_v30, %v4224_v22  ;;  %v4324_v52 = vmul.f32 %v13905_v30, %v4219_v43  ;;  %5248 = vperm.xlu1 %11740, %v13483_v1   ;;  %5243 = vperm.xlu0 %11739, %v13485_v63   ;;  %v4390_v1 = vld [vmem:[#allocation2 + $0xf8] sm:$0xff]  ;;  %v4389_v63 = vld [vmem:[#allocation2 + $0xf0] sm:$0xff] }
 0x451   : > { %v4663_v62 = vld [vmem:[#allocation2 + $0x189] sm:$0xff]  ;;  %v4662_v59 = vld [vmem:[#allocation2 + $0x181] sm:$0xff] }
 0x452   : > { %v13926_v34 = vadd.f32 %v4325_v49, %v13799_v38  ;;  %v13929_v9 = vadd.f32 %v4324_v52, %v13802_v35 }
 0x453   : > { %v4234_v51 = vpop.permute.xlu1 %4233  ;;  %v4229_v61 = vpop.permute.xlu0 %4228 }
 0x454   : > { %16791 = vst [vmem:[#allocation189_spill] sm:$0xff] %v13926_v34  ;;  %16792 = vst [vmem:[#allocation190_spill] sm:$0xff] %v13929_v9  ;;  %v4327_v55 = vmul.f32 %v13905_v30, %v4234_v51  ;;  %v4326_v29 = vmul.f32 %v13905_v30, %v4229_v61  ;;  %4475 = vperm.xlu1 %11740, %v13921_v37   ;;  %4470 = vperm.xlu0 %11739, %v13923_v23   ;;  %v4392_v51 = vld [vmem:[#allocation2 + $0x110] sm:$0xff]  ;;  %v4391_v61 = vld [vmem:[#allocation2 + $0x108] sm:$0xff] }
 0x456   : > { %v13936_v22 = vadd.f32 %v4327_v55, %v13809_v5  ;;  %v13939_v38 = vadd.f32 %v4326_v29, %v13812_v41 }
 0x457   : > { %v4244_v35 = vpop.permute.xlu1 %4243  ;;  %v4239_v43 = vpop.permute.xlu0 %4238 }
 0x458   : > { %16793 = vst [vmem:[#allocation191_spill] sm:$0xff] %v13936_v22  ;;  %16794 = vst [vmem:[#allocation192_spill] sm:$0xff] %v13939_v38  ;;  %v4329_v49 = vmul.f32 %v13905_v30, %v4244_v35  ;;  %v4328_v52 = vmul.f32 %v13905_v30, %v4239_v43  ;;  %4485 = vperm.xlu1 %11740, %v4390_v1   ;;  %4480 = vperm.xlu0 %11739, %v4389_v63   ;;  %v4394_v35 = vld [vmem:[#allocation2 + $0x128] sm:$0xff]  ;;  %v4393_v43 = vld [vmem:[#allocation2 + $0x120] sm:$0xff] }
 0x459   : > { %v4661_v38 = vld [vmem:[#allocation2 + $0x171] sm:$0xff] }
 0x45a   : > { %v13944_v9 = vadd.f32 %v4329_v49, %v13817_v60  ;;  %v13947_v34 = vadd.f32 %v4328_v52, %v13820_v12 }
 0x45b   : > { %v4254_v5 = vpop.permute.xlu1 %4253  ;;  %v4249_v55 = vpop.permute.xlu0 %4248 }
 0x45c   : > { %16795 = vst [vmem:[#allocation193_spill] sm:$0xff] %v13944_v9  ;;  %16796 = vst [vmem:[#allocation194_spill] sm:$0xff] %v13947_v34  ;;  %v4331_v41 = vmul.f32 %v13905_v30, %v4254_v5  ;;  %v4330_v29 = vmul.f32 %v13905_v30, %v4249_v55  ;;  %4495 = vperm.xlu1 %11740, %v4392_v51   ;;  %4490 = vperm.xlu0 %11739, %v4391_v61  }
 0x45e   : > { %v13952_v1 = vadd.f32 %v4331_v41, %v13825_v10  ;;  %v13955_v63 = vadd.f32 %v4330_v29, %v13828_v53 }
 0x45f   : > { %v4264_v60 = vpop.permute.xlu1 %4263  ;;  %v4259_v49 = vpop.permute.xlu0 %4258 }
 0x460   : > { %16797 = vst [vmem:[#allocation195_spill] sm:$0xff] %v13952_v1  ;;  %16798 = vst [vmem:[#allocation196_spill] sm:$0xff] %v13955_v63  ;;  %v4333_v12 = vmul.f32 %v13905_v30, %v4264_v60  ;;  %v4332_v52 = vmul.f32 %v13905_v30, %v4259_v49  ;;  %4505 = vperm.xlu1 %11740, %v4394_v35   ;;  %4500 = vperm.xlu0 %11739, %v4393_v43   ;;  %v4396_v60 = vld [vmem:[#allocation2 + $0x140] sm:$0xff] }
 0x462   : > { %v13960_v5 = vadd.f32 %v4333_v12, %v13833_v39  ;;  %v13963_v51 = vadd.f32 %v4332_v52, %v13836_v56 }
 0x463   : > { %v4274_v61 = vpop.permute.xlu1 %4273  ;;  %v4269_v10 = vpop.permute.xlu0 %4268 }
 0x464   : > { %16799 = vst [vmem:[#allocation197_spill] sm:$0xff] %v13960_v5  ;;  %16800 = vst [vmem:[#allocation198_spill] sm:$0xff] %v13963_v51  ;;  %v4335_v55 = vmul.f32 %v13905_v30, %v4274_v61  ;;  %v4334_v53 = vmul.f32 %v13905_v30, %v4269_v10  ;;  %5459 = vperm.xlu1 %11740, %v13578_v6   ;;  %5454 = vperm.xlu0 %11739, %v13580_v27   ;;  %v4395_v6 = vld [vmem:[#allocation2 + $0x138] sm:$0xff] }
 0x465   : > { %v4398_v61 = vld [vmem:[#allocation2 + $0x158] sm:$0xff] }
 0x466   : > { %v13970_v41 = vadd.f32 %v4335_v55, %v13841_v40  ;;  %v13973_v29 = vadd.f32 %v4334_v53, %v13844_v11  ;;  %v16847_v51 = vld [vmem:[#allocation180_spill] sm:$0xff] }
 0x467   : > { %v4284_v39 = vpop.permute.xlu1 %4283  ;;  %v4279_v35 = vpop.permute.xlu0 %4278 }
 0x468   : > { %16801 = vst [vmem:[#allocation199_spill] sm:$0xff] %v13970_v41  ;;  %16802 = vst [vmem:[#allocation200_spill] sm:$0xff] %v13973_v29  ;;  %v4337_v56 = vmul.f32 %v13905_v30, %v4284_v39  ;;  %v4336_v43 = vmul.f32 %v13905_v30, %v4279_v35  ;;  %5469 = vperm.xlu1 %11740, %v13588_v25   ;;  %5464 = vperm.xlu0 %11739, %v13590_v15   ;;  %v4397_v25 = vld [vmem:[#allocation2 + $0x150] sm:$0xff]  ;;  %v4399_v35 = vld [vmem:[#allocation2 + $0x168] sm:$0xff] }
 0x469   : > { %v4400_v39 = vld [vmem:[#allocation2 + $0x170] sm:$0xff] }
 0x46a   : > { %v13980_v27 = vadd.f32 %v4337_v56, %v13849_v50  ;;  %v13983_v40 = vadd.f32 %v4336_v43, %v13852_v45  ;;  %v16843_v29 = vld [vmem:[#allocation176_spill] sm:$0xff] }
 0x46b   : > { %v4294_v11 = vpop.permute.xlu1 %4293  ;;  %v4289_v49 = vpop.permute.xlu0 %4288 }
 0x46c   : > { %16803 = vst [vmem:[#allocation201_spill] sm:$0xff] %v13980_v27  ;;  %16804 = vst [vmem:[#allocation202_spill] sm:$0xff] %v13983_v40  ;;  %v4339_v12 = vmul.f32 %v13905_v30, %v4294_v11  ;;  %v4338_v52 = vmul.f32 %v13905_v30, %v4289_v49  ;;  %4515 = vperm.xlu1 %11740, %v4396_v60   ;;  %4510 = vperm.xlu0 %11739, %v4395_v6   ;;  %v4402_v60 = vld [vmem:[#allocation2 + $0x188] sm:$0xff]  ;;  %v4401_v6 = vld [vmem:[#allocation2 + $0x180] sm:$0xff] }
 0x46e   : > { %v13988_v15 = vadd.f32 %v4339_v12, %v13857_v48  ;;  %v13991_v10 = vadd.f32 %v4338_v52, %v13860_v42 }
 0x46f   : > { %v4304_v50 = vpop.permute.xlu1 %4303  ;;  %v4299_v55 = vpop.permute.xlu0 %4298 }
 0x470   : > { %16805 = vst [vmem:[#allocation203_spill] sm:$0xff] %v13988_v15  ;;  %16806 = vst [vmem:[#allocation204_spill] sm:$0xff] %v13991_v10  ;;  %v4341_v45 = vmul.f32 %v13905_v30, %v4304_v50  ;;  %v4340_v53 = vmul.f32 %v13905_v30, %v4299_v55  ;;  %4525 = vperm.xlu1 %11740, %v4398_v61   ;;  %4520 = vperm.xlu0 %11739, %v4397_v25   ;;  %v4656_v10 = vld [vmem:[#allocation2 + $0x139] sm:$0xff] }
 0x471   : > { %v4659_v15 = vld [vmem:[#allocation2 + $0x159] sm:$0xff] }
 0x472   : > { %v13996_v56 = vadd.f32 %v4341_v45, %v13865_v46  ;;  %v13999_v43 = vadd.f32 %v4340_v53, %v13868_v21 }
 0x473   : > { %v14001_v48 = vpop.permute.xlu1 %4415  ;;  %v14003_v42 = vpop.permute.xlu0 %4410 }
 0x474   : > { %16807 = vst [vmem:[#allocation205_spill] sm:$0xff] %v13996_v56  ;;  %16808 = vst [vmem:[#allocation206_spill] sm:$0xff] %v13999_v43  ;;  %4535 = vperm.xlu1 %11740, %v4400_v39   ;;  %4530 = vperm.xlu0 %11739, %v4399_v35   ;;  %v4655_v35 = vld [vmem:[#allocation2 + $0x129] sm:$0xff] }
 0x477   : > { %v14005_v11 = vpop.permute.xlu1 %4425  ;;  %v14007_v30 = vpop.permute.xlu0 %4420 }
 0x478   : > { %4545 = vperm.xlu1 %11740, %v4402_v60   ;;  %4540 = vperm.xlu0 %11739, %v4401_v6   ;;  %v4654_v60 = vld [vmem:[#allocation2 + $0x121] sm:$0xff] }
 0x47b   : > { %v14009_v49 = vpop.permute.xlu1 %4435  ;;  %v14011_v46 = vpop.permute.xlu0 %4430 }
 0x47c   : > { %16809 = vst [vmem:[#allocation207_spill] sm:$0xff] %v14009_v49  ;;  %16810 = vst [vmem:[#allocation208_spill] sm:$0xff] %v14011_v46  ;;  %5479 = vperm.xlu1 %11740, %v13598_v20   ;;  %5474 = vperm.xlu0 %11739, %v13600_v36   ;;  %v14033_v36 = vld [vmem:[#allocation2 + $0xe1] sm:$0xff] }
 0x47f   : > { %v14015_v21 = vpop.permute.xlu1 %4445  ;;  %v14017_v12 = vpop.permute.xlu0 %4440 }
 0x480   : > { %16811 = vst [vmem:[#allocation209_spill] sm:$0xff] %v14015_v21  ;;  %16812 = vst [vmem:[#allocation210_spill] sm:$0xff] %v14017_v12  ;;  %5489 = vperm.xlu1 %11740, %v13608_v7   ;;  %5484 = vperm.xlu0 %11739, %v13610_v14   ;;  %v14035_v7 = vld [vmem:[#allocation2 + $0xd9] sm:$0xff]  ;;  %v5706_v12 = vld [vmem:[#allocation2 + $0x188] sm:$0xff] }
 0x483   : > { %v14021_v52 = vpop.permute.xlu1 %4455  ;;  %v14023_v61 = vpop.permute.xlu0 %4450 }
 0x484   : > { %16813 = vst [vmem:[#allocation211_spill] sm:$0xff] %v14021_v52  ;;  %16814 = vst [vmem:[#allocation212_spill] sm:$0xff] %v14023_v61  ;;  %5499 = vperm.xlu1 %11740, %v13618_v31   ;;  %5494 = vperm.xlu0 %11739, %v13620_v58   ;;  %v4651_v31 = vld [vmem:[#allocation2 + $0xf9] sm:$0xff]  ;;  %v4650_v58 = vld [vmem:[#allocation2 + $0xf1] sm:$0xff] }
 0x485   : > { %v16987_v61 = vld [vmem:[#allocation42_spill] sm:$0xff]  ;;  %v16988_v52 = vld [vmem:[#allocation43_spill] sm:$0xff] }
 0x487   : > { %v14027_v25 = vpop.permute.xlu1 %4465  ;;  %v14029_v20 = vpop.permute.xlu0 %4460 }
 0x488   : > { %16815 = vst [vmem:[#allocation213_spill] sm:$0xff] %v14027_v25  ;;  %16816 = vst [vmem:[#allocation214_spill] sm:$0xff] %v14029_v20  ;;  %5509 = vperm.xlu1 %11740, %v13628_v8   ;;  %5504 = vperm.xlu0 %11739, %v13630_v28   ;;  %v4653_v8 = vld [vmem:[#allocation2 + $0x111] sm:$0xff]  ;;  %v4652_v28 = vld [vmem:[#allocation2 + $0x109] sm:$0xff] }
 0x489   : > { %v16986_v25 = vld [vmem:[#allocation41_spill] sm:$0xff] }
 0x48b   : > { %v14037_v14 = vpop.permute.xlu1 %4676  ;;  %v14039_v50 = vpop.permute.xlu0 %4671 }
 0x48c   : > { %16817 = vst [vmem:[#allocation215_spill] sm:$0xff] %v14037_v14  ;;  %16818 = vst [vmem:[#allocation216_spill] sm:$0xff] %v14039_v50  ;;  %4736 = vperm.xlu1 %11740, %v14033_v36   ;;  %4731 = vperm.xlu0 %11739, %v14035_v7  }
 0x48f   : > { %v14043_v55 = vpop.permute.xlu1 %4686  ;;  %v14045_v45 = vpop.permute.xlu0 %4681 }
 0x490   : > { %16819 = vst [vmem:[#allocation217_spill] sm:$0xff] %v14043_v55  ;;  %16820 = vst [vmem:[#allocation218_spill] sm:$0xff] %v14045_v45  ;;  %4746 = vperm.xlu1 %11740, %v4651_v31   ;;  %4741 = vperm.xlu0 %11739, %v4650_v58   ;;  %v16978_v45 = vld [vmem:[#allocation35_spill] sm:$0xff]  ;;  %v16983_v55 = vld [vmem:[#allocation40_spill] sm:$0xff] }
 0x493   : > { %v14047_v53 = vpop.permute.xlu1 %4696  ;;  %v14049_v39 = vpop.permute.xlu0 %4691 }
 0x494   : > { %16821 = vst [vmem:[#allocation219_spill] sm:$0xff] %v14047_v53  ;;  %16822 = vst [vmem:[#allocation220_spill] sm:$0xff] %v14049_v39  ;;  %4756 = vperm.xlu1 %11740, %v4653_v8   ;;  %4751 = vperm.xlu0 %11739, %v4652_v28   ;;  %v4657_v28 = vld [vmem:[#allocation2 + $0x141] sm:$0xff] }
 0x495   : > { %v16968_v39 = vld [vmem:[#allocation21_spill] sm:$0xff] }
 0x497   : > { %v14051_v6 = vpop.permute.xlu1 %4706  ;;  %v14053_v43 = vpop.permute.xlu0 %4701 }
 0x498   : > { %16823 = vst [vmem:[#allocation221_spill] sm:$0xff] %v14051_v6  ;;  %16824 = vst [vmem:[#allocation222_spill] sm:$0xff] %v14053_v43  ;;  %4766 = vperm.xlu1 %11740, %v4655_v35   ;;  %4761 = vperm.xlu0 %11739, %v4654_v60   ;;  %v16966_v43 = vld [vmem:[#allocation19_spill] sm:$0xff]  ;;  %v16967_v6 = vld [vmem:[#allocation20_spill] sm:$0xff] }
 0x49b   : > { %v14055_v56 = vpop.permute.xlu1 %4716  ;;  %v14057_v31 = vpop.permute.xlu0 %4711 }
 0x49c   : > { %16825 = vst [vmem:[#allocation223_spill] sm:$0xff] %v14055_v56  ;;  %16826 = vst [vmem:[#allocation224_spill] sm:$0xff] %v14057_v31  ;;  %5721 = vperm.xlu1 %11740, %v13723_v17   ;;  %5716 = vperm.xlu0 %11739, %v13725_v24   ;;  %v4658_v17 = vld [vmem:[#allocation2 + $0x151] sm:$0xff] }
 0x49d   : > { %v16965_v31 = vld [vmem:[#allocation28_spill] sm:$0xff] }
 0x49e   : > { %v5702_v56 = vld [vmem:[#allocation2 + $0x158] sm:$0xff] }
 0x49f   : > { %v14061_v58 = vpop.permute.xlu1 %4726  ;;  %v14063_v8 = vpop.permute.xlu0 %4721 }
 0x4a0   : > { %16827 = vst [vmem:[#allocation225_spill] sm:$0xff] %v14061_v58  ;;  %16828 = vst [vmem:[#allocation226_spill] sm:$0xff] %v14063_v8  ;;  %5731 = vperm.xlu1 %11740, %v13733_v4   ;;  %5726 = vperm.xlu0 %11739, %v13735_v0   ;;  %v4660_v4 = vld [vmem:[#allocation2 + $0x169] sm:$0xff] }
 0x4a1   : > { %v16963_v8 = vld [vmem:[#allocation18_spill] sm:$0xff]  ;;  %v16964_v58 = vld [vmem:[#allocation27_spill] sm:$0xff] }
 0x4a3   : > { %v14067_v35 = vpop.permute.xlu1 %4937  ;;  %v14069_v60 = vpop.permute.xlu0 %4932 }
 0x4a4   : > { %16829 = vst [vmem:[#allocation227_spill] sm:$0xff] %v14067_v35  ;;  %16830 = vst [vmem:[#allocation228_spill] sm:$0xff] %v14069_v60  ;;  %4776 = vperm.xlu1 %11740, %v4657_v28   ;;  %4771 = vperm.xlu0 %11739, %v4656_v10   ;;  %v16962_v35 = vld [vmem:[#allocation17_spill] sm:$0xff] }
 0x4a7   : > { %v14071_v34 = vpop.permute.xlu1 %4947  ;;  %v14073_v24 = vpop.permute.xlu0 %4942 }
 0x4a8   : > { %16831 = vst [vmem:[#allocation229_spill] sm:$0xff] %v14071_v34  ;;  %16832 = vst [vmem:[#allocation230_spill] sm:$0xff] %v14073_v24  ;;  %4786 = vperm.xlu1 %11740, %v4659_v15   ;;  %4781 = vperm.xlu0 %11739, %v4658_v17   ;;  %v16839_v17 = vld [vmem:[#allocation172_spill] sm:$0xff]  ;;  %v16961_v34 = vld [vmem:[#allocation26_spill] sm:$0xff] }
 0x4a9   : > { %v16960_v24 = vld [vmem:[#allocation16_spill] sm:$0xff] }
 0x4ab   : > { %v14075_v22 = vpop.permute.xlu1 %4957  ;;  %v14077_v0 = vpop.permute.xlu0 %4952 }
 0x4ac   : > { %16833 = vst [vmem:[#allocation231_spill] sm:$0xff] %v14075_v22  ;;  %16834 = vst [vmem:[#allocation232_spill] sm:$0xff] %v14077_v0  ;;  %4796 = vperm.xlu1 %11740, %v4661_v38   ;;  %4791 = vperm.xlu0 %11739, %v4660_v4   ;;  %v16842_v4 = vld [vmem:[#allocation175_spill] sm:$0xff] }
 0x4af   : > { %v14079_v28 = vpop.permute.xlu1 %4967  ;;  %v14081_v10 = vpop.permute.xlu0 %4962 }
 0x4b0   : > { %16835 = vst [vmem:[#allocation233_spill] sm:$0xff] %v14079_v28  ;;  %16836 = vst [vmem:[#allocation234_spill] sm:$0xff] %v14081_v10  ;;  %4806 = vperm.xlu1 %11740, %v4663_v62   ;;  %4801 = vperm.xlu0 %11739, %v4662_v59   ;;  %v16846_v59 = vld [vmem:[#allocation179_spill] sm:$0xff]  ;;  %v16955_v10 = vld [vmem:[#allocation24_spill] sm:$0xff] }
 0x4b1   : > { %v16956_v28 = vld [vmem:[#allocation25_spill] sm:$0xff] }
 0x4b3   : > { %v14083_v40 = vpop.permute.xlu1 %4977  ;;  %v14085_v15 = vpop.permute.xlu0 %4972 }
 0x4b4   : > { %16837 = vst [vmem:[#allocation235_spill] sm:$0xff] %v14083_v40  ;;  %16838 = vst [vmem:[#allocation236_spill] sm:$0xff] %v14085_v15  ;;  %5741 = vperm.xlu1 %11740, %v13743_v16   ;;  %5736 = vperm.xlu0 %11739, %v16839_v17   ;;  %v14107_v17 = vld [vmem:[#allocation2 + $0xe2] sm:$0xff]  ;;  %v16954_v15 = vld [vmem:[#allocation23_spill] sm:$0xff] }
 0x4b7   : > { %v14089_v27 = vpop.permute.xlu1 %4987  ;;  %v14091_v38 = vpop.permute.xlu0 %4982 }
 0x4b8   : > { %16840 = vst [vmem:[#allocation172_spill] sm:$0xff] %v14089_v27  ;;  %16841 = vst [vmem:[#allocation237_spill] sm:$0xff] %v14091_v38  ;;  %5751 = vperm.xlu1 %11740, %v16842_v4   ;;  %5746 = vperm.xlu0 %11739, %v16843_v29   ;;  %v14109_v4 = vld [vmem:[#allocation2 + $0xda] sm:$0xff] }
 0x4bb   : > { %v14095_v41 = vpop.permute.xlu1 %5198  ;;  %v14097_v62 = vpop.permute.xlu0 %5193 }
 0x4bc   : > { %16844 = vst [vmem:[#allocation175_spill] sm:$0xff] %v14095_v41  ;;  %16845 = vst [vmem:[#allocation176_spill] sm:$0xff] %v14097_v62  ;;  %5761 = vperm.xlu1 %11740, %v16846_v59   ;;  %5756 = vperm.xlu0 %11739, %v16847_v51   ;;  %v4912_v51 = vld [vmem:[#allocation2 + $0xfa] sm:$0xff]  ;;  %v4911_v59 = vld [vmem:[#allocation2 + $0xf2] sm:$0xff] }
 0x4bd   : > { %v16952_v41 = vld [vmem:[#allocation14_spill] sm:$0xff] }
 0x4bf   : > { %v14101_v5 = vpop.permute.xlu1 %5208  ;;  %v14103_v16 = vpop.permute.xlu0 %5203 }
 0x4c0   : > { %16848 = vst [vmem:[#allocation179_spill] sm:$0xff] %v14101_v5  ;;  %16849 = vst [vmem:[#allocation180_spill] sm:$0xff] %v14103_v16  ;;  %5771 = vperm.xlu1 %11740, %v13921_v37   ;;  %5766 = vperm.xlu0 %11739, %v13923_v23   ;;  %v4914_v37 = vld [vmem:[#allocation2 + $0x112] sm:$0xff]  ;;  %v4913_v23 = vld [vmem:[#allocation2 + $0x10a] sm:$0xff] }
 0x4c3   : > { %v14111_v29 = vpop.permute.xlu1 %5218  ;;  %v14113_v63 = vpop.permute.xlu0 %5213 }
 0x4c4   : > { %16850 = vst [vmem:[#allocation238_spill] sm:$0xff] %v14111_v29  ;;  %16851 = vst [vmem:[#allocation239_spill] sm:$0xff] %v14113_v63  ;;  %4997 = vperm.xlu1 %11740, %v14107_v17   ;;  %4992 = vperm.xlu0 %11739, %v14109_v4   ;;  %v4916_v63 = vld [vmem:[#allocation2 + $0x12a] sm:$0xff]  ;;  %v4915_v29 = vld [vmem:[#allocation2 + $0x122] sm:$0xff] }
 0x4c7   : > { %v14117_v1 = vpop.permute.xlu1 %5228  ;;  %v14119_v9 = vpop.permute.xlu0 %5223 }
 0x4c8   : > { %16852 = vst [vmem:[#allocation240_spill] sm:$0xff] %v14117_v1  ;;  %16853 = vst [vmem:[#allocation241_spill] sm:$0xff] %v14119_v9  ;;  %5007 = vperm.xlu1 %11740, %v4912_v51   ;;  %5002 = vperm.xlu0 %11739, %v4911_v59   ;;  %v16860_v59 = vld [vmem:[#allocation183_spill] sm:$0xff]  ;;  %v16861_v9 = vld [vmem:[#allocation184_spill] sm:$0xff] }
 0x4cb   : > { %v14121_v38 = vpop.permute.xlu1 %5238  ;;  %v14123_v16 = vpop.permute.xlu0 %5233 }
 0x4cc   : > { %16854 = vst [vmem:[#allocation242_spill] sm:$0xff] %v14121_v38  ;;  %16855 = vst [vmem:[#allocation243_spill] sm:$0xff] %v14123_v16  ;;  %5017 = vperm.xlu1 %11740, %v4914_v37   ;;  %5012 = vperm.xlu0 %11739, %v4913_v23   ;;  %v16864_v23 = vld [vmem:[#allocation185_spill] sm:$0xff]  ;;  %v16865_v16 = vld [vmem:[#allocation186_spill] sm:$0xff] }
 0x4cf   : > { %v14125_v5 = vpop.permute.xlu1 %5248  ;;  %v14127_v62 = vpop.permute.xlu0 %5243 }
 0x4d0   : > { %16856 = vst [vmem:[#allocation244_spill] sm:$0xff] %v14125_v5  ;;  %16857 = vst [vmem:[#allocation245_spill] sm:$0xff] %v14127_v62  ;;  %5027 = vperm.xlu1 %11740, %v4916_v63   ;;  %5022 = vperm.xlu0 %11739, %v4915_v29   ;;  %v4918_v5 = vld [vmem:[#allocation2 + $0x142] sm:$0xff]  ;;  %v4917_v62 = vld [vmem:[#allocation2 + $0x13a] sm:$0xff] }
 0x4d3   : > { %v14129_v1 = vpop.permute.xlu1 %4475  ;;  %v14131_v51 = vpop.permute.xlu0 %4470 }
 0x4d4   : > { %16858 = vst [vmem:[#allocation246_spill] sm:$0xff] %v14129_v1  ;;  %16859 = vst [vmem:[#allocation247_spill] sm:$0xff] %v14131_v51  ;;  %5982 = vperm.xlu1 %11740, %v16860_v59   ;;  %5977 = vperm.xlu0 %11739, %v16861_v9   ;;  %v4920_v51 = vld [vmem:[#allocation2 + $0x15a] sm:$0xff]  ;;  %v4919_v59 = vld [vmem:[#allocation2 + $0x152] sm:$0xff] }
 0x4d7   : > { %v14135_v38 = vpop.permute.xlu1 %4485  ;;  %v14137_v37 = vpop.permute.xlu0 %4480 }
 0x4d8   : > { %16862 = vst [vmem:[#allocation183_spill] sm:$0xff] %v14135_v38  ;;  %16863 = vst [vmem:[#allocation184_spill] sm:$0xff] %v14137_v37  ;;  %5992 = vperm.xlu1 %11740, %v16864_v23   ;;  %5987 = vperm.xlu0 %11739, %v16865_v16   ;;  %v4922_v37 = vld [vmem:[#allocation2 + $0x172] sm:$0xff]  ;;  %v4921_v23 = vld [vmem:[#allocation2 + $0x16a] sm:$0xff] }
 0x4db   : > { %v14141_v63 = vpop.permute.xlu1 %4495  ;;  %v14143_v29 = vpop.permute.xlu0 %4490 }
 0x4dc   : > { %16866 = vst [vmem:[#allocation185_spill] sm:$0xff] %v14141_v63  ;;  %16867 = vst [vmem:[#allocation186_spill] sm:$0xff] %v14143_v29  ;;  %5037 = vperm.xlu1 %11740, %v4918_v5   ;;  %5032 = vperm.xlu0 %11739, %v4917_v62   ;;  %v4924_v63 = vld [vmem:[#allocation2 + $0x18a] sm:$0xff]  ;;  %v4923_v29 = vld [vmem:[#allocation2 + $0x182] sm:$0xff] }
 0x4df   : > { %v14145_v1 = vpop.permute.xlu1 %4505  ;;  %v14147_v9 = vpop.permute.xlu0 %4500 }
 0x4e0   : > { %16868 = vst [vmem:[#allocation248_spill] sm:$0xff] %v14145_v1  ;;  %16869 = vst [vmem:[#allocation249_spill] sm:$0xff] %v14147_v9  ;;  %5047 = vperm.xlu1 %11740, %v4920_v51   ;;  %5042 = vperm.xlu0 %11739, %v4919_v59   ;;  %v5947_v1 = vld [vmem:[#allocation2 + $0x99] sm:$0xff]  ;;  %v5946_v9 = vld [vmem:[#allocation2 + $0x91] sm:$0xff] }
 0x4e3   : > { %v14149_v38 = vpop.permute.xlu1 %5459  ;;  %v14151_v16 = vpop.permute.xlu0 %5454 }
 0x4e4   : > { %16870 = vst [vmem:[#allocation250_spill] sm:$0xff] %v14149_v38  ;;  %16871 = vst [vmem:[#allocation251_spill] sm:$0xff] %v14151_v16  ;;  %5057 = vperm.xlu1 %11740, %v4922_v37   ;;  %5052 = vperm.xlu0 %11739, %v4921_v23   ;;  %v5949_v38 = vld [vmem:[#allocation2 + $0xb1] sm:$0xff]  ;;  %v5948_v16 = vld [vmem:[#allocation2 + $0xa9] sm:$0xff] }
 0x4e7   : > { %v14153_v5 = vpop.permute.xlu1 %5469  ;;  %v14155_v62 = vpop.permute.xlu0 %5464 }
 0x4e8   : > { %16872 = vst [vmem:[#allocation252_spill] sm:$0xff] %v14153_v5  ;;  %16873 = vst [vmem:[#allocation253_spill] sm:$0xff] %v14155_v62  ;;  %5067 = vperm.xlu1 %11740, %v4924_v63   ;;  %5062 = vperm.xlu0 %11739, %v4923_v29   ;;  %v5951_v5 = vld [vmem:[#allocation2 + $0xc9] sm:$0xff]  ;;  %v5950_v62 = vld [vmem:[#allocation2 + $0xc1] sm:$0xff] }
 0x4eb   : > { %v14157_v51 = vpop.permute.xlu1 %4515  ;;  %v14159_v59 = vpop.permute.xlu0 %4510 }
 0x4ec   : > { %16874 = vst [vmem:[#allocation254_spill] sm:$0xff] %v14157_v51  ;;  %16875 = vst [vmem:[#allocation255_spill] sm:$0xff] %v14159_v59  ;;  %6002 = vperm.xlu1 %11740, %v5947_v1   ;;  %5997 = vperm.xlu0 %11739, %v5946_v9   ;;  %v14175_v9 = vld [vmem:[#allocation2 + $0xe3] sm:$0xff] }
 0x4ed   : > { %v5176_v59 = vld [vmem:[#allocation2 + $0x123] sm:$0xff] }
 0x4ef   : > { %v14161_v37 = vpop.permute.xlu1 %4525  ;;  %v14163_v23 = vpop.permute.xlu0 %4520 }
 0x4f0   : > { %16876 = vst [vmem:[#allocation256_spill] sm:$0xff] %v14161_v37  ;;  %16877 = vst [vmem:[#allocation257_spill] sm:$0xff] %v14163_v23  ;;  %6012 = vperm.xlu1 %11740, %v5949_v38   ;;  %6007 = vperm.xlu0 %11739, %v5948_v16   ;;  %v14177_v38 = vld [vmem:[#allocation2 + $0xdb] sm:$0xff]  ;;  %v5177_v37 = vld [vmem:[#allocation2 + $0x12b] sm:$0xff] }
 0x4f3   : > { %v14165_v63 = vpop.permute.xlu1 %4535  ;;  %v14167_v29 = vpop.permute.xlu0 %4530 }
 0x4f4   : > { %16878 = vst [vmem:[#allocation258_spill] sm:$0xff] %v14165_v63  ;;  %16879 = vst [vmem:[#allocation259_spill] sm:$0xff] %v14167_v29  ;;  %6022 = vperm.xlu1 %11740, %v5951_v5   ;;  %6017 = vperm.xlu0 %11739, %v5950_v62   ;;  %v5173_v5 = vld [vmem:[#allocation2 + $0xfb] sm:$0xff]  ;;  %v5172_v62 = vld [vmem:[#allocation2 + $0xf3] sm:$0xff] }
 0x4f7   : > { %v14169_v51 = vpop.permute.xlu1 %4545  ;;  %v14171_v1 = vpop.permute.xlu0 %4540 }
 0x4f8   : > { %16880 = vst [vmem:[#allocation260_spill] sm:$0xff] %v14169_v51  ;;  %16881 = vst [vmem:[#allocation261_spill] sm:$0xff] %v14171_v1  ;;  %6032 = vperm.xlu1 %11740, %v14033_v36   ;;  %6027 = vperm.xlu0 %11739, %v14035_v7   ;;  %v5175_v36 = vld [vmem:[#allocation2 + $0x113] sm:$0xff]  ;;  %v5174_v7 = vld [vmem:[#allocation2 + $0x10b] sm:$0xff] }
 0x4fb   : > { %v14179_v16 = vpop.permute.xlu1 %5479  ;;  %v14181_v23 = vpop.permute.xlu0 %5474 }
 0x4fc   : > { %16882 = vst [vmem:[#allocation262_spill] sm:$0xff] %v14179_v16  ;;  %16883 = vst [vmem:[#allocation263_spill] sm:$0xff] %v14181_v23  ;;  %5258 = vperm.xlu1 %11740, %v14175_v9   ;;  %5253 = vperm.xlu0 %11739, %v14177_v38  }
 0x4ff   : > { %v14185_v51 = vpop.permute.xlu1 %5489  ;;  %v14187_v1 = vpop.permute.xlu0 %5484 }
 0x500   : > { %16884 = vst [vmem:[#allocation264_spill] sm:$0xff] %v14185_v51  ;;  %16885 = vst [vmem:[#allocation265_spill] sm:$0xff] %v14187_v1  ;;  %5268 = vperm.xlu1 %11740, %v5173_v5   ;;  %5263 = vperm.xlu0 %11739, %v5172_v62   ;;  %v6204_v51 = vld [vmem:[#allocation2 + $0x6a] sm:$0xff]  ;;  %v6203_v1 = vld [vmem:[#allocation2 + $0x62] sm:$0xff] }
 0x503   : > { %v14189_v29 = vpop.permute.xlu1 %5499  ;;  %v14191_v63 = vpop.permute.xlu0 %5494 }
 0x504   : > { %16886 = vst [vmem:[#allocation266_spill] sm:$0xff] %v14189_v29  ;;  %16887 = vst [vmem:[#allocation267_spill] sm:$0xff] %v14191_v63  ;;  %5278 = vperm.xlu1 %11740, %v5175_v36   ;;  %5273 = vperm.xlu0 %11739, %v5174_v7   ;;  %v6206_v29 = vld [vmem:[#allocation2 + $0x82] sm:$0xff]  ;;  %v6205_v63 = vld [vmem:[#allocation2 + $0x7a] sm:$0xff] }
 0x507   : > { %v14193_v23 = vpop.permute.xlu1 %5509  ;;  %v14195_v16 = vpop.permute.xlu0 %5504 }
 0x508   : > { %16888 = vst [vmem:[#allocation268_spill] sm:$0xff] %v14193_v23  ;;  %16889 = vst [vmem:[#allocation269_spill] sm:$0xff] %v14195_v16  ;;  %5288 = vperm.xlu1 %11740, %v5177_v37   ;;  %5283 = vperm.xlu0 %11739, %v5176_v59   ;;  %v5179_v23 = vld [vmem:[#allocation2 + $0x143] sm:$0xff]  ;;  %v5178_v16 = vld [vmem:[#allocation2 + $0x13b] sm:$0xff] }
 0x50b   : > { %v14197_v5 = vpop.permute.xlu1 %4736  ;;  %v14199_v62 = vpop.permute.xlu0 %4731 }
 0x50c   : > { %16890 = vst [vmem:[#allocation270_spill] sm:$0xff] %v14197_v5  ;;  %16891 = vst [vmem:[#allocation271_spill] sm:$0xff] %v14199_v62  ;;  %6243 = vperm.xlu1 %11740, %v6204_v51   ;;  %6238 = vperm.xlu0 %11739, %v6203_v1   ;;  %v5181_v5 = vld [vmem:[#allocation2 + $0x15b] sm:$0xff]  ;;  %v5180_v62 = vld [vmem:[#allocation2 + $0x153] sm:$0xff] }
 0x50f   : > { %v14201_v36 = vpop.permute.xlu1 %4746  ;;  %v14203_v7 = vpop.permute.xlu0 %4741 }
 0x510   : > { %16892 = vst [vmem:[#allocation272_spill] sm:$0xff] %v14201_v36  ;;  %16893 = vst [vmem:[#allocation273_spill] sm:$0xff] %v14203_v7  ;;  %6253 = vperm.xlu1 %11740, %v6206_v29   ;;  %6248 = vperm.xlu0 %11739, %v6205_v63   ;;  %v5183_v36 = vld [vmem:[#allocation2 + $0x173] sm:$0xff]  ;;  %v5182_v7 = vld [vmem:[#allocation2 + $0x16b] sm:$0xff] }
 0x513   : > { %v14205_v37 = vpop.permute.xlu1 %4756  ;;  %v14207_v59 = vpop.permute.xlu0 %4751 }
 0x514   : > { %16894 = vst [vmem:[#allocation274_spill] sm:$0xff] %v14205_v37  ;;  %16895 = vst [vmem:[#allocation275_spill] sm:$0xff] %v14207_v59  ;;  %5298 = vperm.xlu1 %11740, %v5179_v23   ;;  %5293 = vperm.xlu0 %11739, %v5178_v16   ;;  %v5185_v37 = vld [vmem:[#allocation2 + $0x18b] sm:$0xff]  ;;  %v5184_v59 = vld [vmem:[#allocation2 + $0x183] sm:$0xff] }
 0x517   : > { %v14209_v51 = vpop.permute.xlu1 %4766  ;;  %v14211_v1 = vpop.permute.xlu0 %4761 }
 0x518   : > { %16896 = vst [vmem:[#allocation276_spill] sm:$0xff] %v14209_v51  ;;  %16897 = vst [vmem:[#allocation277_spill] sm:$0xff] %v14211_v1  ;;  %5308 = vperm.xlu1 %11740, %v5181_v5   ;;  %5303 = vperm.xlu0 %11739, %v5180_v62   ;;  %v6208_v51 = vld [vmem:[#allocation2 + $0x9a] sm:$0xff]  ;;  %v6207_v1 = vld [vmem:[#allocation2 + $0x92] sm:$0xff] }
 0x51b   : > { %v14213_v29 = vpop.permute.xlu1 %5721  ;;  %v14215_v63 = vpop.permute.xlu0 %5716 }
 0x51c   : > { %16898 = vst [vmem:[#allocation278_spill] sm:$0xff] %v14213_v29  ;;  %16899 = vst [vmem:[#allocation279_spill] sm:$0xff] %v14215_v63  ;;  %5318 = vperm.xlu1 %11740, %v5183_v36   ;;  %5313 = vperm.xlu0 %11739, %v5182_v7   ;;  %v6210_v29 = vld [vmem:[#allocation2 + $0xb2] sm:$0xff]  ;;  %v6209_v63 = vld [vmem:[#allocation2 + $0xaa] sm:$0xff] }
 0x51f   : > { %v14217_v23 = vpop.permute.xlu1 %5731  ;;  %v14219_v16 = vpop.permute.xlu0 %5726 }
 0x520   : > { %16900 = vst [vmem:[#allocation280_spill] sm:$0xff] %v14217_v23  ;;  %16901 = vst [vmem:[#allocation281_spill] sm:$0xff] %v14219_v16  ;;  %5328 = vperm.xlu1 %11740, %v5185_v37   ;;  %5323 = vperm.xlu0 %11739, %v5184_v59   ;;  %v6212_v23 = vld [vmem:[#allocation2 + $0xca] sm:$0xff]  ;;  %v6211_v16 = vld [vmem:[#allocation2 + $0xc2] sm:$0xff] }
 0x523   : > { %v14221_v5 = vpop.permute.xlu1 %4776  ;;  %v14223_v62 = vpop.permute.xlu0 %4771 }
 0x524   : > { %16902 = vst [vmem:[#allocation282_spill] sm:$0xff] %v14221_v5  ;;  %16903 = vst [vmem:[#allocation283_spill] sm:$0xff] %v14223_v62  ;;  %6263 = vperm.xlu1 %11740, %v6208_v51   ;;  %6258 = vperm.xlu0 %11739, %v6207_v1   ;;  %v14239_v1 = vld [vmem:[#allocation2 + $0xe4] sm:$0xff] }
 0x525   : > { %v5437_v62 = vld [vmem:[#allocation2 + $0x124] sm:$0xff] }
 0x527   : > { %v14225_v36 = vpop.permute.xlu1 %4786  ;;  %v14227_v7 = vpop.permute.xlu0 %4781 }
 0x528   : > { %16904 = vst [vmem:[#allocation284_spill] sm:$0xff] %v14225_v36  ;;  %16905 = vst [vmem:[#allocation285_spill] sm:$0xff] %v14227_v7  ;;  %6273 = vperm.xlu1 %11740, %v6210_v29   ;;  %6268 = vperm.xlu0 %11739, %v6209_v63   ;;  %v14241_v29 = vld [vmem:[#allocation2 + $0xdc] sm:$0xff]  ;;  %v5438_v36 = vld [vmem:[#allocation2 + $0x12c] sm:$0xff] }
 0x52b   : > { %v14229_v37 = vpop.permute.xlu1 %4796  ;;  %v14231_v59 = vpop.permute.xlu0 %4791 }
 0x52c   : > { %16906 = vst [vmem:[#allocation286_spill] sm:$0xff] %v14229_v37  ;;  %16907 = vst [vmem:[#allocation287_spill] sm:$0xff] %v14231_v59  ;;  %6283 = vperm.xlu1 %11740, %v6212_v23   ;;  %6278 = vperm.xlu0 %11739, %v6211_v16   ;;  %v5434_v23 = vld [vmem:[#allocation2 + $0xfc] sm:$0xff]  ;;  %v5433_v16 = vld [vmem:[#allocation2 + $0xf4] sm:$0xff] }
 0x52f   : > { %v14233_v5 = vpop.permute.xlu1 %4806  ;;  %v14235_v51 = vpop.permute.xlu0 %4801 }
 0x530   : > { %16908 = vst [vmem:[#allocation288_spill] sm:$0xff] %v14233_v5  ;;  %16909 = vst [vmem:[#allocation289_spill] sm:$0xff] %v14235_v51  ;;  %6293 = vperm.xlu1 %11740, %v14107_v17   ;;  %6288 = vperm.xlu0 %11739, %v14109_v4   ;;  %v5436_v17 = vld [vmem:[#allocation2 + $0x114] sm:$0xff]  ;;  %v5435_v4 = vld [vmem:[#allocation2 + $0x10c] sm:$0xff] }
 0x533   : > { %v14243_v63 = vpop.permute.xlu1 %5741  ;;  %v14245_v7 = vpop.permute.xlu0 %5736 }
 0x534   : > { %16910 = vst [vmem:[#allocation290_spill] sm:$0xff] %v14243_v63  ;;  %16911 = vst [vmem:[#allocation291_spill] sm:$0xff] %v14245_v7  ;;  %5519 = vperm.xlu1 %11740, %v14239_v1   ;;  %5514 = vperm.xlu0 %11739, %v14241_v29  }
 0x537   : > { %v14249_v5 = vpop.permute.xlu1 %5751  ;;  %v14251_v51 = vpop.permute.xlu0 %5746 }
 0x538   : > { %16912 = vst [vmem:[#allocation292_spill] sm:$0xff] %v14249_v5  ;;  %16913 = vst [vmem:[#allocation293_spill] sm:$0xff] %v14251_v51  ;;  %5529 = vperm.xlu1 %11740, %v5434_v23   ;;  %5524 = vperm.xlu0 %11739, %v5433_v16   ;;  %v6465_v5 = vld [vmem:[#allocation2 + $0x6b] sm:$0xff]  ;;  %v6464_v51 = vld [vmem:[#allocation2 + $0x63] sm:$0xff] }
 0x53b   : > { %v14253_v59 = vpop.permute.xlu1 %5761  ;;  %v14255_v37 = vpop.permute.xlu0 %5756 }
 0x53c   : > { %16914 = vst [vmem:[#allocation294_spill] sm:$0xff] %v14253_v59  ;;  %16915 = vst [vmem:[#allocation295_spill] sm:$0xff] %v14255_v37  ;;  %5539 = vperm.xlu1 %11740, %v5436_v17   ;;  %5534 = vperm.xlu0 %11739, %v5435_v4   ;;  %v6467_v59 = vld [vmem:[#allocation2 + $0x83] sm:$0xff]  ;;  %v6466_v37 = vld [vmem:[#allocation2 + $0x7b] sm:$0xff] }
 0x53f   : > { %v14257_v7 = vpop.permute.xlu1 %5771  ;;  %v14259_v63 = vpop.permute.xlu0 %5766 }
 0x540   : > { %16916 = vst [vmem:[#allocation296_spill] sm:$0xff] %v14257_v7  ;;  %16917 = vst [vmem:[#allocation297_spill] sm:$0xff] %v14259_v63  ;;  %5549 = vperm.xlu1 %11740, %v5438_v36   ;;  %5544 = vperm.xlu0 %11739, %v5437_v62   ;;  %v5440_v7 = vld [vmem:[#allocation2 + $0x144] sm:$0xff]  ;;  %v5439_v63 = vld [vmem:[#allocation2 + $0x13c] sm:$0xff] }
 0x543   : > { %v14261_v23 = vpop.permute.xlu1 %4997  ;;  %v14263_v16 = vpop.permute.xlu0 %4992 }
 0x544   : > { %16918 = vst [vmem:[#allocation298_spill] sm:$0xff] %v14261_v23  ;;  %16919 = vst [vmem:[#allocation299_spill] sm:$0xff] %v14263_v16  ;;  %6504 = vperm.xlu1 %11740, %v6465_v5   ;;  %6499 = vperm.xlu0 %11739, %v6464_v51   ;;  %v5442_v23 = vld [vmem:[#allocation2 + $0x15c] sm:$0xff]  ;;  %v5441_v16 = vld [vmem:[#allocation2 + $0x154] sm:$0xff] }
 0x547   : > { %v14265_v17 = vpop.permute.xlu1 %5007  ;;  %v14267_v4 = vpop.permute.xlu0 %5002 }
 0x548   : > { %16920 = vst [vmem:[#allocation300_spill] sm:$0xff] %v14265_v17  ;;  %16921 = vst [vmem:[#allocation301_spill] sm:$0xff] %v14267_v4  ;;  %6514 = vperm.xlu1 %11740, %v6467_v59   ;;  %6509 = vperm.xlu0 %11739, %v6466_v37   ;;  %v5444_v17 = vld [vmem:[#allocation2 + $0x174] sm:$0xff]  ;;  %v5443_v4 = vld [vmem:[#allocation2 + $0x16c] sm:$0xff] }
 0x54b   : > { %v14269_v36 = vpop.permute.xlu1 %5017  ;;  %v14271_v62 = vpop.permute.xlu0 %5012 }
 0x54c   : > { %16922 = vst [vmem:[#allocation302_spill] sm:$0xff] %v14269_v36  ;;  %16923 = vst [vmem:[#allocation303_spill] sm:$0xff] %v14271_v62  ;;  %5559 = vperm.xlu1 %11740, %v5440_v7   ;;  %5554 = vperm.xlu0 %11739, %v5439_v63   ;;  %v5446_v36 = vld [vmem:[#allocation2 + $0x18c] sm:$0xff]  ;;  %v5445_v62 = vld [vmem:[#allocation2 + $0x184] sm:$0xff] }
 0x54f   : > { %v14273_v5 = vpop.permute.xlu1 %5027  ;;  %v14275_v51 = vpop.permute.xlu0 %5022 }
 0x550   : > { %16924 = vst [vmem:[#allocation304_spill] sm:$0xff] %v14273_v5  ;;  %16925 = vst [vmem:[#allocation305_spill] sm:$0xff] %v14275_v51  ;;  %5569 = vperm.xlu1 %11740, %v5442_v23   ;;  %5564 = vperm.xlu0 %11739, %v5441_v16   ;;  %v6469_v5 = vld [vmem:[#allocation2 + $0x9b] sm:$0xff]  ;;  %v6468_v51 = vld [vmem:[#allocation2 + $0x93] sm:$0xff] }
 0x553   : > { %v14277_v59 = vpop.permute.xlu1 %5982  ;;  %v14279_v37 = vpop.permute.xlu0 %5977 }
 0x554   : > { %16926 = vst [vmem:[#allocation306_spill] sm:$0xff] %v14277_v59  ;;  %16927 = vst [vmem:[#allocation307_spill] sm:$0xff] %v14279_v37  ;;  %5579 = vperm.xlu1 %11740, %v5444_v17   ;;  %5574 = vperm.xlu0 %11739, %v5443_v4   ;;  %v6471_v59 = vld [vmem:[#allocation2 + $0xb3] sm:$0xff]  ;;  %v6470_v37 = vld [vmem:[#allocation2 + $0xab] sm:$0xff] }
 0x557   : > { %v14281_v7 = vpop.permute.xlu1 %5992  ;;  %v14283_v63 = vpop.permute.xlu0 %5987 }
 0x558   : > { %16928 = vst [vmem:[#allocation308_spill] sm:$0xff] %v14281_v7  ;;  %16929 = vst [vmem:[#allocation309_spill] sm:$0xff] %v14283_v63  ;;  %5589 = vperm.xlu1 %11740, %v5446_v36   ;;  %5584 = vperm.xlu0 %11739, %v5445_v62   ;;  %v6473_v7 = vld [vmem:[#allocation2 + $0xcb] sm:$0xff]  ;;  %v6472_v63 = vld [vmem:[#allocation2 + $0xc3] sm:$0xff] }
 0x55b   : > { %v14285_v23 = vpop.permute.xlu1 %5037  ;;  %v14287_v16 = vpop.permute.xlu0 %5032 }
 0x55c   : > { %16930 = vst [vmem:[#allocation310_spill] sm:$0xff] %v14285_v23  ;;  %16931 = vst [vmem:[#allocation311_spill] sm:$0xff] %v14287_v16  ;;  %6524 = vperm.xlu1 %11740, %v6469_v5   ;;  %6519 = vperm.xlu0 %11739, %v6468_v51   ;;  %v5694_v51 = vld [vmem:[#allocation2 + $0xf8] sm:$0xff] }
 0x55d   : > { %v5699_v16 = vld [vmem:[#allocation2 + $0x138] sm:$0xff] }
 0x55f   : > { %v14289_v17 = vpop.permute.xlu1 %5047  ;;  %v14291_v4 = vpop.permute.xlu0 %5042 }
 0x560   : > { %16932 = vst [vmem:[#allocation312_spill] sm:$0xff] %v14289_v17  ;;  %16933 = vst [vmem:[#allocation313_spill] sm:$0xff] %v14291_v4  ;;  %6534 = vperm.xlu1 %11740, %v6471_v59   ;;  %6529 = vperm.xlu0 %11739, %v6470_v37   ;;  %v5693_v4 = vld [vmem:[#allocation2 + $0xf0] sm:$0xff]  ;;  %v5700_v17 = vld [vmem:[#allocation2 + $0x140] sm:$0xff] }
 0x563   : > { %v14293_v36 = vpop.permute.xlu1 %5057  ;;  %v14295_v62 = vpop.permute.xlu0 %5052 }
 0x564   : > { %16934 = vst [vmem:[#allocation314_spill] sm:$0xff] %v14293_v36  ;;  %16935 = vst [vmem:[#allocation315_spill] sm:$0xff] %v14295_v62  ;;  %6544 = vperm.xlu1 %11740, %v6473_v7   ;;  %6539 = vperm.xlu0 %11739, %v6472_v63   ;;  %v5696_v36 = vld [vmem:[#allocation2 + $0x110] sm:$0xff]  ;;  %v5695_v62 = vld [vmem:[#allocation2 + $0x108] sm:$0xff] }
 0x567   : > { %v14297_v23 = vpop.permute.xlu1 %5067  ;;  %v14299_v5 = vpop.permute.xlu0 %5062 }
 0x568   : > { %16936 = vst [vmem:[#allocation316_spill] sm:$0xff] %v14297_v23  ;;  %16937 = vst [vmem:[#allocation317_spill] sm:$0xff] %v14299_v5  ;;  %6554 = vperm.xlu1 %11740, %v14175_v9   ;;  %6549 = vperm.xlu0 %11739, %v14177_v38   ;;  %v5698_v5 = vld [vmem:[#allocation2 + $0x128] sm:$0xff]  ;;  %v5697_v9 = vld [vmem:[#allocation2 + $0x120] sm:$0xff] }
 0x56b   : > { %v14303_v59 = vpop.permute.xlu1 %6002  ;;  %v14305_v37 = vpop.permute.xlu0 %5997 }
 0x56c   : > { %16938 = vst [vmem:[#allocation318_spill] sm:$0xff] %v14303_v59  ;;  %16939 = vst [vmem:[#allocation319_spill] sm:$0xff] %v14305_v37  ;;  %5781 = vperm.xlu1 %11740, %v5694_v51   ;;  %5776 = vperm.xlu0 %11739, %v5693_v4   ;;  %v16949_v37 = vld [vmem:[#allocation11_spill] sm:$0xff]  ;;  %v16951_v59 = vld [vmem:[#allocation13_spill] sm:$0xff] }
 0x56f   : > { %v14307_v7 = vpop.permute.xlu1 %6012  ;;  %v14309_v63 = vpop.permute.xlu0 %6007 }
 0x570   : > { %16940 = vst [vmem:[#allocation320_spill] sm:$0xff] %v14307_v7  ;;  %16941 = vst [vmem:[#allocation321_spill] sm:$0xff] %v14309_v63  ;;  %5791 = vperm.xlu1 %11740, %v5696_v36   ;;  %5786 = vperm.xlu0 %11739, %v5695_v62   ;;  %v6726_v7 = vld [vmem:[#allocation2 + $0x6c] sm:$0xff]  ;;  %v6725_v63 = vld [vmem:[#allocation2 + $0x64] sm:$0xff] }
 0x573   : > { %v14311_v23 = vpop.permute.xlu1 %6022  ;;  %v14313_v38 = vpop.permute.xlu0 %6017 }
 0x574   : > { %16942 = vst [vmem:[#allocation322_spill] sm:$0xff] %v14311_v23  ;;  %16943 = vst [vmem:[#allocation323_spill] sm:$0xff] %v14313_v38  ;;  %5801 = vperm.xlu1 %11740, %v5698_v5   ;;  %5796 = vperm.xlu0 %11739, %v5697_v9   ;;  %v11837_v5 = vld [vmem:[%s16571_s1] ss:$0 sm:$0xff]  ;;  %v16948_v9 = vld [vmem:[#allocation10_spill] sm:$0xff] }
 0x575   : > { %v657_v38 = vmul.f32 %v11837_v5, %v16948_v9  ;;  %v6728_v23 = vld [vmem:[#allocation2 + $0x84] sm:$0xff]  ;;  %v656_v27 = vmul.f32 %v11837_v5, %v16951_v59 }
 0x577   : > { %v14315_v51 = vpop.permute.xlu1 %6032  ;;  %v14317_v4 = vpop.permute.xlu0 %6027 }
 0x578   : > { %16944 = vst [vmem:[#allocation324_spill] sm:$0xff] %v14315_v51  ;;  %16945 = vst [vmem:[#allocation325_spill] sm:$0xff] %v14317_v4  ;;  %5811 = vperm.xlu1 %11740, %v5700_v17   ;;  %5806 = vperm.xlu0 %11739, %v5699_v16   ;;  %v6727_v51 = vld [vmem:[#allocation2 + $0x7c] sm:$0xff]  ;;  %v655_v4 = vmul.f32 %v11837_v5, %v16949_v37  ;;  %v16950_v17 = vld [vmem:[#allocation12_spill] sm:$0xff] }
 0x579   : > { %v658_v16 = vmul.f32 %v11837_v5, %v16950_v17  ;;  %v16959_v17 = vld [vmem:[#allocation15_spill] sm:$0xff] }
 0x57a   : > { %v659_v59 = vmul.f32 %v11837_v5, %v16959_v17  ;;  %v666_v17 = vmul.f32 %v11837_v5, %v16967_v6 }
 0x57b   : > { %v14319_v36 = vpop.permute.xlu1 %5258  ;;  %v14321_v62 = vpop.permute.xlu0 %5253 }
 0x57c   : > { %16946 = vst [vmem:[#allocation326_spill] sm:$0xff] %v14319_v36  ;;  %16947 = vst [vmem:[#allocation327_spill] sm:$0xff] %v14321_v62  ;;  %6765 = vperm.xlu1 %11740, %v6726_v7   ;;  %6760 = vperm.xlu0 %11739, %v6725_v63   ;;  %v660_v36 = vmul.f32 %v11837_v5, %v16952_v41  ;;  %v11838_v7 = vld [vmem:[%s16571_s1 + $0x1] ss:$0 sm:$0xff]  ;;  %v16953_v63 = vld [vmem:[#allocation22_spill] sm:$0xff]  ;;  %v662_v41 = vmul.f32 %v11837_v5, %v16960_v24 }
 0x57d   : > { %v917_v62 = vmul.f32 %v11838_v7, %v16953_v63  ;;  %v916_v40 = vmul.f32 %v11838_v7, %v16954_v15  ;;  %v919_v9 = vmul.f32 %v11838_v7, %v16955_v10  ;;  %v918_v0 = vmul.f32 %v11838_v7, %v16956_v28 }
 0x57e   : > { %v921_v60 = vmul.f32 %v11838_v7, %v16961_v34  ;;  %v661_v63 = vmul.f32 %v11837_v5, %v16962_v35  ;;  %v664_v15 = vmul.f32 %v11837_v5, %v16963_v8  ;;  %v920_v10 = vmul.f32 %v11838_v7, %v16964_v58 }
 0x57f   : > { %v14338_v22 = vpop.permute.xlu1 %5268  ;;  %v14340_v37 = vpop.permute.xlu0 %5263  ;;  %v923_v28 = vmul.f32 %v11838_v7, %v16965_v31  ;;  %v665_v24 = vmul.f32 %v11837_v5, %v16968_v39  ;;  %v949_v34 = vadd.f32 %v917_v62, %v656_v27  ;;  %v950_v53 = vadd.f32 %v918_v0, %v657_v38  ;;  %v16973_v39 = vld [vmem:[#allocation30_spill] sm:$0xff]  ;;  %v16974_v38 = vld [vmem:[#allocation31_spill] sm:$0xff]  ;;  %v16975_v62 = vld [vmem:[#allocation32_spill] sm:$0xff] }
 0x580   : > { %16957 = vst [vmem:[#allocation10_spill] sm:$0xff] %v14338_v22  ;;  %16958 = vst [vmem:[#allocation11_spill] sm:$0xff] %v14340_v37  ;;  %6775 = vperm.xlu1 %11740, %v6728_v23   ;;  %6770 = vperm.xlu0 %11739, %v6727_v51   ;;  %v5701_v22 = vld [vmem:[#allocation2 + $0x150] sm:$0xff]  ;;  %v663_v37 = vmul.f32 %v11837_v5, %v16966_v43  ;;  %v948_v23 = vadd.f32 %v916_v40, %v655_v4  ;;  %v16971_v58 = vmov 0.0   ;;  %v16972_v40 = vld [vmem:[#allocation29_spill] sm:$0xff] }
 0x581   : > { %v951_v51 = vadd.f32 %v919_v9, %v658_v16  ;;  %7090 = vst.msk [vmem:[#allocation4] sm:$0xff] %vm7073_vm2, %v16971_v58  ;;  %7093 = vst.msk [vmem:[#allocation4 + $0x10] sm:$0xff] %vm7073_vm2, %v16971_v58  ;;  %v953_v27 = vadd.f32 %v921_v60, %v660_v36  ;;  %v922_v43 = vmul.f32 %v11838_v7, %v16972_v40  ;;  %v5704_v16 = vld [vmem:[#allocation2 + $0x170] sm:$0xff]  ;;  %v5703_v9 = vld [vmem:[#allocation2 + $0x168] sm:$0xff] }
 0x582   : > { %7095 = vst.msk [vmem:[#allocation4 + $0x20] sm:$0xff] %vm7073_vm2, %v16971_v58  ;;  %7097 = vst.msk [vmem:[#allocation4 + $0x30] sm:$0xff] %vm7073_vm2, %v16971_v58  ;;  %v925_v6 = vmul.f32 %v11838_v7, %v16973_v39  ;;  %v952_v31 = vadd.f32 %v920_v10, %v659_v59  ;;  %v955_v0 = vadd.f32 %v923_v28, %v662_v41  ;;  %v11839_v60 = vld [vmem:[%s16571_s1 + $0x2] ss:$0 sm:$0xff]  ;;  %v16977_v36 = vld [vmem:[#allocation34_spill] sm:$0xff] }
 0x583   : > { %v14352_v35 = vpop.permute.xlu1 %5278  ;;  %v14354_v8 = vpop.permute.xlu0 %5273  ;;  %7099 = vst.msk [vmem:[#allocation4 + $0x40] sm:$0xff] %vm7073_vm2, %v16971_v58  ;;  %7101 = vst.msk [vmem:[#allocation4 + $0x50] sm:$0xff] %vm7073_vm2, %v16971_v58  ;;  %v924_v4 = vmul.f32 %v11838_v7, %v16974_v38  ;;  %v927_v5 = vmul.f32 %v11838_v7, %v16975_v62  ;;  %v1178_v40 = vmul.f32 %v11839_v60, %v16977_v36  ;;  %v16980_v59 = vld [vmem:[#allocation37_spill] sm:$0xff]  ;;  %v16981_v10 = vld [vmem:[#allocation38_spill] sm:$0xff] }
 0x584   : > { %16969 = vst [vmem:[#allocation12_spill] sm:$0xff] %v14352_v35  ;;  %16970 = vst [vmem:[#allocation13_spill] sm:$0xff] %v14354_v8  ;;  %5821 = vperm.xlu1 %11740, %v5702_v56   ;;  %5816 = vperm.xlu0 %11739, %v5701_v22   ;;  %v16976_v8 = vld [vmem:[#allocation33_spill] sm:$0xff]  ;;  %v1177_v39 = vmul.f32 %v11839_v60, %v16978_v45  ;;  %v16979_v56 = vld [vmem:[#allocation36_spill] sm:$0xff]  ;;  %v1179_v41 = vmul.f32 %v11839_v60, %v16980_v59 }
 0x585   : > { %7103 = vst.msk [vmem:[#allocation4 + $0x60] sm:$0xff] %vm7073_vm2, %v16971_v58  ;;  %7105 = vst.msk [vmem:[#allocation4 + $0x70] sm:$0xff] %vm7073_vm2, %v16971_v58  ;;  %v926_v35 = vmul.f32 %v11838_v7, %v16976_v8  ;;  %v1180_v22 = vmul.f32 %v11839_v60, %v16979_v56  ;;  %v1182_v28 = vmul.f32 %v11839_v60, %v16981_v10  ;;  %v16982_v38 = vld [vmem:[#allocation39_spill] sm:$0xff] }
 0x586   : > { %7107 = vst.msk [vmem:[#allocation4 + $0x80] sm:$0xff] %vm7073_vm2, %v16971_v58  ;;  %7109 = vst.msk [vmem:[#allocation4 + $0x90] sm:$0xff] %vm7073_vm2, %v16971_v58  ;;  %v1181_v62 = vmul.f32 %v11839_v60, %v16982_v38  ;;  %v1184_v50 = vmul.f32 %v11839_v60, %v16983_v55  ;;  %v954_v8 = vadd.f32 %v922_v43, %v661_v63  ;;  %v5705_v38 = vld [vmem:[#allocation2 + $0x180] sm:$0xff] }
 0x587   : > { %7111 = vst.msk [vmem:[#allocation4 + $0xa0] sm:$0xff] %vm7073_vm2, %v16971_v58  ;;  %7113 = vst.msk [vmem:[#allocation4 + $0xb0] sm:$0xff] %vm7073_vm2, %v16971_v58  ;;  %v14395_v14 = vpop.permute.xlu1 %5288  ;;  %v14397_v7 = vpop.permute.xlu0 %5283  ;;  %v957_v20 = vadd.f32 %v925_v6, %v664_v15  ;;  %v1183_v36 = vmul.f32 %v11839_v60, %v16986_v25  ;;  %v956_v45 = vadd.f32 %v924_v4, %v663_v37 }
 0x588   : > { %16984 = vst [vmem:[#allocation14_spill] sm:$0xff] %v14395_v14  ;;  %16985 = vst [vmem:[#allocation22_spill] sm:$0xff] %v14397_v7  ;;  %5831 = vperm.xlu1 %11740, %v5704_v16   ;;  %5826 = vperm.xlu0 %11739, %v5703_v9   ;;  %v959_v56 = vadd.f32 %v927_v5, %v666_v17  ;;  %v1186_v59 = vmul.f32 %v11839_v60, %v16987_v61  ;;  %v16989_v17 = vld [vmem:[#allocation44_spill] sm:$0xff]  ;;  %v16990_v61 = vld [vmem:[#allocation45_spill] sm:$0xff] }
 0x589   : > { %v1185_v10 = vmul.f32 %v11839_v60, %v16988_v52  ;;  %v958_v21 = vadd.f32 %v926_v35, %v665_v24  ;;  %v1210_v55 = vadd.f32 %v1178_v40, %v949_v34  ;;  %v1209_v46 = vadd.f32 %v1177_v39, %v948_v23  ;;  %v16991_v34 = vld [vmem:[#allocation46_spill] sm:$0xff]  ;;  %v16994_v5 = vld [vmem:[#allocation49_spill] sm:$0xff]  ;;  %7094 = vst.msk [vmem:[#allocation4 + $0x18] sm:$0xf] %vm7091_vm3, %v16971_v58 }
 0x58a   : > { %v1212_v14 = vadd.f32 %v1180_v22, %v951_v51  ;;  %v1211_v49 = vadd.f32 %v1179_v41, %v950_v53  ;;  %v1214_v7 = vadd.f32 %v1182_v28, %v953_v27  ;;  %v1213_v63 = vadd.f32 %v1181_v62, %v952_v31  ;;  %v11840_v53 = vld [vmem:[%s16571_s1 + $0x3] ss:$0 sm:$0xff]  ;;  %v5707_v27 = vld [vmem:[#allocation2 + $0x198] sm:$0xff]  ;;  %7096 = vst.msk [vmem:[#allocation4 + $0x28] sm:$0xf] %vm7091_vm3, %v16971_v58 }
 0x58b   : > { %v1216_v15 = vadd.f32 %v1184_v50, %v955_v0  ;;  %v14402_v43 = vpop.permute.xlu1 %6243  ;;  %v14404_v25 = vpop.permute.xlu0 %6238  ;;  %v1215_v37 = vadd.f32 %v1183_v36, %v954_v8  ;;  %v1188_v6 = vmul.f32 %v11839_v60, %v16989_v17  ;;  %v1187_v4 = vmul.f32 %v11839_v60, %v16990_v61  ;;  %v16992_v50 = vld [vmem:[#allocation47_spill] sm:$0xff]  ;;  %v5708_v35 = vld [vmem:[#allocation2 + $0x1a0] sm:$0xff]  ;;  %v16993_v31 = vld [vmem:[#allocation48_spill] sm:$0xff]  ;;  %7092 = vst.msk [vmem:[#allocation4 + $0x8] sm:$0xf] %vm7091_vm3, %v16971_v58 }
 0x58c   : > { %5841 = vperm.xlu1 %11740, %v5706_v12   ;;  %5836 = vperm.xlu0 %11739, %v5705_v38   ;;  %v1218_v52 = vadd.f32 %v1186_v59, %v957_v20  ;;  %v1217_v24 = vadd.f32 %v1185_v10, %v956_v45  ;;  %v1439_v23 = vmul.f32 %v11840_v53, %v16991_v34  ;;  %v16995_v9 = vld [vmem:[#allocation50_spill] sm:$0xff]  ;;  %v16996_v12 = vld [vmem:[#allocation51_spill] sm:$0xff]  ;;  %v16997_v20 = vld [vmem:[#allocation52_spill] sm:$0xff] }
 0x58d   : > { %v1438_v51 = vmul.f32 %v11840_v53, %v16992_v50  ;;  %v1441_v0 = vmul.f32 %v11840_v53, %v16993_v31  ;;  %v1440_v16 = vmul.f32 %v11840_v53, %v16994_v5  ;;  %v1443_v60 = vmul.f32 %v11840_v53, %v16995_v9  ;;  %v16998_v22 = vld [vmem:[#allocation53_spill] sm:$0xff]  ;;  %v16999_v28 = vld [vmem:[#allocation54_spill] sm:$0xff]  ;;  %v17000_v8 = vld [vmem:[#allocation55_spill] sm:$0xff]  ;;  %7098 = vst.msk [vmem:[#allocation4 + $0x38] sm:$0xf] %vm7091_vm3, %v16971_v58 }
 0x58e   : > { %v1442_v40 = vmul.f32 %v11840_v53, %v16996_v12  ;;  %v1445_v39 = vmul.f32 %v11840_v53, %v16997_v20  ;;  %v1444_v41 = vmul.f32 %v11840_v53, %v16998_v22  ;;  %v1447_v62 = vmul.f32 %v11840_v53, %v16999_v28  ;;  %v17002_v17 = vld [vmem:[#allocation56_spill] sm:$0xff]  ;;  %v17003_v31 = vld [vmem:[#allocation57_spill] sm:$0xff]  ;;  %v11841_v9 = vld [vmem:[%s16571_s1 + $0x4] ss:$0 sm:$0xff]  ;;  %7100 = vst.msk [vmem:[#allocation4 + $0x48] sm:$0xf] %vm7091_vm3, %v16971_v58 }
 0x58f   : > { %v1446_v36 = vmul.f32 %v11840_v53, %v17000_v8  ;;  %v14421_v45 = vpop.permute.xlu1 %6253  ;;  %v14423_v59 = vpop.permute.xlu0 %6248  ;;  %v1220_v10 = vadd.f32 %v1188_v6, %v959_v56  ;;  %v1219_v38 = vadd.f32 %v1187_v4, %v958_v21  ;;  %v1449_v61 = vmul.f32 %v11840_v53, %v17002_v17  ;;  %v17004_v12 = vld [vmem:[#allocation58_spill] sm:$0xff]  ;;  %v6729_v28 = vld [vmem:[#allocation2 + $0x94] sm:$0xff]  ;;  %7102 = vst.msk [vmem:[#allocation4 + $0x58] sm:$0xf] %vm7091_vm3, %v16971_v58 }
 0x590   : > { %17001 = vst [vmem:[#allocation23_spill] sm:$0xff] %v14423_v59  ;;  %5851 = vperm.xlu1 %11740, %v5708_v35   ;;  %5846 = vperm.xlu0 %11739, %v5707_v27   ;;  %v1471_v34 = vadd.f32 %v1439_v23, %v1210_v55  ;;  %v1470_v50 = vadd.f32 %v1438_v51, %v1209_v46  ;;  %v6730_v22 = vld [vmem:[#allocation2 + $0x9c] sm:$0xff]  ;;  %v17007_v23 = vld [vmem:[#allocation59_spill] sm:$0xff]  ;;  %v17008_v17 = vld [vmem:[#allocation60_spill] sm:$0xff] }
 0x591   : > { %v1448_v5 = vmul.f32 %v11840_v53, %v17003_v31  ;;  %v1700_v20 = vmul.f32 %v11841_v9, %v17004_v12  ;;  %v1473_v8 = vadd.f32 %v1441_v0, %v1212_v14  ;;  %v1472_v59 = vadd.f32 %v1440_v16, %v1211_v49  ;;  %v17009_v49 = vld [vmem:[#allocation61_spill] sm:$0xff]  ;;  %v17012_v16 = vld [vmem:[#allocation64_spill] sm:$0xff]  ;;  %7104 = vst.msk [vmem:[#allocation4 + $0x68] sm:$0xf] %vm7091_vm3, %v16971_v58 }
 0x592   : > { %v1475_v56 = vadd.f32 %v1443_v60, %v1214_v7  ;;  %v1474_v21 = vadd.f32 %v1442_v40, %v1213_v63  ;;  %v1477_v6 = vadd.f32 %v1445_v39, %v1216_v15  ;;  %v1476_v4 = vadd.f32 %v1444_v41, %v1215_v37  ;;  %v17010_v63 = vld [vmem:[#allocation62_spill] sm:$0xff]  ;;  %v6732_v37 = vld [vmem:[#allocation2 + $0xb4] sm:$0xff]  ;;  %7106 = vst.msk [vmem:[#allocation4 + $0x78] sm:$0xf] %vm7091_vm3, %v16971_v58 }
 0x593   : > { %v1479_v35 = vadd.f32 %v1447_v62, %v1218_v52  ;;  %v1478_v27 = vadd.f32 %v1446_v36, %v1217_v24  ;;  %v14431_v55 = vpop.permute.xlu1 %5298  ;;  %v14433_v46 = vpop.permute.xlu0 %5293  ;;  %v1481_v53 = vadd.f32 %v1449_v61, %v1220_v10  ;;  %v1699_v51 = vmul.f32 %v11841_v9, %v17007_v23  ;;  %v6731_v52 = vld [vmem:[#allocation2 + $0xac] sm:$0xff]  ;;  %v17013_v40 = vld [vmem:[#allocation65_spill] sm:$0xff]  ;;  %v17014_v41 = vld [vmem:[#allocation66_spill] sm:$0xff]  ;;  %7108 = vst.msk [vmem:[#allocation4 + $0x88] sm:$0xf] %vm7091_vm3, %v16971_v58 }
 0x594   : > { %17005 = vst [vmem:[#allocation24_spill] sm:$0xff] %v14431_v55  ;;  %17006 = vst [vmem:[#allocation25_spill] sm:$0xff] %v14433_v46  ;;  %v1702_v31 = vmul.f32 %v11841_v9, %v17008_v17  ;;  %6785 = vperm.xlu1 %11740, %v6730_v22   ;;  %6780 = vperm.xlu0 %11739, %v6729_v28   ;;  %v1480_v12 = vadd.f32 %v1448_v5, %v1219_v38  ;;  %v17011_v24 = vld [vmem:[#allocation63_spill] sm:$0xff]  ;;  %v17016_v61 = vld [vmem:[#allocation68_spill] sm:$0xff] }
 0x595   : > { %v1732_v14 = vadd.f32 %v1700_v20, %v1471_v34  ;;  %v1701_v7 = vmul.f32 %v11841_v9, %v17009_v49  ;;  %v1704_v15 = vmul.f32 %v11841_v9, %v17010_v63  ;;  %v1703_v0 = vmul.f32 %v11841_v9, %v17011_v24  ;;  %v17015_v36 = vld [vmem:[#allocation67_spill] sm:$0xff]  ;;  %v17017_v38 = vld [vmem:[#allocation69_spill] sm:$0xff]  ;;  %v11842_v17 = vld [vmem:[%s16571_s1 + $0x5] ss:$0 sm:$0xff]  ;;  %7110 = vst.msk [vmem:[#allocation4 + $0x98] sm:$0xf] %vm7091_vm3, %v16971_v58 }
 0x596   : > { %v1706_v60 = vmul.f32 %v11841_v9, %v17012_v16  ;;  %v1705_v39 = vmul.f32 %v11841_v9, %v17013_v40  ;;  %v1708_v62 = vmul.f32 %v11841_v9, %v17014_v41  ;;  %v1707_v10 = vmul.f32 %v11841_v9, %v17015_v36  ;;  %v17020_v49 = vld [vmem:[#allocation70_spill] sm:$0xff]  ;;  %7112 = vst.msk [vmem:[#allocation4 + $0xa8] sm:$0xf] %vm7091_vm3, %v16971_v58  ;;  %v17023_v36 = vld [vmem:[#allocation73_spill] sm:$0xff] }
 0x597   : > { %v1710_v22 = vmul.f32 %v11841_v9, %v17016_v61  ;;  %v1709_v34 = vmul.f32 %v11841_v9, %v17017_v38  ;;  %v14446_v5 = vpop.permute.xlu1 %5308  ;;  %v14448_v20 = vpop.permute.xlu0 %5303  ;;  %v1731_v28 = vadd.f32 %v1699_v51, %v1470_v50  ;;  %v1734_v23 = vadd.f32 %v1702_v31, %v1473_v8  ;;  %7114 = vst.msk [vmem:[#allocation4 + $0xb8] sm:$0xf] %vm7091_vm3, %v16971_v58  ;;  %v17021_v8 = vld [vmem:[#allocation71_spill] sm:$0xff]  ;;  %v17022_v31 = vld [vmem:[#allocation72_spill] sm:$0xff] }
 0x598   : > { %17018 = vst [vmem:[#allocation15_spill] sm:$0xff] %v14446_v5  ;;  %17019 = vst [vmem:[#allocation16_spill] sm:$0xff] %v14448_v20  ;;  %v1962_v63 = vmul.f32 %v11842_v17, %v17020_v49  ;;  %6795 = vperm.xlu1 %11740, %v6732_v37   ;;  %6790 = vperm.xlu0 %11739, %v6731_v52   ;;  %v1733_v50 = vadd.f32 %v1701_v7, %v1472_v59  ;;  %v6734_v52 = vld [vmem:[#allocation2 + $0xcc] sm:$0xff]  ;;  %v6733_v24 = vld [vmem:[#allocation2 + $0xc4] sm:$0xff]  ;;  %vm10080_vm3 = vcmask 844544  }
 0x599   : > { %v1736_v9 = vadd.f32 %v1704_v15, %v1475_v56  ;;  %v1961_v51 = vmul.f32 %v11842_v17, %v17021_v8  ;;  %v1964_v37 = vmul.f32 %v11842_v17, %v17022_v31  ;;  %v1735_v16 = vadd.f32 %v1703_v0, %v1474_v21  ;;  %v17026_v56 = vld [vmem:[#allocation74_spill] sm:$0xff]  ;;  %v17027_v15 = vld [vmem:[#allocation75_spill] sm:$0xff] }
 0x59a   : > { %v1738_v40 = vadd.f32 %v1706_v60, %v1477_v6  ;;  %v1737_v41 = vadd.f32 %v1705_v39, %v1476_v4  ;;  %v1963_v61 = vmul.f32 %v11842_v17, %v17023_v36  ;;  %v1740_v38 = vadd.f32 %v1708_v62, %v1479_v35  ;;  %v17028_v4 = vld [vmem:[#allocation76_spill] sm:$0xff]  ;;  %v17029_v60 = vld [vmem:[#allocation77_spill] sm:$0xff]  ;;  %v17031_v39 = vld [vmem:[#allocation79_spill] sm:$0xff] }
 0x59b   : > { %v1739_v49 = vadd.f32 %v1707_v10, %v1478_v27  ;;  %v1742_v20 = vadd.f32 %v1710_v22, %v1481_v53  ;;  %v1741_v5 = vadd.f32 %v1709_v34, %v1480_v12  ;;  %v14481_v46 = vpop.permute.xlu1 %5318  ;;  %v14483_v58 = vpop.permute.xlu0 %5313  ;;  %v1994_v59 = vadd.f32 %v1962_v63, %v1732_v14  ;;  %v17030_v53 = vld [vmem:[#allocation78_spill] sm:$0xff]  ;;  %v17032_v10 = vld [vmem:[#allocation80_spill] sm:$0xff]  ;;  %v17033_v14 = vld [vmem:[#allocation81_spill] sm:$0xff] }
 0x59c   : > { %17024 = vst [vmem:[#allocation26_spill] sm:$0xff] %v14481_v46  ;;  %17025 = vst [vmem:[#allocation17_spill] sm:$0xff] %v14483_v58  ;;  %v1966_v7 = vmul.f32 %v11842_v17, %v17026_v56  ;;  %v1965_v8 = vmul.f32 %v11842_v17, %v17027_v15  ;;  %6805 = vperm.xlu1 %11740, %v6734_v52   ;;  %6800 = vperm.xlu0 %11739, %v6733_v24   ;;  %v11843_v63 = vld [vmem:[%s16571_s1 + $0x6] ss:$0 sm:$0xff]  ;;  %v17039_v56 = vld [vmem:[#allocation85_spill] sm:$0xff] }
 0x59d   : > { %v1993_v21 = vadd.f32 %v1961_v51, %v1731_v28  ;;  %v1996_v6 = vadd.f32 %v1964_v37, %v1734_v23  ;;  %v1968_v0 = vmul.f32 %v11842_v17, %v17028_v4  ;;  %v1967_v35 = vmul.f32 %v11842_v17, %v17029_v60  ;;  %v17034_v31 = vld [vmem:[#allocation82_spill] sm:$0xff]  ;;  %v17035_v23 = vld [vmem:[#allocation83_spill] sm:$0xff]  ;;  %v17036_v37 = vld [vmem:[#allocation84_spill] sm:$0xff] }
 0x59e   : > { %v1995_v27 = vadd.f32 %v1963_v61, %v1733_v50  ;;  %v1970_v12 = vmul.f32 %v11842_v17, %v17030_v53  ;;  %v1969_v62 = vmul.f32 %v11842_v17, %v17031_v39  ;;  %v1972_v22 = vmul.f32 %v11842_v17, %v17032_v10  ;;  %v17040_v60 = vld [vmem:[#allocation86_spill] sm:$0xff]  ;;  %v17041_v39 = vld [vmem:[#allocation87_spill] sm:$0xff] }
 0x59f   : > { %v1971_v34 = vmul.f32 %v11842_v17, %v17033_v14  ;;  %v2223_v28 = vmul.f32 %v11843_v63, %v17034_v31  ;;  %v2222_v51 = vmul.f32 %v11843_v63, %v17035_v23  ;;  %v2225_v52 = vmul.f32 %v11843_v63, %v17036_v37  ;;  %v14499_v24 = vpop.permute.xlu1 %5328  ;;  %v14501_v50 = vpop.permute.xlu0 %5323  ;;  %v5955_v14 = vld [vmem:[#allocation2 + $0xf9] sm:$0xff]  ;;  %v5954_v31 = vld [vmem:[#allocation2 + $0xf1] sm:$0xff]  ;;  %v5959_v58 = vld [vmem:[#allocation2 + $0x129] sm:$0xff] }
 0x5a0   : > { %17037 = vst [vmem:[#allocation18_spill] sm:$0xff] %v14499_v24  ;;  %17038 = vst [vmem:[#allocation27_spill] sm:$0xff] %v14501_v50  ;;  %v1998_v36 = vadd.f32 %v1966_v7, %v1736_v9  ;;  %v1997_v61 = vadd.f32 %v1965_v8, %v1735_v16  ;;  %v2224_v15 = vmul.f32 %v11843_v63, %v17039_v56  ;;  %6815 = vperm.xlu1 %11740, %v14239_v1   ;;  %v17042_v50 = vld [vmem:[#allocation88_spill] sm:$0xff] }
 0x5a1   : > { %6810 = vperm.xlu0 %11739, %v14241_v29   ;;  %v2000_v17 = vadd.f32 %v1968_v0, %v1738_v40  ;;  %v1999_v4 = vadd.f32 %v1967_v35, %v1737_v41  ;;  %v2227_v53 = vmul.f32 %v11843_v63, %v17040_v60  ;;  %v2226_v10 = vmul.f32 %v11843_v63, %v17041_v39  ;;  %v17045_v41 = vld [vmem:[#allocation89_spill] sm:$0xff]  ;;  %v17046_v35 = vld [vmem:[#allocation90_spill] sm:$0xff] }
 0x5a2   : > { %v2002_v23 = vadd.f32 %v1970_v12, %v1740_v38  ;;  %v2001_v37 = vadd.f32 %v1969_v62, %v1739_v49  ;;  %v2004_v24 = vadd.f32 %v1972_v22, %v1742_v20  ;;  %v2229_v9 = vmul.f32 %v11843_v63, %v17042_v50  ;;  %v17047_v20 = vld [vmem:[#allocation91_spill] sm:$0xff]  ;;  %v17048_v62 = vld [vmem:[#allocation92_spill] sm:$0xff]  ;;  %v17049_v22 = vld [vmem:[#allocation93_spill] sm:$0xff] }
 0x5a3   : > { %v2003_v16 = vadd.f32 %v1971_v34, %v1741_v5  ;;  %v2255_v7 = vadd.f32 %v2223_v28, %v1994_v59  ;;  %v2254_v8 = vadd.f32 %v2222_v51, %v1993_v21  ;;  %v2257_v56 = vadd.f32 %v2225_v52, %v1996_v6  ;;  %v14509_v1 = vpop.permute.xlu1 %6263  ;;  %v14511_v29 = vpop.permute.xlu0 %6258  ;;  %v5957_v59 = vld [vmem:[#allocation2 + $0x111] sm:$0xff]  ;;  %v5956_v21 = vld [vmem:[#allocation2 + $0x109] sm:$0xff] }
 0x5a4   : > { %17043 = vst [vmem:[#allocation28_spill] sm:$0xff] %v14509_v1  ;;  %17044 = vst [vmem:[#allocation19_spill] sm:$0xff] %v14511_v29  ;;  %v2256_v40 = vadd.f32 %v2224_v15, %v1995_v27  ;;  %v2228_v0 = vmul.f32 %v11843_v63, %v17045_v41  ;;  %v2231_v60 = vmul.f32 %v11843_v63, %v17046_v35  ;;  %6042 = vperm.xlu1 %11740, %v5955_v14   ;;  %v11844_v27 = vld [vmem:[%s16571_s1 + $0x7] ss:$0 sm:$0xff]  ;;  %v17051_v52 = vld [vmem:[#allocation95_spill] sm:$0xff] }
 0x5a5   : > { %6037 = vperm.xlu0 %11739, %v5954_v31   ;;  %v2259_v38 = vadd.f32 %v2227_v53, %v1998_v36  ;;  %v2258_v49 = vadd.f32 %v2226_v10, %v1997_v61  ;;  %v2230_v12 = vmul.f32 %v11843_v63, %v17047_v20  ;;  %v2233_v5 = vmul.f32 %v11843_v63, %v17048_v62  ;;  %v17050_v28 = vld [vmem:[#allocation94_spill] sm:$0xff]  ;;  %v17052_v15 = vld [vmem:[#allocation96_spill] sm:$0xff]  ;;  %v17053_v61 = vld [vmem:[#allocation97_spill] sm:$0xff] }
 0x5a6   : > { %v2261_v6 = vadd.f32 %v2229_v9, %v2000_v17  ;;  %v2232_v34 = vmul.f32 %v11843_v63, %v17049_v22  ;;  %v2484_v51 = vmul.f32 %v11844_v27, %v17050_v28  ;;  %v2483_v50 = vmul.f32 %v11844_v27, %v17051_v52  ;;  %v17054_v39 = vld [vmem:[#allocation98_spill] sm:$0xff]  ;;  %v17055_v14 = vld [vmem:[#allocation99_spill] sm:$0xff]  ;;  %v17058_v35 = vld [vmem:[#allocation100_spill] sm:$0xff] }
 0x5a7   : > { %v2486_v36 = vmul.f32 %v11844_v27, %v17052_v15  ;;  %v2485_v53 = vmul.f32 %v11844_v27, %v17053_v61  ;;  %v2488_v10 = vmul.f32 %v11844_v27, %v17054_v39  ;;  %v2487_v31 = vmul.f32 %v11844_v27, %v17055_v14  ;;  %v14527_v41 = vpop.permute.xlu1 %6273  ;;  %v14529_v17 = vpop.permute.xlu0 %6268  ;;  %v17059_v28 = vld [vmem:[#allocation101_spill] sm:$0xff]  ;;  %v17060_v15 = vld [vmem:[#allocation102_spill] sm:$0xff] }
 0x5a8   : > { %17056 = vst [vmem:[#allocation20_spill] sm:$0xff] %v14527_v41  ;;  %17057 = vst [vmem:[#allocation21_spill] sm:$0xff] %v14529_v17  ;;  %v2260_v63 = vadd.f32 %v2228_v0, %v1999_v4  ;;  %v2263_v9 = vadd.f32 %v2231_v60, %v2002_v23  ;;  %v2490_v20 = vmul.f32 %v11844_v27, %v17058_v35  ;;  %6052 = vperm.xlu1 %11740, %v5957_v59   ;;  %v5958_v39 = vld [vmem:[#allocation2 + $0x121] sm:$0xff]  ;;  %v17061_v41 = vld [vmem:[#allocation103_spill] sm:$0xff] }
 0x5a9   : > { %6047 = vperm.xlu0 %11739, %v5956_v21   ;;  %v2262_v62 = vadd.f32 %v2230_v12, %v2001_v37  ;;  %v2265_v22 = vadd.f32 %v2233_v5, %v2004_v24  ;;  %v2489_v52 = vmul.f32 %v11844_v27, %v17059_v28  ;;  %v2492_v61 = vmul.f32 %v11844_v27, %v17060_v15  ;;  %v17064_v37 = vld [vmem:[#allocation104_spill] sm:$0xff]  ;;  %v17065_v5 = vld [vmem:[#allocation105_spill] sm:$0xff]  ;;  %v17074_v28 = vld [vmem:[#allocation114_spill] sm:$0xff] }
 0x5aa   : > { %v2264_v46 = vadd.f32 %v2232_v34, %v2003_v16  ;;  %v2516_v14 = vadd.f32 %v2484_v51, %v2255_v7  ;;  %v2515_v55 = vadd.f32 %v2483_v50, %v2254_v8  ;;  %v2491_v29 = vmul.f32 %v11844_v27, %v17061_v41  ;;  %v11845_v8 = vld [vmem:[%s16571_s1 + $0x8] ss:$0 sm:$0xff]  ;;  %v5960_v51 = vld [vmem:[#allocation2 + $0x139] sm:$0xff] }
 0x5ab   : > { %v2518_v17 = vadd.f32 %v2486_v36, %v2257_v56  ;;  %v2517_v4 = vadd.f32 %v2485_v53, %v2256_v40  ;;  %v2520_v23 = vadd.f32 %v2488_v10, %v2259_v38  ;;  %v2519_v0 = vadd.f32 %v2487_v31, %v2258_v49  ;;  %v14535_v60 = vpop.permute.xlu1 %6283  ;;  %v14537_v59 = vpop.permute.xlu0 %6278  ;;  %v17066_v56 = vld [vmem:[#allocation106_spill] sm:$0xff]  ;;  %v17067_v38 = vld [vmem:[#allocation107_spill] sm:$0xff]  ;;  %v17069_v53 = vld [vmem:[#allocation109_spill] sm:$0xff] }
 0x5ac   : > { %17062 = vst [vmem:[#allocation29_spill] sm:$0xff] %v14535_v60  ;;  %17063 = vst [vmem:[#allocation30_spill] sm:$0xff] %v14537_v59  ;;  %v2522_v24 = vadd.f32 %v2490_v20, %v2261_v6  ;;  %v2494_v12 = vmul.f32 %v11844_v27, %v17064_v37  ;;  %v2493_v21 = vmul.f32 %v11844_v27, %v17065_v5  ;;  %6062 = vperm.xlu1 %11740, %v5959_v58   ;;  %v5961_v34 = vld [vmem:[#allocation2 + $0x141] sm:$0xff]  ;;  %v17068_v6 = vld [vmem:[#allocation108_spill] sm:$0xff] }
 0x5ad   : > { %6057 = vperm.xlu0 %11739, %v5958_v39   ;;  %v2521_v16 = vadd.f32 %v2489_v52, %v2260_v63  ;;  %v2524_v7 = vadd.f32 %v2492_v61, %v2263_v9  ;;  %v2745_v40 = vmul.f32 %v11845_v8, %v17066_v56  ;;  %v2744_v49 = vmul.f32 %v11845_v8, %v17067_v38  ;;  %v17070_v27 = vld [vmem:[#allocation110_spill] sm:$0xff]  ;;  %v17071_v31 = vld [vmem:[#allocation111_spill] sm:$0xff]  ;;  %v17072_v63 = vld [vmem:[#allocation112_spill] sm:$0xff] }
 0x5ae   : > { %v2523_v50 = vadd.f32 %v2491_v29, %v2262_v62  ;;  %v2747_v36 = vmul.f32 %v11845_v8, %v17068_v6  ;;  %v2746_v10 = vmul.f32 %v11845_v8, %v17069_v53  ;;  %v2749_v58 = vmul.f32 %v11845_v8, %v17070_v27  ;;  %v17073_v35 = vld [vmem:[#allocation113_spill] sm:$0xff]  ;;  %v17077_v62 = vld [vmem:[#allocation115_spill] sm:$0xff]  ;;  %v17078_v38 = vld [vmem:[#allocation116_spill] sm:$0xff] }
 0x5af   : > { %v2748_v41 = vmul.f32 %v11845_v8, %v17071_v31  ;;  %v2751_v9 = vmul.f32 %v11845_v8, %v17072_v63  ;;  %v2750_v20 = vmul.f32 %v11845_v8, %v17073_v35  ;;  %v2753_v52 = vmul.f32 %v11845_v8, %v17074_v28  ;;  %v14553_v15 = vpop.permute.xlu1 %6293  ;;  %v14555_v61 = vpop.permute.xlu0 %6288  ;;  %v17079_v53 = vld [vmem:[#allocation117_spill] sm:$0xff]  ;;  %v5962_v63 = vld [vmem:[#allocation2 + $0x151] sm:$0xff] }
 0x5b0   : > { %17075 = vst [vmem:[#allocation31_spill] sm:$0xff] %v14553_v15  ;;  %17076 = vst [vmem:[#allocation32_spill] sm:$0xff] %v14555_v61  ;;  %v2526_v39 = vadd.f32 %v2494_v12, %v2265_v22  ;;  %v2525_v29 = vadd.f32 %v2493_v21, %v2264_v46  ;;  %v2752_v37 = vmul.f32 %v11845_v8, %v17077_v62  ;;  %6072 = vperm.xlu1 %11740, %v5961_v34   ;;  %v5963_v31 = vld [vmem:[#allocation2 + $0x159] sm:$0xff]  ;;  %v11846_v22 = vld [vmem:[%s16571_s1 + $0x9] ss:$0 sm:$0xff] }
 0x5b1   : > { %6067 = vperm.xlu0 %11739, %v5960_v51   ;;  %v2777_v5 = vadd.f32 %v2745_v40, %v2516_v14  ;;  %v2776_v56 = vadd.f32 %v2744_v49, %v2515_v55  ;;  %v2755_v6 = vmul.f32 %v11845_v8, %v17078_v38  ;;  %v2754_v27 = vmul.f32 %v11845_v8, %v17079_v53  ;;  %v17080_v46 = vld [vmem:[#allocation118_spill] sm:$0xff]  ;;  %v17083_v49 = vld [vmem:[#allocation119_spill] sm:$0xff]  ;;  %v17089_v53 = vld [vmem:[#allocation125_spill] sm:$0xff] }
 0x5b2   : > { %v2779_v35 = vadd.f32 %v2747_v36, %v2518_v17  ;;  %v2778_v28 = vadd.f32 %v2746_v10, %v2517_v4  ;;  %v2781_v59 = vadd.f32 %v2749_v58, %v2520_v23  ;;  %v3006_v12 = vmul.f32 %v11846_v22, %v17080_v46  ;;  %v17084_v17 = vld [vmem:[#allocation120_spill] sm:$0xff]  ;;  %v11741_v23 = vld [vmem:[%s16573_s3] ss:$0 sps:$4 sm:$0xcc]  }
 0x5b3   : > { %v2780_v21 = vadd.f32 %v2748_v41, %v2519_v0  ;;  %v2783_v34 = vadd.f32 %v2751_v9, %v2522_v24  ;;  %v2782_v51 = vadd.f32 %v2750_v20, %v2521_v16  ;;  %v2785_v14 = vadd.f32 %v2753_v52, %v2524_v7  ;;  %v14564_v55 = vpop.permute.xlu1 %5519  ;;  %v14566_v40 = vpop.permute.xlu0 %5514  ;;  %v17085_v24 = vld [vmem:[#allocation121_spill] sm:$0xff]  ;;  %v17086_v7 = vld [vmem:[#allocation122_spill] sm:$0xff]  ;;  %v5965_v58 = vld [vmem:[#allocation2 + $0x171] sm:$0xff] }
 0x5b4   : > { %17081 = vst [vmem:[#allocation33_spill] sm:$0xff] %v14564_v55  ;;  %17082 = vst [vmem:[#allocation34_spill] sm:$0xff] %v14566_v40  ;;  %v2784_v8 = vadd.f32 %v2752_v37, %v2523_v50  ;;  %v3005_v62 = vmul.f32 %v11846_v22, %v17083_v49  ;;  %v3008_v4 = vmul.f32 %v11846_v22, %v17084_v17  ;;  %6082 = vperm.xlu1 %11740, %v5963_v31   ;;  %v5964_v41 = vld [vmem:[#allocation2 + $0x169] sm:$0xff]  ;;  %v17088_v52 = vld [vmem:[#allocation124_spill] sm:$0xff] }
 0x5b5   : > { %6077 = vperm.xlu0 %11739, %v5962_v63   ;;  %v2787_v36 = vadd.f32 %v2755_v6, %v2526_v39  ;;  %v2786_v0 = vadd.f32 %v2754_v27, %v2525_v29  ;;  %v3007_v16 = vmul.f32 %v11846_v22, %v17085_v24  ;;  %v3010_v10 = vmul.f32 %v11846_v22, %v17086_v7  ;;  %v17087_v50 = vld [vmem:[#allocation123_spill] sm:$0xff]  ;;  %v17090_v63 = vld [vmem:[#allocation126_spill] sm:$0xff]  ;;  %v17094_v24 = vld [vmem:[#allocation128_spill] sm:$0xff] }
 0x5b6   : > { %v3038_v9 = vadd.f32 %v3006_v12, %v2777_v5  ;;  %v3009_v20 = vmul.f32 %v11846_v22, %v17087_v50  ;;  %v3012_v37 = vmul.f32 %v11846_v22, %v17088_v52  ;;  %v7402_v38 = vrot.slane %v11741_v23, 2  ;;  %v17091_v49 = vld [vmem:[#allocation127_spill] sm:$0xff]  ;;  %v7386_v23 = vld [vmem:[#allocation4 + $0x1] sm:$0xff]  ;;  %v17130_v15 = vld [vmem:[#allocation160_spill] sm:$0xff] }
 0x5b7   : > { %v3011_v31 = vmul.f32 %v11846_v22, %v17089_v53  ;;  %v3014_v46 = vmul.f32 %v11846_v22, %v17090_v63  ;;  %v3013_v17 = vmul.f32 %v11846_v22, %v17091_v49  ;;  %v14580_v39 = vpop.permute.xlu1 %5529  ;;  %v14582_v29 = vpop.permute.xlu0 %5524  ;;  %v3037_v6 = vadd.f32 %v3005_v62, %v2776_v56  ;;  %v7387_v7 = vld [vmem:[#allocation4 + $0x11] sm:$0xff]  ;;  %v17095_v53 = vld [vmem:[#allocation129_spill] sm:$0xff]  ;;  %v5967_v49 = vld [vmem:[#allocation2 + $0x189] sm:$0xff] }
 0x5b8   : > { %17092 = vst [vmem:[#allocation35_spill] sm:$0xff] %v14580_v39  ;;  %17093 = vst [vmem:[#allocation36_spill] sm:$0xff] %v14582_v29  ;;  %v3040_v27 = vadd.f32 %v3008_v4, %v2779_v35  ;;  %v3016_v5 = vmul.f32 %v11846_v22, %v17094_v24  ;;  %6092 = vperm.xlu1 %11740, %v5965_v58   ;;  %v7417_v12 = vsel %vm7415_vm4, %v7402_v38, 0  ;;  %v5966_v40 = vld [vmem:[#allocation2 + $0x181] sm:$0xff]  ;;  %11658 = vmatprep.subr.msk.bf16.mxu1 %vm7415_vm4, %v7402_v38  ;;  %v11847_v56 = vld [vmem:[%s16571_s1 + $0xa] ss:$0 sm:$0xff] }
 0x5b9   : > { %6087 = vperm.xlu0 %11739, %v5964_v41   ;;  %v3039_v50 = vadd.f32 %v3007_v16, %v2778_v28  ;;  %v3042_v52 = vadd.f32 %v3010_v10, %v2781_v59  ;;  %v3015_v63 = vmul.f32 %v11846_v22, %v17095_v53  ;;  %v7395_v29 = vpack.c.bf16 %v7387_v7, %v7386_v23  ;;  %v17096_v35 = vld [vmem:[#allocation130_spill] sm:$0xff]  ;;  %v17097_v4 = vld [vmem:[#allocation131_spill] sm:$0xff]  ;;  %v17098_v41 = vld [vmem:[#allocation132_spill] sm:$0xff] }
 0x5ba   : > { %v3041_v39 = vadd.f32 %v3009_v20, %v2780_v21  ;;  %v3267_v62 = vmul.f32 %v11847_v56, %v17096_v35  ;;  %v3266_v58 = vmul.f32 %v11847_v56, %v17097_v4  ;;  %v3269_v24 = vmul.f32 %v11847_v56, %v17098_v41  ;;  %11217 = vmatpush3.bf16.msra.mxu1 %v7417_v12  ;;  %v11742_v21 = vld [vmem:[%s16573_s3 + $0x10] ss:$0 sps:$4 sm:$0xcc]   ;;  %v17101_v23 = vld [vmem:[#allocation133_spill] sm:$0xff]  ;;  %v17102_v53 = vld [vmem:[#allocation134_spill] sm:$0xff] }
 0x5bb   : > { %v3044_v59 = vadd.f32 %v3012_v37, %v2783_v34  ;;  %v3043_v28 = vadd.f32 %v3011_v31, %v2782_v51  ;;  %v3046_v22 = vadd.f32 %v3014_v46, %v2785_v14  ;;  %v3045_v16 = vadd.f32 %v3013_v17, %v2784_v8  ;;  %v14594_v10 = vpop.permute.xlu1 %5539  ;;  %v14596_v38 = vpop.permute.xlu0 %5534  ;;  %11218 = vmatprep.mubr.msk.bf16.mxu1 %vm7073_vm2, %v7395_v29  ;;  %v17103_v51 = vld [vmem:[#allocation135_spill] sm:$0xff]  ;;  %v17104_v8 = vld [vmem:[#allocation136_spill] sm:$0xff]  ;;  %v5969_v31 = vld [vmem:[#allocation2 + $0x1a1] sm:$0xff] }
 0x5bc   : > { %17099 = vst [vmem:[#allocation37_spill] sm:$0xff] %v14594_v10  ;;  %17100 = vst [vmem:[#allocation38_spill] sm:$0xff] %v14596_v38  ;;  %v3048_v20 = vadd.f32 %v3016_v5, %v2787_v36  ;;  %v3268_v7 = vmul.f32 %v11847_v56, %v17101_v23  ;;  %v3271_v35 = vmul.f32 %v11847_v56, %v17102_v53  ;;  %6102 = vperm.xlu1 %11740, %v5967_v49   ;;  %v5968_v46 = vld [vmem:[#allocation2 + $0x199] sm:$0xff]  ;;  %v17106_v36 = vld [vmem:[#allocation138_spill] sm:$0xff] }
 0x5bd   : > { %6097 = vperm.xlu0 %11739, %v5966_v40   ;;  %v3047_v34 = vadd.f32 %v3015_v63, %v2786_v0  ;;  %v3270_v14 = vmul.f32 %v11847_v56, %v17103_v51  ;;  %v3273_v37 = vmul.f32 %v11847_v56, %v17104_v8  ;;  %v8300_v17 = vrot.slane %v11742_v21, 2  ;;  %v17105_v41 = vld [vmem:[#allocation137_spill] sm:$0xff]  ;;  %v17107_v23 = vld [vmem:[#allocation139_spill] sm:$0xff]  ;;  %v17108_v53 = vld [vmem:[#allocation140_spill] sm:$0xff] }
 0x5be   : > { %v3299_v29 = vadd.f32 %v3267_v62, %v3038_v9  ;;  %v3298_v12 = vadd.f32 %v3266_v58, %v3037_v6  ;;  %v3301_v4 = vadd.f32 %v3269_v24, %v3040_v27  ;;  %v3272_v38 = vmul.f32 %v11847_v56, %v17105_v41  ;;  %v17111_v6 = vld [vmem:[#allocation141_spill] sm:$0xff]  ;;  %v11848_v24 = vld [vmem:[%s16571_s1 + $0xb] ss:$0 sm:$0xff]  ;;  %v17112_v51 = vld [vmem:[#allocation142_spill] sm:$0xff] }
 0x5bf   : > { %v3275_v5 = vmul.f32 %v11847_v56, %v17106_v36  ;;  %v3274_v10 = vmul.f32 %v11847_v56, %v17107_v23  ;;  %v3277_v49 = vmul.f32 %v11847_v56, %v17108_v53  ;;  %v14610_v40 = vpop.permute.xlu1 %5549  ;;  %v14612_v0 = vpop.permute.xlu0 %5544  ;;  %11667 = vmatprep.subr.msk.bf16.mxu0 %vm7415_vm4, %v8300_v17  ;;  %v8314_v63 = vsel %vm7415_vm4, %v8300_v17, 0  ;;  %v17113_v41 = vld [vmem:[#allocation143_spill] sm:$0xff]  ;;  %v6216_v23 = vld [vmem:[#allocation2 + $0xfa] sm:$0xff] }
 0x5c0   : > { %17109 = vst [vmem:[#allocation39_spill] sm:$0xff] %v14610_v40  ;;  %17110 = vst [vmem:[#allocation40_spill] sm:$0xff] %v14612_v0  ;;  %v3300_v21 = vadd.f32 %v3268_v7, %v3039_v50  ;;  %v3303_v9 = vadd.f32 %v3271_v35, %v3042_v52  ;;  %v3276_v27 = vmul.f32 %v11847_v56, %v17111_v6  ;;  %6112 = vperm.xlu1 %11740, %v5969_v31   ;;  %v6215_v53 = vld [vmem:[#allocation2 + $0xf2] sm:$0xff]  ;;  %v17115_v7 = vld [vmem:[#allocation145_spill] sm:$0xff] }
 0x5c1   : > { %6107 = vperm.xlu0 %11739, %v5968_v46   ;;  %v3302_v62 = vadd.f32 %v3270_v14, %v3041_v39  ;;  %v3305_v58 = vadd.f32 %v3273_v37, %v3044_v59  ;;  %v3528_v8 = vmul.f32 %v11848_v24, %v17112_v51  ;;  %v3527_v36 = vmul.f32 %v11848_v24, %v17113_v41  ;;  %v17114_v50 = vld [vmem:[#allocation144_spill] sm:$0xff]  ;;  %v17116_v35 = vld [vmem:[#allocation146_spill] sm:$0xff]  ;;  %v17117_v37 = vld [vmem:[#allocation147_spill] sm:$0xff] }
 0x5c2   : > { %11307 = vmatpush3.bf16.msra.mxu0 %v8314_v63  ;;  %v3304_v17 = vadd.f32 %v3272_v38, %v3043_v28  ;;  %v3530_v52 = vmul.f32 %v11848_v24, %v17114_v50  ;;  %v3529_v56 = vmul.f32 %v11848_v24, %v17115_v7  ;;  %v3532_v31 = vmul.f32 %v11848_v24, %v17116_v35  ;;  %v17118_v0 = vld [vmem:[#allocation148_spill] sm:$0xff]  ;;  %v17119_v63 = vld [vmem:[#allocation149_spill] sm:$0xff]  ;;  %v17120_v7 = vld [vmem:[#allocation150_spill] sm:$0xff] }
 0x5c3   : > { %v3307_v39 = vadd.f32 %v3275_v5, %v3046_v22  ;;  %v3306_v59 = vadd.f32 %v3274_v10, %v3045_v16  ;;  %v3309_v14 = vadd.f32 %v3277_v49, %v3048_v20  ;;  %v3531_v46 = vmul.f32 %v11848_v24, %v17117_v37  ;;  %v14626_v6 = vpop.permute.xlu1 %6504  ;;  %v14628_v51 = vpop.permute.xlu0 %6499  ;;  %v17121_v22 = vld [vmem:[#allocation151_spill] sm:$0xff]  ;;  %v17122_v40 = vld [vmem:[#allocation152_spill] sm:$0xff]  ;;  %v17131_v1 = vld [vmem:[#allocation161_spill] sm:$0xff] }
 0x5c4   : > { %v3308_v41 = vadd.f32 %v3276_v27, %v3047_v34  ;;  %v3534_v55 = vmul.f32 %v11848_v24, %v17118_v0  ;;  %v3533_v28 = vmul.f32 %v11848_v24, %v17119_v63  ;;  %6303 = vperm.xlu1 %11740, %v6216_v23   ;;  %v3560_v38 = vadd.f32 %v3528_v8, %v3299_v29  ;;  %v6218_v10 = vld [vmem:[#allocation2 + $0x112] sm:$0xff]  ;;  %v6217_v20 = vld [vmem:[#allocation2 + $0x10a] sm:$0xff]  ;;  %v17123_v27 = vld [vmem:[#allocation153_spill] sm:$0xff] }
 0x5c5   : > { %6298 = vperm.xlu0 %11739, %v6215_v53   ;;  %v3559_v50 = vadd.f32 %v3527_v36, %v3298_v12  ;;  %v3536_v35 = vmul.f32 %v11848_v24, %v17120_v7  ;;  %v3535_v16 = vmul.f32 %v11848_v24, %v17121_v22  ;;  %v3562_v5 = vadd.f32 %v3530_v52, %v3301_v4  ;;  %v11849_v23 = vld [vmem:[%s16571_s1 + $0xc] ss:$0 sm:$0xff]  ;;  %v17124_v29 = vld [vmem:[#allocation154_spill] sm:$0xff] }
 0x5c6   : > { %v3561_v49 = vadd.f32 %v3529_v56, %v3300_v21  ;;  %v3564_v37 = vadd.f32 %v3532_v31, %v3303_v9  ;;  %v3538_v61 = vmul.f32 %v11848_v24, %v17122_v40  ;;  %v3563_v34 = vadd.f32 %v3531_v46, %v3302_v62  ;;  %v17125_v8 = vld [vmem:[#allocation155_spill] sm:$0xff]  ;;  %v17126_v9 = vld [vmem:[#allocation156_spill] sm:$0xff]  ;;  %v17128_v31 = vld [vmem:[#allocation158_spill] sm:$0xff] }
 0x5c7   : > { %v3537_v0 = vmul.f32 %v11848_v24, %v17123_v27  ;;  %v3789_v12 = vmul.f32 %v11849_v23, %v17124_v29  ;;  %v3788_v36 = vmul.f32 %v11849_v23, %v17125_v8  ;;  %v14641_v53 = vpop.permute.xlu1 %6514  ;;  %v14643_v63 = vpop.permute.xlu0 %6509  ;;  %v3566_v4 = vadd.f32 %v3534_v55, %v3305_v58  ;;  %v17127_v24 = vld [vmem:[#allocation157_spill] sm:$0xff]  ;;  %v6220_v7 = vld [vmem:[#allocation2 + $0x12a] sm:$0xff] }
 0x5c8   : > { %v3565_v21 = vadd.f32 %v3533_v28, %v3304_v17  ;;  %v3791_v52 = vmul.f32 %v11849_v23, %v17126_v9  ;;  %6313 = vperm.xlu1 %11740, %v6218_v10   ;;  %v3568_v40 = vadd.f32 %v3536_v35, %v3307_v39  ;;  %v3567_v62 = vadd.f32 %v3535_v16, %v3306_v59  ;;  %v6219_v22 = vld [vmem:[#allocation2 + $0x122] sm:$0xff]  ;;  %v17129_v29 = vld [vmem:[#allocation159_spill] sm:$0xff] }
 0x5c9   : > { %6308 = vperm.xlu0 %11739, %v6217_v20   ;;  %v3790_v56 = vmul.f32 %v11849_v23, %v17127_v24  ;;  %v3793_v46 = vmul.f32 %v11849_v23, %v17128_v31  ;;  %v3570_v27 = vadd.f32 %v3538_v61, %v3309_v14  ;;  %v3792_v8 = vmul.f32 %v11849_v23, %v17129_v29  ;;  %v17132_v10 = vld [vmem:[#allocation162_spill] sm:$0xff]  ;;  %v17135_v16 = vld [vmem:[#allocation163_spill] sm:$0xff]  ;;  %v17136_v24 = vld [vmem:[#allocation164_spill] sm:$0xff] }
 0x5ca   : > { %v3795_v60 = vmul.f32 %v11849_v23, %v17130_v15  ;;  %v3794_v55 = vmul.f32 %v11849_v23, %v17131_v1  ;;  %v3569_v58 = vadd.f32 %v3537_v0, %v3308_v41  ;;  %v3821_v17 = vadd.f32 %v3789_v12, %v3560_v38  ;;  %v17137_v31 = vld [vmem:[#allocation165_spill] sm:$0xff]  ;;  %v11850_v41 = vld [vmem:[%s16571_s1 + $0xd] ss:$0 sm:$0xff]  ;;  %v17138_v38 = vld [vmem:[#allocation166_spill] sm:$0xff] }
 0x5cb   : > { %v3820_v28 = vadd.f32 %v3788_v36, %v3559_v50  ;;  %v3797_v20 = vmul.f32 %v11849_v23, %v17132_v10  ;;  %v14652_v39 = vpop.permute.xlu1 %5559  ;;  %v14654_v59 = vpop.permute.xlu0 %5554  ;;  %v3823_v35 = vadd.f32 %v3791_v52, %v3562_v5  ;;  %v3796_v9 = vmul.f32 %v11849_v23, %v17135_v16  ;;  %v6222_v0 = vld [vmem:[#allocation2 + $0x142] sm:$0xff]  ;;  %v6221_v12 = vld [vmem:[#allocation2 + $0x13a] sm:$0xff]  ;;  %v17139_v29 = vld [vmem:[#allocation167_spill] sm:$0xff] }
 0x5cc   : > { %17133 = vst [vmem:[#allocation41_spill] sm:$0xff] %v14652_v39  ;;  %17134 = vst [vmem:[#allocation42_spill] sm:$0xff] %v14654_v59  ;;  %v3799_v61 = vmul.f32 %v11849_v23, %v17136_v24  ;;  %6323 = vperm.xlu1 %11740, %v6220_v7   ;;  %v3822_v14 = vadd.f32 %v3790_v56, %v3561_v49  ;;  %v3825_v15 = vadd.f32 %v3793_v46, %v3564_v37  ;;  %v17140_v7 = vld [vmem:[#allocation168_spill] sm:$0xff]  ;;  %v17141_v49 = vld [vmem:[#allocation169_spill] sm:$0xff] }
 0x5cd   : > { %6318 = vperm.xlu0 %11739, %v6219_v22   ;;  %v3798_v1 = vmul.f32 %v11849_v23, %v17137_v31  ;;  %v4050_v50 = vmul.f32 %v11850_v41, %v17138_v38  ;;  %v3824_v36 = vadd.f32 %v3792_v8, %v3563_v34  ;;  %v3827_v5 = vadd.f32 %v3795_v60, %v3566_v4  ;;  %v17142_v56 = vld [vmem:[#allocation170_spill] sm:$0xff]  ;;  %v17145_v59 = vld [vmem:[#allocation171_spill] sm:$0xff]  ;;  %v17146_v4 = vld [vmem:[#allocation173_spill] sm:$0xff] }
 0x5ce   : > { %v3826_v52 = vadd.f32 %v3794_v55, %v3565_v21  ;;  %v4049_v10 = vmul.f32 %v11850_v41, %v17139_v29  ;;  %v3829_v16 = vadd.f32 %v3797_v20, %v3568_v40  ;;  %v4052_v22 = vmul.f32 %v11850_v41, %v17140_v7  ;;  %v17147_v40 = vld [vmem:[#allocation174_spill] sm:$0xff]  ;;  %v6224_v55 = vld [vmem:[#allocation2 + $0x15a] sm:$0xff]  ;;  %v6223_v20 = vld [vmem:[#allocation2 + $0x152] sm:$0xff] }
 0x5cf   : > { %v4051_v37 = vmul.f32 %v11850_v41, %v17141_v49  ;;  %v4054_v23 = vmul.f32 %v11850_v41, %v17142_v56  ;;  %v14667_v46 = vpop.permute.xlu1 %5569  ;;  %v14669_v24 = vpop.permute.xlu0 %5564  ;;  %v3828_v31 = vadd.f32 %v3796_v9, %v3567_v62  ;;  %v3831_v38 = vadd.f32 %v3799_v61, %v3570_v27  ;;  %v17148_v7 = vld [vmem:[#allocation177_spill] sm:$0xff]  ;;  %v17149_v56 = vld [vmem:[#allocation178_spill] sm:$0xff] }
 0x5d0   : > { %17143 = vst [vmem:[#allocation43_spill] sm:$0xff] %v14667_v46  ;;  %17144 = vst [vmem:[#allocation44_spill] sm:$0xff] %v14669_v24  ;;  %v4053_v39 = vmul.f32 %v11850_v41, %v17145_v59  ;;  %6333 = vperm.xlu1 %11740, %v6222_v0   ;;  %v3830_v60 = vadd.f32 %v3798_v1, %v3569_v58  ;;  %v4082_v34 = vadd.f32 %v4050_v50, %v3821_v17  ;;  %v17150_v24 = vld [vmem:[#allocation181_spill] sm:$0xff]  ;;  %v17151_v61 = vld [vmem:[#allocation182_spill] sm:$0xff] }
 0x5d1   : > { %6328 = vperm.xlu0 %11739, %v6221_v12   ;;  %v4056_v21 = vmul.f32 %v11850_v41, %v17146_v4  ;;  %v4055_v8 = vmul.f32 %v11850_v41, %v17147_v40  ;;  %v4081_v29 = vadd.f32 %v4049_v10, %v3820_v28  ;;  %v4058_v49 = vmul.f32 %v11850_v41, %v17148_v7  ;;  %v11851_v28 = vld [vmem:[%s16571_s1 + $0xe] ss:$0 sm:$0xff]  ;;  %v6226_v10 = vld [vmem:[#allocation2 + $0x172] sm:$0xff] }
 0x5d2   : > { %v4057_v46 = vmul.f32 %v11850_v41, %v17149_v56  ;;  %v4060_v62 = vmul.f32 %v11850_v41, %v17150_v24  ;;  %v4084_v27 = vadd.f32 %v4052_v22, %v3823_v35  ;;  %v4083_v9 = vadd.f32 %v4051_v37, %v3822_v14  ;;  %v6225_v22 = vld [vmem:[#allocation2 + $0x16a] sm:$0xff] }
 0x5d3   : > { %v4086_v59 = vadd.f32 %v4054_v23, %v3825_v15  ;;  %v4059_v0 = vmul.f32 %v11850_v41, %v17151_v61  ;;  %v14678_v58 = vpop.permute.xlu1 %5579  ;;  %v14680_v17 = vpop.permute.xlu0 %5574  ;;  %v4085_v1 = vadd.f32 %v4053_v39, %v3824_v36  ;;  %v4311_v50 = vmul.f32 %v11851_v28, %v13870_v3 }
 0x5d4   : > { %v4310_v12 = vmul.f32 %v11851_v28, %v13872_v54  ;;  %6343 = vperm.xlu1 %11740, %v6224_v55   ;;  %v4088_v35 = vadd.f32 %v4056_v21, %v3827_v5  ;;  %v4087_v14 = vadd.f32 %v4055_v8, %v3826_v52  ;;  %v4313_v15 = vmul.f32 %v11851_v28, %v13874_v32  ;;  %v10855_v32 = vld [vmem:[%s16571_s1 + $0xf] ss:$0 sm:$0xff] }
 0x5d5   : > { %6338 = vperm.xlu0 %11739, %v6223_v20   ;;  %v4312_v41 = vmul.f32 %v11851_v28, %v13876_v26  ;;  %v4090_v37 = vadd.f32 %v4058_v49, %v3829_v16  ;;  %v4089_v39 = vadd.f32 %v4057_v46, %v3828_v31  ;;  %v4092_v36 = vadd.f32 %v4060_v62, %v3831_v38  ;;  %v6228_v31 = vld [vmem:[#allocation2 + $0x18a] sm:$0xff]  ;;  %v6227_v38 = vld [vmem:[#allocation2 + $0x182] sm:$0xff]  ;;  %v17153_v62 = vld [vmem:[#allocation208_spill] sm:$0xff] }
 0x5d6   : > { %v4315_v23 = vmul.f32 %v11851_v28, %v13878_v57  ;;  %v4091_v24 = vadd.f32 %v4059_v0, %v3830_v60  ;;  %v4314_v3 = vmul.f32 %v11851_v28, %v13880_v18  ;;  %v4317_v54 = vmul.f32 %v11851_v28, %v13884_v33  ;;  %v17152_v49 = vld [vmem:[#allocation207_spill] sm:$0xff] }
 0x5d7   : > { %v4316_v4 = vmul.f32 %v11851_v28, %v13886_v2  ;;  %v14696_v5 = vpop.permute.xlu1 %5589  ;;  %v14698_v26 = vpop.permute.xlu0 %5584  ;;  %v4343_v52 = vadd.f32 %v4311_v50, %v4082_v34  ;;  %v4342_v16 = vadd.f32 %v4310_v12, %v4081_v29  ;;  %v4319_v46 = vmul.f32 %v11851_v28, %v13890_v44 }
 0x5d8   : > { %6353 = vperm.xlu1 %11740, %v6226_v10   ;;  %v4345_v57 = vadd.f32 %v4313_v15, %v4084_v27  ;;  %v4344_v18 = vadd.f32 %v4312_v41, %v4083_v9  ;;  %v4318_v33 = vmul.f32 %v11851_v28, %v13892_v19  ;;  %v4321_v2 = vmul.f32 %v11851_v28, %v13896_v47  ;;  %v17154_v27 = vld [vmem:[#allocation209_spill] sm:$0xff]  ;;  %v17157_v15 = vld [vmem:[#allocation212_spill] sm:$0xff] }
 0x5d9   : > { %6348 = vperm.xlu0 %11739, %v6225_v22   ;;  %v4347_v60 = vadd.f32 %v4315_v23, %v4086_v59  ;;  %v4320_v21 = vmul.f32 %v11851_v28, %v13898_v13  ;;  %v4573_v40 = vmul.f32 %v10855_v32, %v14001_v48  ;;  %v4572_v34 = vmul.f32 %v10855_v32, %v14003_v42  ;;  %v14715_v59 = vld [vmem:[#allocation2 + $0x1a2] sm:$0xff] }
 0x5da   : > { %v4346_v8 = vadd.f32 %v4314_v3, %v4085_v1  ;;  %v4349_v55 = vadd.f32 %v4317_v54, %v4088_v35  ;;  %v4348_v44 = vadd.f32 %v4316_v4, %v4087_v14  ;;  %v4575_v20 = vmul.f32 %v10855_v32, %v14005_v11  ;;  %v14717_v11 = vld [vmem:[#allocation2 + $0x19a] sm:$0xff]  ;;  %v17155_v28 = vld [vmem:[#allocation210_spill] sm:$0xff]  ;;  %v17156_v35 = vld [vmem:[#allocation211_spill] sm:$0xff] }
 0x5db   : > { %v14707_v29 = vpop.permute.xlu1 %6524  ;;  %v14709_v7 = vpop.permute.xlu0 %6519  ;;  %v4351_v19 = vadd.f32 %v4319_v46, %v4090_v37  ;;  %v4574_v47 = vmul.f32 %v10855_v32, %v14007_v30  ;;  %v4577_v56 = vmul.f32 %v10855_v32, %v17152_v49  ;;  %v4350_v13 = vadd.f32 %v4318_v33, %v4089_v39  ;;  %v10856_v30 = vld [vmem:[%s16571_s1 + $0x10] ss:$0 sm:$0xff]  ;;  %v17158_v10 = vld [vmem:[#allocation213_spill] sm:$0xff]  ;;  %v17161_v46 = vld [vmem:[#allocation216_spill] sm:$0xff] }
 0x5dc   : > { %6363 = vperm.xlu1 %11740, %v6228_v31   ;;  %v4353_v48 = vadd.f32 %v4321_v2, %v4092_v36  ;;  %v4576_v42 = vmul.f32 %v10855_v32, %v17153_v62  ;;  %v4579_v9 = vmul.f32 %v10855_v32, %v17154_v27  ;;  %v4352_v61 = vadd.f32 %v4320_v21, %v4091_v24  ;;  %v17159_v24 = vld [vmem:[#allocation214_spill] sm:$0xff]  ;;  %v6477_v33 = vld [vmem:[#allocation2 + $0xfb] sm:$0xff]  ;;  %v6476_v2 = vld [vmem:[#allocation2 + $0xf3] sm:$0xff] }
 0x5dd   : > { %6358 = vperm.xlu0 %11739, %v6227_v38   ;;  %v4605_v0 = vadd.f32 %v4573_v40, %v4343_v52  ;;  %v4604_v1 = vadd.f32 %v4572_v34, %v4342_v16  ;;  %v4578_v50 = vmul.f32 %v10855_v32, %v17155_v28  ;;  %v4607_v12 = vadd.f32 %v4575_v20, %v4345_v57  ;;  %v17160_v52 = vld [vmem:[#allocation215_spill] sm:$0xff]  ;;  %v17162_v38 = vld [vmem:[#allocation217_spill] sm:$0xff]  ;;  %v17163_v40 = vld [vmem:[#allocation218_spill] sm:$0xff] }
 0x5de   : > { %v4581_v14 = vmul.f32 %v10855_v32, %v17156_v35  ;;  %v4580_v41 = vmul.f32 %v10855_v32, %v17157_v15  ;;  %v4583_v22 = vmul.f32 %v10855_v32, %v17158_v10  ;;  %v4606_v36 = vadd.f32 %v4574_v47, %v4344_v18  ;;  %v17165_v49 = vld [vmem:[#allocation220_spill] sm:$0xff]  ;;  %v14748_v28 = vld [vmem:[%s16571_s1 + $0x11] ss:$0 sm:$0xff] }
 0x5df   : > { %v14726_v37 = vpop.permute.xlu1 %6534  ;;  %v14728_v39 = vpop.permute.xlu0 %6529  ;;  %v4609_v23 = vadd.f32 %v4577_v56, %v4347_v60  ;;  %v4582_v3 = vmul.f32 %v10855_v32, %v17159_v24  ;;  %v4608_v54 = vadd.f32 %v4576_v42, %v4346_v8  ;;  %v4611_v4 = vadd.f32 %v4579_v9, %v4349_v55  ;;  %v17164_v60 = vld [vmem:[#allocation219_spill] sm:$0xff]  ;;  %v17166_v42 = vld [vmem:[#allocation221_spill] sm:$0xff]  ;;  %v17167_v9 = vld [vmem:[#allocation222_spill] sm:$0xff] }
 0x5e0   : > { %6373 = vperm.xlu1 %11740, %v14715_v59   ;;  %v4834_v16 = vmul.f32 %v10856_v30, %v17160_v52  ;;  %v4833_v57 = vmul.f32 %v10856_v30, %v17161_v46  ;;  %v4610_v31 = vadd.f32 %v4578_v50, %v4348_v44  ;;  %v4836_v21 = vmul.f32 %v10856_v30, %v17162_v38  ;;  %v17169_v35 = vld [vmem:[#allocation224_spill] sm:$0xff]  ;;  %v17170_v24 = vld [vmem:[#allocation225_spill] sm:$0xff]  ;;  %v17171_v46 = vld [vmem:[#allocation226_spill] sm:$0xff] }
 0x5e1   : > { %6368 = vperm.xlu0 %11739, %v14717_v11   ;;  %v4835_v18 = vmul.f32 %v10856_v30, %v17163_v40  ;;  %v4838_v34 = vmul.f32 %v10856_v30, %v17164_v60  ;;  %v4613_v32 = vadd.f32 %v4581_v14, %v4351_v19  ;;  %v4612_v20 = vadd.f32 %v4580_v41, %v4350_v13  ;;  %v6479_v15 = vld [vmem:[#allocation2 + $0x113] sm:$0xff]  ;;  %v6478_v41 = vld [vmem:[#allocation2 + $0x10b] sm:$0xff] }
 0x5e2   : > { %v4615_v47 = vadd.f32 %v4583_v22, %v4353_v48  ;;  %v4837_v56 = vmul.f32 %v10856_v30, %v17165_v49  ;;  %v4614_v62 = vadd.f32 %v4582_v3, %v4352_v61  ;;  %v4840_v27 = vmul.f32 %v10856_v30, %v17166_v42  ;;  %v17168_v48 = vld [vmem:[#allocation223_spill] sm:$0xff]  ;;  %v17177_v42 = vld [vmem:[#allocation232_spill] sm:$0xff] }
 0x5e3   : > { %v14739_v8 = vpop.permute.xlu1 %6544  ;;  %v14741_v55 = vpop.permute.xlu0 %6539  ;;  %v4839_v44 = vmul.f32 %v10856_v30, %v17167_v9  ;;  %v4866_v19 = vadd.f32 %v4834_v16, %v4605_v0  ;;  %v4865_v13 = vadd.f32 %v4833_v57, %v4604_v1  ;;  %v4842_v50 = vmul.f32 %v10856_v30, %v17168_v48  ;;  %v17172_v40 = vld [vmem:[#allocation227_spill] sm:$0xff]  ;;  %v17178_v9 = vld [vmem:[#allocation233_spill] sm:$0xff] }
 0x5e4   : > { %6564 = vperm.xlu1 %11740, %v6477_v33   ;;  %v4841_v14 = vmul.f32 %v10856_v30, %v17169_v35  ;;  %v4868_v61 = vadd.f32 %v4836_v21, %v4607_v12  ;;  %v4867_v10 = vadd.f32 %v4835_v18, %v4606_v36  ;;  %v4870_v22 = vadd.f32 %v4838_v34, %v4609_v23  ;;  %v17174_v12 = vld [vmem:[#allocation229_spill] sm:$0xff]  ;;  %v17176_v18 = vld [vmem:[#allocation231_spill] sm:$0xff] }
 0x5e5   : > { %6559 = vperm.xlu0 %11739, %v6476_v2   ;;  %v4844_v3 = vmul.f32 %v10856_v30, %v17170_v24  ;;  %v4869_v52 = vadd.f32 %v4837_v56, %v4608_v54  ;;  %v4843_v38 = vmul.f32 %v10856_v30, %v17171_v46  ;;  %v5095_v33 = vmul.f32 %v14748_v28, %v17172_v40  ;;  %v17173_v2 = vld [vmem:[#allocation228_spill] sm:$0xff]  ;;  %v17175_v30 = vld [vmem:[#allocation230_spill] sm:$0xff]  ;;  %v14771_v49 = vld [vmem:[%s16571_s1 + $0x12] ss:$0 sm:$0xff] }
 0x5e6   : > { %v5094_v0 = vmul.f32 %v14748_v28, %v17173_v2  ;;  %v4872_v57 = vadd.f32 %v4840_v27, %v4611_v4  ;;  %v4871_v60 = vadd.f32 %v4839_v44, %v4610_v31  ;;  %v5097_v36 = vmul.f32 %v14748_v28, %v17174_v12  ;;  %v6481_v4 = vld [vmem:[#allocation2 + $0x12b] sm:$0xff]  ;;  %v6480_v31 = vld [vmem:[#allocation2 + $0x123] sm:$0xff]  ;;  %v17183_v46 = vld [vmem:[#allocation236_spill] sm:$0xff] }
 0x5e7   : > { %v14758_v1 = vpop.permute.xlu1 %6554  ;;  %v14760_v16 = vpop.permute.xlu0 %6549  ;;  %v4874_v23 = vadd.f32 %v4842_v50, %v4613_v32  ;;  %v4873_v54 = vadd.f32 %v4841_v14, %v4612_v20  ;;  %v5096_v21 = vmul.f32 %v14748_v28, %v17175_v30  ;;  %v5099_v34 = vmul.f32 %v14748_v28, %v17176_v18  ;;  %v17179_v20 = vld [vmem:[#allocation234_spill] sm:$0xff]  ;;  %v17180_v14 = vld [vmem:[#allocation235_spill] sm:$0xff]  ;;  %v6482_v30 = vld [vmem:[#allocation2 + $0x13b] sm:$0xff] }
 0x5e8   : > { %6574 = vperm.xlu1 %11740, %v6479_v15   ;;  %v4876_v56 = vadd.f32 %v4844_v3, %v4615_v47  ;;  %v5098_v27 = vmul.f32 %v14748_v28, %v17177_v42  ;;  %v5101_v32 = vmul.f32 %v14748_v28, %v17178_v9  ;;  %v5100_v44 = vmul.f32 %v14748_v28, %v17179_v20  ;;  %v14786_v47 = vld [vmem:[%s16571_s1 + $0x13] ss:$0 sm:$0xff] }
 0x5e9   : > { %6569 = vperm.xlu0 %11739, %v6478_v41   ;;  %v14779_v48 = vadd.f32 %v4843_v38, %v4614_v62  ;;  %v5127_v50 = vadd.f32 %v5095_v33, %v4866_v19  ;;  %v5126_v35 = vadd.f32 %v5094_v0, %v4865_v13  ;;  %v5103_v15 = vmul.f32 %v14748_v28, %v17180_v14  ;;  %v17184_v62 = vld [vmem:[#allocation175_spill] sm:$0xff]  ;;  %v17185_v33 = vld [vmem:[#allocation172_spill] sm:$0xff] }
 0x5ea   : > { %v5129_v3 = vadd.f32 %v5097_v36, %v4868_v61  ;;  %v5102_v40 = vmul.f32 %v14748_v28, %v17183_v46  ;;  %v5356_v19 = vmul.f32 %v14771_v49, %v17184_v62  ;;  %v5128_v13 = vadd.f32 %v5096_v21, %v4867_v10  ;;  %v17186_v0 = vld [vmem:[#allocation176_spill] sm:$0xff]  ;;  %v6483_v36 = vld [vmem:[#allocation2 + $0x143] sm:$0xff]  ;;  %v17190_v14 = vld [vmem:[#allocation251_spill] sm:$0xff] }
 0x5eb   : > { %v14788_v41 = vpop.permute.xlu1 %5781  ;;  %v14790_v24 = vpop.permute.xlu0 %5776  ;;  %v14796_v38 = vadd.f32 %v5099_v34, %v4870_v22  ;;  %v5105_v2 = vmul.f32 %v14748_v28, %v17185_v33  ;;  %v5355_v12 = vmul.f32 %v14771_v49, %v17186_v0  ;;  %v14805_v61 = vld [vmem:[%s16571_s1 + $0x14] ss:$0 sm:$0xff]  ;;  %v14807_v18 = vadd.f32 %v5098_v27, %v4869_v52  ;;  %v17187_v22 = vld [vmem:[#allocation250_spill] sm:$0xff]  ;;  %v14826_v52 = vld [vmem:[%s16571_s1 + $0x15] ss:$0 sm:$0xff] }
 0x5ec   : > { %17181 = vst [vmem:[#allocation45_spill] sm:$0xff] %v14788_v41  ;;  %17182 = vst [vmem:[#allocation46_spill] sm:$0xff] %v14790_v24  ;;  %6584 = vperm.xlu1 %11740, %v6481_v4   ;;  %v14809_v4 = vadd.f32 %v5101_v32, %v4872_v57  ;;  %v14811_v10 = vadd.f32 %v5100_v44, %v4871_v60  ;;  %v5617_v21 = vmul.f32 %v14786_v47, %v17187_v22  ;;  %v17189_v9 = vld [vmem:[#allocation180_spill] sm:$0xff]  ;;  %v17193_v32 = vld [vmem:[#allocation278_spill] sm:$0xff] }
 0x5ed   : > { %6579 = vperm.xlu0 %11739, %v6480_v31   ;;  %v14815_v34 = vadd.f32 %v5103_v15, %v4874_v23  ;;  %v17188_v31 = vld [vmem:[#allocation179_spill] sm:$0xff]  ;;  %v5357_v20 = vmul.f32 %v14771_v49, %v17189_v9  ;;  %v5616_v46 = vmul.f32 %v14786_v47, %v17190_v14  ;;  %v14832_v23 = vadd.f32 %v5102_v40, %v4873_v54  ;;  %v17194_v62 = vld [vmem:[#allocation237_spill] sm:$0xff]  ;;  %v17196_v14 = vld [vmem:[#allocation252_spill] sm:$0xff] }
 0x5ee   : > { %v5358_v42 = vmul.f32 %v14771_v49, %v17188_v31  ;;  %v5388_v27 = vadd.f32 %v5356_v19, %v5127_v50  ;;  %v5879_v44 = vmul.f32 %v14805_v61, %v17193_v32  ;;  %v14836_v15 = vadd.f32 %v5105_v2, %v4876_v56  ;;  %v17195_v22 = vld [vmem:[#allocation279_spill] sm:$0xff]  ;;  %v17197_v40 = vld [vmem:[#allocation253_spill] sm:$0xff]  ;;  %v17198_v19 = vld [vmem:[#allocation306_spill] sm:$0xff] }
 0x5ef   : > { %v14828_v57 = vpop.permute.xlu1 %5791  ;;  %v14830_v60 = vpop.permute.xlu0 %5786  ;;  %v5104_v33 = vmul.f32 %v14748_v28, %v17194_v62  ;;  %v5387_v0 = vadd.f32 %v5355_v12, %v5126_v35  ;;  %v5878_v31 = vmul.f32 %v14805_v61, %v17195_v22  ;;  %v5619_v54 = vmul.f32 %v14786_v47, %v17196_v14  ;;  %v14851_v56 = vld [vmem:[%s16571_s1 + $0x16] ss:$0 sm:$0xff]  ;;  %v17199_v12 = vld [vmem:[#allocation307_spill] sm:$0xff]  ;;  %v17202_v32 = vld [vmem:[#allocation238_spill] sm:$0xff] }
 0x5f0   : > { %17191 = vst [vmem:[#allocation47_spill] sm:$0xff] %v14828_v57  ;;  %17192 = vst [vmem:[#allocation48_spill] sm:$0xff] %v14830_v60  ;;  %6594 = vperm.xlu1 %11740, %v6483_v36   ;;  %v5649_v9 = vadd.f32 %v5617_v21, %v5388_v27  ;;  %v5618_v50 = vmul.f32 %v14786_v47, %v17197_v40  ;;  %v6140_v36 = vmul.f32 %v14826_v52, %v17198_v19  ;;  %v17203_v14 = vld [vmem:[#allocation280_spill] sm:$0xff] }
 0x5f1   : > { %6589 = vperm.xlu0 %11739, %v6482_v30   ;;  %v5390_v28 = vadd.f32 %v5358_v42, %v5129_v3  ;;  %v5389_v35 = vadd.f32 %v5357_v20, %v5128_v13  ;;  %v5648_v2 = vadd.f32 %v5616_v46, %v5387_v0  ;;  %v6139_v30 = vmul.f32 %v14826_v52, %v17199_v12  ;;  %v14866_v3 = vld [vmem:[%s16571_s1 + $0x17] ss:$0 sm:$0xff]  ;;  %v11852_v13 = vld [vmem:[#allocation2 + $0x1a0] sm:$0xff]  ;;  %v11853_v42 = vld [vmem:[#allocation2 + $0x198] sm:$0xff] }
 0x5f2   : > { %v5360_v62 = vmul.f32 %v14771_v49, %v17202_v32  ;;  %v5911_v22 = vadd.f32 %v5879_v44, %v5649_v9  ;;  %v5881_v40 = vmul.f32 %v14805_v61, %v17203_v14  ;;  %v17204_v46 = vld [vmem:[#allocation281_spill] sm:$0xff]  ;;  %v6401_v19 = vmul.f32 %v14851_v56, %v14402_v43  ;;  %v14876_v12 = vld [vmem:[#allocation2 + $0x1b0] sm:$0xff] }
 0x5f3   : > { %v14855_v21 = vpop.permute.xlu1 %5801  ;;  %v14857_v27 = vpop.permute.xlu0 %5796  ;;  %v5910_v20 = vadd.f32 %v5878_v31, %v5648_v2  ;;  %v5880_v0 = vmul.f32 %v14805_v61, %v17204_v46  ;;  %v6400_v44 = vmul.f32 %v14851_v56, %v14404_v25  ;;  %v14874_v9 = vld [vmem:[#allocation2 + $0x1b8] sm:$0xff]  ;;  %v5651_v32 = vadd.f32 %v5619_v54, %v5390_v28 }
 0x5f4   : > { %17200 = vst [vmem:[#allocation49_spill] sm:$0xff] %v14855_v21  ;;  %17201 = vst [vmem:[#allocation50_spill] sm:$0xff] %v14857_v27  ;;  %4555 = vperm.xlu1 %11740, %v11852_v13   ;;  %v5650_v14 = vadd.f32 %v5618_v50, %v5389_v35  ;;  %v6172_v27 = vadd.f32 %v6140_v36, %v5911_v22  ;;  %v17205_v13 = vld [vmem:[#allocation308_spill] sm:$0xff]  ;;  %v17206_v2 = vld [vmem:[#allocation309_spill] sm:$0xff]  ;;  %v6662_v43 = vmul.f32 %v14866_v3, %v14626_v6 }
 0x5f5   : > { %4550 = vperm.xlu0 %11739, %v11853_v42   ;;  %v6142_v42 = vmul.f32 %v14826_v52, %v17205_v13  ;;  %v6171_v31 = vadd.f32 %v6139_v30, %v5910_v20  ;;  %v6141_v46 = vmul.f32 %v14826_v52, %v17206_v2  ;;  %v6661_v25 = vmul.f32 %v14866_v3, %v14628_v51  ;;  %v17208_v50 = vld [vmem:[#allocation239_spill] sm:$0xff]  ;;  %v14899_v51 = vld [vmem:[%s16571_s1 + $0x18] ss:$0 sm:$0xff]  ;;  %v6485_v20 = vld [vmem:[#allocation2 + $0x15b] sm:$0xff] }
 0x5f6   : > { %v5136_v54 = vadd.f32 %v5104_v33, %v14779_v48  ;;  %v5359_v36 = vmul.f32 %v14771_v49, %v17208_v50  ;;  %v5913_v28 = vadd.f32 %v5881_v40, %v5651_v32  ;;  %v5392_v35 = vadd.f32 %v5360_v62, %v14796_v38  ;;  %v6484_v48 = vld [vmem:[#allocation2 + $0x153] sm:$0xff]  ;;  %v17210_v2 = vld [vmem:[#allocation23_spill] sm:$0xff] }
 0x5f7   : > { %v14886_v21 = vpop.permute.xlu1 %5811  ;;  %v14888_v60 = vpop.permute.xlu0 %5806  ;;  %v5912_v6 = vadd.f32 %v5880_v0, %v5650_v14  ;;  %v6433_v30 = vadd.f32 %v6401_v19, %v6172_v27  ;;  %v6432_v22 = vadd.f32 %v6400_v44, %v6171_v31  ;;  %v17209_v33 = vld [vmem:[#allocation240_spill] sm:$0xff]  ;;  %v6403_v32 = vmul.f32 %v14851_v56, %v14421_v45  ;;  %v17211_v45 = vld [vmem:[#allocation241_spill] sm:$0xff] }
 0x5f8   : > { %17207 = vst [vmem:[#allocation51_spill] sm:$0xff] %v14888_v60  ;;  %4565 = vperm.xlu1 %11740, %v14874_v9   ;;  %v5362_v13 = vmul.f32 %v14771_v49, %v17209_v33  ;;  %v6174_v40 = vadd.f32 %v6142_v42, %v5913_v28  ;;  %v6402_v38 = vmul.f32 %v14851_v56, %v17210_v2 }
 0x5f9   : > { %4560 = vperm.xlu0 %11739, %v14876_v12   ;;  %v6173_v62 = vadd.f32 %v6141_v46, %v5912_v6  ;;  %v6694_v27 = vadd.f32 %v6662_v43, %v6433_v30  ;;  %v6693_v0 = vadd.f32 %v6661_v25, %v6432_v22  ;;  %v6664_v19 = vmul.f32 %v14866_v3, %v14641_v53  ;;  %v17212_v46 = vld [vmem:[#allocation242_spill] sm:$0xff]  ;;  %v17213_v25 = vld [vmem:[#allocation243_spill] sm:$0xff]  ;;  %v17214_v6 = vld [vmem:[#allocation244_spill] sm:$0xff] }
 0x5fa   : > { %v6663_v31 = vmul.f32 %v14866_v3, %v14643_v63  ;;  %v5361_v28 = vmul.f32 %v14771_v49, %v17211_v45  ;;  %v5364_v43 = vmul.f32 %v14771_v49, %v17212_v46  ;;  %v5363_v53 = vmul.f32 %v14771_v49, %v17213_v25  ;;  %v6487_v22 = vld [vmem:[#allocation2 + $0x173] sm:$0xff]  ;;  %v17215_v45 = vld [vmem:[#allocation245_spill] sm:$0xff]  ;;  %v17216_v46 = vld [vmem:[#allocation262_spill] sm:$0xff] }
 0x5fb   : > { %v6766_v44 = vpop.permute.xlu1 %6765  ;;  %v6761_v14 = vpop.permute.xlu0 %6760  ;;  %v5366_v30 = vmul.f32 %v14771_v49, %v17214_v6  ;;  %v6435_v63 = vadd.f32 %v6403_v32, %v6174_v40  ;;  %v6434_v33 = vadd.f32 %v6402_v38, %v6173_v62  ;;  %v5365_v60 = vmul.f32 %v14771_v49, %v17215_v45  ;;  %v14930_v25 = vld [vmem:[%s16572_s2] ss:$0 sm:$0xff]  ;;  %v6488_v6 = vld [vmem:[#allocation2 + $0x183] sm:$0xff]  ;;  %v17222_v45 = vld [vmem:[#allocation268_spill] sm:$0xff] }
 0x5fc   : > { %v6923_v50 = vmul.f32 %v14899_v51, %v6766_v44  ;;  %v6922_v42 = vmul.f32 %v14899_v51, %v6761_v14  ;;  %6604 = vperm.xlu1 %11740, %v6485_v20   ;;  %v6486_v14 = vld [vmem:[#allocation2 + $0x16b] sm:$0xff]  ;;  %v5391_v20 = vadd.f32 %v5359_v36, %v14807_v18  ;;  %v5621_v57 = vmul.f32 %v14786_v47, %v17216_v46 }
 0x5fd   : > { %6599 = vperm.xlu0 %11739, %v6484_v48   ;;  %v5394_v48 = vadd.f32 %v5362_v13, %v14809_v4  ;;  %v6696_v38 = vadd.f32 %v6664_v19, %v6435_v63  ;;  %v6695_v62 = vadd.f32 %v6663_v31, %v6434_v33  ;;  %v5393_v4 = vadd.f32 %v5361_v28, %v14811_v10  ;;  %v17217_v33 = vld [vmem:[#allocation263_spill] sm:$0xff]  ;;  %v17218_v10 = vld [vmem:[#allocation264_spill] sm:$0xff]  ;;  %v17219_v28 = vld [vmem:[#allocation265_spill] sm:$0xff] }
 0x5fe   : > { %v6955_v2 = vadd.f32 %v6923_v50, %v6694_v27  ;;  %v6954_v44 = vadd.f32 %v6922_v42, %v6693_v0  ;;  %v5396_v49 = vadd.f32 %v5364_v43, %v14815_v34  ;;  %v5395_v36 = vadd.f32 %v5363_v53, %v14832_v23  ;;  %v6489_v0 = vld [vmem:[#allocation2 + $0x18b] sm:$0xff] }
 0x5ff   : > { %v6776_v40 = vpop.permute.xlu1 %6775  ;;  %v6771_v32 = vpop.permute.xlu0 %6770  ;;  %v5398_v13 = vadd.f32 %v5366_v30, %v14836_v15  ;;  %v5397_v63 = vadd.f32 %v5365_v60, %v5136_v54  ;;  %v5623_v34 = vmul.f32 %v14786_v47, %v17218_v10  ;;  %v5622_v23 = vmul.f32 %v14786_v47, %v17219_v28  ;;  %v17220_v30 = vld [vmem:[#allocation266_spill] sm:$0xff]  ;;  %v17221_v54 = vld [vmem:[#allocation267_spill] sm:$0xff] }
 0x600   : > { %v6925_v27 = vmul.f32 %v14899_v51, %v6776_v40  ;;  %v6924_v18 = vmul.f32 %v14899_v51, %v6771_v32  ;;  %6614 = vperm.xlu1 %11740, %v6487_v22   ;;  %v6994_v50 = vadd.f32 %v14930_v25, %v6955_v2  ;;  %v6993_v19 = vadd.f32 %v14930_v25, %v6954_v44  ;;  %v17223_v40 = vld [vmem:[#allocation269_spill] sm:$0xff]  ;;  %v17225_v28 = vld [vmem:[#allocation291_spill] sm:$0xff] }
 0x601   : > { %6609 = vperm.xlu0 %11739, %v6486_v14   ;;  %v5620_v22 = vmul.f32 %v14786_v47, %v17217_v33  ;;  %v5653_v53 = vadd.f32 %v5621_v57, %v5392_v35  ;;  %v5625_v2 = vmul.f32 %v14786_v47, %v17220_v30  ;;  %v5624_v14 = vmul.f32 %v14786_v47, %v17221_v54  ;;  %v14962_v35 = vld [vmem:[#allocation2 + $0x1a3] sm:$0xff] }
 0x602   : > { %v6957_v31 = vadd.f32 %v6925_v27, %v6696_v38  ;;  %v6956_v42 = vadd.f32 %v6924_v18, %v6695_v62  ;;  %v5627_v46 = vmul.f32 %v14786_v47, %v17222_v45  ;;  %v5626_v32 = vmul.f32 %v14786_v47, %v17223_v40  ;;  %v17224_v38 = vld [vmem:[#allocation290_spill] sm:$0xff] }
 0x603   : > { %v14946_v15 = vpop.permute.xlu1 %5821  ;;  %v14948_v43 = vpop.permute.xlu0 %5816  ;;  %v5883_v57 = vmul.f32 %v14805_v61, %v17224_v38  ;;  %v7026_v62 = vmax.f32 %v6994_v50, 0.0  ;;  %v7025_v27 = vmax.f32 %v6993_v19, 0.0  ;;  %v5655_v33 = vadd.f32 %v5623_v34, %v5394_v48  ;;  %v17227_v48 = vld [vmem:[#allocation293_spill] sm:$0xff] }
 0x604   : > { %v6996_v44 = vadd.f32 %v14930_v25, %v6957_v31  ;;  %v6995_v60 = vadd.f32 %v14930_v25, %v6956_v42  ;;  %6624 = vperm.xlu1 %11740, %v6489_v0   ;;  %v14964_v0 = vld [vmem:[#allocation2 + $0x19b] sm:$0xff]  ;;  %v5652_v42 = vadd.f32 %v5620_v22, %v5391_v20  ;;  %v5654_v10 = vadd.f32 %v5622_v23, %v5393_v4  ;;  %v17228_v23 = vld [vmem:[#allocation294_spill] sm:$0xff] }
 0x605   : > { %6619 = vperm.xlu0 %11739, %v6488_v6   ;;  %v5882_v30 = vmul.f32 %v14805_v61, %v17225_v28  ;;  %v5657_v45 = vadd.f32 %v5625_v2, %v5396_v49  ;;  %v17226_v6 = vld [vmem:[#allocation292_spill] sm:$0xff]  ;;  %v5658_v20 = vadd.f32 %v5626_v32, %v5397_v63  ;;  %v5884_v4 = vmul.f32 %v14805_v61, %v17227_v48  ;;  %v6738_v22 = vld [vmem:[#allocation2 + $0xfc] sm:$0xff]  ;;  %v17229_v2 = vld [vmem:[#allocation295_spill] sm:$0xff] }
 0x606   : > { %v7028_v18 = vmax.f32 %v6996_v44, 0.0  ;;  %v7027_v31 = vmax.f32 %v6995_v60, 0.0  ;;  %v5885_v40 = vmul.f32 %v14805_v61, %v17226_v6  ;;  %v5656_v44 = vadd.f32 %v5624_v14, %v5395_v36  ;;  %v6737_v36 = vld [vmem:[#allocation2 + $0xf4] sm:$0xff]  ;;  %v17233_v32 = vld [vmem:[#allocation319_spill] sm:$0xff] }
 0x607   : > { %v14968_v54 = vpop.permute.xlu1 %5831  ;;  %v14970_v47 = vpop.permute.xlu0 %5826  ;;  %v5659_v60 = vadd.f32 %v5627_v46, %v5398_v13  ;;  %v5915_v34 = vadd.f32 %v5883_v57, %v5653_v53  ;;  %v5887_v49 = vmul.f32 %v14805_v61, %v17228_v23  ;;  %v5886_v38 = vmul.f32 %v14805_v61, %v17229_v2  ;;  %v17231_v63 = vld [vmem:[#allocation296_spill] sm:$0xff]  ;;  %v17232_v46 = vld [vmem:[#allocation297_spill] sm:$0xff] }
 0x608   : > { %v7058_v50 = vmax.f32 %v7026_v62, %v7028_v18  ;;  %v7057_v19 = vmax.f32 %v7025_v27, %v7027_v31  ;;  %6634 = vperm.xlu1 %11740, %v14962_v35   ;;  %v17230_v62 = vld [vmem:[#allocation318_spill] sm:$0xff]  ;;  %v5914_v13 = vadd.f32 %v5882_v30, %v5652_v42  ;;  %v5889_v14 = vmul.f32 %v14805_v61, %v17231_v63  ;;  %v17234_v6 = vld [vmem:[#allocation320_spill] sm:$0xff] }
 0x609   : > { %6629 = vperm.xlu0 %11739, %v14964_v0   ;;  %v6144_v27 = vmul.f32 %v14826_v52, %v17230_v62  ;;  %v5888_v53 = vmul.f32 %v14805_v61, %v17232_v46  ;;  %v6143_v57 = vmul.f32 %v14826_v52, %v17233_v32  ;;  %v5917_v28 = vadd.f32 %v5885_v40, %v5655_v33  ;;  %v17236_v30 = vld [vmem:[#allocation28_spill] sm:$0xff]  ;;  %v17237_v61 = vld [vmem:[#allocation322_spill] sm:$0xff]  ;;  %v17238_v62 = vld [vmem:[#allocation323_spill] sm:$0xff] }
 0x60a   : > { %7075 = vst.msk [vmem:[#allocation3 + $0x8] sm:$0xff] %vm7073_vm2, %v7058_v50  ;;  %7074 = vst.msk [vmem:[#allocation3] sm:$0xff] %vm7073_vm2, %v7057_v19  ;;  %v6146_v50 = vmul.f32 %v14826_v52, %v17234_v6  ;;  %v17235_v19 = vld [vmem:[#allocation321_spill] sm:$0xff]  ;;  %v6405_v48 = vmul.f32 %v14851_v56, %v17236_v30  ;;  %v5916_v23 = vadd.f32 %v5884_v4, %v5654_v10  ;;  %v17239_v46 = vld [vmem:[#allocation19_spill] sm:$0xff] }
 0x60b   : > { %v14992_v18 = vpop.permute.xlu1 %5841  ;;  %v14994_v31 = vpop.permute.xlu0 %5836  ;;  %v6145_v42 = vmul.f32 %v14826_v52, %v17235_v19  ;;  %v6148_v2 = vmul.f32 %v14826_v52, %v17237_v61  ;;  %v6147_v63 = vmul.f32 %v14826_v52, %v17238_v62  ;;  %v6404_v33 = vmul.f32 %v14851_v56, %v17239_v46  ;;  %v6740_v40 = vld [vmem:[#allocation2 + $0x114] sm:$0xff]  ;;  %v6739_v30 = vld [vmem:[#allocation2 + $0x10c] sm:$0xff] }
 0x60c   : > { %6825 = vperm.xlu1 %11740, %v6738_v22   ;;  %v5919_v32 = vadd.f32 %v5887_v49, %v5657_v45  ;;  %v5918_v6 = vadd.f32 %v5886_v38, %v5656_v44  ;;  %v6176_v24 = vadd.f32 %v6144_v27, %v5915_v34  ;;  %v6666_v19 = vmul.f32 %v14866_v3, %v14707_v29  ;;  %v6742_v34 = vld [vmem:[#allocation2 + $0x12c] sm:$0xff]  ;;  %v6741_v49 = vld [vmem:[#allocation2 + $0x124] sm:$0xff] }
 0x60d   : > { %6820 = vperm.xlu0 %11739, %v6737_v36   ;;  %v15010_v22 = vadd.f32 %v5889_v14, %v5659_v60  ;;  %v15012_v10 = vadd.f32 %v5888_v53, %v5658_v20  ;;  %v6175_v4 = vadd.f32 %v6143_v57, %v5914_v13  ;;  %v6665_v61 = vmul.f32 %v14866_v3, %v14709_v7  ;;  %v17242_v38 = vld [vmem:[#allocation20_spill] sm:$0xff] }
 0x60e   : > { %v6178_v36 = vadd.f32 %v6146_v50, %v5917_v28  ;;  %v6177_v45 = vadd.f32 %v6145_v42, %v5916_v23  ;;  %v6437_v44 = vadd.f32 %v6405_v48, %v6176_v24  ;;  %v15020_v29 = vadd.f32 %v6148_v2, %v5919_v32  ;;  %v17243_v53 = vld [vmem:[#allocation324_spill] sm:$0xff]  ;;  %v17244_v24 = vld [vmem:[#allocation21_spill] sm:$0xff] }
 0x60f   : > { %v15016_v62 = vpop.permute.xlu1 %5851  ;;  %v15018_v46 = vpop.permute.xlu0 %5846  ;;  %v15022_v60 = vadd.f32 %v6147_v63, %v5918_v6  ;;  %v6436_v20 = vadd.f32 %v6404_v33, %v6175_v4  ;;  %v6407_v27 = vmul.f32 %v14851_v56, %v17242_v38  ;;  %v6150_v57 = vmul.f32 %v14826_v52, %v17243_v53  ;;  %v6744_v4 = vld [vmem:[#allocation2 + $0x144] sm:$0xff] }
 0x610   : > { %17240 = vst [vmem:[#allocation52_spill] sm:$0xff] %v15016_v62  ;;  %17241 = vst [vmem:[#allocation53_spill] sm:$0xff] %v15018_v46  ;;  %6835 = vperm.xlu1 %11740, %v6740_v40   ;;  %v6406_v28 = vmul.f32 %v14851_v56, %v17244_v24  ;;  %v6698_v50 = vadd.f32 %v6666_v19, %v6437_v44  ;;  %v6668_v33 = vmul.f32 %v14866_v3, %v14726_v37 }
 0x611   : > { %v7115_v7 = vld [vmem:[#allocation3] sm:$0x1]  ;;  %v7123_v13 = vld [vmem:[#allocation3 + $0x1] sm:$0x1]  ;;  %v7149_v14 = vld [vmem:[#allocation3 + $0x2] sm:$0x1]  ;;  %6830 = vperm.xlu0 %11739, %v6739_v30   ;;  %v6697_v63 = vadd.f32 %v6665_v61, %v6436_v20  ;;  %v6667_v24 = vmul.f32 %v14866_v3, %v14728_v39 }
 0x612   : > { %v7131_v42 = vmax.f32 %v7115_v7, %v7123_v13  ;;  %v7157_v48 = vld [vmem:[#allocation3 + $0x3] sm:$0x1]  ;;  %v7181_v23 = vld [vmem:[#allocation3 + $0x4] sm:$0x1]  ;;  %v7189_v2 = vld [vmem:[#allocation3 + $0x5] sm:$0x1] }
 0x613   : > { %v7165_v40 = vmax.f32 %v7149_v14, %v7157_v48  ;;  %v6786_v32 = vpop.permute.xlu1 %6785  ;;  %v6781_v6 = vpop.permute.xlu0 %6780  ;;  %v7197_v30 = vmax.f32 %v7181_v23, %v7189_v2  ;;  %v7213_v38 = vld [vmem:[#allocation3 + $0x6] sm:$0x1]  ;;  %v7221_v41 = vld [vmem:[#allocation3 + $0x7] sm:$0x1]  ;;  %v7245_v53 = vld [vmem:[#allocation3 + $0x8] sm:$0x1]  ;;  %v6439_v48 = vadd.f32 %v6407_v27, %v6178_v36 }
 0x614   : > { %v6927_v19 = vmul.f32 %v14899_v51, %v6786_v32  ;;  %v6926_v44 = vmul.f32 %v14899_v51, %v6781_v6  ;;  %6845 = vperm.xlu1 %11740, %v6742_v34   ;;  %v7229_v61 = vmax.f32 %v7213_v38, %v7221_v41  ;;  %v7253_v20 = vld [vmem:[#allocation3 + $0x9] sm:$0x1]  ;;  %v7277_v7 = vld [vmem:[#allocation3 + $0xa] sm:$0x1]  ;;  %v7285_v37 = vld [vmem:[#allocation3 + $0xb] sm:$0x1]  ;;  %v6438_v41 = vadd.f32 %v6406_v28, %v6177_v45 }
 0x615   : > { %7141 = vst.msk [vmem:[#allocation4 + $0x22] sm:$0x1] %vm7140_vm5, %v7131_v42  ;;  %v17245_v13 = vld [vmem:[#allocation325_spill] sm:$0xff]  ;;  %6840 = vperm.xlu0 %11739, %v6741_v49   ;;  %7205 = vst.msk [vmem:[#allocation4 + $0x24] sm:$0x1] %vm7140_vm5, %v7197_v30  ;;  %v7261_v23 = vmax.f32 %v7245_v53, %v7253_v20  ;;  %v7293_v39 = vmax.f32 %v7277_v7, %v7285_v37  ;;  %v17247_v27 = vld [vmem:[#allocation30_spill] sm:$0xff]  ;;  %v6700_v28 = vadd.f32 %v6668_v33, %v6439_v48 }
 0x616   : > { %v6149_v14 = vmul.f32 %v14826_v52, %v17245_v13  ;;  %v7309_v2 = vld [vmem:[#allocation3 + $0xc] sm:$0x1]  ;;  %v7317_v32 = vld [vmem:[#allocation3 + $0xd] sm:$0x1]  ;;  %v7341_v46 = vld [vmem:[#allocation3 + $0xe] sm:$0x1]  ;;  %v6959_v34 = vadd.f32 %v6927_v19, %v6698_v50  ;;  %v6958_v6 = vadd.f32 %v6926_v44, %v6697_v63  ;;  %v6182_v52 = vadd.f32 %v6150_v57, %v15010_v22 }
 0x617   : > { %7173 = vst.msk [vmem:[#allocation4 + $0x23] sm:$0x1] %vm7140_vm5, %v7165_v40  ;;  %v6743_v38 = vld [vmem:[#allocation2 + $0x13c] sm:$0xff]  ;;  %7237 = vst.msk [vmem:[#allocation4 + $0x25] sm:$0x1] %vm7140_vm5, %v7229_v61  ;;  %v7325_v42 = vmax.f32 %v7309_v2, %v7317_v32  ;;  %v6408_v30 = vmul.f32 %v14851_v56, %v17247_v27  ;;  %v6796_v53 = vpop.permute.xlu1 %6795  ;;  %v6791_v20 = vpop.permute.xlu0 %6790  ;;  %v6699_v50 = vadd.f32 %v6667_v24, %v6438_v41  ;;  %v17248_v57 = vld [vmem:[#allocation31_spill] sm:$0xff] }
 0x618   : > { %v7349_v62 = vld [vmem:[#allocation3 + $0xf] sm:$0x1]  ;;  %v17246_v36 = vld [vmem:[#allocation29_spill] sm:$0xff]  ;;  %7269 = vst.msk [vmem:[#allocation4 + $0x26] sm:$0x1] %vm7140_vm5, %v7261_v23  ;;  %v6929_v63 = vmul.f32 %v14899_v51, %v6796_v53  ;;  %v6928_v40 = vmul.f32 %v14899_v51, %v6791_v20  ;;  %6855 = vperm.xlu1 %11740, %v6744_v4   ;;  %v6181_v22 = vadd.f32 %v6149_v14, %v15012_v10  ;;  %v17249_v7 = vld [vmem:[#allocation32_spill] sm:$0xff] }
 0x619   : > { %v6409_v49 = vmul.f32 %v14851_v56, %v17246_v36  ;;  %7301 = vst.msk [vmem:[#allocation4 + $0x27] sm:$0x1] %vm7140_vm5, %v7293_v39  ;;  %v7357_v45 = vmax.f32 %v7341_v46, %v7349_v62  ;;  %7333 = vst.msk [vmem:[#allocation4 + $0x28] sm:$0x1] %vm7140_vm5, %v7325_v42  ;;  %v6411_v19 = vmul.f32 %v14851_v56, %v17248_v57  ;;  %6850 = vperm.xlu0 %11739, %v6743_v38   ;;  %v11854_v2 = vld [vmem:[#allocation2 + $0x1a1] sm:$0xff]  ;;  %v11855_v41 = vld [vmem:[#allocation2 + $0x199] sm:$0xff] }
 0x61a   : > { %v6670_v44 = vmul.f32 %v14866_v3, %v14739_v8  ;;  %v6669_v62 = vmul.f32 %v14866_v3, %v14741_v55  ;;  %v6998_v46 = vadd.f32 %v14930_v25, %v6959_v34  ;;  %v6997_v33 = vadd.f32 %v14930_v25, %v6958_v6  ;;  %v8284_v36 = vld [vmem:[#allocation4 + $0x14] sm:$0xff] }
 0x61b   : > { %7365 = vst.msk [vmem:[#allocation4 + $0x29] sm:$0x1] %vm7140_vm5, %v7357_v45  ;;  %v6961_v4 = vadd.f32 %v6929_v63, %v6700_v28  ;;  %v6960_v24 = vadd.f32 %v6928_v40, %v6699_v50  ;;  %v6441_v10 = vadd.f32 %v6409_v49, %v15020_v29  ;;  %v6440_v61 = vadd.f32 %v6408_v30, %v15022_v60  ;;  %v6806_v55 = vpop.permute.xlu1 %6805  ;;  %v6801_v13 = vpop.permute.xlu0 %6800  ;;  %v15076_v49 = vld [vmem:[#allocation2 + $0x1b1] sm:$0xff] }
 0x61c   : > { %v6410_v37 = vmul.f32 %v14851_v56, %v17249_v7  ;;  %v6672_v8 = vmul.f32 %v14866_v3, %v14758_v1  ;;  %v6931_v23 = vmul.f32 %v14899_v51, %v6806_v55  ;;  %v6930_v39 = vmul.f32 %v14899_v51, %v6801_v13  ;;  %4816 = vperm.xlu1 %11740, %v11854_v2   ;;  %v15074_v1 = vld [vmem:[#allocation2 + $0x1b9] sm:$0xff]  ;;  %v6747_v55 = vld [vmem:[#allocation2 + $0x16c] sm:$0xff] }
 0x61d   : > { %v7000_v14 = vadd.f32 %v14930_v25, %v6961_v4  ;;  %v6999_v48 = vadd.f32 %v14930_v25, %v6960_v24  ;;  %v6443_v29 = vadd.f32 %v6411_v19, %v6182_v52  ;;  %v6702_v60 = vadd.f32 %v6670_v44, %v6441_v10  ;;  %4811 = vperm.xlu0 %11739, %v11855_v41   ;;  %v15078_v45 = vld [vmem:[#allocation4 + $0x12] sm:$0xff]  ;;  %v6746_v44 = vld [vmem:[#allocation2 + $0x15c] sm:$0xff] }
 0x61e   : > { %v6701_v32 = vadd.f32 %v6669_v62, %v6440_v61  ;;  %v6671_v56 = vmul.f32 %v14866_v3, %v14760_v16  ;;  %v7030_v34 = vmax.f32 %v6998_v46, 0.0  ;;  %v7029_v6 = vmax.f32 %v6997_v33, 0.0  ;;  %17250 = vst [vmem:[#allocation54_spill] sm:$0xff] %v15078_v45  ;;  %v6745_v62 = vld [vmem:[#allocation2 + $0x154] sm:$0xff]  ;;  %v17283_v46 = vld [vmem:[#allocation286_spill] sm:$0xff] }
 0x61f   : > { %v7032_v38 = vmax.f32 %v7000_v14, 0.0  ;;  %v7031_v42 = vmax.f32 %v6999_v48, 0.0  ;;  %v6442_v27 = vadd.f32 %v6410_v37, %v6181_v22  ;;  %v6963_v30 = vadd.f32 %v6931_v23, %v6702_v60  ;;  %v6816_v52 = vpop.permute.xlu1 %6815  ;;  %v6749_v60 = vld [vmem:[#allocation2 + $0x184] sm:$0xff] }
 0x620   : > { %v6962_v53 = vadd.f32 %v6930_v39, %v6701_v32  ;;  %v6811_v20 = vpop.permute.xlu0 %6810  ;;  %v6704_v28 = vadd.f32 %v6672_v8, %v6443_v29  ;;  %4826 = vperm.xlu1 %11740, %v15074_v1   ;;  %v6933_v19 = vmul.f32 %v14899_v51, %v6816_v52  ;;  %v6748_v8 = vld [vmem:[#allocation2 + $0x174] sm:$0xff]  ;;  %v6750_v29 = vld [vmem:[#allocation2 + $0x18c] sm:$0xff] }
 0x621   : > { %v7060_v16 = vmax.f32 %v7030_v34, %v7032_v38  ;;  %v7059_v3 = vmax.f32 %v7029_v6, %v7031_v42  ;;  %v6703_v40 = vadd.f32 %v6671_v56, %v6442_v27  ;;  %v6932_v22 = vmul.f32 %v14899_v51, %v6811_v20  ;;  %4821 = vperm.xlu0 %11739, %v15076_v49  }
 0x622   : > { %v8285_v50 = vld [vmem:[#allocation4 + $0x24] sm:$0xff]  ;;  %v7002_v33 = vadd.f32 %v14930_v25, %v6963_v30  ;;  %v7001_v4 = vadd.f32 %v14930_v25, %v6962_v53  ;;  %v6965_v24 = vadd.f32 %v6933_v19, %v6704_v28 }
 0x623   : > { %v15081_v63 = vld [vmem:[#allocation4 + $0x22] sm:$0xff]  ;;  %v8293_v57 = vpack.c.bf16 %v8285_v50, %v8284_v36  ;;  %7077 = vst.msk [vmem:[#allocation3 + $0x18] sm:$0xff] %vm7073_vm2, %v7060_v16  ;;  %7076 = vst.msk [vmem:[#allocation3 + $0x10] sm:$0xff] %vm7073_vm2, %v7059_v3  ;;  %v6964_v10 = vadd.f32 %v6932_v22, %v6703_v40  ;;  %v15093_v51 = vpop.permute.xlu1 %6042 }
 0x624   : > { %17251 = vst [vmem:[#allocation55_spill] sm:$0xff] %v15081_v63  ;;  %17252 = vst [vmem:[#allocation56_spill] sm:$0xff] %v15093_v51  ;;  %v15095_v61 = vpop.permute.xlu0 %6037  ;;  %6865 = vperm.xlu1 %11740, %v6746_v44   ;;  %v7004_v7 = vadd.f32 %v14930_v25, %v6965_v24  ;;  %v7034_v13 = vmax.f32 %v7002_v33, 0.0  ;;  %v7033_v14 = vmax.f32 %v7001_v4, 0.0  ;;  %v15109_v3 = vld [vmem:[#allocation2 + $0x1a4] sm:$0xff]  ;;  %v17285_v63 = vld [vmem:[#allocation288_spill] sm:$0xff] }
 0x625   : > { %11308 = vmatprep.mubr.msk.bf16.mxu0 %vm7073_vm2, %v8293_v57  ;;  %17253 = vst [vmem:[#allocation57_spill] sm:$0xff] %v15095_v61  ;;  %v7003_v37 = vadd.f32 %v14930_v25, %v6964_v10  ;;  %6860 = vperm.xlu0 %11739, %v6745_v62   ;;  %v17292_v61 = vld [vmem:[#allocation312_spill] sm:$0xff] }
 0x626   : > { %v7036_v48 = vmax.f32 %v7004_v7, 0.0  ;;  %v15115_v7 = vld [vmem:[#allocation2 + $0x19c] sm:$0xff] }
 0x627   : > { %v7035_v23 = vmax.f32 %v7003_v37, 0.0  ;;  %v15099_v39 = vpop.permute.xlu1 %6052 }
 0x628   : > { %17254 = vst [vmem:[#allocation58_spill] sm:$0xff] %v15099_v39  ;;  %v15101_v2 = vpop.permute.xlu0 %6047  ;;  %6875 = vperm.xlu1 %11740, %v6748_v8   ;;  %v7062_v34 = vmax.f32 %v7034_v13, %v7036_v48  ;;  %v17290_v39 = vld [vmem:[#allocation310_spill] sm:$0xff] }
 0x629   : > { %17255 = vst [vmem:[#allocation59_spill] sm:$0xff] %v15101_v2  ;;  %v7061_v6 = vmax.f32 %v7033_v14, %v7035_v23  ;;  %6870 = vperm.xlu0 %11739, %v6747_v55  }
 0x62a   : > { %v7246_v32 = vld [vmem:[#allocation3 + $0x18] sm:$0x1]  ;;  %v7254_v56 = vld [vmem:[#allocation3 + $0x19] sm:$0x1]  ;;  %v7278_v41 = vld [vmem:[#allocation3 + $0x1a] sm:$0x1] }
 0x62b   : > { %v7262_v25 = vmax.f32 %v7246_v32, %v7254_v56  ;;  %v7286_v38 = vld [vmem:[#allocation3 + $0x1b] sm:$0x1]  ;;  %v7310_v42 = vld [vmem:[#allocation3 + $0x1c] sm:$0x1]  ;;  %v7318_v36 = vld [vmem:[#allocation3 + $0x1d] sm:$0x1]  ;;  %v15105_v28 = vpop.permute.xlu1 %6062 }
 0x62c   : > { %v7294_v27 = vmax.f32 %v7278_v41, %v7286_v38  ;;  %v7326_v30 = vmax.f32 %v7310_v42, %v7318_v36  ;;  %v7342_v53 = vld [vmem:[#allocation3 + $0x1e] sm:$0x1]  ;;  %v7350_v52 = vld [vmem:[#allocation3 + $0x1f] sm:$0x1]  ;;  %v7116_v20 = vld [vmem:[#allocation3 + $0x10] sm:$0x1]  ;;  %v15107_v16 = vpop.permute.xlu0 %6057  ;;  %6885 = vperm.xlu1 %11740, %v6750_v29  }
 0x62d   : > { %7079 = vst.msk [vmem:[#allocation3 + $0x28] sm:$0xff] %vm7073_vm2, %v7062_v34  ;;  %7078 = vst.msk [vmem:[#allocation3 + $0x20] sm:$0xff] %vm7073_vm2, %v7061_v6  ;;  %v7358_v50 = vmax.f32 %v7342_v53, %v7350_v52  ;;  %v7124_v40 = vld [vmem:[#allocation3 + $0x11] sm:$0x1]  ;;  %v7150_v57 = vld [vmem:[#allocation3 + $0x12] sm:$0x1]  ;;  %6880 = vperm.xlu0 %11739, %v6749_v60  }
 0x62e   : > { %17256 = vst [vmem:[#allocation60_spill] sm:$0xff] %v15105_v28  ;;  %17257 = vst [vmem:[#allocation61_spill] sm:$0xff] %v15107_v16  ;;  %v7158_v19 = vld [vmem:[#allocation3 + $0x13] sm:$0x1]  ;;  %v7132_v22 = vmax.f32 %v7116_v20, %v7124_v40  ;;  %v7182_v62 = vld [vmem:[#allocation3 + $0x14] sm:$0x1] }
 0x62f   : > { %7270 = vst.msk [vmem:[#allocation4 + $0x36] sm:$0x1] %vm7140_vm5, %v7262_v25  ;;  %v7166_v44 = vmax.f32 %v7150_v57, %v7158_v19  ;;  %v7190_v33 = vld [vmem:[#allocation3 + $0x15] sm:$0x1]  ;;  %v7214_v4 = vld [vmem:[#allocation3 + $0x16] sm:$0x1]  ;;  %v15119_v8 = vpop.permute.xlu1 %6072 }
 0x630   : > { %7302 = vst.msk [vmem:[#allocation4 + $0x37] sm:$0x1] %vm7140_vm5, %v7294_v27  ;;  %7334 = vst.msk [vmem:[#allocation4 + $0x38] sm:$0x1] %vm7140_vm5, %v7326_v30  ;;  %v7198_v24 = vmax.f32 %v7182_v62, %v7190_v33  ;;  %v7222_v10 = vld [vmem:[#allocation3 + $0x17] sm:$0x1]  ;;  %v15121_v55 = vpop.permute.xlu0 %6067  ;;  %6895 = vperm.xlu1 %11740, %v15109_v3  }
 0x631   : > { %7366 = vst.msk [vmem:[#allocation4 + $0x39] sm:$0x1] %vm7140_vm5, %v7358_v50  ;;  %v7230_v37 = vmax.f32 %v7214_v4, %v7222_v10  ;;  %7142 = vst.msk [vmem:[#allocation4 + $0x32] sm:$0x1] %vm7140_vm5, %v7132_v22  ;;  %6890 = vperm.xlu0 %11739, %v15115_v7   ;;  %v15131_v34 = vld [vmem:[#allocation2 + $0x1ba] sm:$0xff]  ;;  %v15134_v27 = vld [vmem:[#allocation2 + $0x1b2] sm:$0xff] }
 0x632   : > { %7174 = vst.msk [vmem:[#allocation4 + $0x33] sm:$0x1] %vm7140_vm5, %v7166_v44  ;;  %17258 = vst [vmem:[#allocation62_spill] sm:$0xff] %v15121_v55  ;;  %v17260_v44 = vld [vmem:[#allocation248_spill] sm:$0xff]  ;;  %v17261_v10 = vld [vmem:[#allocation254_spill] sm:$0xff] }
 0x633   : > { %7206 = vst.msk [vmem:[#allocation4 + $0x34] sm:$0x1] %vm7140_vm5, %v7198_v24  ;;  %7238 = vst.msk [vmem:[#allocation4 + $0x35] sm:$0x1] %vm7140_vm5, %v7230_v37  ;;  %v15127_v56 = vpop.permute.xlu1 %6082  ;;  %v17288_v28 = vld [vmem:[#allocation289_spill] sm:$0xff] }
 0x634   : > { %v7247_v13 = vld [vmem:[#allocation3 + $0x28] sm:$0x1]  ;;  %v7255_v14 = vld [vmem:[#allocation3 + $0x29] sm:$0x1]  ;;  %v7279_v48 = vld [vmem:[#allocation3 + $0x2a] sm:$0x1]  ;;  %v15129_v41 = vpop.permute.xlu0 %6077  ;;  %5077 = vperm.xlu1 %11740, %v14715_v59  }
 0x635   : > { %v7263_v23 = vmax.f32 %v7247_v13, %v7255_v14  ;;  %v7287_v29 = vld [vmem:[#allocation3 + $0x2b] sm:$0x1]  ;;  %v7311_v60 = vld [vmem:[#allocation3 + $0x2c] sm:$0x1]  ;;  %v7319_v32 = vld [vmem:[#allocation3 + $0x2d] sm:$0x1]  ;;  %5072 = vperm.xlu0 %11739, %v14717_v11  }
 0x636   : > { %v7295_v6 = vmax.f32 %v7279_v48, %v7287_v29  ;;  %v7327_v25 = vmax.f32 %v7311_v60, %v7319_v32  ;;  %v7343_v38 = vld [vmem:[#allocation3 + $0x2e] sm:$0x1]  ;;  %v7351_v42 = vld [vmem:[#allocation3 + $0x2f] sm:$0x1]  ;;  %v7117_v36 = vld [vmem:[#allocation3 + $0x20] sm:$0x1] }
 0x637   : > { %v7359_v30 = vmax.f32 %v7343_v38, %v7351_v42  ;;  %7271 = vst.msk [vmem:[#allocation4 + $0x46] sm:$0x1] %vm7140_vm5, %v7263_v23  ;;  %v7125_v53 = vld [vmem:[#allocation3 + $0x21] sm:$0x1]  ;;  %v7151_v52 = vld [vmem:[#allocation3 + $0x22] sm:$0x1]  ;;  %v15148_v4 = vpop.permute.xlu1 %6092 }
 0x638   : > { %v7159_v20 = vld [vmem:[#allocation3 + $0x23] sm:$0x1]  ;;  %7303 = vst.msk [vmem:[#allocation4 + $0x47] sm:$0x1] %vm7140_vm5, %v7295_v6  ;;  %7335 = vst.msk [vmem:[#allocation4 + $0x48] sm:$0x1] %vm7140_vm5, %v7327_v25  ;;  %v7133_v50 = vmax.f32 %v7117_v36, %v7125_v53  ;;  %v15150_v24 = vpop.permute.xlu0 %6087  ;;  %5087 = vperm.xlu1 %11740, %v15131_v34  }
 0x639   : > { %v7167_v40 = vmax.f32 %v7151_v52, %v7159_v20  ;;  %v7183_v57 = vld [vmem:[#allocation3 + $0x24] sm:$0x1]  ;;  %v7191_v19 = vld [vmem:[#allocation3 + $0x25] sm:$0x1]  ;;  %v7215_v22 = vld [vmem:[#allocation3 + $0x26] sm:$0x1]  ;;  %5082 = vperm.xlu0 %11739, %v15134_v27  }
 0x63a   : > { %v15143_v59 = vld [vmem:[%s16571_s1 + $0xf] ss:$0 sm:$0xff]  ;;  %7367 = vst.msk [vmem:[#allocation4 + $0x49] sm:$0x1] %vm7140_vm5, %v7359_v30  ;;  %v7199_v11 = vmax.f32 %v7183_v57, %v7191_v19  ;;  %v7223_v33 = vld [vmem:[#allocation3 + $0x27] sm:$0x1] }
 0x63b   : > { %17259 = vst [vmem:[#allocation63_spill] sm:$0xff] %v15143_v59  ;;  %v4591_v62 = vmul.f32 %v15143_v59, %v17260_v44  ;;  %v4593_v37 = vmul.f32 %v15143_v59, %v17261_v10  ;;  %v7231_v13 = vmax.f32 %v7215_v22, %v7223_v33  ;;  %7143 = vst.msk [vmem:[#allocation4 + $0x42] sm:$0x1] %vm7140_vm5, %v7133_v50  ;;  %v7388_v14 = vld [vmem:[#allocation4 + $0x21] sm:$0xff]  ;;  %v7389_v48 = vld [vmem:[#allocation4 + $0x31] sm:$0xff]  ;;  %v15172_v50 = vpop.permute.xlu1 %6102 }
 0x63c   : > { %7175 = vst.msk [vmem:[#allocation4 + $0x43] sm:$0x1] %vm7140_vm5, %v7167_v40  ;;  %v17262_v23 = vld [vmem:[#allocation255_spill] sm:$0xff]  ;;  %v17263_v60 = vld [vmem:[#allocation256_spill] sm:$0xff]  ;;  %7207 = vst.msk [vmem:[#allocation4 + $0x44] sm:$0x1] %vm7140_vm5, %v7199_v11  ;;  %v7396_v6 = vpack.c.bf16 %v7389_v48, %v7388_v14  ;;  %v15174_v40 = vpop.permute.xlu0 %6097  ;;  %5338 = vperm.xlu1 %11740, %v14962_v35  }
 0x63d   : > { %v4592_v29 = vmul.f32 %v15143_v59, %v17262_v23  ;;  %v4595_v32 = vmul.f32 %v15143_v59, %v17263_v60  ;;  %v17264_v25 = vld [vmem:[#allocation257_spill] sm:$0xff]  ;;  %v17265_v42 = vld [vmem:[#allocation258_spill] sm:$0xff]  ;;  %7239 = vst.msk [vmem:[#allocation4 + $0x45] sm:$0x1] %vm7140_vm5, %v7231_v13  ;;  %v17267_v52 = vld [vmem:[#allocation259_spill] sm:$0xff]  ;;  %5333 = vperm.xlu0 %11739, %v14964_v0  }
 0x63e   : > { %v4594_v38 = vmul.f32 %v15143_v59, %v17264_v25  ;;  %v4597_v36 = vmul.f32 %v15143_v59, %v17265_v42  ;;  %v17266_v30 = vld [vmem:[#allocation193_spill] sm:$0xff]  ;;  %v4596_v20 = vmul.f32 %v15143_v59, %v17267_v52  ;;  %11219 = vmatmul.mubr.msk.bf16.vlgmr.msra.gmra.mrb[0].mxu1 %vm7073_vm2, %v7396_v6  ;;  %v17268_v57 = vld [vmem:[#allocation195_spill] sm:$0xff]  ;;  %v17269_v22 = vld [vmem:[#allocation260_spill] sm:$0xff] }
 0x63f   : > { %v4623_v53 = vadd.f32 %v4591_v62, %v17266_v30  ;;  %v4625_v19 = vadd.f32 %v4593_v37, %v17268_v57  ;;  %v4599_v44 = vmul.f32 %v15143_v59, %v17269_v22  ;;  %v17270_v11 = vld [vmem:[#allocation261_spill] sm:$0xff]  ;;  %v15184_v62 = vld [vmem:[%s16571_s1 + $0x10] ss:$0 sm:$0xff]  ;;  %v17272_v10 = vld [vmem:[#allocation276_spill] sm:$0xff] }
 0x640   : > { %v4598_v33 = vmul.f32 %v15143_v59, %v17270_v11  ;;  %17271 = vst [vmem:[#allocation64_spill] sm:$0xff] %v15184_v62  ;;  %v4852_v13 = vmul.f32 %v15184_v62, %v17272_v10  ;;  %v17273_v14 = vld [vmem:[#allocation196_spill] sm:$0xff]  ;;  %v17274_v23 = vld [vmem:[#allocation197_spill] sm:$0xff]  ;;  %v17275_v60 = vld [vmem:[#allocation282_spill] sm:$0xff] }
 0x641   : > { %v4624_v48 = vadd.f32 %v4592_v29, %v17273_v14  ;;  %v4627_v37 = vadd.f32 %v4595_v32, %v17274_v23  ;;  %v4854_v6 = vmul.f32 %v15184_v62, %v17275_v60  ;;  %v17276_v25 = vld [vmem:[#allocation283_spill] sm:$0xff]  ;;  %v15196_v30 = vld [vmem:[#allocation2 + $0x1bb] sm:$0xff]  ;;  %v17277_v52 = vld [vmem:[#allocation198_spill] sm:$0xff] }
 0x642   : > { %v4853_v42 = vmul.f32 %v15184_v62, %v17276_v25  ;;  %v4626_v57 = vadd.f32 %v4594_v38, %v17277_v52  ;;  %v17278_v22 = vld [vmem:[#allocation199_spill] sm:$0xff]  ;;  %v17279_v10 = vld [vmem:[#allocation284_spill] sm:$0xff]  ;;  %v17280_v29 = vld [vmem:[#allocation285_spill] sm:$0xff]  ;;  %v4858_v25 = vmul.f32 %v15184_v62, %v17283_v46  ;;  %v4860_v38 = vmul.f32 %v15184_v62, %v17285_v63  ;;  %v15215_v52 = vpop.permute.xlu0 %6107  ;;  %5348 = vperm.xlu1 %11740, %v15196_v30  }
 0x643   : > { %v4629_v11 = vadd.f32 %v4597_v36, %v17278_v22  ;;  %v4856_v35 = vmul.f32 %v15184_v62, %v17279_v10  ;;  %v4855_v32 = vmul.f32 %v15184_v62, %v17280_v29  ;;  %v15204_v14 = vld [vmem:[#allocation2 + $0x1b3] sm:$0xff]  ;;  %v17284_v0 = vld [vmem:[#allocation287_spill] sm:$0xff]  ;;  %v15213_v36 = vpop.permute.xlu1 %6112  ;;  %v17286_v22 = vld [vmem:[#allocation201_spill] sm:$0xff]  ;;  %v4884_v16 = vadd.f32 %v4852_v13, %v4623_v53 }
 0x644   : > { %17281 = vst [vmem:[#allocation65_spill] sm:$0xff] %v15204_v14  ;;  %v17282_v23 = vld [vmem:[#allocation200_spill] sm:$0xff]  ;;  %v4857_v45 = vmul.f32 %v15184_v62, %v17284_v0  ;;  %v4631_v10 = vadd.f32 %v4599_v44, %v17286_v22  ;;  %v17287_v29 = vld [vmem:[#allocation202_spill] sm:$0xff]  ;;  %v4886_v46 = vadd.f32 %v4854_v6, %v4625_v19  ;;  %v15225_v63 = vld [vmem:[%s16571_s1 + $0x11] ss:$0 sm:$0xff]  ;;  %5343 = vperm.xlu0 %11739, %v15204_v14  }
 0x645   : > { %v4628_v60 = vadd.f32 %v4596_v20, %v17282_v23  ;;  %v4630_v55 = vadd.f32 %v4598_v33, %v17287_v29  ;;  %v4859_v20 = vmul.f32 %v15184_v62, %v17288_v28  ;;  %v4885_v23 = vadd.f32 %v4853_v42, %v4624_v48  ;;  %v17289_v0 = vld [vmem:[#allocation304_spill] sm:$0xff]  ;;  %v8287_v53 = vld [vmem:[#allocation4 + $0x44] sm:$0xff]  ;;  %v17293_v59 = vld [vmem:[#allocation313_spill] sm:$0xff] }
 0x646   : > { %v5113_v2 = vmul.f32 %v15225_v63, %v17289_v0  ;;  %v5115_v44 = vmul.f32 %v15225_v63, %v17290_v39  ;;  %v8286_v33 = vld [vmem:[#allocation4 + $0x34] sm:$0xff]  ;;  %v4888_v28 = vadd.f32 %v4856_v35, %v4627_v37  ;;  %v4887_v13 = vadd.f32 %v4855_v32, %v4626_v57  ;;  %v17291_v22 = vld [vmem:[#allocation311_spill] sm:$0xff]  ;;  %v15238_v62 = vpop.permute.xlu0 %6298  ;;  %v17294_v37 = vld [vmem:[#allocation314_spill] sm:$0xff]  ;;  %5599 = vperm.xlu1 %11740, %v15109_v3  }
 0x647   : > { %v5114_v19 = vmul.f32 %v15225_v63, %v17291_v22  ;;  %v8294_v48 = vpack.c.bf16 %v8287_v53, %v8286_v33  ;;  %v4890_v6 = vadd.f32 %v4858_v25, %v4629_v11  ;;  %v4889_v42 = vadd.f32 %v4857_v45, %v4628_v60  ;;  %v15236_v0 = vpop.permute.xlu1 %6303  ;;  %v17295_v35 = vld [vmem:[#allocation315_spill] sm:$0xff]  ;;  %v17296_v32 = vld [vmem:[#allocation316_spill] sm:$0xff]  ;;  %v17297_v25 = vld [vmem:[#allocation317_spill] sm:$0xff] }
 0x648   : > { %v4892_v29 = vadd.f32 %v4860_v38, %v4631_v10  ;;  %v5117_v51 = vmul.f32 %v15225_v63, %v17292_v61  ;;  %v4891_v39 = vadd.f32 %v4859_v20, %v4630_v55  ;;  %v5116_v14 = vmul.f32 %v15225_v63, %v17293_v59  ;;  %5594 = vperm.xlu0 %11739, %v15115_v7   ;;  %v15251_v55 = vld [vmem:[#allocation2 + $0x1bc] sm:$0xff]  ;;  %v15258_v3 = vld [vmem:[%s16571_s1 + $0x12] ss:$0 sm:$0xff]  ;;  %v17299_v10 = vld [vmem:[#allocation24_spill] sm:$0xff] }
 0x649   : > { %v5119_v57 = vmul.f32 %v15225_v63, %v17294_v37  ;;  %11309 = vmatmul.mubr.msk.bf16.vlgmr.msra.gmra.mrb[0].mxu0 %vm7073_vm2, %v8294_v48  ;;  %v5145_v45 = vadd.f32 %v5113_v2, %v4884_v16  ;;  %v5147_v11 = vadd.f32 %v5115_v44, %v4886_v46  ;;  %v5118_v61 = vmul.f32 %v15225_v63, %v17295_v35  ;;  %v17298_v2 = vld [vmem:[#allocation14_spill] sm:$0xff]  ;;  %v15264_v46 = vld [vmem:[#allocation2 + $0x1b4] sm:$0xff]  ;;  %v17301_v33 = vld [vmem:[#allocation15_spill] sm:$0xff] }
 0x64a   : > { %v5121_v60 = vmul.f32 %v15225_v63, %v17296_v32  ;;  %v5146_v59 = vadd.f32 %v5114_v19, %v4885_v23  ;;  %v5120_v38 = vmul.f32 %v15225_v63, %v17297_v25  ;;  %v5374_v16 = vmul.f32 %v15258_v3, %v17298_v2  ;;  %v17300_v44 = vld [vmem:[#allocation25_spill] sm:$0xff]  ;;  %v17302_v22 = vld [vmem:[#allocation16_spill] sm:$0xff]  ;;  %v15274_v37 = vpop.permute.xlu0 %6308  ;;  %v17305_v25 = vld [vmem:[#allocation26_spill] sm:$0xff]  ;;  %5609 = vperm.xlu1 %11740, %v15251_v55  }
 0x64b   : > { %v5376_v20 = vmul.f32 %v15258_v3, %v17299_v10  ;;  %v5149_v7 = vadd.f32 %v5117_v51, %v4888_v28  ;;  %v5375_v23 = vmul.f32 %v15258_v3, %v17300_v44  ;;  %v5378_v53 = vmul.f32 %v15258_v3, %v17301_v33  ;;  %v15272_v48 = vpop.permute.xlu1 %6313  ;;  %17304 = vst [vmem:[#allocation67_spill] sm:$0xff] %v15274_v37  ;;  %v15281_v51 = vld [vmem:[%s16571_s1 + $0x13] ss:$0 sm:$0xff]  ;;  %v17306_v28 = vld [vmem:[#allocation39_spill] sm:$0xff] }
 0x64c   : > { %v5377_v19 = vmul.f32 %v15258_v3, %v17302_v22  ;;  %17303 = vst [vmem:[#allocation66_spill] sm:$0xff] %v15272_v48  ;;  %v5148_v35 = vadd.f32 %v5116_v14, %v4887_v13  ;;  %v5151_v32 = vadd.f32 %v5119_v57, %v4890_v6  ;;  %v5380_v2 = vmul.f32 %v15258_v3, %v17305_v25  ;;  %v17307_v22 = vld [vmem:[#allocation41_spill] sm:$0xff]  ;;  %v17308_v13 = vld [vmem:[#allocation42_spill] sm:$0xff] }
 0x64d   : > { %v5635_v10 = vmul.f32 %v15281_v51, %v17306_v28  ;;  %v5150_v44 = vadd.f32 %v5118_v61, %v4889_v42  ;;  %v15286_v33 = vadd.f32 %v5121_v60, %v4892_v29  ;;  %v5637_v14 = vmul.f32 %v15281_v51, %v17307_v22  ;;  %5604 = vperm.xlu0 %11739, %v15264_v46   ;;  %v15298_v28 = vld [vmem:[%s16571_s1 + $0x14] ss:$0 sm:$0xff]  ;;  %v17309_v22 = vld [vmem:[#allocation17_spill] sm:$0xff] }
 0x64e   : > { %v5636_v6 = vmul.f32 %v15281_v51, %v17308_v13  ;;  %v15293_v57 = vadd.f32 %v5120_v38, %v4891_v39  ;;  %v5406_v25 = vadd.f32 %v5374_v16, %v5145_v45  ;;  %v5408_v37 = vadd.f32 %v5376_v20, %v5147_v11  ;;  %v15306_v39 = vpop.permute.xlu0 %6318  ;;  %v7381_v45 = vld [vmem:[%s16573_s3] sm:$0x3]  ;;  %5861 = vperm.xlu1 %11740, %v14874_v9  }
 0x64f   : > { %v5897_v42 = vmul.f32 %v15298_v28, %v14886_v21  ;;  %v5407_v29 = vadd.f32 %v5375_v23, %v5146_v59  ;;  %v5410_v61 = vadd.f32 %v5378_v53, %v5149_v7  ;;  %v5409_v60 = vadd.f32 %v5377_v19, %v5148_v35  ;;  %v15304_v48 = vpop.permute.xlu1 %6323  ;;  %v15314_v21 = vld [vmem:[%s16571_s1 + $0x15] ss:$0 sm:$0xff]  ;;  %11659 = vmatprep.subr.msk.bf16.mxu1 %vm7415_vm4, %v7381_v45  ;;  %v17310_v19 = vld [vmem:[#allocation43_spill] sm:$0xff] }
 0x650   : > { %v5379_v13 = vmul.f32 %v15258_v3, %v17309_v22  ;;  %v5412_v11 = vadd.f32 %v5380_v2, %v5151_v32  ;;  %v5667_v38 = vadd.f32 %v5635_v10, %v5406_v25  ;;  %v6158_v59 = vmul.f32 %v15314_v21, %v15119_v8  ;;  %v5712_v53 = vld [vmem:[#allocation2 + $0x1d0] sm:$0xff]  ;;  %v5711_v2 = vld [vmem:[#allocation2 + $0x1c8] sm:$0xff] }
 0x651   : > { %v5669_v16 = vadd.f32 %v5637_v14, %v5408_v37  ;;  %v5668_v20 = vadd.f32 %v5636_v6, %v5407_v29  ;;  %v5899_v7 = vmul.f32 %v15298_v28, %v14946_v15  ;;  %v5898_v23 = vmul.f32 %v15298_v28, %v14948_v43  ;;  %5856 = vperm.xlu0 %11739, %v14876_v12   ;;  %v17311_v32 = vld [vmem:[#allocation44_spill] sm:$0xff] }
 0x652   : > { %v5639_v35 = vmul.f32 %v15281_v51, %v17310_v19  ;;  %v5638_v8 = vmul.f32 %v15281_v51, %v17311_v32  ;;  %v5929_v9 = vadd.f32 %v5897_v42, %v5667_v38  ;;  %v7497_v37 = vsel %vm7415_vm4, %v7381_v45, 0  ;;  %v15338_v6 = vpop.permute.xlu0 %6328  ;;  %v17313_v42 = vld [vmem:[#allocation18_spill] sm:$0xff]  ;;  %5871 = vperm.xlu1 %11740, %v5712_v53  }
 0x653   : > { %v5641_v10 = vmul.f32 %v15281_v51, %v14678_v58  ;;  %v5640_v15 = vmul.f32 %v15281_v51, %v14680_v17  ;;  %v6160_v12 = vmul.f32 %v15314_v21, %v15127_v56  ;;  %v6159_v43 = vmul.f32 %v15314_v21, %v15129_v41  ;;  %v6334_v14 = vpop.permute.xlu1 %6333  ;;  %17312 = vst [vmem:[#allocation68_spill] sm:$0xff] %v15338_v6  ;;  %v15345_v58 = vld [vmem:[%s16571_s1 + $0x16] ss:$0 sm:$0xff]  ;;  %v17314_v56 = vld [vmem:[#allocation27_spill] sm:$0xff] }
 0x654   : > { %11227 = vmatpush3.bf16.msra.mxu1 %v7497_v37  ;;  %v5411_v25 = vadd.f32 %v5379_v13, %v5150_v44  ;;  %v5382_v29 = vmul.f32 %v15258_v3, %v17313_v42  ;;  %v6190_v22 = vadd.f32 %v6158_v59, %v5929_v9  ;;  %v6419_v17 = vmul.f32 %v15345_v58, %v6334_v14 }
 0x655   : > { %v5381_v41 = vmul.f32 %v15258_v3, %v17314_v56  ;;  %v5931_v45 = vadd.f32 %v5899_v7, %v5669_v16  ;;  %v5930_v38 = vadd.f32 %v5898_v23, %v5668_v20  ;;  %v5901_v44 = vmul.f32 %v15298_v28, %v14968_v54  ;;  %5866 = vperm.xlu0 %11739, %v5711_v2   ;;  %v17316_v56 = vld [vmem:[#allocation53_spill] sm:$0xff] }
 0x656   : > { %v5671_v13 = vadd.f32 %v5639_v35, %v5410_v61  ;;  %v5670_v19 = vadd.f32 %v5638_v8, %v5409_v60  ;;  %v5900_v59 = vmul.f32 %v15298_v28, %v14970_v47  ;;  %v15354_v32 = vadd.f32 %v6419_v17, %v6190_v22  ;;  %v6339_v6 = vpop.permute.xlu0 %6338  ;;  %6122 = vperm.xlu1 %11740, %v15074_v1   ;;  %v8397_v47 = vld [vmem:[%s16573_s3 + $0x14] sm:$0x3]  ;;  %v5972_v35 = vld [vmem:[#allocation2 + $0x1c9] sm:$0xff] }
 0x657   : > { %v5673_v9 = vadd.f32 %v5641_v10, %v5412_v11  ;;  %v5672_v37 = vadd.f32 %v5640_v15, %v5411_v25  ;;  %v6192_v14 = vadd.f32 %v6160_v12, %v5931_v45  ;;  %v6191_v53 = vadd.f32 %v6159_v43, %v5930_v38  ;;  %v6344_v42 = vpop.permute.xlu1 %6343  ;;  %11668 = vmatprep.subr.msk.bf16.mxu0 %vm7415_vm4, %v8397_v47 }
 0x658   : > { %v6162_v16 = vmul.f32 %v15314_v21, %v15148_v4  ;;  %v6161_v54 = vmul.f32 %v15314_v21, %v15150_v24  ;;  %v6421_v61 = vmul.f32 %v15345_v58, %v6344_v42  ;;  %v6420_v60 = vmul.f32 %v15345_v58, %v6339_v6  ;;  %v5973_v24 = vld [vmem:[#allocation2 + $0x1d1] sm:$0xff] }
 0x659   : > { %v5933_v11 = vadd.f32 %v5901_v44, %v5671_v13  ;;  %v5903_v20 = vmul.f32 %v15298_v28, %v14992_v18  ;;  %v5902_v4 = vmul.f32 %v15298_v28, %v14994_v31  ;;  %6117 = vperm.xlu0 %11739, %v15076_v49   ;;  %v5932_v7 = vadd.f32 %v5900_v59, %v5670_v19  ;;  %v6234_v42 = vld [vmem:[#allocation2 + $0x1d2] sm:$0xff] }
 0x65a   : > { %v15372_v23 = vadd.f32 %v6421_v61, %v6192_v14  ;;  %v15374_v1 = vadd.f32 %v6420_v60, %v6191_v53  ;;  %v8415_v8 = vsel %vm7415_vm4, %v8397_v47, 0  ;;  %v5643_v2 = vmul.f32 %v15281_v51, %v14696_v5  ;;  %v6349_v15 = vpop.permute.xlu0 %6348  ;;  %6132 = vperm.xlu1 %11740, %v5973_v24   ;;  %v15407_v53 = vld [vmem:[%s16573_s3 + $0x4] sm:$0x3]  ;;  %v6233_v61 = vld [vmem:[#allocation2 + $0x1ca] sm:$0xff] }
 0x65b   : > { %v5642_v18 = vmul.f32 %v15281_v51, %v14698_v26  ;;  %v6164_v31 = vmul.f32 %v15314_v21, %v15172_v50  ;;  %v6163_v49 = vmul.f32 %v15314_v21, %v15174_v40  ;;  %v6354_v10 = vpop.permute.xlu1 %6353  ;;  %11317 = vmatpush3.bf16.msra.mxu0 %v8415_v8  ;;  %v6194_v12 = vadd.f32 %v6162_v16, %v5933_v11  ;;  %v17315_v50 = vld [vmem:[#allocation52_spill] sm:$0xff]  ;;  %v17320_v8 = vld [vmem:[#allocation65_spill] sm:$0xff] }
 0x65c   : > { %v6193_v43 = vadd.f32 %v6161_v54, %v5932_v7  ;;  %v6423_v6 = vmul.f32 %v15345_v58, %v6354_v10  ;;  %v6422_v25 = vmul.f32 %v15345_v58, %v6349_v15  ;;  %v5414_v5 = vadd.f32 %v5382_v29, %v15286_v33  ;;  %17317 = vst [vmem:[#allocation69_spill] sm:$0xff] %v15407_v53 }
 0x65d   : > { %v5413_v26 = vadd.f32 %v5381_v41, %v15293_v57  ;;  %v5935_v22 = vadd.f32 %v5903_v20, %v5673_v9  ;;  %v5934_v17 = vadd.f32 %v5902_v4, %v5672_v37  ;;  %6127 = vperm.xlu0 %11739, %v5972_v35   ;;  %v5905_v40 = vmul.f32 %v15298_v28, %v17315_v50 }
 0x65e   : > { %v5904_v45 = vmul.f32 %v15298_v28, %v17316_v56  ;;  %v15393_v38 = vadd.f32 %v6423_v6, %v6194_v12  ;;  %v15395_v44 = vadd.f32 %v6422_v25, %v6193_v43  ;;  %v5675_v13 = vadd.f32 %v5643_v2, %v5414_v5  ;;  %v6359_v29 = vpop.permute.xlu0 %6358  ;;  %6383 = vperm.xlu1 %11740, %v15131_v34   ;;  %v6495_v2 = vld [vmem:[#allocation2 + $0x1d3] sm:$0xff]  ;;  %v17322_v43 = vld [vmem:[#allocation63_spill] sm:$0xff] }
 0x65f   : > { %v5674_v19 = vadd.f32 %v5642_v18, %v5413_v26  ;;  %v6196_v59 = vadd.f32 %v6164_v31, %v5935_v22  ;;  %v6195_v14 = vadd.f32 %v6163_v49, %v5934_v17  ;;  %v6364_v33 = vpop.permute.xlu1 %6363  ;;  %v6166_v57 = vmul.f32 %v15314_v21, %v15213_v36  ;;  %11660 = vmatprep.subr.msk.bf16.mxu1 %vm7415_vm4, %v15407_v53  ;;  %v6494_v18 = vld [vmem:[#allocation2 + $0x1cb] sm:$0xff]  ;;  %v6756_v12 = vld [vmem:[#allocation2 + $0x1d4] sm:$0xff] }
 0x660   : > { %v6165_v41 = vmul.f32 %v15314_v21, %v15215_v52  ;;  %v6425_v9 = vmul.f32 %v15345_v58, %v6364_v33  ;;  %v6424_v37 = vmul.f32 %v15345_v58, %v6359_v29  ;;  %v5937_v36 = vadd.f32 %v5905_v40, %v5675_v13  ;;  %v6755_v25 = vld [vmem:[#allocation2 + $0x1cc] sm:$0xff]  ;;  %v17329_v33 = vld [vmem:[#allocation249_spill] sm:$0xff] }
 0x661   : > { %6378 = vperm.xlu0 %11739, %v15134_v27   ;;  %v5936_v16 = vadd.f32 %v5904_v45, %v5674_v19  ;;  %v17323_v5 = vld [vmem:[#allocation247_spill] sm:$0xff]  ;;  %v17325_v56 = vld [vmem:[#allocation184_spill] sm:$0xff]  ;;  %v4590_v29 = vmul.f32 %v17322_v43, %v17329_v33 }
 0x662   : > { %v15412_v52 = vadd.f32 %v6425_v9, %v6196_v59  ;;  %v15414_v54 = vadd.f32 %v6424_v37, %v6195_v14  ;;  %v6369_v34 = vpop.permute.xlu0 %6368  ;;  %v6198_v47 = vadd.f32 %v6166_v57, %v5937_v36  ;;  %6393 = vperm.xlu1 %11740, %v6234_v42   ;;  %v4584_v26 = vmul.f32 %v17322_v43, %v17323_v5  ;;  %v17324_v22 = vld [vmem:[#allocation183_spill] sm:$0xff]  ;;  %v17328_v59 = vld [vmem:[#allocation186_spill] sm:$0xff]  ;;  %v17330_v57 = vld [vmem:[#allocation188_spill] sm:$0xff] }
 0x663   : > { %v6374_v60 = vpop.permute.xlu1 %6373  ;;  %v6197_v11 = vadd.f32 %v6165_v41, %v5936_v16  ;;  %v6426_v4 = vmul.f32 %v15345_v58, %v6369_v34  ;;  %v4587_v17 = vmul.f32 %v17322_v43, %v17324_v22  ;;  %v17327_v13 = vld [vmem:[#allocation187_spill] sm:$0xff]  ;;  %v4588_v14 = vmul.f32 %v17322_v43, %v17328_v59  ;;  %v17331_v9 = vld [vmem:[#allocation189_spill] sm:$0xff]  ;;  %v17332_v42 = vld [vmem:[#allocation270_spill] sm:$0xff] }
 0x664   : > { %v6427_v20 = vmul.f32 %v15345_v58, %v6374_v60  ;;  %v4616_v41 = vadd.f32 %v4584_v26, %v17330_v57  ;;  %v17333_v36 = vld [vmem:[#allocation64_spill] sm:$0xff]  ;;  %v17339_v5 = vld [vmem:[#allocation274_spill] sm:$0xff]  ;;  %v17340_v22 = vld [vmem:[#allocation275_spill] sm:$0xff] }
 0x665   : > { %6388 = vperm.xlu0 %11739, %v6233_v61   ;;  %v15420_v24 = vadd.f32 %v6426_v4, %v6197_v11  ;;  %v4619_v37 = vadd.f32 %v4587_v17, %v17331_v9  ;;  %v4846_v16 = vmul.f32 %v17333_v36, %v17332_v42  ;;  %v17334_v61 = vld [vmem:[#allocation271_spill] sm:$0xff]  ;;  %v17335_v11 = vld [vmem:[#allocation190_spill] sm:$0xff]  ;;  %v17336_v4 = vld [vmem:[#allocation272_spill] sm:$0xff]  ;;  %v4850_v26 = vmul.f32 %v17333_v36, %v17339_v5 }
 0x666   : > { %v15418_v27 = vadd.f32 %v6427_v20, %v6198_v47  ;;  %v15424_v35 = vpop.permute.xlu0 %6559  ;;  %6644 = vperm.xlu1 %11740, %v15196_v30   ;;  %v17321_v30 = vld [vmem:[#allocation246_spill] sm:$0xff]  ;;  %v4845_v60 = vmul.f32 %v17333_v36, %v17334_v61  ;;  %v4849_v17 = vmul.f32 %v17333_v36, %v17340_v22  ;;  %v17343_v59 = vld [vmem:[#allocation203_spill] sm:$0xff]  ;;  %v17344_v57 = vld [vmem:[#allocation204_spill] sm:$0xff] }
 0x667   : > { %17319 = vst [vmem:[#allocation71_spill] sm:$0xff] %v15420_v24  ;;  %v15422_v7 = vpop.permute.xlu1 %6564  ;;  %v4585_v6 = vmul.f32 %v17322_v43, %v17321_v30  ;;  %v17345_v61 = vld [vmem:[#allocation277_spill] sm:$0xff] }
 0x668   : > { %17318 = vst [vmem:[#allocation70_spill] sm:$0xff] %v15418_v27  ;;  %v4877_v42 = vadd.f32 %v4845_v60, %v4616_v41  ;;  %v17348_v41 = vld [vmem:[#allocation300_spill] sm:$0xff]  ;;  %v17349_v60 = vld [vmem:[#allocation301_spill] sm:$0xff] }
 0x669   : > { %6639 = vperm.xlu0 %11739, %v17320_v8   ;;  %v4617_v19 = vadd.f32 %v4585_v6, %v17327_v13  ;;  %v4848_v8 = vmul.f32 %v17333_v36, %v17336_v4  ;;  %v17338_v6 = vld [vmem:[#allocation273_spill] sm:$0xff] }
 0x66a   : > { %v15430_v49 = vpop.permute.xlu0 %6569  ;;  %6654 = vperm.xlu1 %11740, %v6495_v2   ;;  %v17368_v27 = vld [vmem:[#allocation45_spill] sm:$0xff] }
 0x66b   : > { %v15428_v31 = vpop.permute.xlu1 %6574 }
 0x66d   : > { %6649 = vperm.xlu0 %11739, %v6494_v18  }
 0x66e   : > { %v15434_v15 = vpop.permute.xlu0 %6579  ;;  %6905 = vperm.xlu1 %11740, %v15251_v55   ;;  %v4586_v55 = vmul.f32 %v17322_v43, %v17325_v56  ;;  %v17341_v56 = vld [vmem:[#allocation192_spill] sm:$0xff] }
 0x66f   : > { %v15432_v10 = vpop.permute.xlu1 %6584 }
 0x670   : > { %v4618_v20 = vadd.f32 %v4586_v55, %v17335_v11  ;;  %v4620_v55 = vadd.f32 %v4588_v14, %v17341_v56  ;;  %v17347_v14 = vld [vmem:[#allocation299_spill] sm:$0xff]  ;;  %v5108_v56 = vmul.f32 %v15225_v63, %v17349_v60  ;;  %v17359_v60 = vld [vmem:[#allocation12_spill] sm:$0xff] }
 0x671   : > { %6900 = vperm.xlu0 %11739, %v15264_v46   ;;  %v17326_v46 = vld [vmem:[#allocation185_spill] sm:$0xff] }
 0x672   : > { %v15446_v40 = vpop.permute.xlu0 %6589  ;;  %6915 = vperm.xlu1 %11740, %v6756_v12   ;;  %v4589_v45 = vmul.f32 %v17322_v43, %v17326_v46  ;;  %v17337_v12 = vld [vmem:[#allocation191_spill] sm:$0xff]  ;;  %v17342_v46 = vld [vmem:[#allocation194_spill] sm:$0xff] }
 0x673   : > { %v15444_v50 = vpop.permute.xlu1 %6594  ;;  %v4622_v13 = vadd.f32 %v4590_v29, %v17342_v46  ;;  %v5106_v29 = vmul.f32 %v15225_v63, %v17347_v14  ;;  %v17350_v46 = vld [vmem:[#allocation302_spill] sm:$0xff] }
 0x674   : > { %v4621_v30 = vadd.f32 %v4589_v45, %v17337_v12  ;;  %v4878_v45 = vadd.f32 %v4846_v16, %v4617_v19  ;;  %v4881_v19 = vadd.f32 %v4849_v17, %v4620_v55  ;;  %v5109_v16 = vmul.f32 %v15225_v63, %v17348_v41  ;;  %v17357_v41 = vld [vmem:[#allocation10_spill] sm:$0xff] }
 0x675   : > { %6910 = vperm.xlu0 %11739, %v6755_v25   ;;  %v4847_v25 = vmul.f32 %v17333_v36, %v17338_v6  ;;  %v4880_v6 = vadd.f32 %v4848_v8, %v4619_v37  ;;  %v17351_v37 = vld [vmem:[#allocation205_spill] sm:$0xff] }
 0x676   : > { %v4551_v47 = vpop.permute.xlu0 %4550  ;;  %v4882_v22 = vadd.f32 %v4850_v26, %v4621_v30 }
 0x677   : > { %v4556_v34 = vpop.permute.xlu1 %4555  ;;  %v4600_v18 = vmul.f32 %v17322_v43, %v4551_v47  ;;  %v17346_v47 = vld [vmem:[#allocation298_spill] sm:$0xff] }
 0x678   : > { %v4601_v2 = vmul.f32 %v17322_v43, %v4556_v34  ;;  %v4851_v34 = vmul.f32 %v17333_v36, %v17345_v61  ;;  %v5107_v11 = vmul.f32 %v15225_v63, %v17346_v47 }
 0x679   : > { %v15481_v9 = vadd.f32 %v4600_v18, %v17344_v57  ;;  %v4879_v18 = vadd.f32 %v4847_v25, %v4618_v20  ;;  %v17352_v57 = vld [vmem:[#allocation206_spill] sm:$0xff]  ;;  %v17353_v20 = vld [vmem:[#allocation303_spill] sm:$0xff]  ;;  %v17354_v25 = vld [vmem:[#allocation305_spill] sm:$0xff] }
 0x67a   : > { %v15478_v33 = vadd.f32 %v4601_v2, %v17343_v59  ;;  %v4561_v12 = vpop.permute.xlu0 %4560  ;;  %v5111_v59 = vmul.f32 %v15225_v63, %v17350_v46  ;;  %v4883_v47 = vadd.f32 %v4851_v34, %v4622_v13  ;;  %v5110_v30 = vmul.f32 %v15225_v63, %v17353_v20  ;;  %v17358_v34 = vld [vmem:[#allocation11_spill] sm:$0xff]  ;;  %v17360_v46 = vld [vmem:[#allocation13_spill] sm:$0xff] }
 0x67b   : > { %v4566_v4 = vpop.permute.xlu1 %4565  ;;  %v4602_v5 = vmul.f32 %v17322_v43, %v4561_v12  ;;  %v5112_v26 = vmul.f32 %v15225_v63, %v17354_v25  ;;  %v17355_v12 = vld [vmem:[#allocation326_spill] sm:$0xff]  ;;  %v5370_v13 = vmul.f32 %v15258_v3, %v17357_v41  ;;  %v5372_v63 = vmul.f32 %v15258_v3, %v17359_v60  ;;  %v17362_v25 = vld [vmem:[#allocation33_spill] sm:$0xff] }
 0x67c   : > { %v4603_v2 = vmul.f32 %v17322_v43, %v4566_v4  ;;  %v5139_v43 = vadd.f32 %v5107_v11, %v4878_v45  ;;  %v5138_v4 = vadd.f32 %v5106_v29, %v4877_v42  ;;  %v5368_v14 = vmul.f32 %v15258_v3, %v17355_v12 }
 0x67d   : > { %v15501_v61 = vadd.f32 %v4602_v5, %v17352_v57  ;;  %v5141_v45 = vadd.f32 %v5109_v16, %v4880_v6  ;;  %v5369_v11 = vmul.f32 %v15258_v3, %v17358_v34  ;;  %v5140_v42 = vadd.f32 %v5108_v56, %v4879_v18  ;;  %v17361_v57 = vld [vmem:[#allocation22_spill] sm:$0xff]  ;;  %v17364_v34 = vld [vmem:[#allocation35_spill] sm:$0xff] }
 0x67e   : > { %v15498_v8 = vadd.f32 %v4603_v2, %v17351_v37  ;;  %v15509_v55 = vpop.permute.xlu0 %6599  ;;  %v17356_v2 = vld [vmem:[#allocation327_spill] sm:$0xff]  ;;  %v5371_v37 = vmul.f32 %v15258_v3, %v17360_v46  ;;  %v5143_v29 = vadd.f32 %v5111_v59, %v4882_v22  ;;  %v5373_v20 = vmul.f32 %v15258_v3, %v17361_v57  ;;  %v17363_v6 = vld [vmem:[#allocation34_spill] sm:$0xff]  ;;  %v17365_v22 = vld [vmem:[#allocation36_spill] sm:$0xff] }
 0x67f   : > { %v15507_v17 = vpop.permute.xlu1 %6604  ;;  %v5367_v5 = vmul.f32 %v15258_v3, %v17356_v2  ;;  %v5629_v12 = vmul.f32 %v15281_v51, %v17362_v25  ;;  %v5142_v2 = vadd.f32 %v5110_v30, %v4881_v19  ;;  %v5144_v41 = vadd.f32 %v5112_v26, %v4883_v47  ;;  %v17366_v47 = vld [vmem:[#allocation37_spill] sm:$0xff] }
 0x680   : > { %v5628_v16 = vmul.f32 %v15281_v51, %v17363_v6  ;;  %v5631_v53 = vmul.f32 %v15281_v51, %v17364_v34  ;;  %v5400_v24 = vadd.f32 %v5368_v14, %v5139_v43  ;;  %v5402_v18 = vadd.f32 %v5370_v13, %v5141_v45  ;;  %v17367_v6 = vld [vmem:[#allocation38_spill] sm:$0xff] }
 0x681   : > { %v5399_v46 = vadd.f32 %v5367_v5, %v5138_v4  ;;  %v5630_v56 = vmul.f32 %v15281_v51, %v17365_v22  ;;  %v5401_v59 = vadd.f32 %v5369_v11, %v5140_v42  ;;  %v5404_v57 = vadd.f32 %v5372_v63, %v5143_v29  ;;  %v17369_v5 = vld [vmem:[#allocation40_spill] sm:$0xff]  ;;  %v17370_v45 = vld [vmem:[#allocation46_spill] sm:$0xff]  ;;  %v17371_v42 = vld [vmem:[#allocation47_spill] sm:$0xff] }
 0x682   : > { %v15535_v3 = vpop.permute.xlu0 %6609  ;;  %v5403_v19 = vadd.f32 %v5371_v37, %v5142_v2  ;;  %v5633_v30 = vmul.f32 %v15281_v51, %v17366_v47  ;;  %v5405_v26 = vadd.f32 %v5373_v20, %v5144_v41  ;;  %v5661_v25 = vadd.f32 %v5629_v12, %v5400_v24  ;;  %v17372_v29 = vld [vmem:[#allocation48_spill] sm:$0xff]  ;;  %v17374_v41 = vld [vmem:[#allocation49_spill] sm:$0xff]  ;;  %v17377_v47 = vld [vmem:[#allocation58_spill] sm:$0xff] }
 0x683   : > { %v15531_v60 = vpop.permute.xlu1 %6614  ;;  %v5632_v34 = vmul.f32 %v15281_v51, %v17367_v6  ;;  %v5891_v43 = vmul.f32 %v15298_v28, %v17368_v27  ;;  %v5660_v4 = vadd.f32 %v5628_v16, %v5399_v46  ;;  %v5663_v14 = vadd.f32 %v5631_v53, %v5402_v18  ;;  %v17373_v12 = vld [vmem:[#allocation56_spill] sm:$0xff]  ;;  %v17375_v16 = vld [vmem:[#allocation50_spill] sm:$0xff]  ;;  %v17376_v18 = vld [vmem:[#allocation57_spill] sm:$0xff] }
 0x684   : > { %v5634_v13 = vmul.f32 %v15281_v51, %v17369_v5  ;;  %v5890_v11 = vmul.f32 %v15298_v28, %v17370_v45  ;;  %v5662_v37 = vadd.f32 %v5630_v56, %v5401_v59  ;;  %v5893_v24 = vmul.f32 %v15298_v28, %v17371_v42 }
 0x685   : > { %v5892_v20 = vmul.f32 %v15298_v28, %v17372_v29  ;;  %v6152_v27 = vmul.f32 %v15314_v21, %v17373_v12  ;;  %v5665_v53 = vadd.f32 %v5633_v30, %v5404_v57  ;;  %v5895_v51 = vmul.f32 %v15298_v28, %v17374_v41  ;;  %v17378_v57 = vld [vmem:[#allocation59_spill] sm:$0xff] }
 0x686   : > { %v15555_v2 = vpop.permute.xlu0 %6619  ;;  %v5894_v46 = vmul.f32 %v15298_v28, %v17375_v16  ;;  %v6151_v22 = vmul.f32 %v15314_v21, %v17376_v18  ;;  %v5664_v56 = vadd.f32 %v5632_v34, %v5403_v19  ;;  %v5923_v59 = vadd.f32 %v5891_v43, %v5661_v25  ;;  %v15576_v25 = vld [vmem:[%s16571_s1 + $0x17] ss:$0 sm:$0xff] }
 0x687   : > { %v15547_v63 = vpop.permute.xlu1 %6624  ;;  %v6154_v6 = vmul.f32 %v15314_v21, %v17377_v47  ;;  %v6413_v5 = vmul.f32 %v15345_v58, %v15236_v0  ;;  %v5666_v45 = vadd.f32 %v5634_v13, %v5405_v26  ;;  %v5922_v42 = vadd.f32 %v5890_v11, %v5660_v4  ;;  %v17379_v13 = vld [vmem:[#allocation51_spill] sm:$0xff]  ;;  %v15603_v47 = vld [vmem:[%s16571_s1 + $0x18] ss:$0 sm:$0xff] }
 0x688   : > { %v6153_v30 = vmul.f32 %v15314_v21, %v17378_v57  ;;  %v6412_v29 = vmul.f32 %v15345_v58, %v15238_v62  ;;  %v5925_v41 = vadd.f32 %v5893_v24, %v5663_v14  ;;  %v5924_v16 = vadd.f32 %v5892_v20, %v5662_v37  ;;  %v15587_v14 = vld [vmem:[%s16573_s3 + $0x14] ss:$0 sps:$4 sm:$0xcc]   ;;  %v17380_v20 = vld [vmem:[#allocation66_spill] sm:$0xff] }
 0x689   : > { %v6184_v19 = vadd.f32 %v6152_v27, %v5923_v59  ;;  %v6674_v0 = vmul.f32 %v15576_v25, %v15422_v7  ;;  %v5927_v34 = vadd.f32 %v5895_v51, %v5665_v53  ;;  %v5926_v43 = vadd.f32 %v5894_v46, %v5664_v56  ;;  %v17381_v51 = vld [vmem:[#allocation67_spill] sm:$0xff] }
 0x68a   : > { %v15580_v26 = vpop.permute.xlu0 %6629  ;;  %v6183_v4 = vadd.f32 %v6151_v22, %v5922_v42  ;;  %v6673_v62 = vmul.f32 %v15576_v25, %v15424_v35  ;;  %v5896_v11 = vmul.f32 %v15298_v28, %v17379_v13  ;;  %v6186_v37 = vadd.f32 %v6154_v6, %v5925_v41  ;;  %v17382_v22 = vld [vmem:[#allocation60_spill] sm:$0xff]  ;;  %v17383_v42 = vld [vmem:[#allocation61_spill] sm:$0xff] }
 0x68b   : > { %v15571_v12 = vpop.permute.xlu1 %6634  ;;  %v6445_v24 = vadd.f32 %v6413_v5, %v6184_v19  ;;  %v6415_v7 = vmul.f32 %v15345_v58, %v17380_v20  ;;  %v6185_v27 = vadd.f32 %v6153_v30, %v5924_v16  ;;  %v6414_v46 = vmul.f32 %v15345_v58, %v17381_v51 }
 0x68c   : > { %v6444_v53 = vadd.f32 %v6412_v29, %v6183_v4  ;;  %v8506_v35 = vrot.slane %v15587_v14, 2  ;;  %v6156_v56 = vmul.f32 %v15314_v21, %v17382_v22  ;;  %v6676_v28 = vmul.f32 %v15576_v25, %v15428_v31  ;;  %v17384_v31 = vld [vmem:[#allocation62_spill] sm:$0xff] }
 0x68d   : > { %v6706_v59 = vadd.f32 %v6674_v0, %v6445_v24  ;;  %v6155_v57 = vmul.f32 %v15314_v21, %v17383_v42  ;;  %v6675_v29 = vmul.f32 %v15576_v25, %v15430_v49  ;;  %v6157_v16 = vmul.f32 %v15314_v21, %v17384_v31 }
 0x68e   : > { %v6821_v5 = vpop.permute.xlu0 %6820  ;;  %v6705_v30 = vadd.f32 %v6673_v62, %v6444_v53  ;;  %11669 = vmatprep.subr.msk.bf16.mxu0 %vm7415_vm4, %v8506_v35  ;;  %v6447_v19 = vadd.f32 %v6415_v7, %v6186_v37  ;;  %v6417_v0 = vmul.f32 %v15345_v58, %v15304_v48  ;;  %v5928_v13 = vadd.f32 %v5896_v11, %v5666_v45 }
 0x68f   : > { %v6826_v18 = vpop.permute.xlu1 %6825  ;;  %v6934_v41 = vmul.f32 %v15603_v47, %v6821_v5  ;;  %v6446_v24 = vadd.f32 %v6414_v46, %v6185_v27  ;;  %v6416_v62 = vmul.f32 %v15345_v58, %v15306_v39  ;;  %v6188_v53 = vadd.f32 %v6156_v56, %v5927_v34  ;;  %v15629_v39 = vld [vmem:[%s16572_s2] ss:$0 sm:$0xff]  ;;  %v17385_v56 = vld [vmem:[#allocation68_spill] sm:$0xff] }
 0x690   : > { %v6935_v6 = vmul.f32 %v15603_v47, %v6826_v18  ;;  %v6708_v51 = vadd.f32 %v6676_v28, %v6447_v19  ;;  %v6678_v18 = vmul.f32 %v15576_v25, %v15432_v10  ;;  %v6187_v37 = vadd.f32 %v6155_v57, %v5926_v43 }
 0x691   : > { %v6966_v49 = vadd.f32 %v6934_v41, %v6705_v30  ;;  %v6707_v7 = vadd.f32 %v6675_v29, %v6446_v24  ;;  %v6677_v48 = vmul.f32 %v15576_v25, %v15434_v15  ;;  %v6189_v11 = vadd.f32 %v6157_v16, %v5928_v13 }
 0x692   : > { %v6967_v4 = vadd.f32 %v6935_v6, %v6706_v59  ;;  %v6831_v21 = vpop.permute.xlu0 %6830  ;;  %v6449_v27 = vadd.f32 %v6417_v0, %v6188_v53  ;;  %v6448_v46 = vadd.f32 %v6416_v62, %v6187_v37  ;;  %v6418_v43 = vmul.f32 %v15345_v58, %v17385_v56 }
 0x693   : > { %v6836_v20 = vpop.permute.xlu1 %6835  ;;  %v6936_v45 = vmul.f32 %v15603_v47, %v6831_v21  ;;  %v7005_v59 = vadd.f32 %v15629_v39, %v6966_v49  ;;  %v6680_v5 = vmul.f32 %v15576_v25, %v15444_v50  ;;  %v6679_v41 = vmul.f32 %v15576_v25, %v15446_v40 }
 0x694   : > { %v6937_v22 = vmul.f32 %v15603_v47, %v6836_v20  ;;  %v7006_v34 = vadd.f32 %v15629_v39, %v6967_v4  ;;  %v6710_v6 = vadd.f32 %v6678_v18, %v6449_v27  ;;  %v6709_v29 = vadd.f32 %v6677_v48, %v6448_v46 }
 0x695   : > { %v6968_v28 = vadd.f32 %v6936_v45, %v6707_v7  ;;  %v6450_v4 = vadd.f32 %v6418_v43, %v6189_v11  ;;  %v7037_v13 = vmax.f32 %v7005_v59, 0.0  ;;  %v6712_v49 = vadd.f32 %v6680_v5, %v15354_v32 }
 0x696   : > { %v6969_v10 = vadd.f32 %v6937_v22, %v6708_v51  ;;  %v6841_v30 = vpop.permute.xlu0 %6840  ;;  %v7038_v16 = vmax.f32 %v7006_v34, 0.0  ;;  %v6682_v46 = vmul.f32 %v15576_v25, %v15507_v17 }
 0x697   : > { %v6846_v15 = vpop.permute.xlu1 %6845  ;;  %v7007_v31 = vadd.f32 %v15629_v39, %v6968_v28  ;;  %v6938_v58 = vmul.f32 %v15603_v47, %v6841_v30  ;;  %v6711_v18 = vadd.f32 %v6679_v41, %v6450_v4  ;;  %v6681_v28 = vmul.f32 %v15576_v25, %v15509_v55 }
 0x698   : > { %v7008_v42 = vadd.f32 %v15629_v39, %v6969_v10  ;;  %v6939_v57 = vmul.f32 %v15603_v47, %v6846_v15 }
 0x699   : > { %v7039_v24 = vmax.f32 %v7007_v31, 0.0  ;;  %v6970_v50 = vadd.f32 %v6938_v58, %v6709_v29 }
 0x69a   : > { %v7040_v19 = vmax.f32 %v7008_v42, 0.0  ;;  %v6971_v0 = vadd.f32 %v6939_v57, %v6710_v6  ;;  %v6851_v51 = vpop.permute.xlu0 %6850 }
 0x69b   : > { %v6856_v62 = vpop.permute.xlu1 %6855  ;;  %v7063_v40 = vmax.f32 %v7037_v13, %v7039_v24  ;;  %v6940_v22 = vmul.f32 %v15603_v47, %v6851_v51  ;;  %v7009_v7 = vadd.f32 %v15629_v39, %v6970_v50  ;;  %v6713_v13 = vadd.f32 %v6681_v28, %v15374_v1 }
 0x69c   : > { %v7064_v20 = vmax.f32 %v7038_v16, %v7040_v19  ;;  %v6941_v53 = vmul.f32 %v15603_v47, %v6856_v62  ;;  %v7010_v21 = vadd.f32 %v15629_v39, %v6971_v0  ;;  %v6714_v16 = vadd.f32 %v6682_v46, %v15372_v23 }
 0x69d   : > { %7080 = vst.msk [vmem:[#allocation3 + $0x30] sm:$0xff] %vm7073_vm2, %v7063_v40  ;;  %v6972_v48 = vadd.f32 %v6940_v22, %v6711_v18  ;;  %v7041_v15 = vmax.f32 %v7009_v7, 0.0 }
 0x69e   : > { %7081 = vst.msk [vmem:[#allocation3 + $0x38] sm:$0xff] %vm7073_vm2, %v7064_v20  ;;  %v6973_v37 = vadd.f32 %v6941_v53, %v6712_v49  ;;  %v4812_v27 = vpop.permute.xlu0 %4811  ;;  %v7042_v56 = vmax.f32 %v7010_v21, 0.0  ;;  %v6684_v53 = vmul.f32 %v15576_v25, %v15531_v60 }
 0x69f   : > { %v4817_v45 = vpop.permute.xlu1 %4816  ;;  %v7011_v34 = vadd.f32 %v15629_v39, %v6972_v48  ;;  %v4861_v10 = vmul.f32 %v17333_v36, %v4812_v27 }
 0x6a0   : > { %v7012_v32 = vadd.f32 %v15629_v39, %v6973_v37  ;;  %v4862_v11 = vmul.f32 %v17333_v36, %v4817_v45 }
 0x6a1   : > { %v7043_v6 = vmax.f32 %v7011_v34, 0.0  ;;  %v15662_v5 = vadd.f32 %v4861_v10, %v15481_v9 }
 0x6a2   : > { %v7044_v43 = vmax.f32 %v7012_v32, 0.0  ;;  %v15657_v59 = vadd.f32 %v4862_v11, %v15478_v33  ;;  %v4822_v29 = vpop.permute.xlu0 %4821  ;;  %v6685_v32 = vmul.f32 %v15576_v25, %v15555_v2 }
 0x6a3   : > { %v4827_v42 = vpop.permute.xlu1 %4826  ;;  %v7065_v58 = vmax.f32 %v7041_v15, %v7043_v6  ;;  %v4863_v33 = vmul.f32 %v17333_v36, %v4822_v29 }
 0x6a4   : > { %v7066_v57 = vmax.f32 %v7042_v56, %v7044_v43  ;;  %v4864_v30 = vmul.f32 %v17333_v36, %v4827_v42  ;;  %v7118_v20 = vld [vmem:[#allocation3 + $0x30] sm:$0x1]  ;;  %v7126_v1 = vld [vmem:[#allocation3 + $0x31] sm:$0x1]  ;;  %v7152_v18 = vld [vmem:[#allocation3 + $0x32] sm:$0x1]  ;;  %v6716_v56 = vadd.f32 %v6684_v53, %v15393_v38  ;;  %v6717_v29 = vadd.f32 %v6685_v32, %v15414_v54 }
 0x6a5   : > { %v7248_v41 = vld [vmem:[#allocation3 + $0x38] sm:$0x1]  ;;  %v7256_v17 = vld [vmem:[#allocation3 + $0x39] sm:$0x1]  ;;  %v7280_v31 = vld [vmem:[#allocation3 + $0x3a] sm:$0x1]  ;;  %v15674_v23 = vadd.f32 %v4863_v33, %v15501_v61  ;;  %v6686_v61 = vmul.f32 %v15576_v25, %v15547_v63  ;;  %v7134_v60 = vmax.f32 %v7118_v20, %v7126_v1 }
 0x6a6   : > { %v7264_v19 = vmax.f32 %v7248_v41, %v7256_v17  ;;  %v7288_v55 = vld [vmem:[#allocation3 + $0x3b] sm:$0x1]  ;;  %v7312_v0 = vld [vmem:[#allocation3 + $0x3c] sm:$0x1]  ;;  %v7320_v4 = vld [vmem:[#allocation3 + $0x3d] sm:$0x1]  ;;  %v15669_v9 = vadd.f32 %v4864_v30, %v15498_v8  ;;  %v6683_v8 = vmul.f32 %v15576_v25, %v15535_v3  ;;  %v6861_v21 = vpop.permute.xlu0 %6860 }
 0x6a7   : > { %7083 = vst.msk [vmem:[#allocation3 + $0x48] sm:$0xff] %vm7073_vm2, %v7066_v57  ;;  %v7296_v24 = vmax.f32 %v7280_v31, %v7288_v55  ;;  %v7328_v50 = vmax.f32 %v7312_v0, %v7320_v4  ;;  %v7344_v62 = vld [vmem:[#allocation3 + $0x3e] sm:$0x1]  ;;  %v7352_v49 = vld [vmem:[#allocation3 + $0x3f] sm:$0x1]  ;;  %7082 = vst.msk [vmem:[#allocation3 + $0x40] sm:$0xff] %vm7073_vm2, %v7065_v58  ;;  %v6866_v36 = vpop.permute.xlu1 %6865  ;;  %v6942_v45 = vmul.f32 %v15603_v47, %v6861_v21 }
 0x6a8   : > { %v7360_v51 = vmax.f32 %v7344_v62, %v7352_v49  ;;  %7272 = vst.msk [vmem:[#allocation4 + $0x56] sm:$0x1] %vm7140_vm5, %v7264_v19  ;;  %v7160_v40 = vld [vmem:[#allocation3 + $0x33] sm:$0x1]  ;;  %v6943_v22 = vmul.f32 %v15603_v47, %v6866_v36  ;;  %v7184_v7 = vld [vmem:[#allocation3 + $0x34] sm:$0x1]  ;;  %v6715_v2 = vadd.f32 %v6683_v8, %v15395_v44  ;;  %v6718_v15 = vadd.f32 %v6686_v61, %v15412_v52 }
 0x6a9   : > { %7304 = vst.msk [vmem:[#allocation4 + $0x57] sm:$0x1] %vm7140_vm5, %v7296_v24  ;;  %7336 = vst.msk [vmem:[#allocation4 + $0x58] sm:$0x1] %vm7140_vm5, %v7328_v50  ;;  %v7168_v37 = vmax.f32 %v7152_v18, %v7160_v40  ;;  %v7192_v3 = vld [vmem:[#allocation3 + $0x35] sm:$0x1]  ;;  %v6974_v10 = vadd.f32 %v6942_v45, %v6713_v13  ;;  %v6688_v24 = vmul.f32 %v15576_v25, %v15571_v12 }
 0x6aa   : > { %v7216_v48 = vld [vmem:[#allocation3 + $0x36] sm:$0x1]  ;;  %7368 = vst.msk [vmem:[#allocation4 + $0x59] sm:$0x1] %vm7140_vm5, %v7360_v51  ;;  %v7200_v11 = vmax.f32 %v7184_v7, %v7192_v3  ;;  %v7224_v27 = vld [vmem:[#allocation3 + $0x37] sm:$0x1]  ;;  %v6975_v34 = vadd.f32 %v6943_v22, %v6714_v16  ;;  %v6871_v28 = vpop.permute.xlu0 %6870  ;;  %v6687_v21 = vmul.f32 %v15576_v25, %v15580_v26 }
 0x6ab   : > { %v7232_v63 = vmax.f32 %v7216_v48, %v7224_v27  ;;  %7144 = vst.msk [vmem:[#allocation4 + $0x52] sm:$0x1] %vm7140_vm5, %v7134_v60  ;;  %7176 = vst.msk [vmem:[#allocation4 + $0x53] sm:$0x1] %vm7140_vm5, %v7168_v37  ;;  %v6876_v46 = vpop.permute.xlu1 %6875  ;;  %v6944_v30 = vmul.f32 %v15603_v47, %v6871_v28  ;;  %v7013_v0 = vadd.f32 %v15629_v39, %v6974_v10  ;;  %v17386_v27 = vld [vmem:[#allocation70_spill] sm:$0xff] }
 0x6ac   : > { %7208 = vst.msk [vmem:[#allocation4 + $0x54] sm:$0x1] %vm7140_vm5, %v7200_v11  ;;  %v6945_v43 = vmul.f32 %v15603_v47, %v6876_v46  ;;  %v7014_v58 = vadd.f32 %v15629_v39, %v6975_v34  ;;  %v6720_v34 = vadd.f32 %v6688_v24, %v17386_v27  ;;  %v15718_v10 = vld [vmem:[#allocation4 + $0x41] sm:$0xff] }
 0x6ad   : > { %7240 = vst.msk [vmem:[#allocation4 + $0x55] sm:$0x1] %vm7140_vm5, %v7232_v63  ;;  %v6976_v4 = vadd.f32 %v6944_v30, %v6715_v2  ;;  %v7045_v48 = vmax.f32 %v7013_v0, 0.0 }
 0x6ae   : > { %v7249_v6 = vld [vmem:[#allocation3 + $0x48] sm:$0x1]  ;;  %v7257_v42 = vld [vmem:[#allocation3 + $0x49] sm:$0x1]  ;;  %v7281_v57 = vld [vmem:[#allocation3 + $0x4a] sm:$0x1]  ;;  %v6977_v33 = vadd.f32 %v6945_v43, %v6716_v56  ;;  %v6881_v53 = vpop.permute.xlu0 %6880 }
 0x6af   : > { %v7265_v41 = vmax.f32 %v7249_v6, %v7257_v42  ;;  %v7289_v38 = vld [vmem:[#allocation3 + $0x4b] sm:$0x1]  ;;  %v7313_v17 = vld [vmem:[#allocation3 + $0x4c] sm:$0x1]  ;;  %v7321_v31 = vld [vmem:[#allocation3 + $0x4d] sm:$0x1]  ;;  %v6886_v13 = vpop.permute.xlu1 %6885  ;;  %v7015_v40 = vadd.f32 %v15629_v39, %v6976_v4  ;;  %v6946_v22 = vmul.f32 %v15603_v47, %v6881_v53 }
 0x6b0   : > { %v7297_v16 = vmax.f32 %v7281_v57, %v7289_v38  ;;  %v7329_v44 = vmax.f32 %v7313_v17, %v7321_v31  ;;  %v7345_v19 = vld [vmem:[#allocation3 + $0x4e] sm:$0x1]  ;;  %v7353_v52 = vld [vmem:[#allocation3 + $0x4f] sm:$0x1]  ;;  %v7119_v55 = vld [vmem:[#allocation3 + $0x40] sm:$0x1]  ;;  %v7016_v20 = vadd.f32 %v15629_v39, %v6977_v33  ;;  %v6947_v36 = vmul.f32 %v15603_v47, %v6886_v13 }
 0x6b1   : > { %v7361_v54 = vmax.f32 %v7345_v19, %v7353_v52  ;;  %7273 = vst.msk [vmem:[#allocation4 + $0x66] sm:$0x1] %vm7140_vm5, %v7265_v41  ;;  %v7127_v50 = vld [vmem:[#allocation3 + $0x41] sm:$0x1]  ;;  %v7153_v62 = vld [vmem:[#allocation3 + $0x42] sm:$0x1]  ;;  %v6978_v63 = vadd.f32 %v6946_v22, %v6717_v29 }
 0x6b2   : > { %v7161_v49 = vld [vmem:[#allocation3 + $0x43] sm:$0x1]  ;;  %7305 = vst.msk [vmem:[#allocation4 + $0x67] sm:$0x1] %vm7140_vm5, %v7297_v16  ;;  %7337 = vst.msk [vmem:[#allocation4 + $0x68] sm:$0x1] %vm7140_vm5, %v7329_v44  ;;  %v7135_v8 = vmax.f32 %v7119_v55, %v7127_v50  ;;  %v6979_v32 = vadd.f32 %v6947_v36, %v6718_v15  ;;  %v6891_v43 = vpop.permute.xlu0 %6890 }
 0x6b3   : > { %v7169_v51 = vmax.f32 %v7153_v62, %v7161_v49  ;;  %v7185_v1 = vld [vmem:[#allocation3 + $0x44] sm:$0x1]  ;;  %v7193_v18 = vld [vmem:[#allocation3 + $0x45] sm:$0x1]  ;;  %v7217_v12 = vld [vmem:[#allocation3 + $0x46] sm:$0x1]  ;;  %v6896_v11 = vpop.permute.xlu1 %6895  ;;  %v6948_v30 = vmul.f32 %v15603_v47, %v6891_v43  ;;  %v7017_v41 = vadd.f32 %v15629_v39, %v6978_v63 }
 0x6b4   : > { %7369 = vst.msk [vmem:[#allocation4 + $0x69] sm:$0x1] %vm7140_vm5, %v7361_v54  ;;  %v7201_v61 = vmax.f32 %v7185_v1, %v7193_v18  ;;  %v7225_v60 = vld [vmem:[#allocation3 + $0x47] sm:$0x1]  ;;  %v7046_v37 = vmax.f32 %v7014_v58, 0.0  ;;  %v7048_v7 = vmax.f32 %v7016_v20, 0.0  ;;  %v6949_v56 = vmul.f32 %v15603_v47, %v6896_v11 }
 0x6b5   : > { %v7233_v3 = vmax.f32 %v7217_v12, %v7225_v60  ;;  %7145 = vst.msk [vmem:[#allocation4 + $0x62] sm:$0x1] %vm7140_vm5, %v7135_v8  ;;  %7177 = vst.msk [vmem:[#allocation4 + $0x63] sm:$0x1] %vm7140_vm5, %v7169_v51  ;;  %v7047_v45 = vmax.f32 %v7015_v40, 0.0  ;;  %v7391_v46 = vld [vmem:[#allocation4 + $0x51] sm:$0xff]  ;;  %v7018_v42 = vadd.f32 %v15629_v39, %v6979_v32 }
 0x6b6   : > { %7209 = vst.msk [vmem:[#allocation4 + $0x64] sm:$0x1] %vm7140_vm5, %v7201_v61  ;;  %v7068_v26 = vmax.f32 %v7046_v37, %v7048_v7  ;;  %v15723_v2 = vpack.c.bf16 %v7391_v46, %v15718_v10  ;;  %v17387_v15 = vld [vmem:[#allocation71_spill] sm:$0xff]  ;;  %v6981_v57 = vadd.f32 %v6949_v56, %v6720_v34  ;;  %v15736_v31 = vpop.permute.xlu0 %5072  ;;  %v7049_v19 = vmax.f32 %v7017_v41, 0.0  ;;  %v15741_v0 = vld [vmem:[#allocation4 + $0x54] sm:$0xff] }
 0x6b7   : > { %7241 = vst.msk [vmem:[#allocation4 + $0x65] sm:$0x1] %vm7140_vm5, %v7233_v3  ;;  %v7067_v28 = vmax.f32 %v7045_v48, %v7047_v45  ;;  %v6719_v6 = vadd.f32 %v6687_v21, %v17387_v15  ;;  %v15732_v29 = vpop.permute.xlu1 %5077  ;;  %v7050_v58 = vmax.f32 %v7018_v42, 0.0  ;;  %v15765_v45 = vld [vmem:[#allocation4 + $0x52] sm:$0xff] }
 0x6b8   : > { %7085 = vst.msk [vmem:[#allocation3 + $0x58] sm:$0xff] %vm7073_vm2, %v7068_v26  ;;  %11222 = vmatprep.mubr.msk.bf16.mxu1 %vm7073_vm2, %v15723_v2  ;;  %v7020_v38 = vadd.f32 %v15629_v39, %v6981_v57  ;;  %v15767_v32 = vld [vmem:[#allocation4 + $0x53] sm:$0xff] }
 0x6b9   : > { %7084 = vst.msk [vmem:[#allocation3 + $0x50] sm:$0xff] %vm7073_vm2, %v7067_v28  ;;  %v6980_v17 = vadd.f32 %v6948_v30, %v6719_v6 }
 0x6ba   : > { %v7052_v33 = vmax.f32 %v7020_v38, 0.0  ;;  %v15745_v13 = vpop.permute.xlu0 %5082 }
 0x6bb   : > { %v7019_v16 = vadd.f32 %v15629_v39, %v6980_v17  ;;  %v15739_v44 = vpop.permute.xlu1 %5087 }
 0x6bc   : > { %v7070_v52 = vmax.f32 %v7050_v58, %v7052_v33 }
 0x6bd   : > { %v7051_v55 = vmax.f32 %v7019_v16, 0.0 }
 0x6be   : > { %v15743_v4 = vld [vmem:[#allocation4 + $0x64] sm:$0xff]  ;;  %7087 = vst.msk [vmem:[#allocation3 + $0x68] sm:$0xff] %vm7073_vm2, %v7070_v52  ;;  %v15763_v48 = vpop.permute.xlu0 %5333 }
 0x6bf   : > { %v15747_v24 = vld [vmem:[#allocation4 + $0x61] sm:$0xff]  ;;  %v7250_v54 = vld [vmem:[#allocation3 + $0x58] sm:$0x1]  ;;  %v7258_v50 = vld [vmem:[#allocation3 + $0x59] sm:$0x1]  ;;  %v15751_v49 = vpack.c.bf16 %v15743_v4, %v15741_v0  ;;  %v7069_v1 = vmax.f32 %v7049_v19, %v7051_v55  ;;  %v15759_v61 = vpop.permute.xlu1 %5338 }
 0x6c0   : > { %v7282_v62 = vld [vmem:[#allocation3 + $0x5a] sm:$0x1]  ;;  %v15754_v20 = vpack.c.bf16 %v15747_v24, %v7391_v46  ;;  %v7266_v36 = vmax.f32 %v7250_v54, %v7258_v50  ;;  %v7290_v53 = vld [vmem:[#allocation3 + $0x5b] sm:$0x1]  ;;  %v7314_v8 = vld [vmem:[#allocation3 + $0x5c] sm:$0x1] }
 0x6c1   : > { %17388 = vst [vmem:[#allocation72_spill] sm:$0xff] %v15751_v49  ;;  %v7322_v51 = vld [vmem:[#allocation3 + $0x5d] sm:$0x1]  ;;  %v7298_v18 = vmax.f32 %v7282_v62, %v7290_v53  ;;  %v7346_v40 = vld [vmem:[#allocation3 + $0x5e] sm:$0x1]  ;;  %11312 = vmatprep.mubr.msk.bf16.mxu0 %vm7073_vm2, %v15751_v49  ;;  %7086 = vst.msk [vmem:[#allocation3 + $0x60] sm:$0xff] %vm7073_vm2, %v7069_v1 }
 0x6c2   : > { %v7330_v12 = vmax.f32 %v7314_v8, %v7322_v51  ;;  %v7354_v22 = vld [vmem:[#allocation3 + $0x5f] sm:$0x1]  ;;  %v7120_v21 = vld [vmem:[#allocation3 + $0x50] sm:$0x1]  ;;  %7274 = vst.msk [vmem:[#allocation4 + $0x76] sm:$0x1] %vm7140_vm5, %v7266_v36 }
 0x6c3   : > { %v7362_v60 = vmax.f32 %v7346_v40, %v7354_v22  ;;  %v7128_v37 = vld [vmem:[#allocation3 + $0x51] sm:$0x1]  ;;  %v7154_v7 = vld [vmem:[#allocation3 + $0x52] sm:$0x1]  ;;  %v7162_v3 = vld [vmem:[#allocation3 + $0x53] sm:$0x1]  ;;  %v15778_v6 = vpop.permute.xlu1 %5348  ;;  %v15789_v30 = vpop.permute.xlu0 %5343 }
 0x6c4   : > { %7306 = vst.msk [vmem:[#allocation4 + $0x77] sm:$0x1] %vm7140_vm5, %v7298_v18  ;;  %7338 = vst.msk [vmem:[#allocation4 + $0x78] sm:$0x1] %vm7140_vm5, %v7330_v12  ;;  %v7136_v11 = vmax.f32 %v7120_v21, %v7128_v37  ;;  %v7170_v27 = vmax.f32 %v7154_v7, %v7162_v3  ;;  %v7186_v34 = vld [vmem:[#allocation3 + $0x54] sm:$0x1] }
 0x6c5   : > { %v7194_v26 = vld [vmem:[#allocation3 + $0x55] sm:$0x1]  ;;  %v7218_v63 = vld [vmem:[#allocation3 + $0x56] sm:$0x1]  ;;  %7370 = vst.msk [vmem:[#allocation4 + $0x79] sm:$0x1] %vm7140_vm5, %v7362_v60 }
 0x6c6   : > { %v7202_v46 = vmax.f32 %v7186_v34, %v7194_v26  ;;  %v7226_v56 = vld [vmem:[#allocation3 + $0x57] sm:$0x1]  ;;  %v15772_v43 = vld [vmem:[#allocation4 + $0x62] sm:$0xff]  ;;  %7146 = vst.msk [vmem:[#allocation4 + $0x72] sm:$0x1] %vm7140_vm5, %v7136_v11 }
 0x6c7   : > { %v15774_v28 = vld [vmem:[#allocation4 + $0x63] sm:$0xff]  ;;  %v7234_v15 = vmax.f32 %v7218_v63, %v7226_v56  ;;  %7178 = vst.msk [vmem:[#allocation4 + $0x73] sm:$0x1] %vm7140_vm5, %v7170_v27  ;;  %v15782_v42 = vpack.c.bf16 %v15772_v43, %v15765_v45  ;;  %v7291_v33 = vld [vmem:[#allocation3 + $0x6b] sm:$0x1]  ;;  %v15792_v36 = vpop.permute.xlu1 %5599  ;;  %v15795_v12 = vpop.permute.xlu0 %5594  ;;  %v15804_v34 = vld [vmem:[#allocation4 + $0x10] sm:$0xff] }
 0x6c8   : > { %v15786_v57 = vpack.c.bf16 %v15774_v28, %v15767_v32  ;;  %7210 = vst.msk [vmem:[#allocation4 + $0x74] sm:$0x1] %vm7140_vm5, %v7202_v46  ;;  %v7251_v41 = vld [vmem:[#allocation3 + $0x68] sm:$0x1]  ;;  %v7259_v38 = vld [vmem:[#allocation3 + $0x69] sm:$0x1] }
 0x6c9   : > { %17389 = vst [vmem:[#allocation73_spill] sm:$0xff] %v15782_v42  ;;  %7242 = vst.msk [vmem:[#allocation4 + $0x75] sm:$0x1] %vm7140_vm5, %v7234_v15  ;;  %v7283_v17 = vld [vmem:[#allocation3 + $0x6a] sm:$0x1]  ;;  %v7267_v58 = vmax.f32 %v7251_v41, %v7259_v38  ;;  %v7373_v53 = vld [vmem:[#allocation4] sm:$0xff] }
 0x6ca   : > { %17390 = vst [vmem:[#allocation74_spill] sm:$0xff] %v15786_v57  ;;  %v7315_v16 = vld [vmem:[#allocation3 + $0x6c] sm:$0x1]  ;;  %v7323_v19 = vld [vmem:[#allocation3 + $0x6d] sm:$0x1]  ;;  %v7299_v52 = vmax.f32 %v7283_v17, %v7291_v33  ;;  %v7382_v46 = vpack.c.bf16 %v15804_v34, %v7373_v53  ;;  %v15824_v38 = vld [vmem:[#allocation4 + $0x30] sm:$0xff] }
 0x6cb   : > { %v7331_v55 = vmax.f32 %v7315_v16, %v7323_v19  ;;  %v7347_v54 = vld [vmem:[#allocation3 + $0x6e] sm:$0x1]  ;;  %v7355_v50 = vld [vmem:[#allocation3 + $0x6f] sm:$0x1]  ;;  %v7121_v62 = vld [vmem:[#allocation3 + $0x60] sm:$0x1]  ;;  %v15802_v27 = vpop.permute.xlu1 %5609 }
 0x6cc   : > { %v7363_v8 = vmax.f32 %v7347_v54, %v7355_v50  ;;  %7275 = vst.msk [vmem:[#allocation4 + $0x86] sm:$0x1] %vm7140_vm5, %v7267_v58  ;;  %v7129_v51 = vld [vmem:[#allocation3 + $0x61] sm:$0x1]  ;;  %v7155_v1 = vld [vmem:[#allocation3 + $0x62] sm:$0x1]  ;;  %v15809_v63 = vpop.permute.xlu0 %5604 }
 0x6cd   : > { %v7163_v18 = vld [vmem:[#allocation3 + $0x63] sm:$0x1]  ;;  %7307 = vst.msk [vmem:[#allocation4 + $0x87] sm:$0x1] %vm7140_vm5, %v7299_v52  ;;  %7339 = vst.msk [vmem:[#allocation4 + $0x88] sm:$0x1] %vm7140_vm5, %v7331_v55  ;;  %v7137_v40 = vmax.f32 %v7121_v62, %v7129_v51 }
 0x6ce   : > { %v7171_v22 = vmax.f32 %v7155_v1, %v7163_v18  ;;  %v7187_v21 = vld [vmem:[#allocation3 + $0x64] sm:$0x1]  ;;  %v7195_v60 = vld [vmem:[#allocation3 + $0x65] sm:$0x1]  ;;  %v7219_v37 = vld [vmem:[#allocation3 + $0x66] sm:$0x1] }
 0x6cf   : > { %7371 = vst.msk [vmem:[#allocation4 + $0x89] sm:$0x1] %vm7140_vm5, %v7363_v8  ;;  %v7203_v7 = vmax.f32 %v7187_v21, %v7195_v60  ;;  %v7227_v3 = vld [vmem:[#allocation3 + $0x67] sm:$0x1]  ;;  %7147 = vst.msk [vmem:[#allocation4 + $0x82] sm:$0x1] %vm7140_vm5, %v7137_v40  ;;  %v15819_v15 = vpop.permute.xlu1 %5861 }
 0x6d0   : > { %v7235_v11 = vmax.f32 %v7219_v37, %v7227_v3  ;;  %7179 = vst.msk [vmem:[#allocation4 + $0x83] sm:$0x1] %vm7140_vm5, %v7171_v22  ;;  %v15807_v26 = vld [vmem:[#allocation4 + $0x71] sm:$0xff]  ;;  %v15821_v41 = vpop.permute.xlu0 %5856  ;;  %v11743_v17 = vld [vmem:[%s16573_s3 + $0x4] ss:$0 sps:$4 sm:$0xcc]  }
 0x6d1   : > { %7211 = vst.msk [vmem:[#allocation4 + $0x84] sm:$0x1] %vm7140_vm5, %v7203_v7  ;;  %17391 = vst [vmem:[#allocation75_spill] sm:$0xff] %v15807_v26  ;;  %v15815_v56 = vpack.c.bf16 %v15807_v26, %v15747_v24  ;;  %v15831_v33 = vld [vmem:[#allocation4 + $0x50] sm:$0xff]  ;;  %v15833_v24 = vld [vmem:[#allocation4 + $0x20] sm:$0xff]  ;;  %v7681_v51 = vrot.slane %v11743_v17, 2 }
 0x6d2   : > { %7243 = vst.msk [vmem:[#allocation4 + $0x85] sm:$0x1] %vm7140_vm5, %v7235_v11  ;;  %v15835_v16 = vld [vmem:[#allocation4 + $0x74] sm:$0xff]  ;;  %v7383_v55 = vpack.c.bf16 %v15824_v38, %v15833_v24  ;;  %v15847_v50 = vld [vmem:[#allocation4 + $0x40] sm:$0xff] }
 0x6d3   : > { %11223 = vmatmul.mubr.msk.bf16.gmra.mrb[4].mxu1 %vm7073_vm2, %v15815_v56  ;;  %v15829_v58 = vpop.permute.xlu1 %5871  ;;  %v15851_v62 = vpack.c.bf16 %v15831_v33, %v15847_v50  ;;  %v17395_v53 = vld [vmem:[#allocation69_spill] sm:$0xff]  ;;  %v15865_v22 = vld [vmem:[#allocation4 + $0x70] sm:$0xff] }
 0x6d4   : > { %11228 = vmatprep.mubr.msk.bf16.mxu1 %vm7073_vm2, %v7382_v46  ;;  %v15839_v52 = vpop.permute.xlu0 %5866  ;;  %v7590_v8 = vsel %vm7415_vm4, %v17395_v53, 0  ;;  %v7564_v40 = vld [vmem:[#allocation4 + $0x2] sm:$0xff]  ;;  %v11867_v7 = vld [vmem:[#allocation4 + $0x12] sm:$0xff]  ;;  %v8520_v46 = vsel %vm7415_vm4, %v8506_v35, 0  ;;  %v11868_v53 = vld [vmem:[%s16571_s1 + $0x11] ss:$0 sm:$0xff] }
 0x6d5   : > { %17394 = vst [vmem:[#allocation78_spill] sm:$0xff] %v15851_v62  ;;  %v15870_v60 = vld [vmem:[#allocation4 + $0x60] sm:$0xff]  ;;  %v7573_v3 = vpack.c.bf16 %v11867_v7, %v7564_v40  ;;  %v5123_v14 = vmul.f32 %v11868_v53, %v15732_v29  ;;  %v5122_v40 = vmul.f32 %v11868_v53, %v15736_v31  ;;  %v11869_v7 = vld [vmem:[%s16571_s1 + $0x12] ss:$0 sm:$0xff]  ;;  %v5125_v29 = vmul.f32 %v11868_v53, %v15739_v44  ;;  %v15920_v26 = vld [vmem:[#allocation4 + $0x13] sm:$0xff] }
 0x6d6   : > { %v15876_v11 = vpack.c.bf16 %v15865_v22, %v15870_v60  ;;  %v7695_v44 = vsel %vm7415_vm4, %v7681_v51, 0 }
 0x6d7   : > { %v15858_v1 = vpop.permute.xlu1 %6122 }
 0x6d8   : > { %v15863_v18 = vpop.permute.xlu0 %6117  ;;  %17396 = vst [vmem:[#allocation79_spill] sm:$0xff] %v15876_v11 }
 0x6d9   : > { %v15837_v19 = vld [vmem:[#allocation4 + $0x84] sm:$0xff] }
 0x6da   : > { %17392 = vst [vmem:[#allocation76_spill] sm:$0xff] %v15837_v19  ;;  %v15845_v54 = vpack.c.bf16 %v15837_v19, %v15835_v16  ;;  %v5124_v19 = vmul.f32 %v11868_v53, %v15745_v13 }
 0x6db   : > { %11229 = vmatmul.mubr.msk.bf16.vlgmr.msra.gmra.mrb[0].mxu1 %vm7073_vm2, %v7383_v55  ;;  %v15868_v21 = vpop.permute.xlu1 %6132 }
 0x6dc   : > { %17393 = vst [vmem:[#allocation77_spill] sm:$0xff] %v15845_v54  ;;  %11313 = vmatmul.mubr.msk.bf16.gmra.mrb[4].mxu0 %vm7073_vm2, %v15845_v54  ;;  %11232 = vmatprep.mubr.msk.bf16.mxu1 %vm7073_vm2, %v15851_v62  ;;  %v15872_v37 = vpop.permute.xlu0 %6127  ;;  %v15904_v54 = vld [vmem:[#allocation4 + $0x3] sm:$0xff] }
 0x6dd   : > { %11318 = vmatprep.mubr.msk.bf16.mxu0 %vm7073_vm2, %v7383_v55  ;;  %11237 = vmatpush3.bf16.msra.mxu1 %v7590_v8  ;;  %v15888_v55 = vld [vmem:[%s16573_s3 + $0x18] sm:$0x3]  ;;  %v7674_v13 = vpack.c.bf16 %v15920_v26, %v15904_v54 }
 0x6de   : > { %11661 = vmatprep.subr.msk.bf16.mxu1 %vm7415_vm4, %v7681_v51  ;;  %v15897_v8 = vld [vmem:[#allocation4 + $0x32] sm:$0xff] }
 0x6df   : > { %v6384_v17 = vpop.permute.xlu1 %6383  ;;  %17397 = vst [vmem:[#allocation80_spill] sm:$0xff] %v15897_v8 }
 0x6e0   : > { %v6379_v35 = vpop.permute.xlu0 %6378 }
 0x6e3   : > { %11233 = vmatmul.mubr.msk.bf16.gmra.mrb[4].mxu1 %vm7073_vm2, %v15876_v11  ;;  %v6394_v31 = vpop.permute.xlu1 %6393 }
 0x6e4   : > { %11319 = vmatmul.mubr.msk.bf16.vlgmr.msra.gmra.mrb[0].mxu0 %vm7073_vm2, %v15851_v62  ;;  %11238 = vmatprep.mubr.msk.bf16.mxu1 %vm7073_vm2, %v7573_v3  ;;  %v5384_v62 = vmul.f32 %v11869_v7, %v15759_v61  ;;  %v5383_v3 = vmul.f32 %v11869_v7, %v15763_v48  ;;  %v11871_v61 = vld [vmem:[%s16571_s1 + $0x13] ss:$0 sm:$0xff]  ;;  %v6389_v42 = vpop.permute.xlu0 %6388  ;;  %v5154_v48 = vadd.f32 %v5122_v40, %v15662_v5 }
 0x6e5   : > { %11322 = vmatprep.mubr.msk.bf16.mxu0 %vm7073_vm2, %v15876_v11  ;;  %11327 = vmatpush3.bf16.msra.mxu0 %v8520_v46  ;;  %v11870_v11 = vld [vmem:[#allocation4 + $0x22] sm:$0xff]  ;;  %v5155_v46 = vadd.f32 %v5123_v14, %v15657_v59  ;;  %v5645_v57 = vmul.f32 %v11871_v61, %v15792_v36  ;;  %v5385_v14 = vmul.f32 %v11869_v7, %v15789_v30  ;;  %v11872_v36 = vld [vmem:[%s16571_s1 + $0x14] ss:$0 sm:$0xff] }
 0x6e6   : > { %11670 = vmatprep.subr.msk.bf16.mxu0 %vm7415_vm4, %v15888_v55  ;;  %v15911_v49 = vpack.c.bf16 %v15897_v8, %v11870_v11  ;;  %v5386_v11 = vmul.f32 %v11869_v7, %v15778_v6  ;;  %v5644_v8 = vmul.f32 %v11871_v61, %v15795_v12  ;;  %v15925_v59 = vld [vmem:[#allocation4 + $0x42] sm:$0xff]  ;;  %v5907_v51 = vmul.f32 %v11872_v36, %v15819_v15  ;;  %v11873_v7 = vld [vmem:[%s16571_s1 + $0x15] ss:$0 sm:$0xff] }
 0x6e7   : > { %v5416_v53 = vadd.f32 %v5384_v62, %v5155_v46  ;;  %v15936_v5 = vpack.c.bf16 %v15765_v45, %v15925_v59  ;;  %v15941_v6 = vld [vmem:[%s16573_s3 + $0x8] sm:$0x3]  ;;  %v5157_v12 = vadd.f32 %v5125_v29, %v15669_v9  ;;  %v5415_v54 = vadd.f32 %v5383_v3, %v5154_v48  ;;  %v6645_v15 = vpop.permute.xlu1 %6644  ;;  %v15957_v48 = vld [vmem:[#allocation4 + $0x72] sm:$0xff] }
 0x6e8   : > { %v5647_v30 = vmul.f32 %v11871_v61, %v15802_v27  ;;  %v5906_v62 = vmul.f32 %v11872_v36, %v15821_v41  ;;  %v5156_v40 = vadd.f32 %v5124_v19, %v15674_v23  ;;  %v6168_v46 = vmul.f32 %v11873_v7, %v15858_v1  ;;  %v6640_v9 = vpop.permute.xlu0 %6639  ;;  %v11874_v1 = vld [vmem:[%s16571_s1 + $0x16] ss:$0 sm:$0xff] }
 0x6e9   : > { %v5677_v45 = vadd.f32 %v5645_v57, %v5416_v53  ;;  %v5418_v27 = vadd.f32 %v5386_v11, %v5157_v12  ;;  %v5676_v41 = vadd.f32 %v5644_v8, %v5415_v54  ;;  %v5646_v29 = vmul.f32 %v11871_v61, %v15809_v63 }
 0x6ea   : > { %v6167_v3 = vmul.f32 %v11873_v7, %v15863_v18  ;;  %v5417_v23 = vadd.f32 %v5385_v14, %v5156_v40  ;;  %v5909_v19 = vmul.f32 %v11872_v36, %v15829_v58  ;;  %v5908_v63 = vmul.f32 %v11872_v36, %v15839_v52 }
 0x6eb   : > { %11239 = vmatmul.mubr.msk.bf16.vlgmr.msra.gmra.mrb[0].mxu1 %vm7073_vm2, %v15911_v49  ;;  %v5939_v57 = vadd.f32 %v5907_v51, %v5677_v45  ;;  %v5679_v11 = vadd.f32 %v5647_v30, %v5418_v27  ;;  %v5938_v8 = vadd.f32 %v5906_v62, %v5676_v41  ;;  %v6428_v61 = vmul.f32 %v11874_v1, %v6379_v35  ;;  %v6655_v18 = vpop.permute.xlu1 %6654 }
 0x6ec   : > { %11242 = vmatprep.mubr.msk.bf16.mxu1 %vm7073_vm2, %v15936_v5  ;;  %11247 = vmatpush3.bf16.msra.mxu1 %v7695_v44  ;;  %v6429_v44 = vmul.f32 %v11874_v1, %v6384_v17  ;;  %v6170_v12 = vmul.f32 %v11873_v7, %v15868_v21  ;;  %v6690_v54 = vmul.f32 %v15576_v25, %v6645_v15  ;;  %v6650_v58 = vpop.permute.xlu0 %6649 }
 0x6ed   : > { %11662 = vmatprep.subr.msk.bf16.mxu1 %vm7415_vm4, %v15941_v6  ;;  %v6200_v53 = vadd.f32 %v6168_v46, %v5939_v57  ;;  %v15970_v14 = vpack.c.bf16 %v15957_v48, %v15772_v43  ;;  %v5678_v51 = vadd.f32 %v5646_v29, %v5417_v23  ;;  %v6199_v40 = vadd.f32 %v6167_v3, %v5938_v8  ;;  %v11745_v3 = vld [vmem:[%s16573_s3 + $0x8] ss:$0 sps:$4 sm:$0xcc]  }
 0x6ee   : > { %v6169_v17 = vmul.f32 %v11873_v7, %v15872_v37  ;;  %v6689_v30 = vmul.f32 %v15576_v25, %v6640_v9  ;;  %v5941_v62 = vadd.f32 %v5909_v19, %v5679_v11  ;;  %v6431_v35 = vmul.f32 %v11874_v1, %v6394_v31 }
 0x6ef   : > { %v6461_v52 = vadd.f32 %v6429_v44, %v6200_v53  ;;  %v5940_v36 = vadd.f32 %v5908_v63, %v5678_v51  ;;  %v6460_v45 = vadd.f32 %v6428_v61, %v6199_v40  ;;  %v6430_v46 = vmul.f32 %v11874_v1, %v6389_v42  ;;  %v6906_v21 = vpop.permute.xlu1 %6905  ;;  %v15981_v42 = vld [vmem:[#allocation4 + $0x33] sm:$0xff]  ;;  %v15986_v44 = vld [vmem:[#allocation4 + $0x23] sm:$0xff] }
 0x6f0   : > { %v6202_v15 = vadd.f32 %v6170_v12, %v5941_v62  ;;  %v6692_v27 = vmul.f32 %v15576_v25, %v6655_v18  ;;  %v6951_v41 = vmul.f32 %v15603_v47, %v6906_v21  ;;  %v6901_v29 = vpop.permute.xlu0 %6900  ;;  %v6691_v31 = vmul.f32 %v15576_v25, %v6650_v58  ;;  %v15993_v18 = vld [vmem:[#allocation4 + $0x43] sm:$0xff] }
 0x6f1   : > { %v6722_v43 = vadd.f32 %v6690_v54, %v6461_v52  ;;  %v6201_v37 = vadd.f32 %v6169_v17, %v5940_v36  ;;  %v6721_v7 = vadd.f32 %v6689_v30, %v6460_v45  ;;  %v6950_v9 = vmul.f32 %v15603_v47, %v6901_v29  ;;  %v7771_v52 = vld [vmem:[#allocation4 + $0x14] sm:$0xff]  ;;  %v16024_v29 = vld [vmem:[#allocation4 + $0x44] sm:$0xff] }
 0x6f2   : > { %v6463_v23 = vadd.f32 %v6431_v35, %v6202_v15  ;;  %v15990_v8 = vpack.c.bf16 %v15981_v42, %v15986_v44  ;;  %v7796_v12 = vsel %vm7415_vm4, %v15941_v6, 0  ;;  %v7888_v54 = vrot.slane %v11745_v3, 2  ;;  %v7770_v6 = vld [vmem:[#allocation4 + $0x4] sm:$0xff]  ;;  %v16011_v36 = vld [vmem:[#allocation4 + $0x73] sm:$0xff] }
 0x6f3   : > { %11243 = vmatmul.mubr.msk.bf16.gmra.mrb[4].mxu1 %vm7073_vm2, %v15970_v14  ;;  %v6983_v57 = vadd.f32 %v6951_v41, %v6722_v43  ;;  %v6462_v19 = vadd.f32 %v6430_v46, %v6201_v37  ;;  %v6982_v1 = vadd.f32 %v6950_v9, %v6721_v7  ;;  %v6916_v11 = vpop.permute.xlu1 %6915  ;;  %v16001_v40 = vpack.c.bf16 %v15767_v32, %v15993_v18  ;;  %v7772_v41 = vld [vmem:[#allocation4 + $0x24] sm:$0xff] }
 0x6f4   : > { %11248 = vmatprep.mubr.msk.bf16.mxu1 %vm7073_vm2, %v7674_v13  ;;  %v6724_v13 = vadd.f32 %v6692_v27, %v6463_v23  ;;  %v6953_v25 = vmul.f32 %v15603_v47, %v6916_v11  ;;  %v6911_v63 = vpop.permute.xlu0 %6910  ;;  %v7779_v15 = vpack.c.bf16 %v7771_v52, %v7770_v6  ;;  %v16015_v27 = vpack.c.bf16 %v16011_v36, %v15774_v28  ;;  %v7985_v28 = vld [vmem:[%s16573_s3 + $0xc] sm:$0x3] }
 0x6f5   : > { %v6723_v61 = vadd.f32 %v6691_v31, %v6462_v19  ;;  %v6952_v53 = vmul.f32 %v15603_v47, %v6911_v63  ;;  %v7022_v58 = vadd.f32 %v15629_v39, %v6983_v57  ;;  %v7021_v17 = vadd.f32 %v15629_v39, %v6982_v1 }
 0x6f6   : > { %v6985_v51 = vadd.f32 %v6953_v25, %v6724_v13  ;;  %v7902_v37 = vsel %vm7415_vm4, %v7888_v54, 0  ;;  %v16035_v11 = vpack.c.bf16 %v15741_v0, %v16024_v29 }
 0x6f7   : > { %v6984_v30 = vadd.f32 %v6952_v53, %v6723_v61  ;;  %v7054_v32 = vmax.f32 %v7022_v58, 0.0  ;;  %v7053_v45 = vmax.f32 %v7021_v17, 0.0 }
 0x6f8   : > { %v7024_v62 = vadd.f32 %v15629_v39, %v6985_v51 }
 0x6f9   : > { %v7023_v47 = vadd.f32 %v15629_v39, %v6984_v30  ;;  %v16022_v39 = vld [vmem:[#allocation4 + $0x34] sm:$0xff] }
 0x6fa   : > { %v7056_v35 = vmax.f32 %v7024_v62, 0.0  ;;  %v16031_v3 = vpack.c.bf16 %v16022_v39, %v7772_v41 }
 0x6fb   : > { %11249 = vmatmul.mubr.msk.bf16.vlgmr.msra.gmra.mrb[0].mxu1 %vm7073_vm2, %v15990_v8  ;;  %v7055_v46 = vmax.f32 %v7023_v47, 0.0 }
 0x6fc   : > { %11252 = vmatprep.mubr.msk.bf16.mxu1 %vm7073_vm2, %v16001_v40  ;;  %11257 = vmatpush3.bf16.msra.mxu1 %v7796_v12  ;;  %v7072_v21 = vmax.f32 %v7054_v32, %v7056_v35  ;;  %v16052_v35 = vpack.c.bf16 %v15835_v16, %v15743_v4  ;;  %v16066_v4 = vpack.c.bf16 %v15847_v50, %v15824_v38  ;;  %v11746_v38 = vld [vmem:[%s16573_s3 + $0x18] ss:$0 sps:$4 sm:$0xcc]  }
 0x6fd   : > { %11663 = vmatprep.subr.msk.bf16.mxu1 %vm7415_vm4, %v7888_v54  ;;  %v7071_v43 = vmax.f32 %v7053_v45, %v7055_v46  ;;  %v7881_v45 = vpack.c.bf16 %v15833_v24, %v15804_v34  ;;  %v11747_v46 = vld [vmem:[%s16573_s3 + $0xc] ss:$0 sps:$4 sm:$0xcc]   ;;  %v8490_v34 = vld [vmem:[#allocation4 + $0x21] sm:$0xff]  ;;  %v16073_v24 = vpack.c.bf16 %v15870_v60, %v15831_v33  ;;  %v7977_v33 = vld [vmem:[#allocation4 + $0x11] sm:$0xff]  ;;  %v8621_v60 = vsel %vm7415_vm4, %v15888_v55, 0 }
 0x6fe   : > { %7089 = vst.msk [vmem:[#allocation3 + $0x78] sm:$0xff] %vm7073_vm2, %v7072_v21  ;;  %v8491_v21 = vld [vmem:[#allocation4 + $0x31] sm:$0xff] }
 0x6ff   : > { %7088 = vst.msk [vmem:[#allocation3 + $0x70] sm:$0xff] %vm7073_vm2, %v7071_v43  ;;  %v8499_v41 = vpack.c.bf16 %v8491_v21, %v8490_v34  ;;  %v16103_v55 = vpack.c.bf16 %v15718_v10, %v8491_v21  ;;  %v17398_v10 = vld [vmem:[#allocation75_spill] sm:$0xff] }
 0x703   : > { %11253 = vmatmul.mubr.msk.bf16.gmra.mrb[4].mxu1 %vm7073_vm2, %v16015_v27 }
 0x704   : > { %11258 = vmatprep.mubr.msk.bf16.mxu1 %vm7073_vm2, %v7779_v15  ;;  %v8395_v15 = vld [vmem:[#allocation4 + $0x80] sm:$0xff] }
 0x705   : > { %v7252_v7 = vld [vmem:[#allocation3 + $0x78] sm:$0x1]  ;;  %v7260_v31 = vld [vmem:[#allocation3 + $0x79] sm:$0x1]  ;;  %v7284_v9 = vld [vmem:[#allocation3 + $0x7a] sm:$0x1]  ;;  %v16088_v50 = vpack.c.bf16 %v8395_v15, %v15865_v22 }
 0x706   : > { %v7268_v23 = vmax.f32 %v7252_v7, %v7260_v31  ;;  %v7292_v57 = vld [vmem:[#allocation3 + $0x7b] sm:$0x1]  ;;  %v7316_v19 = vld [vmem:[#allocation3 + $0x7c] sm:$0x1]  ;;  %v7324_v1 = vld [vmem:[#allocation3 + $0x7d] sm:$0x1]  ;;  %v7986_v31 = vpack.c.bf16 %v8490_v34, %v7977_v33 }
 0x707   : > { %v7300_v13 = vmax.f32 %v7284_v9, %v7292_v57  ;;  %v7332_v25 = vmax.f32 %v7316_v19, %v7324_v1  ;;  %v7348_v63 = vld [vmem:[#allocation3 + $0x7e] sm:$0x1]  ;;  %v7356_v61 = vld [vmem:[#allocation3 + $0x7f] sm:$0x1]  ;;  %v7122_v53 = vld [vmem:[#allocation3 + $0x70] sm:$0x1] }
 0x708   : > { %v7364_v12 = vmax.f32 %v7348_v63, %v7356_v61  ;;  %7276 = vst.msk [vmem:[#allocation4 + $0x96] sm:$0x1] %vm7140_vm5, %v7268_v23  ;;  %v7130_v54 = vld [vmem:[#allocation3 + $0x71] sm:$0x1]  ;;  %v7156_v58 = vld [vmem:[#allocation3 + $0x72] sm:$0x1] }
 0x709   : > { %v7164_v51 = vld [vmem:[#allocation3 + $0x73] sm:$0x1]  ;;  %7308 = vst.msk [vmem:[#allocation4 + $0x97] sm:$0x1] %vm7140_vm5, %v7300_v13  ;;  %7340 = vst.msk [vmem:[#allocation4 + $0x98] sm:$0x1] %vm7140_vm5, %v7332_v25  ;;  %v7138_v0 = vmax.f32 %v7122_v53, %v7130_v54 }
 0x70a   : > { %v7172_v17 = vmax.f32 %v7156_v58, %v7164_v51  ;;  %v7188_v30 = vld [vmem:[#allocation3 + $0x74] sm:$0x1]  ;;  %v7196_v62 = vld [vmem:[#allocation3 + $0x75] sm:$0x1]  ;;  %v7220_v47 = vld [vmem:[#allocation3 + $0x76] sm:$0x1] }
 0x70b   : > { %11259 = vmatmul.mubr.msk.bf16.vlgmr.msra.gmra.mrb[0].mxu1 %vm7073_vm2, %v16031_v3  ;;  %7372 = vst.msk [vmem:[#allocation4 + $0x99] sm:$0x1] %vm7140_vm5, %v7364_v12  ;;  %v7204_v6 = vmax.f32 %v7188_v30, %v7196_v62  ;;  %v7228_v52 = vld [vmem:[#allocation3 + $0x77] sm:$0x1]  ;;  %7148 = vst.msk [vmem:[#allocation4 + $0x92] sm:$0x1] %vm7140_vm5, %v7138_v0  ;;  %v8192_v62 = vpack.c.bf16 %v15986_v44, %v15920_v26 }
 0x70c   : > { %11262 = vmatprep.mubr.msk.bf16.mxu1 %vm7073_vm2, %v16035_v11  ;;  %11267 = vmatpush3.bf16.msra.mxu1 %v7902_v37  ;;  %v7236_v32 = vmax.f32 %v7220_v47, %v7228_v52  ;;  %7180 = vst.msk [vmem:[#allocation4 + $0x93] sm:$0x1] %vm7140_vm5, %v7172_v17  ;;  %v8003_v37 = vsel %vm7415_vm4, %v7985_v28, 0  ;;  %v8094_v7 = vrot.slane %v11747_v46, 2  ;;  %v8496_v9 = vld [vmem:[#allocation4 + $0x81] sm:$0xff]  ;;  %v17402_v53 = vld [vmem:[#allocation80_spill] sm:$0xff]  ;;  %v8193_v47 = vpack.c.bf16 %v15993_v18, %v15981_v42 }
 0x70d   : > { %11664 = vmatprep.subr.msk.bf16.mxu1 %vm7415_vm4, %v7985_v28  ;;  %7212 = vst.msk [vmem:[#allocation4 + $0x94] sm:$0x1] %vm7140_vm5, %v7204_v6  ;;  %v8712_v28 = vrot.slane %v11746_v38, 2  ;;  %v8809_v1 = vld [vmem:[%s16573_s3 + $0x1c] sm:$0x3]  ;;  %v17400_v13 = vld [vmem:[#allocation54_spill] sm:$0xff]  ;;  %v8088_v12 = vpack.c.bf16 %v15925_v59, %v17402_v53 }
 0x70e   : > { %7244 = vst.msk [vmem:[#allocation4 + $0x95] sm:$0x1] %vm7140_vm5, %v7236_v32  ;;  %v8108_v57 = vsel %vm7415_vm4, %v8094_v7, 0  ;;  %v8601_v61 = vld [vmem:[#allocation4 + $0x82] sm:$0xff]  ;;  %v8827_v17 = vsel %vm7415_vm4, %v8809_v1, 0  ;;  %v17405_v18 = vmov 0  }
 0x70f   : > { %v8726_v19 = vsel %vm7415_vm4, %v8712_v28, 0  ;;  %v17403_v51 = vld [vmem:[#allocation73_spill] sm:$0xff]  ;;  %v8090_v0 = vpack.c.bf16 %v8601_v61, %v15957_v48  ;;  %v17404_v44 = vld [vmem:[#allocation74_spill] sm:$0xff]  ;;  %v11752_v53 = vld [vmem:[%s16573_s3 + $0x2c] ss:$0 sps:$4 sm:$0xcc]  }
 0x710   : > { %v11748_v59 = vld [vmem:[%s16573_s3 + $0x1c] ss:$0 sps:$4 sm:$0xcc]   ;;  %v9016_v42 = vld [vmem:[%s16573_s3 + $0x20] sm:$0x3]  ;;  %vm10098_vm5 = vcmask 975744  }
 0x711   : > { %v8919_v30 = vrot.slane %v11748_v59, 2  ;;  %v8910_v46 = vld [vmem:[#allocation4 + $0xa0] sm:$0xff]  ;;  %v9429_v33 = vld [vmem:[%s16573_s3 + $0x28] sm:$0x3]  ;;  %v9744_v59 = vrot.slane %v11752_v53, 2 }
 0x712   : > { %v11753_v53 = vld [vmem:[%s16575_s5] ss:$16 sps:$4 sm:$0xff]  }
 0x713   : > { %11263 = vmatmul.mubr.msk.bf16.gmra.mrb[4].mxu1 %vm7073_vm2, %v16052_v35  ;;  %v8933_v52 = vsel %vm7415_vm4, %v8919_v30, 0 }
 0x714   : > { %11268 = vmatprep.mubr.msk.bf16.mxu1 %vm7073_vm2, %v7881_v45 }
 0x715   : > { %v16062_v43 = vld [vmem:[#allocation4 + $0x90] sm:$0xff] }
 0x716   : > { %v16069_v16 = vpack.c.bf16 %v16062_v43, %v8395_v15  ;;  %v16100_v22 = vld [vmem:[#allocation4 + $0x91] sm:$0xff]  ;;  %v8915_v21 = vpack.c.bf16 %v8910_v46, %v16062_v43  ;;  %v16223_v43 = vld [vmem:[#allocation4 + $0xa1] sm:$0xff] }
 0x717   : > { %v16106_v23 = vpack.c.bf16 %v16100_v22, %v8496_v9  ;;  %v16139_v63 = vld [vmem:[#allocation4 + $0x92] sm:$0xff]  ;;  %v9020_v34 = vpack.c.bf16 %v16223_v43, %v16100_v22  ;;  %v9447_v22 = vsel %vm7415_vm4, %v9429_v33, 0 }
 0x718   : > { %11323 = vmatmul.mubr.msk.bf16.gmra.mrb[4].mxu0 %vm7073_vm2, %v16069_v16  ;;  %v16144_v54 = vpack.c.bf16 %v16139_v63, %v8601_v61  ;;  %v16168_v48 = vld [vmem:[#allocation4 + $0x93] sm:$0xff] }
 0x719   : > { %11328 = vmatprep.mubr.msk.bf16.mxu0 %vm7073_vm2, %v8499_v41 }
 0x71b   : > { %11269 = vmatmul.mubr.msk.bf16.vlgmr.msra.gmra.mrb[0].mxu1 %vm7073_vm2, %v16066_v4 }
 0x71c   : > { %11272 = vmatprep.mubr.msk.bf16.mxu1 %vm7073_vm2, %v16073_v24  ;;  %11277 = vmatpush3.bf16.msra.mxu1 %v8003_v37  ;;  %v9116_v37 = vld [vmem:[#allocation4 + $0xa2] sm:$0xff] }
 0x71d   : > { %11665 = vmatprep.subr.msk.bf16.mxu1 %vm7415_vm4, %v8094_v7  ;;  %v9121_v7 = vpack.c.bf16 %v9116_v37, %v16139_v63  ;;  %v9522_v63 = vld [vmem:[#allocation4 + $0x41] sm:$0xff] }
 0x720   : > { %11329 = vmatmul.mubr.msk.bf16.vlgmr.msra.gmra.mrb[0].mxu0 %vm7073_vm2, %v15723_v2  ;;  %v8191_v2 = vld [vmem:[%s16573_s3 + $0x10] sm:$0x3] }
 0x721   : > { %11337 = vmatpush3.bf16.msra.mxu0 %v8621_v60  ;;  %11332 = vmatprep.mubr.msk.bf16.mxu0 %vm7073_vm2, %v15815_v56  ;;  %v16122_v56 = vpack.c.bf16 %v8496_v9, %v17398_v10  ;;  %v8209_v58 = vsel %vm7415_vm4, %v8191_v2, 0  ;;  %v17409_v10 = vld [vmem:[#allocation78_spill] sm:$0xff] }
 0x722   : > { %11671 = vmatprep.subr.msk.bf16.mxu0 %vm7415_vm4, %v8712_v28  ;;  %v9324_v28 = vpack.c.bf16 %v16024_v29, %v16022_v39  ;;  %v9322_v39 = vld [vmem:[#allocation4 + $0xa4] sm:$0xff] }
 0x723   : > { %11273 = vmatmul.mubr.msk.bf16.gmra.mrb[4].mxu1 %vm7073_vm2, %v16088_v50 }
 0x724   : > { %11278 = vmatprep.mubr.msk.bf16.mxu1 %vm7073_vm2, %v7986_v31  ;;  %v11751_v31 = vld [vmem:[%s16573_s3 + $0x28] ss:$0 sps:$4 sm:$0xcc]  }
 0x725   : > { %v9538_v9 = vrot.slane %v11751_v31, 2 }
 0x728   : > { %11333 = vmatmul.mubr.msk.bf16.gmra.mrb[4].mxu0 %vm7073_vm2, %v16106_v23 }
 0x729   : > { %11338 = vmatprep.mubr.msk.bf16.mxu0 %vm7073_vm2, %v15911_v49  ;;  %v17399_v49 = vld [vmem:[#allocation55_spill] sm:$0xff] }
 0x72a   : > { %v17401_v25 = vpack.c.bf16 %v17399_v49, %v17400_v13  ;;  %v9428_v49 = vld [vmem:[#allocation4 + $0xb0] sm:$0xff] }
 0x72b   : > { %11279 = vmatmul.mubr.msk.bf16.vlgmr.msra.gmra.mrb[0].mxu1 %vm7073_vm2, %v16103_v55  ;;  %v9433_v13 = vpack.c.bf16 %v9428_v49, %v8910_v46 }
 0x72c   : > { %11282 = vmatprep.mubr.msk.bf16.mxu1 %vm7073_vm2, %v15754_v20  ;;  %11287 = vmatpush3.bf16.msra.mxu1 %v8108_v57  ;;  %v17408_v57 = vld [vmem:[#allocation77_spill] sm:$0xff] }
 0x72d   : > { %11666 = vmatprep.subr.msk.bf16.mxu1 %vm7415_vm4, %v8191_v2 }
 0x730   : > { %11339 = vmatmul.mubr.msk.bf16.vlgmr.msra.gmra.mrb[0].mxu0 %vm7073_vm2, %v15936_v5 }
 0x731   : > { %11347 = vmatpush3.bf16.msra.mxu0 %v8726_v19  ;;  %11342 = vmatprep.mubr.msk.bf16.mxu0 %vm7073_vm2, %v15970_v14  ;;  %v9635_v19 = vld [vmem:[%s16573_s3 + $0x2c] sm:$0x3] }
 0x732   : > { %11672 = vmatprep.subr.msk.bf16.mxu0 %vm7415_vm4, %v8809_v1  ;;  %v17410_v1 = vld [vmem:[#allocation79_spill] sm:$0xff] }
 0x733   : > { %11283 = vmatmul.mubr.msk.bf16.gmra.mrb[4].mxu1 %vm7073_vm2, %v16122_v56 }
 0x734   : > { %11288 = vmatprep.mubr.msk.bf16.mxu1 %vm7073_vm2, %v17401_v25  ;;  %v9523_v25 = vld [vmem:[#allocation4 + $0x51] sm:$0xff] }
 0x735   : > { %v9531_v61 = vpack.c.bf16 %v9523_v25, %v9522_v63 }
 0x738   : > { %11343 = vmatmul.mubr.msk.bf16.gmra.mrb[4].mxu0 %vm7073_vm2, %v16144_v54 }
 0x739   : > { %11348 = vmatprep.mubr.msk.bf16.mxu0 %vm7073_vm2, %v15990_v8  ;;  %v8702_v8 = vld [vmem:[#allocation4 + $0x83] sm:$0xff] }
 0x73a   : > { %v16173_v26 = vpack.c.bf16 %v16168_v48, %v8702_v8  ;;  %v8195_v6 = vpack.c.bf16 %v8702_v8, %v16011_v36  ;;  %v16194_v36 = vld [vmem:[#allocation4 + $0x94] sm:$0xff] }
 0x73b   : > { %11289 = vmatmul.mubr.msk.bf16.vlgmr.msra.gmra.mrb[0].mxu1 %vm7073_vm2, %v8088_v12  ;;  %v9327_v2 = vpack.c.bf16 %v9322_v39, %v16194_v36  ;;  %v9834_v8 = vld [vmem:[#allocation4 + $0x54] sm:$0xff] }
 0x73c   : > { %11292 = vmatprep.mubr.msk.bf16.mxu1 %vm7073_vm2, %v17403_v51  ;;  %11297 = vmatpush3.bf16.msra.mxu1 %v8209_v58  ;;  %v9524_v58 = vld [vmem:[#allocation4 + $0x61] sm:$0xff] }
 0x740   : > { %11349 = vmatmul.mubr.msk.bf16.vlgmr.msra.gmra.mrb[0].mxu0 %vm7073_vm2, %v16001_v40 }
 0x741   : > { %11357 = vmatpush3.bf16.msra.mxu0 %v8827_v17  ;;  %11352 = vmatprep.mubr.msk.bf16.mxu0 %vm7073_vm2, %v16015_v27 }
 0x742   : > { %11673 = vmatprep.subr.msk.bf16.mxu0 %vm7415_vm4, %v8919_v30  ;;  %v9758_v30 = vsel %vm7415_vm4, %v9744_v59, 0 }
 0x743   : > { %11293 = vmatmul.mubr.msk.bf16.gmra.mrb[4].mxu1 %vm7073_vm2, %v8090_v0 }
 0x744   : > { %11298 = vmatprep.mubr.msk.bf16.mxu1 %vm7073_vm2, %v8192_v62  ;;  %v9841_v62 = vld [vmem:[%s16573_s3 + $0x30] sm:$0x3] }
 0x748   : > { %11353 = vmatmul.mubr.msk.bf16.gmra.mrb[4].mxu0 %vm7073_vm2, %v16173_v26 }
 0x749   : > { %11358 = vmatprep.mubr.msk.bf16.mxu0 %vm7073_vm2, %v16031_v3  ;;  %v17406_v3 = vld [vmem:[#allocation76_spill] sm:$0xff] }
 0x74a   : > { %v8813_v32 = vpack.c.bf16 %v16194_v36, %v17406_v3 }
 0x74b   : > { %11299 = vmatmul.mubr.msk.bf16.vlgmr.msra.gmra.mrb[0].mxu1 %vm7073_vm2, %v8193_v47 }
 0x74c   : > { %11302 = vmatprep.mubr.msk.bf16.mxu1 %vm7073_vm2, %v17404_v44 }
 0x750   : > { %11359 = vmatmul.mubr.msk.bf16.vlgmr.msra.gmra.mrb[0].mxu0 %vm7073_vm2, %v16035_v11  ;;  %v11749_v11 = vld [vmem:[%s16573_s3 + $0x20] ss:$0 sps:$4 sm:$0xcc]  }
 0x751   : > { %11367 = vmatpush3.bf16.msra.mxu0 %v8933_v52  ;;  %11362 = vmatprep.mubr.msk.bf16.mxu0 %vm7073_vm2, %v16052_v35  ;;  %v9034_v35 = vsel %vm7415_vm4, %v9016_v42, 0  ;;  %v9125_v45 = vrot.slane %v11749_v11, 2  ;;  %v9837_v52 = vld [vmem:[#allocation4 + $0x84] sm:$0xff] }
 0x752   : > { %11674 = vmatprep.subr.msk.bf16.mxu0 %vm7415_vm4, %v9016_v42  ;;  %v9844_v42 = vpack.c.bf16 %v16194_v36, %v9837_v52  ;;  %v10978_v36 = vld [vmem:[%s16574_s4] ss:$0 sm:$0xff] }
 0x753   : > { %11303 = vmatmul.mubr.msk.bf16.gmra.mrb[4].mxu1 %vm7073_vm2, %v8195_v6  ;;  %v9139_v15 = vsel %vm7415_vm4, %v9125_v45, 0  ;;  %v11756_v52 = vld [vmem:[%s16575_s5 + $0x20] ss:$16 sps:$4 sm:$0xff]  }
 0x754   : > { %10357 = vmatprep.mubr.bf16.mxu1 %v17405_v18 }
 0x758   : > { %11363 = vmatmul.mubr.msk.bf16.gmra.mrb[4].mxu0 %vm7073_vm2, %v8813_v32 }
 0x759   : > { %11368 = vmatprep.mubr.msk.bf16.mxu0 %vm7073_vm2, %v16066_v4  ;;  %v9222_v4 = vld [vmem:[%s16573_s3 + $0x24] sm:$0x3] }
 0x760   : > { %11369 = vmatmul.mubr.msk.bf16.vlgmr.msra.gmra.mrb[0].mxu0 %vm7073_vm2, %v16073_v24  ;;  %v11750_v24 = vld [vmem:[%s16573_s3 + $0x24] ss:$0 sps:$4 sm:$0xcc]  }
 0x761   : > { %11377 = vmatpush3.bf16.msra.mxu0 %v9034_v35  ;;  %11372 = vmatprep.mubr.msk.bf16.mxu0 %vm7073_vm2, %v16088_v50  ;;  %v9331_v41 = vrot.slane %v11750_v24, 2  ;;  %v9221_v50 = vld [vmem:[#allocation4 + $0xa3] sm:$0xff] }
 0x762   : > { %11675 = vmatprep.subr.msk.bf16.mxu0 %vm7415_vm4, %v9125_v45  ;;  %v9226_v60 = vpack.c.bf16 %v9221_v50, %v16168_v48 }
 0x763   : > { %v9345_v38 = vsel %vm7415_vm4, %v9331_v41, 0 }
 0x768   : > { %11373 = vmatmul.mubr.msk.bf16.gmra.mrb[4].mxu0 %vm7073_vm2, %v8915_v21 }
 0x769   : > { %11378 = vmatprep.mubr.msk.bf16.mxu0 %vm7073_vm2, %v16103_v55  ;;  %v17407_v55 = vld [vmem:[#allocation72_spill] sm:$0xff] }
 0x770   : > { %11379 = vmatmul.mubr.msk.bf16.vlgmr.msra.gmra.mrb[0].mxu0 %vm7073_vm2, %v15754_v20  ;;  %v9240_v20 = vsel %vm7415_vm4, %v9222_v4, 0 }
 0x771   : > { %11387 = vmatpush3.bf16.msra.mxu0 %v9139_v15  ;;  %11382 = vmatprep.mubr.msk.bf16.mxu0 %vm7073_vm2, %v16122_v56  ;;  %v9552_v56 = vsel %vm7415_vm4, %v9538_v9, 0 }
 0x772   : > { %11676 = vmatprep.subr.msk.bf16.mxu0 %vm7415_vm4, %v9222_v4 }
 0x778   : > { %11383 = vmatmul.mubr.msk.bf16.gmra.mrb[4].mxu0 %vm7073_vm2, %v9020_v34 }
 0x779   : > { %11388 = vmatprep.mubr.msk.bf16.mxu0 %vm7073_vm2, %v8088_v12  ;;  %v9525_v12 = vld [vmem:[#allocation4 + $0x71] sm:$0xff] }
 0x780   : > { %11389 = vmatmul.mubr.msk.bf16.vlgmr.msra.gmra.mrb[0].mxu0 %vm7073_vm2, %v17403_v51  ;;  %v9532_v51 = vpack.c.bf16 %v9525_v12, %v9524_v58  ;;  %v11755_v12 = vld [vmem:[%s16575_s5 + $0x4] ss:$16 sps:$4 sm:$0xff]  }
 0x781   : > { %11397 = vmatpush3.bf16.msra.mxu0 %v9240_v20  ;;  %11392 = vmatprep.mubr.msk.bf16.mxu0 %vm7073_vm2, %v8090_v0  ;;  %v9529_v0 = vld [vmem:[#allocation4 + $0xb1] sm:$0xff] }
 0x782   : > { %11677 = vmatprep.subr.msk.bf16.mxu0 %vm7415_vm4, %v9331_v41  ;;  %v9534_v17 = vpack.c.bf16 %v9529_v0, %v16223_v43  ;;  %10325 = vmatprep.subr.bf16.mxu1 %v11755_v12  ;;  %v11776_v12 = vld [vmem:[%s16575_s5 + $0xe4] ss:$16 sps:$4 sm:$0xff]  }
 0x783   : > { %10326 = vmatpush1.bf16.msra.mxu1 %v11753_v53 }
 0x788   : > { %11393 = vmatmul.mubr.msk.bf16.gmra.mrb[4].mxu0 %vm7073_vm2, %v9121_v7 }
 0x789   : > { %11398 = vmatprep.mubr.msk.bf16.mxu0 %vm7073_vm2, %v8193_v47  ;;  %v9842_v47 = vpack.c.bf16 %v9834_v8, %v16024_v29 }
 0x790   : > { %11399 = vmatmul.mubr.msk.bf16.vlgmr.msra.gmra.mrb[0].mxu0 %vm7073_vm2, %v17404_v44  ;;  %v9836_v44 = vld [vmem:[#allocation4 + $0x74] sm:$0xff] }
 0x791   : > { %11407 = vmatpush3.bf16.msra.mxu0 %v9345_v38  ;;  %11402 = vmatprep.mubr.msk.bf16.mxu0 %vm7073_vm2, %v8195_v6 }
 0x792   : > { %11678 = vmatprep.subr.msk.bf16.mxu0 %vm7415_vm4, %v9429_v33 }
 0x798   : > { %11403 = vmatmul.mubr.msk.bf16.gmra.mrb[4].mxu0 %vm7073_vm2, %v9226_v60 }
 0x799   : > { %11408 = vmatprep.mubr.msk.bf16.mxu0 %vm7073_vm2, %v9324_v28 }
 0x7a0   : > { %11409 = vmatmul.mubr.msk.bf16.vlgmr.msra.gmra.mrb[0].mxu0 %vm7073_vm2, %v17407_v55 }
 0x7a1   : > { %11417 = vmatpush3.bf16.msra.mxu0 %v9447_v22  ;;  %11412 = vmatprep.mubr.msk.bf16.mxu0 %vm7073_vm2, %v17408_v57 }
 0x7a2   : > { %11679 = vmatprep.subr.msk.bf16.mxu0 %vm7415_vm4, %v9538_v9 }
 0x7a8   : > { %11413 = vmatmul.mubr.msk.bf16.gmra.mrb[4].mxu0 %vm7073_vm2, %v9327_v2 }
 0x7a9   : > { %11418 = vmatprep.mubr.msk.bf16.mxu0 %vm7073_vm2, %v17409_v10 }
 0x7b0   : > { %11419 = vmatmul.mubr.msk.bf16.vlgmr.msra.gmra.mrb[0].mxu0 %vm7073_vm2, %v17410_v1 }
 0x7b1   : > { %11427 = vmatpush3.bf16.msra.mxu0 %v9552_v56  ;;  %11422 = vmatprep.mubr.msk.bf16.mxu0 %vm7073_vm2, %v16069_v16  ;;  %v9653_v16 = vsel %vm7415_vm4, %v9635_v19, 0 }
 0x7b2   : > { %11680 = vmatprep.subr.msk.bf16.mxu0 %vm7415_vm4, %v9635_v19 }
 0x7b8   : > { %11423 = vmatmul.mubr.msk.bf16.gmra.mrb[4].mxu0 %vm7073_vm2, %v9433_v13 }
 0x7b9   : > { %11428 = vmatprep.mubr.msk.bf16.mxu0 %vm7073_vm2, %v9531_v61 }
 0x7c0   : > { %11429 = vmatmul.mubr.msk.bf16.vlgmr.msra.gmra.mrb[0].mxu0 %vm7073_vm2, %v9532_v51 }
 0x7c1   : > { %11437 = vmatpush3.bf16.msra.mxu0 %v9653_v16  ;;  %11432 = vmatprep.mubr.msk.bf16.mxu0 %vm7073_vm2, %v16106_v23  ;;  %v9634_v23 = vld [vmem:[#allocation4 + $0xb2] sm:$0xff] }
 0x7c2   : > { %11681 = vmatprep.subr.msk.bf16.mxu0 %vm7415_vm4, %v9744_v59  ;;  %v9639_v48 = vpack.c.bf16 %v9634_v23, %v9116_v37 }
 0x7c8   : > { %11433 = vmatmul.mubr.msk.bf16.gmra.mrb[4].mxu0 %vm7073_vm2, %v9534_v17 }
 0x7c9   : > { %11438 = vmatprep.mubr.msk.bf16.mxu0 %vm7073_vm2, %v15936_v5  ;;  %v9859_v5 = vsel %vm7415_vm4, %v9841_v62, 0 }
 0x7d0   : > { %11439 = vmatmul.mubr.msk.bf16.vlgmr.msra.gmra.mrb[0].mxu0 %vm7073_vm2, %v15970_v14  ;;  %v9735_v14 = vld [vmem:[#allocation4 + $0xb3] sm:$0xff] }
 0x7d1   : > { %11447 = vmatpush3.bf16.msra.mxu0 %v9758_v30  ;;  %11442 = vmatprep.mubr.msk.bf16.mxu0 %vm7073_vm2, %v16144_v54  ;;  %v9740_v54 = vpack.c.bf16 %v9735_v14, %v9221_v50 }
 0x7d2   : > { %11682 = vmatprep.subr.msk.bf16.mxu0 %vm7415_vm4, %v9841_v62  ;;  %vm10089_vm4 = vcmask 910144  }
 0x7d8   : > { %11443 = vmatmul.mubr.msk.bf16.gmra.mrb[4].mxu0 %vm7073_vm2, %v9639_v48 }
 0x7d9   : > { %11448 = vmatprep.mubr.msk.bf16.mxu0 %vm7073_vm2, %v16001_v40  ;;  %v9835_v40 = vld [vmem:[#allocation4 + $0x64] sm:$0xff] }
 0x7da   : > { %v9843_v6 = vpack.c.bf16 %v9836_v44, %v9835_v40 }
 0x7e0   : > { %11449 = vmatmul.mubr.msk.bf16.vlgmr.msra.gmra.mrb[0].mxu0 %vm7073_vm2, %v16015_v27  ;;  %v9840_v27 = vld [vmem:[#allocation4 + $0xb4] sm:$0xff] }
 0x7e1   : > { %11457 = vmatpush3.bf16.msra.mxu0 %v9859_v5  ;;  %11452 = vmatprep.mubr.msk.bf16.mxu0 %vm7073_vm2, %v16173_v26  ;;  %v9845_v26 = vpack.c.bf16 %v9840_v27, %v9322_v39 }
 0x7e8   : > { %11453 = vmatmul.mubr.msk.bf16.gmra.mrb[4].mxu0 %vm7073_vm2, %v9740_v54 }
 0x7e9   : > { %11458 = vmatprep.mubr.msk.bf16.mxu0 %vm7073_vm2, %v9842_v47 }
 0x7f0   : > { %11459 = vmatmul.mubr.msk.bf16.vlgmr.msra.gmra.mrb[0].mxu0 %vm7073_vm2, %v9843_v6 }
 0x7f1   : > { %11462 = vmatprep.mubr.msk.bf16.mxu0 %vm7073_vm2, %v9844_v42  ;;  %v11758_v42 = vld [vmem:[%s16575_s5 + $0x24] ss:$16 sps:$4 sm:$0xff]  }
 0x7f2   : > { %10327 = vmatprep.subr.bf16.mxu1 %v11758_v42 }
 0x7f3   : > { %10328 = vmatpush1.bf16.msra.mxu1 %v11756_v52 }
 0x7f8   : > { %11463 = vmatmul.mubr.msk.bf16.gmra.mrb[4].mxu0 %vm7073_vm2, %v9845_v26  ;;  %vm10070_vm2 = vcmask 778944  }
 0x81e   : > { %v11300_v3 = vpop.f32.mrb[0].mxu1 }
 0x81f   : > { %v8245_v29 = vpop.f32.mrb[1].mxu1 }
 0x820   : > { %v11301_v32 = vpop.f32.mrb[2].mxu1 }
 0x821   : > { %v8248_v11 = vpop.f32.mrb[3].mxu1 }
 0x826   : > { %v11304_v35 = vpop.f32.mrb[4].mxu1 }
 0x827   : > { %v8261_v45 = vpop.f32.mrb[5].mxu1 }
 0x828   : > { %v11305_v46 = vpop.f32.mrb[6].mxu1 }
 0x829   : > { %v8264_v21 = vpop.f32.mrb[7].mxu1 }
 0x8c3   : > { %v11460_v15 = vpop.f32.mrb[0].mxu0 }
 0x8c4   : > { %v11466_v4 = vadd.f32 %v11460_v15, %v11300_v3  ;;  %v9895_v43 = vpop.f32.mrb[1].mxu0 }
 0x8c5   : > { %v11467_v34 = vadd.f32 %v9895_v43, %v8245_v29  ;;  %v11461_v24 = vpop.f32.mrb[2].mxu0 }
 0x8c6   : > { %v9943_v20 = vadd.f32 %v11466_v4, %v10978_v36  ;;  %v11468_v41 = vadd.f32 %v11461_v24, %v11301_v32  ;;  %v9898_v37 = vpop.f32.mrb[3].mxu0  ;;  %v11762_v24 = vld [vmem:[%s16575_s5 + $0x60] ss:$16 sps:$4 sm:$0xff]  }
 0x8c7   : > { %v9941_v7 = vadd.f32 %v11467_v34, %v10978_v36  ;;  %v11469_v38 = vadd.f32 %v9898_v37, %v8248_v11  ;;  %v11761_v11 = vld [vmem:[%s16575_s5 + $0x44] ss:$16 sps:$4 sm:$0xff]  }
 0x8c8   : > { %v9944_v33 = vadd.f32 %v11468_v41, %v10978_v36  ;;  %v9951_v60 = vmax.f32 %v9943_v20, 0.0  ;;  %10329 = vmatprep.subr.bf16.mxu1 %v11761_v11  ;;  %v11764_v41 = vld [vmem:[%s16575_s5 + $0x64] ss:$16 sps:$4 sm:$0xff]   ;;  %v11780_v11 = vld [vmem:[%s16575_s5 + $0x28] ss:$16 sps:$4 sm:$0xff]  }
 0x8c9   : > { %v9942_v50 = vadd.f32 %v11469_v38, %v10978_v36  ;;  %v9949_v31 = vmax.f32 %v9941_v7, 0.0 }
 0x8ca   : > { %v9952_v28 = vmax.f32 %v9944_v33, 0.0  ;;  %v11767_v33 = vld [vmem:[%s16575_s5 + $0x84] ss:$16 sps:$4 sm:$0xff]  }
 0x8cb   : > { %v9950_v22 = vmax.f32 %v9942_v50, 0.0  ;;  %v11464_v9 = vpop.f32.mrb[4].mxu0 }
 0x8cc   : > { %v9958_v55 = vmax.f32 %v9951_v60, %v9952_v28  ;;  %v11470_v57 = vadd.f32 %v11464_v9, %v11304_v35  ;;  %v9911_v39 = vpop.f32.mrb[5].mxu0  ;;  %v11765_v28 = vld [vmem:[%s16575_s5 + $0x80] ss:$16 sps:$4 sm:$0xff]  }
 0x8cd   : > { %v9957_v2 = vmax.f32 %v9949_v31, %v9950_v22  ;;  %v11471_v10 = vadd.f32 %v9911_v39, %v8261_v45  ;;  %v11465_v56 = vpop.f32.mrb[6].mxu0  ;;  %v11770_v22 = vld [vmem:[%s16575_s5 + $0xa4] ss:$16 sps:$4 sm:$0xff]  }
 0x8ce   : > { %9963 = vst.msk [vmem:[#allocation5 + $0x8] sm:$0xff] %vm9961_vm6, %v9958_v55  ;;  %v9947_v19 = vadd.f32 %v11470_v57, %v10978_v36  ;;  %v11472_v1 = vadd.f32 %v11465_v56, %v11305_v46  ;;  %v9914_v49 = vpop.f32.mrb[7].mxu0  ;;  %v11759_v46 = vld [vmem:[%s16575_s5 + $0x40] ss:$16 sps:$4 sm:$0xff]  }
 0x8cf   : > { %9962 = vst.msk [vmem:[#allocation5] sm:$0xff] %vm9961_vm6, %v9957_v2  ;;  %v9945_v13 = vadd.f32 %v11471_v10, %v10978_v36  ;;  %v11473_v25 = vadd.f32 %v9914_v49, %v8264_v21  ;;  %10330 = vmatpush1.bf16.msra.mxu1 %v11759_v46  ;;  %v11768_v10 = vld [vmem:[%s16575_s5 + $0xa0] ss:$16 sps:$4 sm:$0xff]   ;;  %v11788_v46 = vld [vmem:[%s16575_s5 + $0x6c] ss:$16 sps:$4 sm:$0xff]  }
 0x8d0   : > { %v9948_v63 = vadd.f32 %v11472_v1, %v10978_v36  ;;  %v9955_v58 = vmax.f32 %v9947_v19, 0.0  ;;  %10331 = vmatprep.subr.bf16.mxu1 %v11764_v41  ;;  %v11773_v19 = vld [vmem:[%s16575_s5 + $0xc4] ss:$16 sps:$4 sm:$0xff]  }
 0x8d1   : > { %v9946_v61 = vadd.f32 %v11473_v25, %v10978_v36  ;;  %v9953_v16 = vmax.f32 %v9945_v13, 0.0  ;;  %v11801_v41 = vld [vmem:[%s16577_s7 + $0x40] sm:$0xff]  }
 0x8d2   : > { %v9956_v51 = vmax.f32 %v9948_v63, 0.0 }
 0x8d3   : > { %v9954_v59 = vmax.f32 %v9946_v61, 0.0  ;;  %10332 = vmatpush1.bf16.msra.mxu1 %v11762_v24  ;;  %v11771_v61 = vld [vmem:[%s16575_s5 + $0xc0] ss:$16 sps:$4 sm:$0xff]   ;;  %v11800_v24 = vld [vmem:[%s16575_s5 + $0xec] ss:$16 sps:$4 sm:$0xff]  }
 0x8d4   : > { %v9960_v0 = vmax.f32 %v9955_v58, %v9956_v51  ;;  %10333 = vmatprep.subr.bf16.mxu1 %v11767_v33  ;;  %v11805_v33 = vld [vmem:[%s16577_s7 + $0x50] sm:$0xff]  }
 0x8d5   : > { %v9959_v17 = vmax.f32 %v9953_v16, %v9954_v59  ;;  %v9999_v54 = vld [vmem:[#allocation5 + $0x8] sm:$0x1]  ;;  %v10000_v8 = vld [vmem:[#allocation5 + $0x9] sm:$0x1]  ;;  %v10017_v29 = vld [vmem:[#allocation5 + $0xc] sm:$0x1] }
 0x8d6   : > { %9965 = vst.msk [vmem:[#allocation5 + $0x18] sm:$0xff] %vm9961_vm6, %v9960_v0  ;;  %v9980_v30 = vld [vmem:[#allocation5 + $0x4] sm:$0x1]  ;;  %v9981_v62 = vld [vmem:[#allocation5 + $0x5] sm:$0x1]  ;;  %v10001_v27 = vmax.f32 %v9999_v54, %v10000_v8 }
 0x8d7   : > { %v9971_v23 = vld [vmem:[#allocation5 + $0x2] sm:$0x1]  ;;  %9964 = vst.msk [vmem:[#allocation5 + $0x10] sm:$0xff] %vm9961_vm6, %v9959_v17  ;;  %v9982_v48 = vmax.f32 %v9980_v30, %v9981_v62  ;;  %v9972_v5 = vld [vmem:[#allocation5 + $0x3] sm:$0x1]  ;;  %10334 = vmatpush1.bf16.msra.mxu1 %v11765_v28  ;;  %vm10107_vm6 = vcmask 1041344  }
 0x8d8   : > { %v9973_v14 = vmax.f32 %v9971_v23, %v9972_v5  ;;  %v9989_v47 = vld [vmem:[#allocation5 + $0x6] sm:$0x1]  ;;  %v9990_v44 = vld [vmem:[#allocation5 + $0x7] sm:$0x1]  ;;  %v9966_v40 = vld [vmem:[#allocation5] sm:$0x1]  ;;  %10335 = vmatprep.subr.bf16.mxu1 %v11770_v22 }
 0x8d9   : > { %9984 = vrot.lane.b32.xlu1 %v9982_v48, %s11941_s14  ;;  %v9967_v6 = vld [vmem:[#allocation5 + $0x1] sm:$0x1]  ;;  %v9991_v3 = vmax.f32 %v9989_v47, %v9990_v44  ;;  %v10018_v32 = vld [vmem:[#allocation5 + $0xd] sm:$0x1]  ;;  %v10008_v35 = vld [vmem:[#allocation5 + $0xa] sm:$0x1] }
 0x8da   : > { %9975 = vrot.lane.b32.xlu0 %v9973_v14, %s11942_s16  ;;  %v9968_v26 = vmax.f32 %v9966_v40, %v9967_v6  ;;  %v10009_v45 = vld [vmem:[#allocation5 + $0xb] sm:$0x1]  ;;  %v10019_v21 = vmax.f32 %v10017_v29, %v10018_v32  ;;  %s11945_s14 = smov 48   ;;  %v10026_v43 = vld [vmem:[#allocation5 + $0xe] sm:$0x1]  ;;  %s11946_s16 = smov 40  }
 0x8db   : > { %v10010_v15 = vmax.f32 %v10008_v35, %v10009_v45  ;;  %v10027_v34 = vld [vmem:[#allocation5 + $0xf] sm:$0x1]  ;;  %10336 = vmatpush1.bf16.msra.mxu1 %v11768_v10  ;;  %v11774_v59 = vld [vmem:[%s16575_s5 + $0xe0] ss:$16 sps:$4 sm:$0xff]   ;;  %v11783_v45 = vld [vmem:[%s16575_s5 + $0x48] ss:$16 sps:$4 sm:$0xff]  }
 0x8dc   : > { %9970 = vst.msk [vmem:[#allocation6] sm:$0x1] %vm9969_vm7, %v9968_v26  ;;  %v10028_v37 = vmax.f32 %v10026_v43, %v10027_v34  ;;  %10337 = vmatprep.subr.bf16.mxu1 %v11773_v19  ;;  %v11779_v0 = vld [vmem:[%s16575_s5 + $0xc] ss:$16 sps:$4 sm:$0xff]   ;;  %v11777_v26 = vld [vmem:[%s16575_s5 + $0x8] ss:$16 sps:$4 sm:$0xff]   ;;  %v10305_v19 = vlaneseq }
 0x8dd   : > { %10003 = vrot.lane.b32.xlu1 %v10001_v27, %s11943_s27  ;;  %s11947_s27 = smov 64   ;;  %v10073_v55 = vld [vmem:[#allocation5 + $0x18] sm:$0x1]  ;;  %v10074_v57 = vld [vmem:[#allocation5 + $0x19] sm:$0x1]  ;;  %v11810_v22 = vld [vmem:[%s16577_s7 + $0x20] sm:$0xff]  }
 0x8de   : > { %9993 = vrot.lane.b32.xlu0 %v9991_v3, %s11944_s29  ;;  %v10036_v36 = vld [vmem:[#allocation5 + $0x10] sm:$0x1]  ;;  %v10037_v4 = vld [vmem:[#allocation5 + $0x11] sm:$0x1]  ;;  %v10054_v7 = vld [vmem:[#allocation5 + $0x14] sm:$0x1]  ;;  %v10075_v56 = vmax.f32 %v10073_v55, %v10074_v57 }
 0x8df   : > { %v10038_v20 = vmax.f32 %v10036_v36, %v10037_v4  ;;  %v10055_v38 = vld [vmem:[#allocation5 + $0x15] sm:$0x1]  ;;  %v10045_v50 = vld [vmem:[#allocation5 + $0x12] sm:$0x1]  ;;  %v10046_v60 = vld [vmem:[#allocation5 + $0x13] sm:$0x1]  ;;  %10338 = vmatpush1.bf16.msra.mxu1 %v11771_v61 }
 0x8e0   : > { %v10056_v31 = vmax.f32 %v10054_v7, %v10055_v38  ;;  %v10047_v9 = vmax.f32 %v10045_v50, %v10046_v60  ;;  %v10063_v39 = vld [vmem:[#allocation5 + $0x16] sm:$0x1]  ;;  %v10064_v2 = vld [vmem:[#allocation5 + $0x17] sm:$0x1]  ;;  %v10091_v49 = vld [vmem:[#allocation5 + $0x1c] sm:$0x1]  ;;  %10339 = vmatprep.subr.bf16.mxu1 %v11776_v12 }
 0x8e1   : > { %10021 = vrot.lane.b32.xlu1 %v10019_v21, %s11945_s14  ;;  %v10065_v1 = vmax.f32 %v10063_v39, %v10064_v2  ;;  %v10092_v13 = vld [vmem:[#allocation5 + $0x1d] sm:$0x1]  ;;  %v10082_v25 = vld [vmem:[#allocation5 + $0x1a] sm:$0x1]  ;;  %v10083_v63 = vld [vmem:[#allocation5 + $0x1b] sm:$0x1] }
 0x8e2   : > { %10012 = vrot.lane.b32.xlu0 %v10010_v15, %s11946_s16  ;;  %v10093_v53 = vmax.f32 %v10091_v49, %v10092_v13  ;;  %v10084_v58 = vmax.f32 %v10082_v25, %v10083_v63  ;;  %v10100_v51 = vld [vmem:[#allocation5 + $0x1e] sm:$0x1]  ;;  %v10101_v16 = vld [vmem:[#allocation5 + $0x1f] sm:$0x1]  ;;  %v11789_v15 = vld [vmem:[%s16575_s5 + $0x88] ss:$16 sps:$4 sm:$0xff]  }
 0x8e3   : > { %v10102_v17 = vmax.f32 %v10100_v51, %v10101_v16  ;;  %10340 = vmatpush1.bf16.msra.mxu1 %v11774_v59  ;;  %v11782_v32 = vld [vmem:[%s16575_s5 + $0x2c] ss:$16 sps:$4 sm:$0xff]   ;;  %v11792_v4 = vld [vmem:[%s16575_s5 + $0xa8] ss:$16 sps:$4 sm:$0xff]   ;;  %v11806_v50 = vld [vmem:[%s16577_s7 + $0x10] sm:$0xff]   ;;  %vm10752_vm7 = vcmask 73728  }
 0x8e4   : > { %10366 = vmatprep.subr.bf16.mxu1 %v11779_v0  ;;  %v11785_v35 = vld [vmem:[%s16575_s5 + $0x4c] ss:$16 sps:$4 sm:$0xff]   ;;  %v11795_v34 = vld [vmem:[%s16575_s5 + $0xc8] ss:$16 sps:$4 sm:$0xff]   ;;  %v11813_v57 = vld [vmem:[%s16577_s7 + $0x70] sm:$0xff]   ;;  %s323_s29 = sand.u32 1, %s11929_s10  }
 0x8e5   : > { %10040 = vrot.lane.b32.xlu1 %v10038_v20, %s11947_s27  ;;  %s11951_s27 = smov 96   ;;  %v11791_v21 = vld [vmem:[%s16575_s5 + $0x8c] ss:$16 sps:$4 sm:$0xff]   ;;  %v11798_v20 = vld [vmem:[%s16575_s5 + $0xe8] ss:$16 sps:$4 sm:$0xff]   ;;  %v11814_v39 = vld [vmem:[%s16577_s7 + $0x30] sm:$0xff]  }
 0x8e6   : > { %10030 = vrot.lane.b32.xlu0 %v10028_v37, %s11948_s28  ;;  %s11952_s28 = smov 88   ;;  %v11794_v36 = vld [vmem:[%s16575_s5 + $0xac] ss:$16 sps:$4 sm:$0xff]   ;;  %v11802_v37 = vld [vmem:[%s16577_s7] sm:$0xff]   ;;  %s11043_s14 = sshll.u32 %s12028_s13, 4 }
 0x8e7   : > { %v11797_v43 = vld [vmem:[%s16575_s5 + $0xcc] ss:$16 sps:$4 sm:$0xff]   ;;  %v10143_v13 = vld [vmem:[%s16576_s6] sm:$0xf]  ;;  %s324_s16 = scalar_lea.vmem [#allocation7], %s323_s29  ;;  %s16527_s23 = scalar_lea.hbm %s16579_s9, %s11043_s14 }
 0x8e8   : > { %v11803_v7 = vld [vmem:[%s16577_s7 + $0x48] sm:$0xff]   ;;  %v11807_v60 = vld [vmem:[%s16577_s7 + $0x58] sm:$0xff]   ;;  %s10767_s24 = scalar_lea.sflag [#allocation8], %s323_s29  ;;  %s11956_s13 = smov [#allocation7]  }
 0x8e9   : > { %10058 = vrot.lane.b32.xlu1 %v10056_v31, %s11949_s17  ;;  %s11953_s17 = smov 112   ;;  %v11804_v38 = vld [vmem:[%s16577_s7 + $0x8] sm:$0xff]   ;;  %v11808_v28 = vld [vmem:[%s16577_s7 + $0x18] sm:$0xff]   ;;  %v11809_v31 = vld [vmem:[%s16577_s7 + $0x60] sm:$0xff]  }
 0x8ea   : > { %10049 = vrot.lane.b32.xlu0 %v10047_v9, %s11950_s21  ;;  %s11954_s21 = smov 104   ;;  %v11811_v9 = vld [vmem:[%s16577_s7 + $0x68] sm:$0xff]   ;;  %v11815_v2 = vld [vmem:[%s16577_s7 + $0x78] sm:$0xff]  }
 0x8eb   : > { %v11812_v55 = vld [vmem:[%s16577_s7 + $0x28] sm:$0xff]   ;;  %v11816_v10 = vld [vmem:[%s16577_s7 + $0x38] sm:$0xff]  }
 0x8ed   : > { %10077 = vrot.lane.b32.xlu1 %v10075_v56, %s11951_s27  ;;  %s11955_s27 = smov 120   ;;  %v11817_v56 = vld [vmem:[%s16577_s7 + $0xc0] sm:$0xff]  }
 0x8ee   : > { %10067 = vrot.lane.b32.xlu0 %v10065_v1, %s11952_s28  ;;  %v10306_v1 = vshrl.u32 %v10305_v19, 7 }
 0x8f0   : > { %v10307_v49 = vsub.s32 0, %v10306_v1  ;;  %v10311_v25 = vsub.s32 1, %v10306_v1 }
 0x8f1   : > { %10095 = vrot.lane.b32.xlu1 %v10093_v53, %s11953_s17  ;;  %s10779_s17 = sshll.u32 %s324_s16, 4  ;;  %s16529_s17 = int_to_ptr.vmem [resolvable:$true] %s10779_s17 }
 0x8f2   : > { %10086 = vrot.lane.b32.xlu0 %v10084_v58, %s11954_s21  ;;  %v10308_v63 = vrot.slane %v10143_v13, %v10307_v49  ;;  %v10312_v61 = vrot.slane %v10143_v13, %v10311_v25  ;;  %s11875_s26 = scalar_lea.vmem %s16529_s17, 16 }
 0x8f3   : > { %p11876_p11 = scmp.ne.s32.totalorder %s16529_s17, %s11875_s26 }
 0x8f5   : > { %p11877_p12 = pnand %p11876_p11, %p12045_p5 }
 0x8f6   : > { %10104 = vrot.lane.b32.xlu0 %v10102_v17, %s11955_s27  ;;  %s11879_s27 = sshll.u32 %s11956_s13, 4  ;;  %s11880_s27 = int_to_ptr.vmem [resolvable:$false] %s11879_s27 }
 0x8f7   : > { %p11878_p13 = pneg %p11877_p12  ;;  %s11881_s28 = scalar_lea.vmem %s11880_s27, 32 }
 0x8f8   : > { %p11882_p0 = scmp.lt.s32.totalorder %s16529_s17, %s11880_s27  ;;  %p11883_p1 = scmp.lt.s32.totalorder %s11881_s28, %s11875_s26 }
 0x8fa   : > { %p11884_p2 = por %p11883_p1, %p11882_p0 }
 0x8fc   : > { %p11885_p3 = pnand %p11884_p2, %p11878_p13 }
 0x94b   : > { %v9985_v30 = vpop.permute.xlu1 %9984 }
 0x94c   : > { %v9976_v62 = vpop.permute.xlu0 %9975 }
 0x94d   : > { %9979 = vst.msk [vmem:[#allocation6] sm:$0x1] %vm9978_vm8, %v9976_v62  ;;  %v11818_v62 = vld [vmem:[%s16577_s7 + $0x80] sm:$0xff]  }
 0x94e   : > { %9988 = vst.msk [vmem:[#allocation6] sm:$0x1] %vm9987_vm9, %v9985_v30 }
 0x94f   : > { %v10004_v23 = vpop.permute.xlu1 %10003 }
 0x950   : > { %v9994_v48 = vpop.permute.xlu0 %9993 }
 0x951   : > { %9997 = vst.msk [vmem:[#allocation6] sm:$0x1] %vm9996_vm10, %v9994_v48  ;;  %v11819_v48 = vld [vmem:[%s16577_s7 + $0xc8] sm:$0xff]  }
 0x952   : > { %10007 = vst.msk [vmem:[#allocation6] sm:$0x1] %vm10006_vm11, %v10004_v23 }
 0x953   : > { %v10022_v5 = vpop.permute.xlu1 %10021 }
 0x954   : > { %v10013_v14 = vpop.permute.xlu0 %10012 }
 0x955   : > { %10016 = vst.msk [vmem:[#allocation6] sm:$0x1] %vm10015_vm12, %v10013_v14  ;;  %v11821_v14 = vld [vmem:[%s16577_s7 + $0xd0] sm:$0xff]  }
 0x956   : > { %10025 = vst.msk [vmem:[#allocation6] sm:$0x1] %vm10024_vm13, %v10022_v5  ;;  %v11820_v5 = vld [vmem:[%s16577_s7 + $0x88] sm:$0xff]  }
 0x957   : > { %v10041_v54 = vpop.permute.xlu1 %10040 }
 0x958   : > { %v10031_v8 = vpop.permute.xlu0 %10030 }
 0x959   : > { %10034 = vst.msk [vmem:[#allocation6] sm:$0x1] %vm10033_vm14, %v10031_v8  ;;  %v11823_v8 = vld [vmem:[%s16577_s7 + $0xd8] sm:$0xff]  }
 0x95a   : > { %10044 = vst.msk [vmem:[#allocation6] sm:$0x1] %vm10043_vm15, %v10041_v54  ;;  %v11822_v54 = vld [vmem:[%s16577_s7 + $0x90] sm:$0xff]  }
 0x95b   : > { %v10059_v47 = vpop.permute.xlu1 %10058 }
 0x95c   : > { %v10050_v44 = vpop.permute.xlu0 %10049 }
 0x95d   : > { %10053 = vst.msk [vmem:[#allocation6] sm:$0x1] %vm10052_vm0, %v10050_v44  ;;  %v11825_v44 = vld [vmem:[%s16577_s7 + $0xe0] sm:$0xff]  }
 0x95e   : > { %10062 = vst.msk [vmem:[#allocation6] sm:$0x1] %vm10061_vm1, %v10059_v47  ;;  %v11824_v47 = vld [vmem:[%s16577_s7 + $0x98] sm:$0xff]  }
 0x95f   : > { %v10078_v40 = vpop.permute.xlu1 %10077 }
 0x960   : > { %v10068_v6 = vpop.permute.xlu0 %10067 }
 0x961   : > { %10071 = vst.msk [vmem:[#allocation6] sm:$0x1] %vm10070_vm2, %v10068_v6  ;;  %v11827_v6 = vld [vmem:[%s16577_s7 + $0xe8] sm:$0xff]  }
 0x962   : > { %10081 = vst.msk [vmem:[#allocation6] sm:$0x1] %vm10080_vm3, %v10078_v40  ;;  %v11826_v40 = vld [vmem:[%s16577_s7 + $0xa0] sm:$0xff]  }
 0x963   : > { %v10096_v52 = vpop.permute.xlu1 %10095 }
 0x964   : > { %v10087_v42 = vpop.permute.xlu0 %10086 }
 0x965   : > { %10090 = vst.msk [vmem:[#allocation6] sm:$0x1] %vm10089_vm4, %v10087_v42  ;;  %v11828_v42 = vld [vmem:[%s16577_s7 + $0xa8] sm:$0xff]  }
 0x966   : > { %10099 = vst.msk [vmem:[#allocation6] sm:$0x1] %vm10098_vm5, %v10096_v52  ;;  %v10315_v52 = vsub.s32 2, %v10306_v1 }
 0x968   : > { %v10105_v27 = vpop.permute.xlu0 %10104 }
 0x969   : > { %10108 = vst.msk [vmem:[#allocation6] sm:$0x1] %vm10107_vm6, %v10105_v27  ;;  %v10319_v27 = vsub.s32 3, %v10306_v1 }
 0x970   : > { %v10109_v3 = vld [vmem:[#allocation6] sm:$0x1] }
 0x971   : > { %v10110_v29 = vpack.c.bf16 %v10109_v3, %v10109_v3  ;;  %v10316_v3 = vrot.slane %v10143_v13, %v10315_v52 }
 0x973   : > { %10358 = vmatmul.mubr.bf16.vlgmr.msra.gmra.mrb[8].mxu1 %v10110_v29 }
 0x974   : > { %10367 = vmatpush1.bf16.msra.mxu1 %v11777_v26  ;;  %10398 = vmatprep.mubr.bf16.mxu1 %v17405_v18  ;;  %v11786_v18 = vld [vmem:[%s16575_s5 + $0x68] ss:$16 sps:$4 sm:$0xff]   ;;  %v11829_v26 = vld [vmem:[%s16577_s7 + $0xf0] sm:$0xff]  }
 0x975   : > { %10368 = vmatprep.subr.bf16.mxu1 %v11782_v32  ;;  %v11830_v32 = vld [vmem:[%s16577_s7 + $0xb0] sm:$0xff]  }
 0x978   : > { %10369 = vmatpush1.bf16.msra.mxu1 %v11780_v11  ;;  %v11831_v11 = vld [vmem:[%s16577_s7 + $0xf8] sm:$0xff]  }
 0x979   : > { %10370 = vmatprep.subr.bf16.mxu1 %v11785_v35 }
 0x97c   : > { %10371 = vmatpush1.bf16.msra.mxu1 %v11783_v45 }
 0x97d   : > { %10372 = vmatprep.subr.bf16.mxu1 %v11788_v46 }
 0x980   : > { %10373 = vmatpush1.bf16.msra.mxu1 %v11786_v18 }
 0x981   : > { %10374 = vmatprep.subr.bf16.mxu1 %v11791_v21 }
 0x984   : > { %10375 = vmatpush1.bf16.msra.mxu1 %v11789_v15  ;;  %v11832_v15 = vld [vmem:[%s16577_s7 + $0xb8] sm:$0xff]  }
 0x985   : > { %10376 = vmatprep.subr.bf16.mxu1 %v11794_v36 }
 0x988   : > { %10377 = vmatpush1.bf16.msra.mxu1 %v11792_v4 }
 0x989   : > { %10378 = vmatprep.subr.bf16.mxu1 %v11797_v43 }
 0x98c   : > { %10379 = vmatpush1.bf16.msra.mxu1 %v11795_v34 }
 0x98d   : > { %10380 = vmatprep.subr.bf16.mxu1 %v11800_v24 }
 0x990   : > { %10381 = vmatpush1.bf16.msra.mxu1 %v11798_v20 }
 0x991   : > { %11172 = vmatprep.subr.bf16.mxu1 %v11801_v41 }
 0x993   : > { %10399 = vmatmul.mubr.bf16.vlgmr.msra.gmra.mrb[12].mxu1 %v10110_v29  ;;  %v10320_v29 = vrot.slane %v10143_v13, %v10319_v27 }
 0x994   : > { %11173 = vmatpush3.bf16.msra.mxu1 %v11802_v37 }
 0x995   : > { %11174 = vmatprep.subr.bf16.mxu1 %v11803_v7 }
 0x998   : > { %11175 = vmatpush3.bf16.msra.mxu1 %v11804_v38 }
 0x999   : > { %11176 = vmatprep.subr.bf16.mxu1 %v11805_v33  ;;  %v10479_v33 = vld [vmem:[%s16578_s8] sm:$0x1] }
 0x99c   : > { %11177 = vmatpush3.bf16.msra.mxu1 %v11806_v50 }
 0x99d   : > { %11178 = vmatprep.subr.bf16.mxu1 %v11807_v60 }
 0x9a0   : > { %11179 = vmatpush3.bf16.msra.mxu1 %v11808_v28 }
 0x9a1   : > { %11180 = vmatprep.subr.bf16.mxu1 %v11809_v31 }
 0x9a4   : > { %11181 = vmatpush3.bf16.msra.mxu1 %v11810_v22 }
 0x9a5   : > { %11182 = vmatprep.subr.bf16.mxu1 %v11811_v9 }
 0x9a8   : > { %11183 = vmatpush3.bf16.msra.mxu1 %v11812_v55 }
 0x9a9   : > { %11184 = vmatprep.subr.bf16.mxu1 %v11813_v57 }
 0x9ac   : > { %11185 = vmatpush3.bf16.msra.mxu1 %v11814_v39 }
 0x9ad   : > { %11186 = vmatprep.subr.bf16.mxu1 %v11815_v2 }
 0x9b0   : > { %11187 = vmatpush3.bf16.msra.mxu1 %v11816_v10 }
 0x9b1   : > { %11194 = vmatprep.subr.bf16.mxu1 %v11817_v56 }
 0xa46   : > { %v10359_v53 = vpop.f32.mrb[8].mxu1 }
 0xa47   : > { %v10360_v12 = vadd.f32 %v10359_v53, %v10308_v63  ;;  %v10361_v58 = vpop.f32.mrb[9].mxu1 }
 0xa48   : > { %v10362_v51 = vadd.f32 %v10361_v58, %v10312_v61  ;;  %v10363_v16 = vpop.f32.mrb[10].mxu1 }
 0xa49   : > { %v10407_v59 = vmax.f32 %v10360_v12, 0.0  ;;  %v10364_v0 = vpop.f32.mrb[11].mxu1 }
 0xa4a   : > { %v10408_v17 = vmax.f32 %v10362_v51, 0.0 }
 0xa4b   : > { %v10411_v23 = vpack.c.bf16 %v10407_v59, %v10407_v59 }
 0xa4c   : > { %v10412_v30 = vpack.c.bf16 %v10408_v17, %v10408_v17 }
 0xa4e   : > { %10704 = vmatprep.mubr.bf16.mxu1 %v10412_v30 }
 0xa4f   : > { %10705 = vmatmul.mubr.bf16.vlgmr.msra.gmra.mrb[16].mxu1 %v10411_v23 }
 0xa50   : > { %11195 = vmatpush3.bf16.msra.mxu1 %v11818_v62 }
 0xa51   : > { %11196 = vmatprep.subr.bf16.mxu1 %v11819_v48 }
 0xa54   : > { %11197 = vmatpush3.bf16.msra.mxu1 %v11820_v5 }
 0xa55   : > { %11198 = vmatprep.subr.bf16.mxu1 %v11821_v14 }
 0xa58   : > { %11199 = vmatpush3.bf16.msra.mxu1 %v11822_v54 }
 0xa59   : > { %11200 = vmatprep.subr.bf16.mxu1 %v11823_v8 }
 0xa5c   : > { %11201 = vmatpush3.bf16.msra.mxu1 %v11824_v47 }
 0xa5d   : > { %11202 = vmatprep.subr.bf16.mxu1 %v11825_v44 }
 0xa60   : > { %11203 = vmatpush3.bf16.msra.mxu1 %v11826_v40 }
 0xa61   : > { %11204 = vmatprep.subr.bf16.mxu1 %v11827_v6 }
 0xa64   : > { %11205 = vmatpush3.bf16.msra.mxu1 %v11828_v42 }
 0xa65   : > { %11206 = vmatprep.subr.bf16.mxu1 %v11829_v26 }
 0xa66   : > { %v10400_v35 = vpop.f32.mrb[12].mxu1 }
 0xa67   : > { %v10401_v45 = vadd.f32 %v10400_v35, %v10316_v3  ;;  %v10402_v46 = vpop.f32.mrb[13].mxu1 }
 0xa68   : > { %v10403_v18 = vadd.f32 %v10402_v46, %v10320_v29  ;;  %v10404_v21 = vpop.f32.mrb[14].mxu1  ;;  %11207 = vmatpush3.bf16.msra.mxu1 %v11830_v32 }
 0xa69   : > { %v10409_v36 = vmax.f32 %v10401_v45, 0.0  ;;  %v10405_v4 = vpop.f32.mrb[15].mxu1  ;;  %11208 = vmatprep.subr.bf16.mxu1 %v11831_v11 }
 0xa6a   : > { %v10410_v43 = vmax.f32 %v10403_v18, 0.0 }
 0xa6b   : > { %v10413_v24 = vpack.c.bf16 %v10409_v36, %v10409_v36 }
 0xa6c   : > { %v10414_v34 = vpack.c.bf16 %v10410_v43, %v10410_v43  ;;  %11209 = vmatpush3.bf16.msra.mxu1 %v11832_v15 }
 0xa6e   : > { %10744 = vmatprep.mubr.bf16.mxu1 %v10414_v34 }
 0xa6f   : > { %10745 = vmatmul.mubr.bf16.vlgmr.msra.gmra.mrb[20].mxu1 %v10413_v24 }
 0xb22   : > { %v11188_v20 = vpop.f32.mrb[16].mxu1 }
 0xb23   : > { %v11189_v41 = vpop.f32.mrb[17].mxu1 }
 0xb24   : > { %v11190_v37 = vadd.f32 %v11189_v41, %v11188_v20  ;;  %v11191_v7 = vpop.f32.mrb[18].mxu1 }
 0xb25   : > { %v11192_v38 = vpop.f32.mrb[19].mxu1 }
 0xb26   : > { %v10707_v28 = vadd.f32 %v11190_v37, %v10479_v33 }
 0xb42   : > { %v11210_v50 = vpop.f32.mrb[20].mxu1 }
 0xb43   : > { %v11211_v60 = vpop.f32.mrb[21].mxu1 }
 0xb44   : > { %v11212_v31 = vadd.f32 %v11211_v60, %v11210_v50  ;;  %v11213_v22 = vpop.f32.mrb[22].mxu1 }
 0xb45   : > { %v11214_v9 = vpop.f32.mrb[23].mxu1 }
 0xb46   : > { %v10747_v55 = vadd.f32 %v11212_v31, %v10707_v28 }
 0xb48   : > { %v10753_v57 = vsel %vm10752_vm7, %v10747_v55, -inf }
 0xb49   : > { %10754 = vmax.xlane.f32.xlu1 %v10753_v57 }
 0xbd6   : > { %v10755_v39 = vpop.xlane.xlu1 %10754 }
 0xbd7   : > { %v10756_v2 = vsub.f32 %v10747_v55, %v10755_v39 }
 0xbd9   : > { %v10757_v10 = vmul.f32 1.442695, %v10756_v2 }
 0xbdb   : > { %11833 = vpow2.f32 %v10757_v10 }
 0xbe5   : > { %v11834_v56 = vpop.eup %11833 }
 0xbe6   : > { %v10759_v19 = vsel %vm10752_vm7, %v11834_v56, 0.0 }
 0xbe7   : > { %10760 = vadd.xlane.f32.xlu0 %v10759_v19 }
 0xc74   : > { %v10761_v1 = vpop.xlane.xlu0 %10760 }
 0xc75   : > { %11835 = vlog2.f32 %v10761_v1 }
 0xc7f   : > { %v11836_v49 = vpop.eup %11835 }
 0xc80   : > { %v10763_v13 = vmul.f32 0.6931472, %v11836_v49 }
 0xc82   : > { %v10764_v25 = vsub.f32 %v10756_v2, %v10763_v13 }
 0xc84   : > { %10765 = vst.msk [vmem:[%s324_s16] sm:$0x1] %vm10752_vm7, %v10764_v25 }
 0xc85   : > { %11888 = shalt.err (!%p11885_p3)
}
 0xc86   : > { %s11889_s25 = scalar_lea.hbm %s16527_s23, 16  ;;  %s11893_s16 = scalar_lea.hbm %s16579_s9, 32 }
 0xc87   : > { %p11890_p4 = scmp.ne.s32.totalorder %s16527_s23, %s11889_s25  ;;  %p11894_p9 = scmp.lt.u32.totalorder %s16527_s23, %s16579_s9 }
 0xc88   : > { %p11895_p10 = scmp.lt.u32.totalorder %s11893_s16, %s11889_s25  ;;  %p11897_p12 = scmp.lt.u32.totalorder %s11889_s25, %s16527_s23 }
 0xc89   : > { %p11891_p7 = pnand %p11890_p4, %p12045_p5 }
 0xc8a   : > { %p11896_p11 = por %p11895_p10, %p11894_p9 }
 0xc8b   : > { %p11892_p8 = pneg %p11891_p7 }
 0xc8c   : > { %p11898_p13 = por %p11897_p12, %p11896_p11 }
 0xc8e   : > { %p11899_p0 = pnand %p11898_p13, %p11892_p8 }
 0xc90   : > { %11902 = shalt.err (!%p11899_p0)
}
 0xc91   : > { %11683 = dma.vmem_to_hbm [thread:$0]  (%p12045_p5), %s16529_s17, 16, %s16527_s23, %s10767_s24  }
 0xc92 PF: > { %p11689_p1 = scmp.ge.s32.totalorder %s11937_s12, 2  ;;  %s10791_s26 = sand.u32 1, %s11925_s30  }
 0xc93   : > { %s10792_s13 = scalar_lea.sflag [#allocation8], %s10791_s26 }
 0xc94   : > { %p11686_p2 = pnand %p11689_p1, %p12049_p6 }
 0xc96   : > { %11920 = dma.done.wait (!%p11686_p2), %s10792_s13, 16  }
 0xc97   : > { %11922 = vsyncadd (!%p11686_p2), %s10792_s13, 4294967280  ;;  %p19_p3 = scmp.ge.s32.totalorder %s12032_s15, 4   ;;  %s17411_s30 = smov %s11929_s10 }
 0xc98   : > { %s17412_s10 = smov %s11933_s11  ;;  %s17413_s11 = smov %s12043_s18 }
 0xc99   : > { %s17414_s12 = smov %s12032_s15  ;;  %21 = sbr.rel (!%p19_p3) target bundleno = 3 (0x3), region = 102 }
 0xca0   :  { %10796 = vsyncpa [#allocation8], 1 }
 0xca1   :  { %10798 = vsyncpa [#allocation8 + $0x1], 1 }

</bundles_post_ra>
